<compile_context>
chip_gen: v5e
topology: v5e:2x2
jax: 0.10.0
libtpu: 0.0.40
codegen_flags: <defaults>
</compile_context>

<pallas_src>
import jax
import jax.numpy as jnp
from jax.experimental import pallas as pl
from jax.experimental.pallas import tpu as pltpu


# ----------------------------------------------------------------------------
# Conv kernel: KH deep-K matmuls over a width-im2col'd, pre-activated input,
# fused residual epilogue, fused per-channel sum / sum-of-squares outputs.
# One grid step = (sample, output-row tile).
# ----------------------------------------------------------------------------
def _make_conv_kernel(KH, stride, Ho, Wo, Tr, KWC, Cout, res_mode):
    TM = Tr * Wo  # output pixels handled per grid step

    def kernel(*refs):
        it = iter(refs)
        xw_ref = next(it)                                     # (1, s, Hq, Wo, KWC) bf16
        w_ref = next(it)                                      # (KH, KWC, Cout)     bf16
        res_ref = next(it) if res_mode is not None else None  # (1, TM, Cres)       bf16
        rw_ref = next(it) if res_mode == "proj" else None     # (Cres, Cout)        bf16
        o_ref = next(it)                                      # (1, TM, Cout)       bf16
        s1_ref = next(it)                                     # (1, 1, Cout)        f32
        s2_ref = next(it)                                     # (1, 1, Cout)        f32

        r = pl.program_id(1)
        row0 = r * Tr

        # KH deep-K matmuls (K = KW*Cin); no per-tap elementwise work remains.
        acc = jnp.zeros((TM, Cout), jnp.float32)
        for di in range(KH):
            ph, oi = di % stride, di // stride
            win = xw_ref[0, ph, pl.ds(row0 + oi, Tr), :, :]   # (Tr, Wo, KWC)
            acc = acc + jnp.dot(win.reshape(TM, KWC), w_ref[di],
                                preferred_element_type=jnp.float32)

        if res_mode == "proj":      # fused 1x1 shortcut conv on the raw block input
            acc = acc + jnp.dot(res_ref[0], rw_ref[...],
                                preferred_element_type=jnp.float32)
        elif res_mode == "add":     # identity shortcut
            acc = acc + res_ref[0].astype(jnp.float32)

        o_ref[0] = acc.astype(o_ref.dtype)

        # BatchNorm statistics of this conv's output, accumulated across row tiles
        # (consumed by the next layer's BN fold -- no HBM re-read of the activation).
        @pl.when(r == 0)
        def _():
            s1_ref[...] = jnp.zeros_like(s1_ref)
            s2_ref[...] = jnp.zeros_like(s2_ref)

        s1_ref[0] += jnp.sum(acc, axis=0, keepdims=True)
        s2_ref[0] += jnp.sum(acc * acc, axis=0, keepdims=True)

    return kernel


def fused_conv(x, w, *, stride=1, padding=1, bn=None,
               residual=None, residual_w=None):
    """x: (N,H,W,Cin); w: (KH,KW,Cin,Cout).

    Computes conv(relu(bn(x))) (conv(x) if bn is None) with zero padding, plus an
    optional fused residual epilogue.  Returns
      (out (N,Ho*Wo,Cout) bf16, sum (N,1,Cout) f32, sumsq (N,1,Cout) f32)
    where sum/sumsq are per-channel statistics of `out` (post-residual).

    The BN+ReLU+pad+width-im2col producer runs as one XLA fusion in the wrapper;
    the Pallas kernel then only does KH deep-K matmuls + epilogue.
    """
    N, H, W, Cin = x.shape
    KH, KW, _, Cout = w.shape
    s = stride
    Hp, Wp = H + 2 * padding, W + 2 * padding
    assert Hp % s == 0, "padded height must divide the stride"
    Hq = Hp // s
    Ho = (Hp - KH) // s + 1
    Wo = (Wp - KW) // s + 1
    Mo, KWC = Ho * Wo, KW * Cin

    # --- producer (single XLA fusion, ~3x padded-activation bytes, bf16) -------
    act = x.astype(jnp.float32)
    if bn is not None:
        scale, bias = bn
        act = jnp.maximum(act * scale.reshape(1, 1, 1, Cin)
                          + bias.reshape(1, 1, 1, Cin), 0.0)
    act = act.astype(jnp.bfloat16)
    xp = jnp.pad(act, ((0, 0), (padding, padding), (padding, padding), (0, 0)))
    # width-direction im2col: K axis ordered (dj, ci) -> matches w[di].reshape(KW*Cin, Cout)
    xw = jnp.concatenate(
        [xp[:, :, dj:dj + s * (Wo - 1) + 1:s, :] for dj in range(KW)], axis=-1)
    # row-phase split so stride-s row taps become contiguous row windows
    xw = (xw.reshape(N, Hq, s, Wo, KWC)
            .transpose(0, 2, 1, 3, 4))                        # (N, s, Hq, Wo, KWC)
    wt = w.astype(jnp.bfloat16).reshape(KH, KWC, Cout)

    # --- row-tile the output: several pipelined grid steps per core, and the
    # --- f32 accumulator (<= 32 vregs) fits the register file -----------------
    RT = 1
    for cand in (4, 2):
        if Ho % cand == 0 and (Ho // cand) * Wo >= 128:
            RT = cand
            break
    Tr = Ho // RT
    TM = Tr * Wo

    res_mode = None
    if residual is not None:
        res_mode = "proj" if residual_w is not None else "add"
        residual = residual.astype(jnp.bfloat16)

    args = [xw, wt]
    in_specs = [
        pl.BlockSpec((1, s, Hq, Wo, KWC), lambda n, r: (n, 0, 0, 0, 0)),
        pl.BlockSpec((KH, KWC, Cout), lambda n, r: (0, 0, 0)),
    ]
    if res_mode is not None:
        Cres = residual.shape[-1]
        args.append(residual)
        in_specs.append(pl.BlockSpec((1, TM, Cres), lambda n, r: (n, r, 0)))
    if res_mode == "proj":
        Crw = residual_w.shape[0]
        args.append(residual_w.astype(jnp.bfloat16))
        in_specs.append(pl.BlockSpec((Crw, Cout), lambda n, r: (0, 0)))

    kernel = _make_conv_kernel(KH, s, Ho, Wo, Tr, KWC, Cout, res_mode)
    out_shape = (
        jax.ShapeDtypeStruct((N, Mo, Cout), jnp.bfloat16),    # activation (bf16 inter-layer)
        jax.ShapeDtypeStruct((N, 1, Cout), jnp.float32),      # per-channel sum
        jax.ShapeDtypeStruct((N, 1, Cout), jnp.float32),      # per-channel sum of squares
    )
    out_specs = (
        pl.BlockSpec((1, TM, Cout), lambda n, r: (n, r, 0)),
        pl.BlockSpec((1, 1, Cout), lambda n, r: (n, 0, 0)),
        pl.BlockSpec((1, 1, Cout), lambda n, r: (n, 0, 0)),
    )
    return pl.pallas_call(
        kernel,
        out_shape=out_shape,
        grid=(N, RT),
        in_specs=in_specs,
        out_specs=out_specs,
        compiler_params=pltpu.CompilerParams(
            dimension_semantics=("parallel", "arbitrary")),
    )(*args)


# ----------------------------------------------------------------------------
# Fused head: relu(bn(out)) -> global 8x8 avg-pool -> linear, single kernel.
# ----------------------------------------------------------------------------
def _head_kernel(x_ref, s_ref, b_ref, w_ref, lb_ref, o_ref):
    x = jnp.maximum(x_ref[...].astype(jnp.float32) * s_ref[...] + b_ref[...], 0.0)
    pooled = jnp.mean(x, axis=1)                              # (N, C)
    o_ref[...] = (jnp.dot(pooled, w_ref[...],
                          preferred_element_type=jnp.float32) + lb_ref[...])


def head(x3d, scale, bias, lin_w, lin_b):
    N, HW, C = x3d.shape
    ncls = lin_w.shape[-1]
    return pl.pallas_call(
        _head_kernel,
        out_shape=jax.ShapeDtypeStruct((N, ncls), jnp.float32),
    )(x3d, scale.reshape(1, 1, C).astype(jnp.float32),
      bias.reshape(1, 1, C).astype(jnp.float32),
      lin_w.astype(jnp.float32), lin_b.reshape(1, ncls).astype(jnp.float32))


# ----------------------------------------------------------------------------
# Plain-JAX glue: BN fold from kernel-emitted stats, block wiring, init.
# ----------------------------------------------------------------------------
def fold_bn_from_stats(s1, s2, gamma, beta, count, eps=1e-5):
    """Training-mode BatchNorm2d (batch stats, biased var) folded to scale/bias,
    computed from the per-channel sum / sum-of-squares emitted by the conv kernel
    that produced the activation (no HBM re-read of the activation)."""
    total = jnp.sum(s1, axis=(0, 1))                          # (C,)
    total_sq = jnp.sum(s2, axis=(0, 1))
    mean = total / count
    var = jnp.maximum(total_sq / count - mean * mean, 0.0)
    scale = gamma / jnp.sqrt(var + eps)
    return scale, beta - mean * scale


def wide_basic_forward(x, x_stats, p):
    """conv2(relu(bn2(conv1(relu(bn1(x)))))) + shortcut(x) in two pallas_calls."""
    N, H, W, Cin = x.shape
    s = p["stride"]
    planes = p["conv1_w"].shape[-1]

    sc1, b1 = fold_bn_from_stats(*x_stats, p["bn1_g"], p["bn1_b"], N * H * W)
    out1, o1_s1, o1_s2 = fused_conv(x, p["conv1_w"], stride=s, padding=1,
                                    bn=(sc1, b1))
    Ho, Wo = (H + 2 - 3) // s + 1, (W + 2 - 3) // s + 1

    sc2, b2 = fold_bn_from_stats(o1_s1, o1_s2, p["bn2_g"], p["bn2_b"], N * Ho * Wo)
    if "shortcut_w" in p:                                     # 1x1 stride-s projection
        res = x[:, ::s, ::s, :].reshape(N, Ho * Wo, Cin)
        res_w = p["shortcut_w"].reshape(Cin, planes)
    else:                                                     # identity shortcut
        res = x.reshape(N, Ho * Wo, planes)
        res_w = None
    out2, s1, s2 = fused_conv(out1.reshape(N, Ho, Wo, planes), p["conv2_w"],
                              stride=1, padding=1, bn=(sc2, b2),
                              residual=res, residual_w=res_w)
    return out2.reshape(N, Ho, Wo, planes), (s1, s2)


def wide_resnet_forward(x_nchw, params):
    x = jnp.transpose(x_nchw, (0, 2, 3, 1)).astype(jnp.float32)   # NCHW -> NHWC
    N, H, W, _ = x.shape
    out, s1, s2 = fused_conv(x, params["conv1_w"], stride=1, padding=1)   # stem
    out = out.reshape(N, H, W, -1)
    stats = (s1, s2)
    for bp in params["blocks"]:
        out, stats = wide_basic_forward(out, stats, bp)
    N, Ho, Wo, C = out.shape
    assert Ho == 8 and Wo == 8, "reference arch pools 8x8 -> 1x1"
    scale, bias = fold_bn_from_stats(*stats, params["bn_final_g"],
                                     params["bn_final_b"], N * Ho * Wo)
    return head(out.reshape(N, Ho * Wo, C), scale, bias,
                params["linear_w"], params["linear_b"])


def init_params(depth, widen_factor, num_classes, key):
    assert (depth - 4) % 6 == 0, "Wide-resnet depth should be 6n+4"
    n = (depth - 4) // 6
    k = widen_factor
    stages = [16, 16 * k, 32 * k, 64 * k]
    keys = iter(jax.random.split(key, 128))

    def conv_w(kh, kw, cin, cout):
        fan_in = kh * kw * cin
        w = jax.random.normal(next(keys), (kh, kw, cin, cout), jnp.float32)
        return (w * (2.0 / fan_in) ** 0.5).astype(jnp.bfloat16)   # bf16 MXU operands

    params = {"conv1_w": conv_w(3, 3, 3, stages[0])}
    blocks = []
    in_planes = stages[0]
    for planes, stride0 in zip(stages[1:], (1, 2, 2)):
        for s in [stride0] + [1] * (n - 1):
            bp = {
                "stride": s,
                "bn1_g": 1.0 + 0.1 * jax.random.normal(next(keys), (in_planes,), jnp.float32),
                "bn1_b": 0.1 * jax.random.normal(next(keys), (in_planes,), jnp.float32),
                "conv1_w": conv_w(3, 3, in_planes, planes),
                "bn2_g": 1.0 + 0.1 * jax.random.normal(next(keys), (planes,), jnp.float32),
                "bn2_b": 0.1 * jax.random.normal(next(keys), (planes,), jnp.float32),
                "conv2_w": conv_w(3, 3, planes, planes),
            }
            if s != 1 or in_planes != planes:
                bp["shortcut_w"] = conv_w(1, 1, in_planes, planes)
            blocks.append(bp)
            in_planes = planes
    params["blocks"] = blocks
    params["bn_final_g"] = 1.0 + 0.1 * jax.random.normal(next(keys), (stages[3],), jnp.float32)
    params["bn_final_b"] = 0.1 * jax.random.normal(next(keys), (stages[3],), jnp.float32)
    params["linear_w"] = jax.random.normal(
        next(keys), (stages[3], num_classes), jnp.float32) * (1.0 / stages[3]) ** 0.5
    params["linear_b"] = 0.01 * jax.random.normal(next(keys), (num_classes,), jnp.float32)
    return params


if __name__ == "__main__":
    key = jax.random.PRNGKey(0)
    k_param, k_x = jax.random.split(key)
    # Wide-ResNet 10x2, CIFAR-style 32x32 input so the 8-wide avg-pool reduces
    # an 8x8 map to 1x1 exactly as in the reference forward().
    params = init_params(depth=10, widen_factor=2, num_classes=10, key=k_param)
    x = jax.random.normal(k_x, (2, 3, 32, 32), jnp.float32)       # NCHW like PyTorch

    fwd = jax.jit(lambda inp: wide_resnet_forward(inp, params))
    logits = fwd(x)
    jax.block_until_ready(logits)
    assert logits.shape == (2, 10) and logits.dtype == jnp.float32
    print("KERNEL_OK")
</pallas_src>

<mosaic_0001>
module attributes {stable_mosaic.version = 11 : i64} {
  func.func @kernel(%arg0: i32, %arg1: i32, %arg2: memref<1x1x34x32x9xbf16, #tpu.memory_space<vmem>>, %arg3: memref<3x9x16xbf16, #tpu.memory_space<vmem>>, %arg4: memref<1x256x16xbf16, #tpu.memory_space<vmem>>, %arg5: memref<1x1x16xf32, #tpu.memory_space<vmem>>, %arg6: memref<1x1x16xf32, #tpu.memory_space<vmem>>) attributes {dimension_semantics = [#tpu.dimension_semantics<parallel>, #tpu.dimension_semantics<arbitrary>], iteration_bounds = array<i64: 2, 4>, scalar_prefetch = 0 : i64, scratch_operands = 0 : i64, tpu.core_type = #tpu.core_type<tc>, window_params = [{transform_indices = @transform_0, window_bounds = array<i64: 1, 1, 34, 32, 9>}, {pipeline_mode = #tpu.pipeline_mode<synchronous>, transform_indices = @transform_1, window_bounds = array<i64: 3, 9, 16>}, {transform_indices = @transform_2, window_bounds = array<i64: 1, 256, 16>}, {transform_indices = @transform_3, window_bounds = array<i64: 1, 1, 16>}, {transform_indices = @transform_4, window_bounds = array<i64: 1, 1, 16>}]} {
    %c8_i32 = arith.constant 8 : i32
    %0 = arith.muli %arg1, %c8_i32 : i32
    %cst = arith.constant 0.000000e+00 : f32
    %1 = vector.broadcast %cst : f32 to vector<256x16xf32>
    %c0_i32 = arith.constant 0 : i32
    %2 = arith.addi %0, %c0_i32 : i32
    %c0 = arith.constant 0 : index
    %c0_0 = arith.constant 0 : index
    %3 = arith.index_cast %2 : i32 to index
    %c0_1 = arith.constant 0 : index
    %c0_2 = arith.constant 0 : index
    %4 = vector.load %arg2[%c0, %c0_0, %3, %c0_1, %c0_2] : memref<1x1x34x32x9xbf16, #tpu.memory_space<vmem>>, vector<1x1x8x32x9xbf16>
    %5 = vector.shape_cast %4 : vector<1x1x8x32x9xbf16> to vector<8x32x9xbf16>
    %6 = vector.shape_cast %5 : vector<8x32x9xbf16> to vector<256x9xbf16>
    %c0_3 = arith.constant 0 : index
    %c0_4 = arith.constant 0 : index
    %c0_5 = arith.constant 0 : index
    %7 = vector.load %arg3[%c0_3, %c0_4, %c0_5] : memref<3x9x16xbf16, #tpu.memory_space<vmem>>, vector<1x9x16xbf16>
    %8 = vector.shape_cast %7 : vector<1x9x16xbf16> to vector<9x16xbf16>
    %cst_6 = arith.constant dense<0.000000e+00> : vector<256x16xf32>
    %9 = tpu.matmul %6, %8, %cst_6 {dimension_numbers = #tpu.dot_dimension_numbers<[1], [0], [0], [1], [0, 0, 1, 1], [], []>} : vector<256x9xbf16>, vector<9x16xbf16>, vector<256x16xf32> -> vector<256x16xf32>
    %10 = arith.addf %1, %9 : vector<256x16xf32>
    %c1_i32 = arith.constant 1 : i32
    %11 = arith.addi %0, %c1_i32 : i32
    %c0_7 = arith.constant 0 : index
    %c0_8 = arith.constant 0 : index
    %12 = arith.index_cast %11 : i32 to index
    %c0_9 = arith.constant 0 : index
    %c0_10 = arith.constant 0 : index
    %13 = vector.load %arg2[%c0_7, %c0_8, %12, %c0_9, %c0_10] : memref<1x1x34x32x9xbf16, #tpu.memory_space<vmem>>, vector<1x1x8x32x9xbf16>
    %14 = vector.shape_cast %13 : vector<1x1x8x32x9xbf16> to vector<8x32x9xbf16>
    %15 = vector.shape_cast %14 : vector<8x32x9xbf16> to vector<256x9xbf16>
    %c1 = arith.constant 1 : index
    %c0_11 = arith.constant 0 : index
    %c0_12 = arith.constant 0 : index
    %16 = vector.load %arg3[%c1, %c0_11, %c0_12] : memref<3x9x16xbf16, #tpu.memory_space<vmem>>, vector<1x9x16xbf16>
    %17 = vector.shape_cast %16 : vector<1x9x16xbf16> to vector<9x16xbf16>
    %cst_13 = arith.constant dense<0.000000e+00> : vector<256x16xf32>
    %18 = tpu.matmul %15, %17, %cst_13 {dimension_numbers = #tpu.dot_dimension_numbers<[1], [0], [0], [1], [0, 0, 1, 1], [], []>} : vector<256x9xbf16>, vector<9x16xbf16>, vector<256x16xf32> -> vector<256x16xf32>
    %19 = arith.addf %10, %18 : vector<256x16xf32>
    %c2_i32 = arith.constant 2 : i32
    %20 = arith.addi %0, %c2_i32 : i32
    %c0_14 = arith.constant 0 : index
    %c0_15 = arith.constant 0 : index
    %21 = arith.index_cast %20 : i32 to index
    %c0_16 = arith.constant 0 : index
    %c0_17 = arith.constant 0 : index
    %22 = vector.load %arg2[%c0_14, %c0_15, %21, %c0_16, %c0_17] : memref<1x1x34x32x9xbf16, #tpu.memory_space<vmem>>, vector<1x1x8x32x9xbf16>
    %23 = vector.shape_cast %22 : vector<1x1x8x32x9xbf16> to vector<8x32x9xbf16>
    %24 = vector.shape_cast %23 : vector<8x32x9xbf16> to vector<256x9xbf16>
    %c2 = arith.constant 2 : index
    %c0_18 = arith.constant 0 : index
    %c0_19 = arith.constant 0 : index
    %25 = vector.load %arg3[%c2, %c0_18, %c0_19] : memref<3x9x16xbf16, #tpu.memory_space<vmem>>, vector<1x9x16xbf16>
    %26 = vector.shape_cast %25 : vector<1x9x16xbf16> to vector<9x16xbf16>
    %cst_20 = arith.constant dense<0.000000e+00> : vector<256x16xf32>
    %27 = tpu.matmul %24, %26, %cst_20 {dimension_numbers = #tpu.dot_dimension_numbers<[1], [0], [0], [1], [0, 0, 1, 1], [], []>} : vector<256x9xbf16>, vector<9x16xbf16>, vector<256x16xf32> -> vector<256x16xf32>
    %28 = arith.addf %19, %27 : vector<256x16xf32>
    %29 = arith.truncf %28 : vector<256x16xf32> to vector<256x16xbf16>
    %c0_21 = arith.constant 0 : index
    %c0_22 = arith.constant 0 : index
    %c0_23 = arith.constant 0 : index
    %30 = vector.load %arg4[%c0_21, %c0_22, %c0_23] : memref<1x256x16xbf16, #tpu.memory_space<vmem>>, vector<1x256x16xbf16>
    %31 = vector.shape_cast %30 : vector<1x256x16xbf16> to vector<256x16xbf16>
    %32 = vector.shape_cast %29 : vector<256x16xbf16> to vector<1x256x16xbf16>
    tpu.vector_store %arg4[%c0_21, %c0_22, %c0_23], %32 {strides = array<i32>} : memref<1x256x16xbf16, #tpu.memory_space<vmem>>, vector<1x256x16xbf16>,
    %c0_i32_24 = arith.constant 0 : i32
    %33 = arith.cmpi eq, %arg1, %c0_i32_24 : i32
    %34 = arith.extui %33 : i1 to i32
    %c0_i32_25 = arith.constant 0 : i32
    %35 = arith.cmpi ne, %34, %c0_i32_25 : i32
    scf.if %35 {
      %cst_40 = arith.constant 0.000000e+00 : f32
      %53 = vector.broadcast %cst_40 : f32 to vector<1x1x16xf32>
      %c0_41 = arith.constant 0 : index
      %c0_42 = arith.constant 0 : index
      %c0_43 = arith.constant 0 : index
      %54 = vector.load %arg5[%c0_41, %c0_42, %c0_43] : memref<1x1x16xf32, #tpu.memory_space<vmem>>, vector<1x1x16xf32>
      tpu.vector_store %arg5[%c0_41, %c0_42, %c0_43], %53 {strides = array<i32>} : memref<1x1x16xf32, #tpu.memory_space<vmem>>, vector<1x1x16xf32>,
      %cst_44 = arith.constant 0.000000e+00 : f32
      %55 = vector.broadcast %cst_44 : f32 to vector<1x1x16xf32>
      %c0_45 = arith.constant 0 : index
      %c0_46 = arith.constant 0 : index
      %c0_47 = arith.constant 0 : index
      %56 = vector.load %arg6[%c0_45, %c0_46, %c0_47] : memref<1x1x16xf32, #tpu.memory_space<vmem>>, vector<1x1x16xf32>
      tpu.vector_store %arg6[%c0_45, %c0_46, %c0_47], %55 {strides = array<i32>} : memref<1x1x16xf32, #tpu.memory_space<vmem>>, vector<1x1x16xf32>,
    } else {
    }
    %c0_26 = arith.constant 0 : index
    %c0_27 = arith.constant 0 : index
    %c0_28 = arith.constant 0 : index
    %36 = vector.load %arg5[%c0_26, %c0_27, %c0_28] : memref<1x1x16xf32, #tpu.memory_space<vmem>>, vector<1x1x16xf32>
    %37 = vector.shape_cast %36 : vector<1x1x16xf32> to vector<1x16xf32>
    %cst_29 = arith.constant dense<0.000000e+00> : vector<16xf32>
    %38 = vector.multi_reduction <add>, %28, %cst_29 [0] : vector<256x16xf32> to vector<16xf32>
    %39 = vector.shape_cast %38 : vector<16xf32> to vector<1x16xf32>
    %40 = arith.addf %37, %39 : vector<1x16xf32>
    %c0_30 = arith.constant 0 : index
    %c0_31 = arith.constant 0 : index
    %c0_32 = arith.constant 0 : index
    %41 = vector.load %arg5[%c0_30, %c0_31, %c0_32] : memref<1x1x16xf32, #tpu.memory_space<vmem>>, vector<1x1x16xf32>
    %42 = vector.shape_cast %41 : vector<1x1x16xf32> to vector<1x16xf32>
    %43 = vector.shape_cast %40 : vector<1x16xf32> to vector<1x1x16xf32>
    tpu.vector_store %arg5[%c0_30, %c0_31, %c0_32], %43 {strides = array<i32>} : memref<1x1x16xf32, #tpu.memory_space<vmem>>, vector<1x1x16xf32>,
    %c0_33 = arith.constant 0 : index
    %c0_34 = arith.constant 0 : index
    %c0_35 = arith.constant 0 : index
    %44 = vector.load %arg6[%c0_33, %c0_34, %c0_35] : memref<1x1x16xf32, #tpu.memory_space<vmem>>, vector<1x1x16xf32>
    %45 = vector.shape_cast %44 : vector<1x1x16xf32> to vector<1x16xf32>
    %46 = arith.mulf %28, %28 : vector<256x16xf32>
    %cst_36 = arith.constant dense<0.000000e+00> : vector<16xf32>
    %47 = vector.multi_reduction <add>, %46, %cst_36 [0] : vector<256x16xf32> to vector<16xf32>
    %48 = vector.shape_cast %47 : vector<16xf32> to vector<1x16xf32>
    %49 = arith.addf %45, %48 : vector<1x16xf32>
    %c0_37 = arith.constant 0 : index
    %c0_38 = arith.constant 0 : index
    %c0_39 = arith.constant 0 : index
    %50 = vector.load %arg6[%c0_37, %c0_38, %c0_39] : memref<1x1x16xf32, #tpu.memory_space<vmem>>, vector<1x1x16xf32>
    %51 = vector.shape_cast %50 : vector<1x1x16xf32> to vector<1x16xf32>
    %52 = vector.shape_cast %49 : vector<1x16xf32> to vector<1x1x16xf32>
    tpu.vector_store %arg6[%c0_37, %c0_38, %c0_39], %52 {strides = array<i32>} : memref<1x1x16xf32, #tpu.memory_space<vmem>>, vector<1x1x16xf32>,
    return
  }
  func.func @transform_0(%arg0: i32, %arg1: i32) -> (i32, i32, i32, i32, i32) {
    %c0_i32 = arith.constant 0 : i32
    %c0_i32_0 = arith.constant 0 : i32
    %c0_i32_1 = arith.constant 0 : i32
    %c0_i32_2 = arith.constant 0 : i32
    %c0_i32_3 = arith.constant 0 : i32
    return %arg0, %c0_i32, %c0_i32_0, %c0_i32_1, %c0_i32_2 : i32, i32, i32, i32, i32
  }
  func.func @transform_1(%arg0: i32, %arg1: i32) -> (i32, i32, i32) {
    %c0_i32 = arith.constant 0 : i32
    %c0_i32_0 = arith.constant 0 : i32
    %c0_i32_1 = arith.constant 0 : i32
    %c0_i32_2 = arith.constant 0 : i32
    return %c0_i32, %c0_i32_0, %c0_i32_1 : i32, i32, i32
  }
  func.func @transform_2(%arg0: i32, %arg1: i32) -> (i32, i32, i32) {
    %c0_i32 = arith.constant 0 : i32
    %c0_i32_0 = arith.constant 0 : i32
    return %arg0, %arg1, %c0_i32 : i32, i32, i32
  }
  func.func @transform_3(%arg0: i32, %arg1: i32) -> (i32, i32, i32) {
    %c0_i32 = arith.constant 0 : i32
    %c0_i32_0 = arith.constant 0 : i32
    %c0_i32_1 = arith.constant 0 : i32
    return %arg0, %c0_i32, %c0_i32_0 : i32, i32, i32
  }
  func.func @transform_4(%arg0: i32, %arg1: i32) -> (i32, i32, i32) {
    %c0_i32 = arith.constant 0 : i32
    %c0_i32_0 = arith.constant 0 : i32
    %c0_i32_1 = arith.constant 0 : i32
    return %arg0, %c0_i32, %c0_i32_0 : i32, i32, i32
  }
}

module attributes {stable_mosaic.version = 11 : i64} {
  func.func @kernel(%arg0: i32, %arg1: i32, %arg2: memref<1x1x34x32x48xbf16, #tpu.memory_space<vmem>>, %arg3: memref<3x48x32xbf16, #tpu.memory_space<vmem>>, %arg4: memref<1x256x32xbf16, #tpu.memory_space<vmem>>, %arg5: memref<1x1x32xf32, #tpu.memory_space<vmem>>, %arg6: memref<1x1x32xf32, #tpu.memory_space<vmem>>) attributes {dimension_semantics = [#tpu.dimension_semantics<parallel>, #tpu.dimension_semantics<arbitrary>], iteration_bounds = array<i64: 2, 4>, scalar_prefetch = 0 : i64, scratch_operands = 0 : i64, tpu.core_type = #tpu.core_type<tc>, window_params = [{transform_indices = @transform_0, window_bounds = array<i64: 1, 1, 34, 32, 48>}, {pipeline_mode = #tpu.pipeline_mode<synchronous>, transform_indices = @transform_1, window_bounds = array<i64: 3, 48, 32>}, {transform_indices = @transform_2, window_bounds = array<i64: 1, 256, 32>}, {transform_indices = @transform_3, window_bounds = array<i64: 1, 1, 32>}, {transform_indices = @transform_4, window_bounds = array<i64: 1, 1, 32>}]} {
    %c8_i32 = arith.constant 8 : i32
    %0 = arith.muli %arg1, %c8_i32 : i32
    %cst = arith.constant 0.000000e+00 : f32
    %1 = vector.broadcast %cst : f32 to vector<256x32xf32>
    %c0_i32 = arith.constant 0 : i32
    %2 = arith.addi %0, %c0_i32 : i32
    %c0 = arith.constant 0 : index
    %c0_0 = arith.constant 0 : index
    %3 = arith.index_cast %2 : i32 to index
    %c0_1 = arith.constant 0 : index
    %c0_2 = arith.constant 0 : index
    %4 = vector.load %arg2[%c0, %c0_0, %3, %c0_1, %c0_2] : memref<1x1x34x32x48xbf16, #tpu.memory_space<vmem>>, vector<1x1x8x32x48xbf16>
    %5 = vector.shape_cast %4 : vector<1x1x8x32x48xbf16> to vector<8x32x48xbf16>
    %6 = vector.shape_cast %5 : vector<8x32x48xbf16> to vector<256x48xbf16>
    %c0_3 = arith.constant 0 : index
    %c0_4 = arith.constant 0 : index
    %c0_5 = arith.constant 0 : index
    %7 = vector.load %arg3[%c0_3, %c0_4, %c0_5] : memref<3x48x32xbf16, #tpu.memory_space<vmem>>, vector<1x48x32xbf16>
    %8 = vector.shape_cast %7 : vector<1x48x32xbf16> to vector<48x32xbf16>
    %cst_6 = arith.constant dense<0.000000e+00> : vector<256x32xf32>
    %9 = tpu.matmul %6, %8, %cst_6 {dimension_numbers = #tpu.dot_dimension_numbers<[1], [0], [0], [1], [0, 0, 1, 1], [], []>} : vector<256x48xbf16>, vector<48x32xbf16>, vector<256x32xf32> -> vector<256x32xf32>
    %10 = arith.addf %1, %9 : vector<256x32xf32>
    %c1_i32 = arith.constant 1 : i32
    %11 = arith.addi %0, %c1_i32 : i32
    %c0_7 = arith.constant 0 : index
    %c0_8 = arith.constant 0 : index
    %12 = arith.index_cast %11 : i32 to index
    %c0_9 = arith.constant 0 : index
    %c0_10 = arith.constant 0 : index
    %13 = vector.load %arg2[%c0_7, %c0_8, %12, %c0_9, %c0_10] : memref<1x1x34x32x48xbf16, #tpu.memory_space<vmem>>, vector<1x1x8x32x48xbf16>
    %14 = vector.shape_cast %13 : vector<1x1x8x32x48xbf16> to vector<8x32x48xbf16>
    %15 = vector.shape_cast %14 : vector<8x32x48xbf16> to vector<256x48xbf16>
    %c1 = arith.constant 1 : index
    %c0_11 = arith.constant 0 : index
    %c0_12 = arith.constant 0 : index
    %16 = vector.load %arg3[%c1, %c0_11, %c0_12] : memref<3x48x32xbf16, #tpu.memory_space<vmem>>, vector<1x48x32xbf16>
    %17 = vector.shape_cast %16 : vector<1x48x32xbf16> to vector<48x32xbf16>
    %cst_13 = arith.constant dense<0.000000e+00> : vector<256x32xf32>
    %18 = tpu.matmul %15, %17, %cst_13 {dimension_numbers = #tpu.dot_dimension_numbers<[1], [0], [0], [1], [0, 0, 1, 1], [], []>} : vector<256x48xbf16>, vector<48x32xbf16>, vector<256x32xf32> -> vector<256x32xf32>
    %19 = arith.addf %10, %18 : vector<256x32xf32>
    %c2_i32 = arith.constant 2 : i32
    %20 = arith.addi %0, %c2_i32 : i32
    %c0_14 = arith.constant 0 : index
    %c0_15 = arith.constant 0 : index
    %21 = arith.index_cast %20 : i32 to index
    %c0_16 = arith.constant 0 : index
    %c0_17 = arith.constant 0 : index
    %22 = vector.load %arg2[%c0_14, %c0_15, %21, %c0_16, %c0_17] : memref<1x1x34x32x48xbf16, #tpu.memory_space<vmem>>, vector<1x1x8x32x48xbf16>
    %23 = vector.shape_cast %22 : vector<1x1x8x32x48xbf16> to vector<8x32x48xbf16>
    %24 = vector.shape_cast %23 : vector<8x32x48xbf16> to vector<256x48xbf16>
    %c2 = arith.constant 2 : index
    %c0_18 = arith.constant 0 : index
    %c0_19 = arith.constant 0 : index
    %25 = vector.load %arg3[%c2, %c0_18, %c0_19] : memref<3x48x32xbf16, #tpu.memory_space<vmem>>, vector<1x48x32xbf16>
    %26 = vector.shape_cast %25 : vector<1x48x32xbf16> to vector<48x32xbf16>
    %cst_20 = arith.constant dense<0.000000e+00> : vector<256x32xf32>
    %27 = tpu.matmul %24, %26, %cst_20 {dimension_numbers = #tpu.dot_dimension_numbers<[1], [0], [0], [1], [0, 0, 1, 1], [], []>} : vector<256x48xbf16>, vector<48x32xbf16>, vector<256x32xf32> -> vector<256x32xf32>
    %28 = arith.addf %19, %27 : vector<256x32xf32>
    %29 = arith.truncf %28 : vector<256x32xf32> to vector<256x32xbf16>
    %c0_21 = arith.constant 0 : index
    %c0_22 = arith.constant 0 : index
    %c0_23 = arith.constant 0 : index
    %30 = vector.load %arg4[%c0_21, %c0_22, %c0_23] : memref<1x256x32xbf16, #tpu.memory_space<vmem>>, vector<1x256x32xbf16>
    %31 = vector.shape_cast %30 : vector<1x256x32xbf16> to vector<256x32xbf16>
    %32 = vector.shape_cast %29 : vector<256x32xbf16> to vector<1x256x32xbf16>
    tpu.vector_store %arg4[%c0_21, %c0_22, %c0_23], %32 {strides = array<i32>} : memref<1x256x32xbf16, #tpu.memory_space<vmem>>, vector<1x256x32xbf16>,
    %c0_i32_24 = arith.constant 0 : i32
    %33 = arith.cmpi eq, %arg1, %c0_i32_24 : i32
    %34 = arith.extui %33 : i1 to i32
    %c0_i32_25 = arith.constant 0 : i32
    %35 = arith.cmpi ne, %34, %c0_i32_25 : i32
    scf.if %35 {
      %cst_40 = arith.constant 0.000000e+00 : f32
      %53 = vector.broadcast %cst_40 : f32 to vector<1x1x32xf32>
      %c0_41 = arith.constant 0 : index
      %c0_42 = arith.constant 0 : index
      %c0_43 = arith.constant 0 : index
      %54 = vector.load %arg5[%c0_41, %c0_42, %c0_43] : memref<1x1x32xf32, #tpu.memory_space<vmem>>, vector<1x1x32xf32>
      tpu.vector_store %arg5[%c0_41, %c0_42, %c0_43], %53 {strides = array<i32>} : memref<1x1x32xf32, #tpu.memory_space<vmem>>, vector<1x1x32xf32>,
      %cst_44 = arith.constant 0.000000e+00 : f32
      %55 = vector.broadcast %cst_44 : f32 to vector<1x1x32xf32>
      %c0_45 = arith.constant 0 : index
      %c0_46 = arith.constant 0 : index
      %c0_47 = arith.constant 0 : index
      %56 = vector.load %arg6[%c0_45, %c0_46, %c0_47] : memref<1x1x32xf32, #tpu.memory_space<vmem>>, vector<1x1x32xf32>
      tpu.vector_store %arg6[%c0_45, %c0_46, %c0_47], %55 {strides = array<i32>} : memref<1x1x32xf32, #tpu.memory_space<vmem>>, vector<1x1x32xf32>,
    } else {
    }
    %c0_26 = arith.constant 0 : index
    %c0_27 = arith.constant 0 : index
    %c0_28 = arith.constant 0 : index
    %36 = vector.load %arg5[%c0_26, %c0_27, %c0_28] : memref<1x1x32xf32, #tpu.memory_space<vmem>>, vector<1x1x32xf32>
    %37 = vector.shape_cast %36 : vector<1x1x32xf32> to vector<1x32xf32>
    %cst_29 = arith.constant dense<0.000000e+00> : vector<32xf32>
    %38 = vector.multi_reduction <add>, %28, %cst_29 [0] : vector<256x32xf32> to vector<32xf32>
    %39 = vector.shape_cast %38 : vector<32xf32> to vector<1x32xf32>
    %40 = arith.addf %37, %39 : vector<1x32xf32>
    %c0_30 = arith.constant 0 : index
    %c0_31 = arith.constant 0 : index
    %c0_32 = arith.constant 0 : index
    %41 = vector.load %arg5[%c0_30, %c0_31, %c0_32] : memref<1x1x32xf32, #tpu.memory_space<vmem>>, vector<1x1x32xf32>
    %42 = vector.shape_cast %41 : vector<1x1x32xf32> to vector<1x32xf32>
    %43 = vector.shape_cast %40 : vector<1x32xf32> to vector<1x1x32xf32>
    tpu.vector_store %arg5[%c0_30, %c0_31, %c0_32], %43 {strides = array<i32>} : memref<1x1x32xf32, #tpu.memory_space<vmem>>, vector<1x1x32xf32>,
    %c0_33 = arith.constant 0 : index
    %c0_34 = arith.constant 0 : index
    %c0_35 = arith.constant 0 : index
    %44 = vector.load %arg6[%c0_33, %c0_34, %c0_35] : memref<1x1x32xf32, #tpu.memory_space<vmem>>, vector<1x1x32xf32>
    %45 = vector.shape_cast %44 : vector<1x1x32xf32> to vector<1x32xf32>
    %46 = arith.mulf %28, %28 : vector<256x32xf32>
    %cst_36 = arith.constant dense<0.000000e+00> : vector<32xf32>
    %47 = vector.multi_reduction <add>, %46, %cst_36 [0] : vector<256x32xf32> to vector<32xf32>
    %48 = vector.shape_cast %47 : vector<32xf32> to vector<1x32xf32>
    %49 = arith.addf %45, %48 : vector<1x32xf32>
    %c0_37 = arith.constant 0 : index
    %c0_38 = arith.constant 0 : index
    %c0_39 = arith.constant 0 : index
    %50 = vector.load %arg6[%c0_37, %c0_38, %c0_39] : memref<1x1x32xf32, #tpu.memory_space<vmem>>, vector<1x1x32xf32>
    %51 = vector.shape_cast %50 : vector<1x1x32xf32> to vector<1x32xf32>
    %52 = vector.shape_cast %49 : vector<1x32xf32> to vector<1x1x32xf32>
    tpu.vector_store %arg6[%c0_37, %c0_38, %c0_39], %52 {strides = array<i32>} : memref<1x1x32xf32, #tpu.memory_space<vmem>>, vector<1x1x32xf32>,
    return
  }
  func.func @transform_0(%arg0: i32, %arg1: i32) -> (i32, i32, i32, i32, i32) {
    %c0_i32 = arith.constant 0 : i32
    %c0_i32_0 = arith.constant 0 : i32
    %c0_i32_1 = arith.constant 0 : i32
    %c0_i32_2 = arith.constant 0 : i32
    %c0_i32_3 = arith.constant 0 : i32
    return %arg0, %c0_i32, %c0_i32_0, %c0_i32_1, %c0_i32_2 : i32, i32, i32, i32, i32
  }
  func.func @transform_1(%arg0: i32, %arg1: i32) -> (i32, i32, i32) {
    %c0_i32 = arith.constant 0 : i32
    %c0_i32_0 = arith.constant 0 : i32
    %c0_i32_1 = arith.constant 0 : i32
    %c0_i32_2 = arith.constant 0 : i32
    return %c0_i32, %c0_i32_0, %c0_i32_1 : i32, i32, i32
  }
  func.func @transform_2(%arg0: i32, %arg1: i32) -> (i32, i32, i32) {
    %c0_i32 = arith.constant 0 : i32
    %c0_i32_0 = arith.constant 0 : i32
    return %arg0, %arg1, %c0_i32 : i32, i32, i32
  }
  func.func @transform_3(%arg0: i32, %arg1: i32) -> (i32, i32, i32) {
    %c0_i32 = arith.constant 0 : i32
    %c0_i32_0 = arith.constant 0 : i32
    %c0_i32_1 = arith.constant 0 : i32
    return %arg0, %c0_i32, %c0_i32_0 : i32, i32, i32
  }
  func.func @transform_4(%arg0: i32, %arg1: i32) -> (i32, i32, i32) {
    %c0_i32 = arith.constant 0 : i32
    %c0_i32_0 = arith.constant 0 : i32
    %c0_i32_1 = arith.constant 0 : i32
    return %arg0, %c0_i32, %c0_i32_0 : i32, i32, i32
  }
}

module attributes {stable_mosaic.version = 11 : i64} {
  func.func @kernel(%arg0: i32, %arg1: i32, %arg2: memref<1x1x34x32x96xbf16, #tpu.memory_space<vmem>>, %arg3: memref<3x96x32xbf16, #tpu.memory_space<vmem>>, %arg4: memref<1x256x16xbf16, #tpu.memory_space<vmem>>, %arg5: memref<16x32xbf16, #tpu.memory_space<vmem>>, %arg6: memref<1x256x32xbf16, #tpu.memory_space<vmem>>, %arg7: memref<1x1x32xf32, #tpu.memory_space<vmem>>, %arg8: memref<1x1x32xf32, #tpu.memory_space<vmem>>) attributes {dimension_semantics = [#tpu.dimension_semantics<parallel>, #tpu.dimension_semantics<arbitrary>], iteration_bounds = array<i64: 2, 4>, scalar_prefetch = 0 : i64, scratch_operands = 0 : i64, tpu.core_type = #tpu.core_type<tc>, window_params = [{transform_indices = @transform_0, window_bounds = array<i64: 1, 1, 34, 32, 96>}, {pipeline_mode = #tpu.pipeline_mode<synchronous>, transform_indices = @transform_1, window_bounds = array<i64: 3, 96, 32>}, {transform_indices = @transform_2, window_bounds = array<i64: 1, 256, 16>}, {pipeline_mode = #tpu.pipeline_mode<synchronous>, transform_indices = @transform_3, window_bounds = array<i64: 16, 32>}, {transform_indices = @transform_4, window_bounds = array<i64: 1, 256, 32>}, {transform_indices = @transform_5, window_bounds = array<i64: 1, 1, 32>}, {transform_indices = @transform_6, window_bounds = array<i64: 1, 1, 32>}]} {
    %c8_i32 = arith.constant 8 : i32
    %0 = arith.muli %arg1, %c8_i32 : i32
    %cst = arith.constant 0.000000e+00 : f32
    %1 = vector.broadcast %cst : f32 to vector<256x32xf32>
    %c0_i32 = arith.constant 0 : i32
    %2 = arith.addi %0, %c0_i32 : i32
    %c0 = arith.constant 0 : index
    %c0_0 = arith.constant 0 : index
    %3 = arith.index_cast %2 : i32 to index
    %c0_1 = arith.constant 0 : index
    %c0_2 = arith.constant 0 : index
    %4 = vector.load %arg2[%c0, %c0_0, %3, %c0_1, %c0_2] : memref<1x1x34x32x96xbf16, #tpu.memory_space<vmem>>, vector<1x1x8x32x96xbf16>
    %5 = vector.shape_cast %4 : vector<1x1x8x32x96xbf16> to vector<8x32x96xbf16>
    %6 = vector.shape_cast %5 : vector<8x32x96xbf16> to vector<256x96xbf16>
    %c0_3 = arith.constant 0 : index
    %c0_4 = arith.constant 0 : index
    %c0_5 = arith.constant 0 : index
    %7 = vector.load %arg3[%c0_3, %c0_4, %c0_5] : memref<3x96x32xbf16, #tpu.memory_space<vmem>>, vector<1x96x32xbf16>
    %8 = vector.shape_cast %7 : vector<1x96x32xbf16> to vector<96x32xbf16>
    %cst_6 = arith.constant dense<0.000000e+00> : vector<256x32xf32>
    %9 = tpu.matmul %6, %8, %cst_6 {dimension_numbers = #tpu.dot_dimension_numbers<[1], [0], [0], [1], [0, 0, 1, 1], [], []>} : vector<256x96xbf16>, vector<96x32xbf16>, vector<256x32xf32> -> vector<256x32xf32>
    %10 = arith.addf %1, %9 : vector<256x32xf32>
    %c1_i32 = arith.constant 1 : i32
    %11 = arith.addi %0, %c1_i32 : i32
    %c0_7 = arith.constant 0 : index
    %c0_8 = arith.constant 0 : index
    %12 = arith.index_cast %11 : i32 to index
    %c0_9 = arith.constant 0 : index
    %c0_10 = arith.constant 0 : index
    %13 = vector.load %arg2[%c0_7, %c0_8, %12, %c0_9, %c0_10] : memref<1x1x34x32x96xbf16, #tpu.memory_space<vmem>>, vector<1x1x8x32x96xbf16>
    %14 = vector.shape_cast %13 : vector<1x1x8x32x96xbf16> to vector<8x32x96xbf16>
    %15 = vector.shape_cast %14 : vector<8x32x96xbf16> to vector<256x96xbf16>
    %c1 = arith.constant 1 : index
    %c0_11 = arith.constant 0 : index
    %c0_12 = arith.constant 0 : index
    %16 = vector.load %arg3[%c1, %c0_11, %c0_12] : memref<3x96x32xbf16, #tpu.memory_space<vmem>>, vector<1x96x32xbf16>
    %17 = vector.shape_cast %16 : vector<1x96x32xbf16> to vector<96x32xbf16>
    %cst_13 = arith.constant dense<0.000000e+00> : vector<256x32xf32>
    %18 = tpu.matmul %15, %17, %cst_13 {dimension_numbers = #tpu.dot_dimension_numbers<[1], [0], [0], [1], [0, 0, 1, 1], [], []>} : vector<256x96xbf16>, vector<96x32xbf16>, vector<256x32xf32> -> vector<256x32xf32>
    %19 = arith.addf %10, %18 : vector<256x32xf32>
    %c2_i32 = arith.constant 2 : i32
    %20 = arith.addi %0, %c2_i32 : i32
    %c0_14 = arith.constant 0 : index
    %c0_15 = arith.constant 0 : index
    %21 = arith.index_cast %20 : i32 to index
    %c0_16 = arith.constant 0 : index
    %c0_17 = arith.constant 0 : index
    %22 = vector.load %arg2[%c0_14, %c0_15, %21, %c0_16, %c0_17] : memref<1x1x34x32x96xbf16, #tpu.memory_space<vmem>>, vector<1x1x8x32x96xbf16>
    %23 = vector.shape_cast %22 : vector<1x1x8x32x96xbf16> to vector<8x32x96xbf16>
    %24 = vector.shape_cast %23 : vector<8x32x96xbf16> to vector<256x96xbf16>
    %c2 = arith.constant 2 : index
    %c0_18 = arith.constant 0 : index
    %c0_19 = arith.constant 0 : index
    %25 = vector.load %arg3[%c2, %c0_18, %c0_19] : memref<3x96x32xbf16, #tpu.memory_space<vmem>>, vector<1x96x32xbf16>
    %26 = vector.shape_cast %25 : vector<1x96x32xbf16> to vector<96x32xbf16>
    %cst_20 = arith.constant dense<0.000000e+00> : vector<256x32xf32>
    %27 = tpu.matmul %24, %26, %cst_20 {dimension_numbers = #tpu.dot_dimension_numbers<[1], [0], [0], [1], [0, 0, 1, 1], [], []>} : vector<256x96xbf16>, vector<96x32xbf16>, vector<256x32xf32> -> vector<256x32xf32>
    %28 = arith.addf %19, %27 : vector<256x32xf32>
    %c0_21 = arith.constant 0 : index
    %c0_22 = arith.constant 0 : index
    %c0_23 = arith.constant 0 : index
    %29 = vector.load %arg4[%c0_21, %c0_22, %c0_23] : memref<1x256x16xbf16, #tpu.memory_space<vmem>>, vector<1x256x16xbf16>
    %30 = vector.shape_cast %29 : vector<1x256x16xbf16> to vector<256x16xbf16>
    %c0_24 = arith.constant 0 : index
    %c0_25 = arith.constant 0 : index
    %31 = vector.load %arg5[%c0_24, %c0_25] : memref<16x32xbf16, #tpu.memory_space<vmem>>, vector<16x32xbf16>
    %cst_26 = arith.constant dense<0.000000e+00> : vector<256x32xf32>
    %32 = tpu.matmul %30, %31, %cst_26 {dimension_numbers = #tpu.dot_dimension_numbers<[1], [0], [0], [1], [0, 0, 1, 1], [], []>} : vector<256x16xbf16>, vector<16x32xbf16>, vector<256x32xf32> -> vector<256x32xf32>
    %33 = arith.addf %28, %32 : vector<256x32xf32>
    %34 = arith.truncf %33 : vector<256x32xf32> to vector<256x32xbf16>
    %c0_27 = arith.constant 0 : index
    %c0_28 = arith.constant 0 : index
    %c0_29 = arith.constant 0 : index
    %35 = vector.load %arg6[%c0_27, %c0_28, %c0_29] : memref<1x256x32xbf16, #tpu.memory_space<vmem>>, vector<1x256x32xbf16>
    %36 = vector.shape_cast %35 : vector<1x256x32xbf16> to vector<256x32xbf16>
    %37 = vector.shape_cast %34 : vector<256x32xbf16> to vector<1x256x32xbf16>
    tpu.vector_store %arg6[%c0_27, %c0_28, %c0_29], %37 {strides = array<i32>} : memref<1x256x32xbf16, #tpu.memory_space<vmem>>, vector<1x256x32xbf16>,
    %c0_i32_30 = arith.constant 0 : i32
    %38 = arith.cmpi eq, %arg1, %c0_i32_30 : i32
    %39 = arith.extui %38 : i1 to i32
    %c0_i32_31 = arith.constant 0 : i32
    %40 = arith.cmpi ne, %39, %c0_i32_31 : i32
    scf.if %40 {
      %cst_46 = arith.constant 0.000000e+00 : f32
      %58 = vector.broadcast %cst_46 : f32 to vector<1x1x32xf32>
      %c0_47 = arith.constant 0 : index
      %c0_48 = arith.constant 0 : index
      %c0_49 = arith.constant 0 : index
      %59 = vector.load %arg7[%c0_47, %c0_48, %c0_49] : memref<1x1x32xf32, #tpu.memory_space<vmem>>, vector<1x1x32xf32>
      tpu.vector_store %arg7[%c0_47, %c0_48, %c0_49], %58 {strides = array<i32>} : memref<1x1x32xf32, #tpu.memory_space<vmem>>, vector<1x1x32xf32>,
      %cst_50 = arith.constant 0.000000e+00 : f32
      %60 = vector.broadcast %cst_50 : f32 to vector<1x1x32xf32>
      %c0_51 = arith.constant 0 : index
      %c0_52 = arith.constant 0 : index
      %c0_53 = arith.constant 0 : index
      %61 = vector.load %arg8[%c0_51, %c0_52, %c0_53] : memref<1x1x32xf32, #tpu.memory_space<vmem>>, vector<1x1x32xf32>
      tpu.vector_store %arg8[%c0_51, %c0_52, %c0_53], %60 {strides = array<i32>} : memref<1x1x32xf32, #tpu.memory_space<vmem>>, vector<1x1x32xf32>,
    } else {
    }
    %c0_32 = arith.constant 0 : index
    %c0_33 = arith.constant 0 : index
    %c0_34 = arith.constant 0 : index
    %41 = vector.load %arg7[%c0_32, %c0_33, %c0_34] : memref<1x1x32xf32, #tpu.memory_space<vmem>>, vector<1x1x32xf32>
    %42 = vector.shape_cast %41 : vector<1x1x32xf32> to vector<1x32xf32>
    %cst_35 = arith.constant dense<0.000000e+00> : vector<32xf32>
    %43 = vector.multi_reduction <add>, %33, %cst_35 [0] : vector<256x32xf32> to vector<32xf32>
    %44 = vector.shape_cast %43 : vector<32xf32> to vector<1x32xf32>
    %45 = arith.addf %42, %44 : vector<1x32xf32>
    %c0_36 = arith.constant 0 : index
    %c0_37 = arith.constant 0 : index
    %c0_38 = arith.constant 0 : index
    %46 = vector.load %arg7[%c0_36, %c0_37, %c0_38] : memref<1x1x32xf32, #tpu.memory_space<vmem>>, vector<1x1x32xf32>
    %47 = vector.shape_cast %46 : vector<1x1x32xf32> to vector<1x32xf32>
    %48 = vector.shape_cast %45 : vector<1x32xf32> to vector<1x1x32xf32>
    tpu.vector_store %arg7[%c0_36, %c0_37, %c0_38], %48 {strides = array<i32>} : memref<1x1x32xf32, #tpu.memory_space<vmem>>, vector<1x1x32xf32>,
    %c0_39 = arith.constant 0 : index
    %c0_40 = arith.constant 0 : index
    %c0_41 = arith.constant 0 : index
    %49 = vector.load %arg8[%c0_39, %c0_40, %c0_41] : memref<1x1x32xf32, #tpu.memory_space<vmem>>, vector<1x1x32xf32>
    %50 = vector.shape_cast %49 : vector<1x1x32xf32> to vector<1x32xf32>
    %51 = arith.mulf %33, %33 : vector<256x32xf32>
    %cst_42 = arith.constant dense<0.000000e+00> : vector<32xf32>
    %52 = vector.multi_reduction <add>, %51, %cst_42 [0] : vector<256x32xf32> to vector<32xf32>
    %53 = vector.shape_cast %52 : vector<32xf32> to vector<1x32xf32>
    %54 = arith.addf %50, %53 : vector<1x32xf32>
    %c0_43 = arith.constant 0 : index
    %c0_44 = arith.constant 0 : index
    %c0_45 = arith.constant 0 : index
    %55 = vector.load %arg8[%c0_43, %c0_44, %c0_45] : memref<1x1x32xf32, #tpu.memory_space<vmem>>, vector<1x1x32xf32>
    %56 = vector.shape_cast %55 : vector<1x1x32xf32> to vector<1x32xf32>
    %57 = vector.shape_cast %54 : vector<1x32xf32> to vector<1x1x32xf32>
    tpu.vector_store %arg8[%c0_43, %c0_44, %c0_45], %57 {strides = array<i32>} : memref<1x1x32xf32, #tpu.memory_space<vmem>>, vector<1x1x32xf32>,
    return
  }
  func.func @transform_0(%arg0: i32, %arg1: i32) -> (i32, i32, i32, i32, i32) {
    %c0_i32 = arith.constant 0 : i32
    %c0_i32_0 = arith.constant 0 : i32
    %c0_i32_1 = arith.constant 0 : i32
    %c0_i32_2 = arith.constant 0 : i32
    %c0_i32_3 = arith.constant 0 : i32
    return %arg0, %c0_i32, %c0_i32_0, %c0_i32_1, %c0_i32_2 : i32, i32, i32, i32, i32
  }
  func.func @transform_1(%arg0: i32, %arg1: i32) -> (i32, i32, i32) {
    %c0_i32 = arith.constant 0 : i32
    %c0_i32_0 = arith.constant 0 : i32
    %c0_i32_1 = arith.constant 0 : i32
    %c0_i32_2 = arith.constant 0 : i32
    return %c0_i32, %c0_i32_0, %c0_i32_1 : i32, i32, i32
  }
  func.func @transform_2(%arg0: i32, %arg1: i32) -> (i32, i32, i32) {
    %c0_i32 = arith.constant 0 : i32
    %c0_i32_0 = arith.constant 0 : i32
    return %arg0, %arg1, %c0_i32 : i32, i32, i32
  }
  func.func @transform_3(%arg0: i32, %arg1: i32) -> (i32, i32) {
    %c0_i32 = arith.constant 0 : i32
    %c0_i32_0 = arith.constant 0 : i32
    %c0_i32_1 = arith.constant 0 : i32
    return %c0_i32, %c0_i32_0 : i32, i32
  }
  func.func @transform_4(%arg0: i32, %arg1: i32) -> (i32, i32, i32) {
    %c0_i32 = arith.constant 0 : i32
    %c0_i32_0 = arith.constant 0 : i32
    return %arg0, %arg1, %c0_i32 : i32, i32, i32
  }
  func.func @transform_5(%arg0: i32, %arg1: i32) -> (i32, i32, i32) {
    %c0_i32 = arith.constant 0 : i32
    %c0_i32_0 = arith.constant 0 : i32
    %c0_i32_1 = arith.constant 0 : i32
    return %arg0, %c0_i32, %c0_i32_0 : i32, i32, i32
  }
  func.func @transform_6(%arg0: i32, %arg1: i32) -> (i32, i32, i32) {
    %c0_i32 = arith.constant 0 : i32
    %c0_i32_0 = arith.constant 0 : i32
    %c0_i32_1 = arith.constant 0 : i32
    return %arg0, %c0_i32, %c0_i32_0 : i32, i32, i32
  }
}

module attributes {stable_mosaic.version = 11 : i64} {
  func.func @kernel(%arg0: i32, %arg1: i32, %arg2: memref<1x2x17x16x96xbf16, #tpu.memory_space<vmem>>, %arg3: memref<3x96x64xbf16, #tpu.memory_space<vmem>>, %arg4: memref<1x128x64xbf16, #tpu.memory_space<vmem>>, %arg5: memref<1x1x64xf32, #tpu.memory_space<vmem>>, %arg6: memref<1x1x64xf32, #tpu.memory_space<vmem>>) attributes {dimension_semantics = [#tpu.dimension_semantics<parallel>, #tpu.dimension_semantics<arbitrary>], iteration_bounds = array<i64: 2, 2>, scalar_prefetch = 0 : i64, scratch_operands = 0 : i64, tpu.core_type = #tpu.core_type<tc>, window_params = [{transform_indices = @transform_0, window_bounds = array<i64: 1, 2, 17, 16, 96>}, {pipeline_mode = #tpu.pipeline_mode<synchronous>, transform_indices = @transform_1, window_bounds = array<i64: 3, 96, 64>}, {transform_indices = @transform_2, window_bounds = array<i64: 1, 128, 64>}, {transform_indices = @transform_3, window_bounds = array<i64: 1, 1, 64>}, {transform_indices = @transform_4, window_bounds = array<i64: 1, 1, 64>}]} {
    %c8_i32 = arith.constant 8 : i32
    %0 = arith.muli %arg1, %c8_i32 : i32
    %cst = arith.constant 0.000000e+00 : f32
    %1 = vector.broadcast %cst : f32 to vector<128x64xf32>
    %c0_i32 = arith.constant 0 : i32
    %2 = arith.addi %0, %c0_i32 : i32
    %c0 = arith.constant 0 : index
    %c0_0 = arith.constant 0 : index
    %3 = arith.index_cast %2 : i32 to index
    %c0_1 = arith.constant 0 : index
    %c0_2 = arith.constant 0 : index
    %4 = vector.load %arg2[%c0, %c0_0, %3, %c0_1, %c0_2] : memref<1x2x17x16x96xbf16, #tpu.memory_space<vmem>>, vector<1x1x8x16x96xbf16>
    %5 = vector.shape_cast %4 : vector<1x1x8x16x96xbf16> to vector<8x16x96xbf16>
    %6 = vector.shape_cast %5 : vector<8x16x96xbf16> to vector<128x96xbf16>
    %c0_3 = arith.constant 0 : index
    %c0_4 = arith.constant 0 : index
    %c0_5 = arith.constant 0 : index
    %7 = vector.load %arg3[%c0_3, %c0_4, %c0_5] : memref<3x96x64xbf16, #tpu.memory_space<vmem>>, vector<1x96x64xbf16>
    %8 = vector.shape_cast %7 : vector<1x96x64xbf16> to vector<96x64xbf16>
    %cst_6 = arith.constant dense<0.000000e+00> : vector<128x64xf32>
    %9 = tpu.matmul %6, %8, %cst_6 {dimension_numbers = #tpu.dot_dimension_numbers<[1], [0], [0], [1], [0, 0, 1, 1], [], []>} : vector<128x96xbf16>, vector<96x64xbf16>, vector<128x64xf32> -> vector<128x64xf32>
    %10 = arith.addf %1, %9 : vector<128x64xf32>
    %c0_i32_7 = arith.constant 0 : i32
    %11 = arith.addi %0, %c0_i32_7 : i32
    %c0_8 = arith.constant 0 : index
    %c1 = arith.constant 1 : index
    %12 = arith.index_cast %11 : i32 to index
    %c0_9 = arith.constant 0 : index
    %c0_10 = arith.constant 0 : index
    %13 = vector.load %arg2[%c0_8, %c1, %12, %c0_9, %c0_10] : memref<1x2x17x16x96xbf16, #tpu.memory_space<vmem>>, vector<1x1x8x16x96xbf16>
    %14 = vector.shape_cast %13 : vector<1x1x8x16x96xbf16> to vector<8x16x96xbf16>
    %15 = vector.shape_cast %14 : vector<8x16x96xbf16> to vector<128x96xbf16>
    %c1_11 = arith.constant 1 : index
    %c0_12 = arith.constant 0 : index
    %c0_13 = arith.constant 0 : index
    %16 = vector.load %arg3[%c1_11, %c0_12, %c0_13] : memref<3x96x64xbf16, #tpu.memory_space<vmem>>, vector<1x96x64xbf16>
    %17 = vector.shape_cast %16 : vector<1x96x64xbf16> to vector<96x64xbf16>
    %cst_14 = arith.constant dense<0.000000e+00> : vector<128x64xf32>
    %18 = tpu.matmul %15, %17, %cst_14 {dimension_numbers = #tpu.dot_dimension_numbers<[1], [0], [0], [1], [0, 0, 1, 1], [], []>} : vector<128x96xbf16>, vector<96x64xbf16>, vector<128x64xf32> -> vector<128x64xf32>
    %19 = arith.addf %10, %18 : vector<128x64xf32>
    %c1_i32 = arith.constant 1 : i32
    %20 = arith.addi %0, %c1_i32 : i32
    %c0_15 = arith.constant 0 : index
    %c0_16 = arith.constant 0 : index
    %21 = arith.index_cast %20 : i32 to index
    %c0_17 = arith.constant 0 : index
    %c0_18 = arith.constant 0 : index
    %22 = vector.load %arg2[%c0_15, %c0_16, %21, %c0_17, %c0_18] : memref<1x2x17x16x96xbf16, #tpu.memory_space<vmem>>, vector<1x1x8x16x96xbf16>
    %23 = vector.shape_cast %22 : vector<1x1x8x16x96xbf16> to vector<8x16x96xbf16>
    %24 = vector.shape_cast %23 : vector<8x16x96xbf16> to vector<128x96xbf16>
    %c2 = arith.constant 2 : index
    %c0_19 = arith.constant 0 : index
    %c0_20 = arith.constant 0 : index
    %25 = vector.load %arg3[%c2, %c0_19, %c0_20] : memref<3x96x64xbf16, #tpu.memory_space<vmem>>, vector<1x96x64xbf16>
    %26 = vector.shape_cast %25 : vector<1x96x64xbf16> to vector<96x64xbf16>
    %cst_21 = arith.constant dense<0.000000e+00> : vector<128x64xf32>
    %27 = tpu.matmul %24, %26, %cst_21 {dimension_numbers = #tpu.dot_dimension_numbers<[1], [0], [0], [1], [0, 0, 1, 1], [], []>} : vector<128x96xbf16>, vector<96x64xbf16>, vector<128x64xf32> -> vector<128x64xf32>
    %28 = arith.addf %19, %27 : vector<128x64xf32>
    %29 = arith.truncf %28 : vector<128x64xf32> to vector<128x64xbf16>
    %c0_22 = arith.constant 0 : index
    %c0_23 = arith.constant 0 : index
    %c0_24 = arith.constant 0 : index
    %30 = vector.load %arg4[%c0_22, %c0_23, %c0_24] : memref<1x128x64xbf16, #tpu.memory_space<vmem>>, vector<1x128x64xbf16>
    %31 = vector.shape_cast %30 : vector<1x128x64xbf16> to vector<128x64xbf16>
    %32 = vector.shape_cast %29 : vector<128x64xbf16> to vector<1x128x64xbf16>
    tpu.vector_store %arg4[%c0_22, %c0_23, %c0_24], %32 {strides = array<i32>} : memref<1x128x64xbf16, #tpu.memory_space<vmem>>, vector<1x128x64xbf16>,
    %c0_i32_25 = arith.constant 0 : i32
    %33 = arith.cmpi eq, %arg1, %c0_i32_25 : i32
    %34 = arith.extui %33 : i1 to i32
    %c0_i32_26 = arith.constant 0 : i32
    %35 = arith.cmpi ne, %34, %c0_i32_26 : i32
    scf.if %35 {
      %cst_41 = arith.constant 0.000000e+00 : f32
      %53 = vector.broadcast %cst_41 : f32 to vector<1x1x64xf32>
      %c0_42 = arith.constant 0 : index
      %c0_43 = arith.constant 0 : index
      %c0_44 = arith.constant 0 : index
      %54 = vector.load %arg5[%c0_42, %c0_43, %c0_44] : memref<1x1x64xf32, #tpu.memory_space<vmem>>, vector<1x1x64xf32>
      tpu.vector_store %arg5[%c0_42, %c0_43, %c0_44], %53 {strides = array<i32>} : memref<1x1x64xf32, #tpu.memory_space<vmem>>, vector<1x1x64xf32>,
      %cst_45 = arith.constant 0.000000e+00 : f32
      %55 = vector.broadcast %cst_45 : f32 to vector<1x1x64xf32>
      %c0_46 = arith.constant 0 : index
      %c0_47 = arith.constant 0 : index
      %c0_48 = arith.constant 0 : index
      %56 = vector.load %arg6[%c0_46, %c0_47, %c0_48] : memref<1x1x64xf32, #tpu.memory_space<vmem>>, vector<1x1x64xf32>
      tpu.vector_store %arg6[%c0_46, %c0_47, %c0_48], %55 {strides = array<i32>} : memref<1x1x64xf32, #tpu.memory_space<vmem>>, vector<1x1x64xf32>,
    } else {
    }
    %c0_27 = arith.constant 0 : index
    %c0_28 = arith.constant 0 : index
    %c0_29 = arith.constant 0 : index
    %36 = vector.load %arg5[%c0_27, %c0_28, %c0_29] : memref<1x1x64xf32, #tpu.memory_space<vmem>>, vector<1x1x64xf32>
    %37 = vector.shape_cast %36 : vector<1x1x64xf32> to vector<1x64xf32>
    %cst_30 = arith.constant dense<0.000000e+00> : vector<64xf32>
    %38 = vector.multi_reduction <add>, %28, %cst_30 [0] : vector<128x64xf32> to vector<64xf32>
    %39 = vector.shape_cast %38 : vector<64xf32> to vector<1x64xf32>
    %40 = arith.addf %37, %39 : vector<1x64xf32>
    %c0_31 = arith.constant 0 : index
    %c0_32 = arith.constant 0 : index
    %c0_33 = arith.constant 0 : index
    %41 = vector.load %arg5[%c0_31, %c0_32, %c0_33] : memref<1x1x64xf32, #tpu.memory_space<vmem>>, vector<1x1x64xf32>
    %42 = vector.shape_cast %41 : vector<1x1x64xf32> to vector<1x64xf32>
    %43 = vector.shape_cast %40 : vector<1x64xf32> to vector<1x1x64xf32>
    tpu.vector_store %arg5[%c0_31, %c0_32, %c0_33], %43 {strides = array<i32>} : memref<1x1x64xf32, #tpu.memory_space<vmem>>, vector<1x1x64xf32>,
    %c0_34 = arith.constant 0 : index
    %c0_35 = arith.constant 0 : index
    %c0_36 = arith.constant 0 : index
    %44 = vector.load %arg6[%c0_34, %c0_35, %c0_36] : memref<1x1x64xf32, #tpu.memory_space<vmem>>, vector<1x1x64xf32>
    %45 = vector.shape_cast %44 : vector<1x1x64xf32> to vector<1x64xf32>
    %46 = arith.mulf %28, %28 : vector<128x64xf32>
    %cst_37 = arith.constant dense<0.000000e+00> : vector<64xf32>
    %47 = vector.multi_reduction <add>, %46, %cst_37 [0] : vector<128x64xf32> to vector<64xf32>
    %48 = vector.shape_cast %47 : vector<64xf32> to vector<1x64xf32>
    %49 = arith.addf %45, %48 : vector<1x64xf32>
    %c0_38 = arith.constant 0 : index
    %c0_39 = arith.constant 0 : index
    %c0_40 = arith.constant 0 : index
    %50 = vector.load %arg6[%c0_38, %c0_39, %c0_40] : memref<1x1x64xf32, #tpu.memory_space<vmem>>, vector<1x1x64xf32>
    %51 = vector.shape_cast %50 : vector<1x1x64xf32> to vector<1x64xf32>
    %52 = vector.shape_cast %49 : vector<1x64xf32> to vector<1x1x64xf32>
    tpu.vector_store %arg6[%c0_38, %c0_39, %c0_40], %52 {strides = array<i32>} : memref<1x1x64xf32, #tpu.memory_space<vmem>>, vector<1x1x64xf32>,
    return
  }
  func.func @transform_0(%arg0: i32, %arg1: i32) -> (i32, i32, i32, i32, i32) {
    %c0_i32 = arith.constant 0 : i32
    %c0_i32_0 = arith.constant 0 : i32
    %c0_i32_1 = arith.constant 0 : i32
    %c0_i32_2 = arith.constant 0 : i32
    %c0_i32_3 = arith.constant 0 : i32
    return %arg0, %c0_i32, %c0_i32_0, %c0_i32_1, %c0_i32_2 : i32, i32, i32, i32, i32
  }
  func.func @transform_1(%arg0: i32, %arg1: i32) -> (i32, i32, i32) {
    %c0_i32 = arith.constant 0 : i32
    %c0_i32_0 = arith.constant 0 : i32
    %c0_i32_1 = arith.constant 0 : i32
    %c0_i32_2 = arith.constant 0 : i32
    return %c0_i32, %c0_i32_0, %c0_i32_1 : i32, i32, i32
  }
  func.func @transform_2(%arg0: i32, %arg1: i32) -> (i32, i32, i32) {
    %c0_i32 = arith.constant 0 : i32
    %c0_i32_0 = arith.constant 0 : i32
    return %arg0, %arg1, %c0_i32 : i32, i32, i32
  }
  func.func @transform_3(%arg0: i32, %arg1: i32) -> (i32, i32, i32) {
    %c0_i32 = arith.constant 0 : i32
    %c0_i32_0 = arith.constant 0 : i32
    %c0_i32_1 = arith.constant 0 : i32
    return %arg0, %c0_i32, %c0_i32_0 : i32, i32, i32
  }
  func.func @transform_4(%arg0: i32, %arg1: i32) -> (i32, i32, i32) {
    %c0_i32 = arith.constant 0 : i32
    %c0_i32_0 = arith.constant 0 : i32
    %c0_i32_1 = arith.constant 0 : i32
    return %arg0, %c0_i32, %c0_i32_0 : i32, i32, i32
  }
}

module attributes {stable_mosaic.version = 11 : i64} {
  func.func @kernel(%arg0: i32, %arg1: i32, %arg2: memref<1x1x18x16x192xbf16, #tpu.memory_space<vmem>>, %arg3: memref<3x192x64xbf16, #tpu.memory_space<vmem>>, %arg4: memref<1x128x32xbf16, #tpu.memory_space<vmem>>, %arg5: memref<32x64xbf16, #tpu.memory_space<vmem>>, %arg6: memref<1x128x64xbf16, #tpu.memory_space<vmem>>, %arg7: memref<1x1x64xf32, #tpu.memory_space<vmem>>, %arg8: memref<1x1x64xf32, #tpu.memory_space<vmem>>) attributes {dimension_semantics = [#tpu.dimension_semantics<parallel>, #tpu.dimension_semantics<arbitrary>], iteration_bounds = array<i64: 2, 2>, scalar_prefetch = 0 : i64, scratch_operands = 0 : i64, tpu.core_type = #tpu.core_type<tc>, window_params = [{transform_indices = @transform_0, window_bounds = array<i64: 1, 1, 18, 16, 192>}, {pipeline_mode = #tpu.pipeline_mode<synchronous>, transform_indices = @transform_1, window_bounds = array<i64: 3, 192, 64>}, {transform_indices = @transform_2, window_bounds = array<i64: 1, 128, 32>}, {pipeline_mode = #tpu.pipeline_mode<synchronous>, transform_indices = @transform_3, window_bounds = array<i64: 32, 64>}, {transform_indices = @transform_4, window_bounds = array<i64: 1, 128, 64>}, {transform_indices = @transform_5, window_bounds = array<i64: 1, 1, 64>}, {transform_indices = @transform_6, window_bounds = array<i64: 1, 1, 64>}]} {
    %c8_i32 = arith.constant 8 : i32
    %0 = arith.muli %arg1, %c8_i32 : i32
    %cst = arith.constant 0.000000e+00 : f32
    %1 = vector.broadcast %cst : f32 to vector<128x64xf32>
    %c0_i32 = arith.constant 0 : i32
    %2 = arith.addi %0, %c0_i32 : i32
    %c0 = arith.constant 0 : index
    %c0_0 = arith.constant 0 : index
    %3 = arith.index_cast %2 : i32 to index
    %c0_1 = arith.constant 0 : index
    %c0_2 = arith.constant 0 : index
    %4 = vector.load %arg2[%c0, %c0_0, %3, %c0_1, %c0_2] : memref<1x1x18x16x192xbf16, #tpu.memory_space<vmem>>, vector<1x1x8x16x192xbf16>
    %5 = vector.shape_cast %4 : vector<1x1x8x16x192xbf16> to vector<8x16x192xbf16>
    %6 = vector.shape_cast %5 : vector<8x16x192xbf16> to vector<128x192xbf16>
    %c0_3 = arith.constant 0 : index
    %c0_4 = arith.constant 0 : index
    %c0_5 = arith.constant 0 : index
    %7 = vector.load %arg3[%c0_3, %c0_4, %c0_5] : memref<3x192x64xbf16, #tpu.memory_space<vmem>>, vector<1x192x64xbf16>
    %8 = vector.shape_cast %7 : vector<1x192x64xbf16> to vector<192x64xbf16>
    %cst_6 = arith.constant dense<0.000000e+00> : vector<128x64xf32>
    %9 = tpu.matmul %6, %8, %cst_6 {dimension_numbers = #tpu.dot_dimension_numbers<[1], [0], [0], [1], [0, 0, 1, 1], [], []>} : vector<128x192xbf16>, vector<192x64xbf16>, vector<128x64xf32> -> vector<128x64xf32>
    %10 = arith.addf %1, %9 : vector<128x64xf32>
    %c1_i32 = arith.constant 1 : i32
    %11 = arith.addi %0, %c1_i32 : i32
    %c0_7 = arith.constant 0 : index
    %c0_8 = arith.constant 0 : index
    %12 = arith.index_cast %11 : i32 to index
    %c0_9 = arith.constant 0 : index
    %c0_10 = arith.constant 0 : index
    %13 = vector.load %arg2[%c0_7, %c0_8, %12, %c0_9, %c0_10] : memref<1x1x18x16x192xbf16, #tpu.memory_space<vmem>>, vector<1x1x8x16x192xbf16>
    %14 = vector.shape_cast %13 : vector<1x1x8x16x192xbf16> to vector<8x16x192xbf16>
    %15 = vector.shape_cast %14 : vector<8x16x192xbf16> to vector<128x192xbf16>
    %c1 = arith.constant 1 : index
    %c0_11 = arith.constant 0 : index
    %c0_12 = arith.constant 0 : index
    %16 = vector.load %arg3[%c1, %c0_11, %c0_12] : memref<3x192x64xbf16, #tpu.memory_space<vmem>>, vector<1x192x64xbf16>
    %17 = vector.shape_cast %16 : vector<1x192x64xbf16> to vector<192x64xbf16>
    %cst_13 = arith.constant dense<0.000000e+00> : vector<128x64xf32>
    %18 = tpu.matmul %15, %17, %cst_13 {dimension_numbers = #tpu.dot_dimension_numbers<[1], [0], [0], [1], [0, 0, 1, 1], [], []>} : vector<128x192xbf16>, vector<192x64xbf16>, vector<128x64xf32> -> vector<128x64xf32>
    %19 = arith.addf %10, %18 : vector<128x64xf32>
    %c2_i32 = arith.constant 2 : i32
    %20 = arith.addi %0, %c2_i32 : i32
    %c0_14 = arith.constant 0 : index
    %c0_15 = arith.constant 0 : index
    %21 = arith.index_cast %20 : i32 to index
    %c0_16 = arith.constant 0 : index
    %c0_17 = arith.constant 0 : index
    %22 = vector.load %arg2[%c0_14, %c0_15, %21, %c0_16, %c0_17] : memref<1x1x18x16x192xbf16, #tpu.memory_space<vmem>>, vector<1x1x8x16x192xbf16>
    %23 = vector.shape_cast %22 : vector<1x1x8x16x192xbf16> to vector<8x16x192xbf16>
    %24 = vector.shape_cast %23 : vector<8x16x192xbf16> to vector<128x192xbf16>
    %c2 = arith.constant 2 : index
    %c0_18 = arith.constant 0 : index
    %c0_19 = arith.constant 0 : index
    %25 = vector.load %arg3[%c2, %c0_18, %c0_19] : memref<3x192x64xbf16, #tpu.memory_space<vmem>>, vector<1x192x64xbf16>
    %26 = vector.shape_cast %25 : vector<1x192x64xbf16> to vector<192x64xbf16>
    %cst_20 = arith.constant dense<0.000000e+00> : vector<128x64xf32>
    %27 = tpu.matmul %24, %26, %cst_20 {dimension_numbers = #tpu.dot_dimension_numbers<[1], [0], [0], [1], [0, 0, 1, 1], [], []>} : vector<128x192xbf16>, vector<192x64xbf16>, vector<128x64xf32> -> vector<128x64xf32>
    %28 = arith.addf %19, %27 : vector<128x64xf32>
    %c0_21 = arith.constant 0 : index
    %c0_22 = arith.constant 0 : index
    %c0_23 = arith.constant 0 : index
    %29 = vector.load %arg4[%c0_21, %c0_22, %c0_23] : memref<1x128x32xbf16, #tpu.memory_space<vmem>>, vector<1x128x32xbf16>
    %30 = vector.shape_cast %29 : vector<1x128x32xbf16> to vector<128x32xbf16>
    %c0_24 = arith.constant 0 : index
    %c0_25 = arith.constant 0 : index
    %31 = vector.load %arg5[%c0_24, %c0_25] : memref<32x64xbf16, #tpu.memory_space<vmem>>, vector<32x64xbf16>
    %cst_26 = arith.constant dense<0.000000e+00> : vector<128x64xf32>
    %32 = tpu.matmul %30, %31, %cst_26 {dimension_numbers = #tpu.dot_dimension_numbers<[1], [0], [0], [1], [0, 0, 1, 1], [], []>} : vector<128x32xbf16>, vector<32x64xbf16>, vector<128x64xf32> -> vector<128x64xf32>
    %33 = arith.addf %28, %32 : vector<128x64xf32>
    %34 = arith.truncf %33 : vector<128x64xf32> to vector<128x64xbf16>
    %c0_27 = arith.constant 0 : index
    %c0_28 = arith.constant 0 : index
    %c0_29 = arith.constant 0 : index
    %35 = vector.load %arg6[%c0_27, %c0_28, %c0_29] : memref<1x128x64xbf16, #tpu.memory_space<vmem>>, vector<1x128x64xbf16>
    %36 = vector.shape_cast %35 : vector<1x128x64xbf16> to vector<128x64xbf16>
    %37 = vector.shape_cast %34 : vector<128x64xbf16> to vector<1x128x64xbf16>
    tpu.vector_store %arg6[%c0_27, %c0_28, %c0_29], %37 {strides = array<i32>} : memref<1x128x64xbf16, #tpu.memory_space<vmem>>, vector<1x128x64xbf16>,
    %c0_i32_30 = arith.constant 0 : i32
    %38 = arith.cmpi eq, %arg1, %c0_i32_30 : i32
    %39 = arith.extui %38 : i1 to i32
    %c0_i32_31 = arith.constant 0 : i32
    %40 = arith.cmpi ne, %39, %c0_i32_31 : i32
    scf.if %40 {
      %cst_46 = arith.constant 0.000000e+00 : f32
      %58 = vector.broadcast %cst_46 : f32 to vector<1x1x64xf32>
      %c0_47 = arith.constant 0 : index
      %c0_48 = arith.constant 0 : index
      %c0_49 = arith.constant 0 : index
      %59 = vector.load %arg7[%c0_47, %c0_48, %c0_49] : memref<1x1x64xf32, #tpu.memory_space<vmem>>, vector<1x1x64xf32>
      tpu.vector_store %arg7[%c0_47, %c0_48, %c0_49], %58 {strides = array<i32>} : memref<1x1x64xf32, #tpu.memory_space<vmem>>, vector<1x1x64xf32>,
      %cst_50 = arith.constant 0.000000e+00 : f32
      %60 = vector.broadcast %cst_50 : f32 to vector<1x1x64xf32>
      %c0_51 = arith.constant 0 : index
      %c0_52 = arith.constant 0 : index
      %c0_53 = arith.constant 0 : index
      %61 = vector.load %arg8[%c0_51, %c0_52, %c0_53] : memref<1x1x64xf32, #tpu.memory_space<vmem>>, vector<1x1x64xf32>
      tpu.vector_store %arg8[%c0_51, %c0_52, %c0_53], %60 {strides = array<i32>} : memref<1x1x64xf32, #tpu.memory_space<vmem>>, vector<1x1x64xf32>,
    } else {
    }
    %c0_32 = arith.constant 0 : index
    %c0_33 = arith.constant 0 : index
    %c0_34 = arith.constant 0 : index
    %41 = vector.load %arg7[%c0_32, %c0_33, %c0_34] : memref<1x1x64xf32, #tpu.memory_space<vmem>>, vector<1x1x64xf32>
    %42 = vector.shape_cast %41 : vector<1x1x64xf32> to vector<1x64xf32>
    %cst_35 = arith.constant dense<0.000000e+00> : vector<64xf32>
    %43 = vector.multi_reduction <add>, %33, %cst_35 [0] : vector<128x64xf32> to vector<64xf32>
    %44 = vector.shape_cast %43 : vector<64xf32> to vector<1x64xf32>
    %45 = arith.addf %42, %44 : vector<1x64xf32>
    %c0_36 = arith.constant 0 : index
    %c0_37 = arith.constant 0 : index
    %c0_38 = arith.constant 0 : index
    %46 = vector.load %arg7[%c0_36, %c0_37, %c0_38] : memref<1x1x64xf32, #tpu.memory_space<vmem>>, vector<1x1x64xf32>
    %47 = vector.shape_cast %46 : vector<1x1x64xf32> to vector<1x64xf32>
    %48 = vector.shape_cast %45 : vector<1x64xf32> to vector<1x1x64xf32>
    tpu.vector_store %arg7[%c0_36, %c0_37, %c0_38], %48 {strides = array<i32>} : memref<1x1x64xf32, #tpu.memory_space<vmem>>, vector<1x1x64xf32>,
    %c0_39 = arith.constant 0 : index
    %c0_40 = arith.constant 0 : index
    %c0_41 = arith.constant 0 : index
    %49 = vector.load %arg8[%c0_39, %c0_40, %c0_41] : memref<1x1x64xf32, #tpu.memory_space<vmem>>, vector<1x1x64xf32>
    %50 = vector.shape_cast %49 : vector<1x1x64xf32> to vector<1x64xf32>
    %51 = arith.mulf %33, %33 : vector<128x64xf32>
    %cst_42 = arith.constant dense<0.000000e+00> : vector<64xf32>
    %52 = vector.multi_reduction <add>, %51, %cst_42 [0] : vector<128x64xf32> to vector<64xf32>
    %53 = vector.shape_cast %52 : vector<64xf32> to vector<1x64xf32>
    %54 = arith.addf %50, %53 : vector<1x64xf32>
    %c0_43 = arith.constant 0 : index
    %c0_44 = arith.constant 0 : index
    %c0_45 = arith.constant 0 : index
    %55 = vector.load %arg8[%c0_43, %c0_44, %c0_45] : memref<1x1x64xf32, #tpu.memory_space<vmem>>, vector<1x1x64xf32>
    %56 = vector.shape_cast %55 : vector<1x1x64xf32> to vector<1x64xf32>
    %57 = vector.shape_cast %54 : vector<1x64xf32> to vector<1x1x64xf32>
    tpu.vector_store %arg8[%c0_43, %c0_44, %c0_45], %57 {strides = array<i32>} : memref<1x1x64xf32, #tpu.memory_space<vmem>>, vector<1x1x64xf32>,
    return
  }
  func.func @transform_0(%arg0: i32, %arg1: i32) -> (i32, i32, i32, i32, i32) {
    %c0_i32 = arith.constant 0 : i32
    %c0_i32_0 = arith.constant 0 : i32
    %c0_i32_1 = arith.constant 0 : i32
    %c0_i32_2 = arith.constant 0 : i32
    %c0_i32_3 = arith.constant 0 : i32
    return %arg0, %c0_i32, %c0_i32_0, %c0_i32_1, %c0_i32_2 : i32, i32, i32, i32, i32
  }
  func.func @transform_1(%arg0: i32, %arg1: i32) -> (i32, i32, i32) {
    %c0_i32 = arith.constant 0 : i32
    %c0_i32_0 = arith.constant 0 : i32
    %c0_i32_1 = arith.constant 0 : i32
    %c0_i32_2 = arith.constant 0 : i32
    return %c0_i32, %c0_i32_0, %c0_i32_1 : i32, i32, i32
  }
  func.func @transform_2(%arg0: i32, %arg1: i32) -> (i32, i32, i32) {
    %c0_i32 = arith.constant 0 : i32
    %c0_i32_0 = arith.constant 0 : i32
    return %arg0, %arg1, %c0_i32 : i32, i32, i32
  }
  func.func @transform_3(%arg0: i32, %arg1: i32) -> (i32, i32) {
    %c0_i32 = arith.constant 0 : i32
    %c0_i32_0 = arith.constant 0 : i32
    %c0_i32_1 = arith.constant 0 : i32
    return %c0_i32, %c0_i32_0 : i32, i32
  }
  func.func @transform_4(%arg0: i32, %arg1: i32) -> (i32, i32, i32) {
    %c0_i32 = arith.constant 0 : i32
    %c0_i32_0 = arith.constant 0 : i32
    return %arg0, %arg1, %c0_i32 : i32, i32, i32
  }
  func.func @transform_5(%arg0: i32, %arg1: i32) -> (i32, i32, i32) {
    %c0_i32 = arith.constant 0 : i32
    %c0_i32_0 = arith.constant 0 : i32
    %c0_i32_1 = arith.constant 0 : i32
    return %arg0, %c0_i32, %c0_i32_0 : i32, i32, i32
  }
  func.func @transform_6(%arg0: i32, %arg1: i32) -> (i32, i32, i32) {
    %c0_i32 = arith.constant 0 : i32
    %c0_i32_0 = arith.constant 0 : i32
    %c0_i32_1 = arith.constant 0 : i32
    return %arg0, %c0_i32, %c0_i32_0 : i32, i32, i32
  }
}

module attributes {stable_mosaic.version = 11 : i64} {
  func.func @kernel(%arg0: i32, %arg1: i32, %arg2: memref<1x2x9x8x192xbf16, #tpu.memory_space<vmem>>, %arg3: memref<3x192x128xbf16, #tpu.memory_space<vmem>>, %arg4: memref<1x64x128xbf16, #tpu.memory_space<vmem>>, %arg5: memref<1x1x128xf32, #tpu.memory_space<vmem>>, %arg6: memref<1x1x128xf32, #tpu.memory_space<vmem>>) attributes {dimension_semantics = [#tpu.dimension_semantics<parallel>, #tpu.dimension_semantics<arbitrary>], iteration_bounds = array<i64: 2, 1>, scalar_prefetch = 0 : i64, scratch_operands = 0 : i64, tpu.core_type = #tpu.core_type<tc>, window_params = [{transform_indices = @transform_0, window_bounds = array<i64: 1, 2, 9, 8, 192>}, {pipeline_mode = #tpu.pipeline_mode<synchronous>, transform_indices = @transform_1, window_bounds = array<i64: 3, 192, 128>}, {transform_indices = @transform_2, window_bounds = array<i64: 1, 64, 128>}, {transform_indices = @transform_3, window_bounds = array<i64: 1, 1, 128>}, {transform_indices = @transform_4, window_bounds = array<i64: 1, 1, 128>}]} {
    %c8_i32 = arith.constant 8 : i32
    %0 = arith.muli %arg1, %c8_i32 : i32
    %cst = arith.constant 0.000000e+00 : f32
    %1 = vector.broadcast %cst : f32 to vector<64x128xf32>
    %c0_i32 = arith.constant 0 : i32
    %2 = arith.addi %0, %c0_i32 : i32
    %c0 = arith.constant 0 : index
    %c0_0 = arith.constant 0 : index
    %3 = arith.index_cast %2 : i32 to index
    %c0_1 = arith.constant 0 : index
    %c0_2 = arith.constant 0 : index
    %4 = vector.load %arg2[%c0, %c0_0, %3, %c0_1, %c0_2] : memref<1x2x9x8x192xbf16, #tpu.memory_space<vmem>>, vector<1x1x8x8x192xbf16>
    %5 = vector.shape_cast %4 : vector<1x1x8x8x192xbf16> to vector<8x8x192xbf16>
    %6 = vector.shape_cast %5 : vector<8x8x192xbf16> to vector<64x192xbf16>
    %c0_3 = arith.constant 0 : index
    %c0_4 = arith.constant 0 : index
    %c0_5 = arith.constant 0 : index
    %7 = vector.load %arg3[%c0_3, %c0_4, %c0_5] : memref<3x192x128xbf16, #tpu.memory_space<vmem>>, vector<1x192x128xbf16>
    %8 = vector.shape_cast %7 : vector<1x192x128xbf16> to vector<192x128xbf16>
    %cst_6 = arith.constant dense<0.000000e+00> : vector<64x128xf32>
    %9 = tpu.matmul %6, %8, %cst_6 {dimension_numbers = #tpu.dot_dimension_numbers<[1], [0], [0], [1], [0, 0, 1, 1], [], []>} : vector<64x192xbf16>, vector<192x128xbf16>, vector<64x128xf32> -> vector<64x128xf32>
    %10 = arith.addf %1, %9 : vector<64x128xf32>
    %c0_i32_7 = arith.constant 0 : i32
    %11 = arith.addi %0, %c0_i32_7 : i32
    %c0_8 = arith.constant 0 : index
    %c1 = arith.constant 1 : index
    %12 = arith.index_cast %11 : i32 to index
    %c0_9 = arith.constant 0 : index
    %c0_10 = arith.constant 0 : index
    %13 = vector.load %arg2[%c0_8, %c1, %12, %c0_9, %c0_10] : memref<1x2x9x8x192xbf16, #tpu.memory_space<vmem>>, vector<1x1x8x8x192xbf16>
    %14 = vector.shape_cast %13 : vector<1x1x8x8x192xbf16> to vector<8x8x192xbf16>
    %15 = vector.shape_cast %14 : vector<8x8x192xbf16> to vector<64x192xbf16>
    %c1_11 = arith.constant 1 : index
    %c0_12 = arith.constant 0 : index
    %c0_13 = arith.constant 0 : index
    %16 = vector.load %arg3[%c1_11, %c0_12, %c0_13] : memref<3x192x128xbf16, #tpu.memory_space<vmem>>, vector<1x192x128xbf16>
    %17 = vector.shape_cast %16 : vector<1x192x128xbf16> to vector<192x128xbf16>
    %cst_14 = arith.constant dense<0.000000e+00> : vector<64x128xf32>
    %18 = tpu.matmul %15, %17, %cst_14 {dimension_numbers = #tpu.dot_dimension_numbers<[1], [0], [0], [1], [0, 0, 1, 1], [], []>} : vector<64x192xbf16>, vector<192x128xbf16>, vector<64x128xf32> -> vector<64x128xf32>
    %19 = arith.addf %10, %18 : vector<64x128xf32>
    %c1_i32 = arith.constant 1 : i32
    %20 = arith.addi %0, %c1_i32 : i32
    %c0_15 = arith.constant 0 : index
    %c0_16 = arith.constant 0 : index
    %21 = arith.index_cast %20 : i32 to index
    %c0_17 = arith.constant 0 : index
    %c0_18 = arith.constant 0 : index
    %22 = vector.load %arg2[%c0_15, %c0_16, %21, %c0_17, %c0_18] : memref<1x2x9x8x192xbf16, #tpu.memory_space<vmem>>, vector<1x1x8x8x192xbf16>
    %23 = vector.shape_cast %22 : vector<1x1x8x8x192xbf16> to vector<8x8x192xbf16>
    %24 = vector.shape_cast %23 : vector<8x8x192xbf16> to vector<64x192xbf16>
    %c2 = arith.constant 2 : index
    %c0_19 = arith.constant 0 : index
    %c0_20 = arith.constant 0 : index
    %25 = vector.load %arg3[%c2, %c0_19, %c0_20] : memref<3x192x128xbf16, #tpu.memory_space<vmem>>, vector<1x192x128xbf16>
    %26 = vector.shape_cast %25 : vector<1x192x128xbf16> to vector<192x128xbf16>
    %cst_21 = arith.constant dense<0.000000e+00> : vector<64x128xf32>
    %27 = tpu.matmul %24, %26, %cst_21 {dimension_numbers = #tpu.dot_dimension_numbers<[1], [0], [0], [1], [0, 0, 1, 1], [], []>} : vector<64x192xbf16>, vector<192x128xbf16>, vector<64x128xf32> -> vector<64x128xf32>
    %28 = arith.addf %19, %27 : vector<64x128xf32>
    %29 = arith.truncf %28 : vector<64x128xf32> to vector<64x128xbf16>
    %c0_22 = arith.constant 0 : index
    %c0_23 = arith.constant 0 : index
    %c0_24 = arith.constant 0 : index
    %30 = vector.load %arg4[%c0_22, %c0_23, %c0_24] : memref<1x64x128xbf16, #tpu.memory_space<vmem>>, vector<1x64x128xbf16>
    %31 = vector.shape_cast %30 : vector<1x64x128xbf16> to vector<64x128xbf16>
    %32 = vector.shape_cast %29 : vector<64x128xbf16> to vector<1x64x128xbf16>
    tpu.vector_store %arg4[%c0_22, %c0_23, %c0_24], %32 {strides = array<i32>} : memref<1x64x128xbf16, #tpu.memory_space<vmem>>, vector<1x64x128xbf16>,
    %c0_i32_25 = arith.constant 0 : i32
    %33 = arith.cmpi eq, %arg1, %c0_i32_25 : i32
    %34 = arith.extui %33 : i1 to i32
    %c0_i32_26 = arith.constant 0 : i32
    %35 = arith.cmpi ne, %34, %c0_i32_26 : i32
    scf.if %35 {
      %cst_41 = arith.constant 0.000000e+00 : f32
      %53 = vector.broadcast %cst_41 : f32 to vector<1x1x128xf32>
      %c0_42 = arith.constant 0 : index
      %c0_43 = arith.constant 0 : index
      %c0_44 = arith.constant 0 : index
      %54 = vector.load %arg5[%c0_42, %c0_43, %c0_44] : memref<1x1x128xf32, #tpu.memory_space<vmem>>, vector<1x1x128xf32>
      tpu.vector_store %arg5[%c0_42, %c0_43, %c0_44], %53 {strides = array<i32>} : memref<1x1x128xf32, #tpu.memory_space<vmem>>, vector<1x1x128xf32>,
      %cst_45 = arith.constant 0.000000e+00 : f32
      %55 = vector.broadcast %cst_45 : f32 to vector<1x1x128xf32>
      %c0_46 = arith.constant 0 : index
      %c0_47 = arith.constant 0 : index
      %c0_48 = arith.constant 0 : index
      %56 = vector.load %arg6[%c0_46, %c0_47, %c0_48] : memref<1x1x128xf32, #tpu.memory_space<vmem>>, vector<1x1x128xf32>
      tpu.vector_store %arg6[%c0_46, %c0_47, %c0_48], %55 {strides = array<i32>} : memref<1x1x128xf32, #tpu.memory_space<vmem>>, vector<1x1x128xf32>,
    } else {
    }
    %c0_27 = arith.constant 0 : index
    %c0_28 = arith.constant 0 : index
    %c0_29 = arith.constant 0 : index
    %36 = vector.load %arg5[%c0_27, %c0_28, %c0_29] : memref<1x1x128xf32, #tpu.memory_space<vmem>>, vector<1x1x128xf32>
    %37 = vector.shape_cast %36 : vector<1x1x128xf32> to vector<1x128xf32>
    %cst_30 = arith.constant dense<0.000000e+00> : vector<128xf32>
    %38 = vector.multi_reduction <add>, %28, %cst_30 [0] : vector<64x128xf32> to vector<128xf32>
    %39 = vector.shape_cast %38 : vector<128xf32> to vector<1x128xf32>
    %40 = arith.addf %37, %39 : vector<1x128xf32>
    %c0_31 = arith.constant 0 : index
    %c0_32 = arith.constant 0 : index
    %c0_33 = arith.constant 0 : index
    %41 = vector.load %arg5[%c0_31, %c0_32, %c0_33] : memref<1x1x128xf32, #tpu.memory_space<vmem>>, vector<1x1x128xf32>
    %42 = vector.shape_cast %41 : vector<1x1x128xf32> to vector<1x128xf32>
    %43 = vector.shape_cast %40 : vector<1x128xf32> to vector<1x1x128xf32>
    tpu.vector_store %arg5[%c0_31, %c0_32, %c0_33], %43 {strides = array<i32>} : memref<1x1x128xf32, #tpu.memory_space<vmem>>, vector<1x1x128xf32>,
    %c0_34 = arith.constant 0 : index
    %c0_35 = arith.constant 0 : index
    %c0_36 = arith.constant 0 : index
    %44 = vector.load %arg6[%c0_34, %c0_35, %c0_36] : memref<1x1x128xf32, #tpu.memory_space<vmem>>, vector<1x1x128xf32>
    %45 = vector.shape_cast %44 : vector<1x1x128xf32> to vector<1x128xf32>
    %46 = arith.mulf %28, %28 : vector<64x128xf32>
    %cst_37 = arith.constant dense<0.000000e+00> : vector<128xf32>
    %47 = vector.multi_reduction <add>, %46, %cst_37 [0] : vector<64x128xf32> to vector<128xf32>
    %48 = vector.shape_cast %47 : vector<128xf32> to vector<1x128xf32>
    %49 = arith.addf %45, %48 : vector<1x128xf32>
    %c0_38 = arith.constant 0 : index
    %c0_39 = arith.constant 0 : index
    %c0_40 = arith.constant 0 : index
    %50 = vector.load %arg6[%c0_38, %c0_39, %c0_40] : memref<1x1x128xf32, #tpu.memory_space<vmem>>, vector<1x1x128xf32>
    %51 = vector.shape_cast %50 : vector<1x1x128xf32> to vector<1x128xf32>
    %52 = vector.shape_cast %49 : vector<1x128xf32> to vector<1x1x128xf32>
    tpu.vector_store %arg6[%c0_38, %c0_39, %c0_40], %52 {strides = array<i32>} : memref<1x1x128xf32, #tpu.memory_space<vmem>>, vector<1x1x128xf32>,
    return
  }
  func.func @transform_0(%arg0: i32, %arg1: i32) -> (i32, i32, i32, i32, i32) {
    %c0_i32 = arith.constant 0 : i32
    %c0_i32_0 = arith.constant 0 : i32
    %c0_i32_1 = arith.constant 0 : i32
    %c0_i32_2 = arith.constant 0 : i32
    %c0_i32_3 = arith.constant 0 : i32
    return %arg0, %c0_i32, %c0_i32_0, %c0_i32_1, %c0_i32_2 : i32, i32, i32, i32, i32
  }
  func.func @transform_1(%arg0: i32, %arg1: i32) -> (i32, i32, i32) {
    %c0_i32 = arith.constant 0 : i32
    %c0_i32_0 = arith.constant 0 : i32
    %c0_i32_1 = arith.constant 0 : i32
    %c0_i32_2 = arith.constant 0 : i32
    return %c0_i32, %c0_i32_0, %c0_i32_1 : i32, i32, i32
  }
  func.func @transform_2(%arg0: i32, %arg1: i32) -> (i32, i32, i32) {
    %c0_i32 = arith.constant 0 : i32
    %c0_i32_0 = arith.constant 0 : i32
    return %arg0, %arg1, %c0_i32 : i32, i32, i32
  }
  func.func @transform_3(%arg0: i32, %arg1: i32) -> (i32, i32, i32) {
    %c0_i32 = arith.constant 0 : i32
    %c0_i32_0 = arith.constant 0 : i32
    %c0_i32_1 = arith.constant 0 : i32
    return %arg0, %c0_i32, %c0_i32_0 : i32, i32, i32
  }
  func.func @transform_4(%arg0: i32, %arg1: i32) -> (i32, i32, i32) {
    %c0_i32 = arith.constant 0 : i32
    %c0_i32_0 = arith.constant 0 : i32
    %c0_i32_1 = arith.constant 0 : i32
    return %arg0, %c0_i32, %c0_i32_0 : i32, i32, i32
  }
}

module attributes {stable_mosaic.version = 11 : i64} {
  func.func @kernel(%arg0: i32, %arg1: i32, %arg2: memref<1x1x10x8x384xbf16, #tpu.memory_space<vmem>>, %arg3: memref<3x384x128xbf16, #tpu.memory_space<vmem>>, %arg4: memref<1x64x64xbf16, #tpu.memory_space<vmem>>, %arg5: memref<64x128xbf16, #tpu.memory_space<vmem>>, %arg6: memref<1x64x128xbf16, #tpu.memory_space<vmem>>, %arg7: memref<1x1x128xf32, #tpu.memory_space<vmem>>, %arg8: memref<1x1x128xf32, #tpu.memory_space<vmem>>) attributes {dimension_semantics = [#tpu.dimension_semantics<parallel>, #tpu.dimension_semantics<arbitrary>], iteration_bounds = array<i64: 2, 1>, scalar_prefetch = 0 : i64, scratch_operands = 0 : i64, tpu.core_type = #tpu.core_type<tc>, window_params = [{transform_indices = @transform_0, window_bounds = array<i64: 1, 1, 10, 8, 384>}, {pipeline_mode = #tpu.pipeline_mode<synchronous>, transform_indices = @transform_1, window_bounds = array<i64: 3, 384, 128>}, {transform_indices = @transform_2, window_bounds = array<i64: 1, 64, 64>}, {pipeline_mode = #tpu.pipeline_mode<synchronous>, transform_indices = @transform_3, window_bounds = array<i64: 64, 128>}, {transform_indices = @transform_4, window_bounds = array<i64: 1, 64, 128>}, {transform_indices = @transform_5, window_bounds = array<i64: 1, 1, 128>}, {transform_indices = @transform_6, window_bounds = array<i64: 1, 1, 128>}]} {
    %c8_i32 = arith.constant 8 : i32
    %0 = arith.muli %arg1, %c8_i32 : i32
    %cst = arith.constant 0.000000e+00 : f32
    %1 = vector.broadcast %cst : f32 to vector<64x128xf32>
    %c0_i32 = arith.constant 0 : i32
    %2 = arith.addi %0, %c0_i32 : i32
    %c0 = arith.constant 0 : index
    %c0_0 = arith.constant 0 : index
    %3 = arith.index_cast %2 : i32 to index
    %c0_1 = arith.constant 0 : index
    %c0_2 = arith.constant 0 : index
    %4 = vector.load %arg2[%c0, %c0_0, %3, %c0_1, %c0_2] : memref<1x1x10x8x384xbf16, #tpu.memory_space<vmem>>, vector<1x1x8x8x384xbf16>
    %5 = vector.shape_cast %4 : vector<1x1x8x8x384xbf16> to vector<8x8x384xbf16>
    %6 = vector.shape_cast %5 : vector<8x8x384xbf16> to vector<64x384xbf16>
    %c0_3 = arith.constant 0 : index
    %c0_4 = arith.constant 0 : index
    %c0_5 = arith.constant 0 : index
    %7 = vector.load %arg3[%c0_3, %c0_4, %c0_5] : memref<3x384x128xbf16, #tpu.memory_space<vmem>>, vector<1x384x128xbf16>
    %8 = vector.shape_cast %7 : vector<1x384x128xbf16> to vector<384x128xbf16>
    %cst_6 = arith.constant dense<0.000000e+00> : vector<64x128xf32>
    %9 = tpu.matmul %6, %8, %cst_6 {dimension_numbers = #tpu.dot_dimension_numbers<[1], [0], [0], [1], [0, 0, 1, 1], [], []>} : vector<64x384xbf16>, vector<384x128xbf16>, vector<64x128xf32> -> vector<64x128xf32>
    %10 = arith.addf %1, %9 : vector<64x128xf32>
    %c1_i32 = arith.constant 1 : i32
    %11 = arith.addi %0, %c1_i32 : i32
    %c0_7 = arith.constant 0 : index
    %c0_8 = arith.constant 0 : index
    %12 = arith.index_cast %11 : i32 to index
    %c0_9 = arith.constant 0 : index
    %c0_10 = arith.constant 0 : index
    %13 = vector.load %arg2[%c0_7, %c0_8, %12, %c0_9, %c0_10] : memref<1x1x10x8x384xbf16, #tpu.memory_space<vmem>>, vector<1x1x8x8x384xbf16>
    %14 = vector.shape_cast %13 : vector<1x1x8x8x384xbf16> to vector<8x8x384xbf16>
    %15 = vector.shape_cast %14 : vector<8x8x384xbf16> to vector<64x384xbf16>
    %c1 = arith.constant 1 : index
    %c0_11 = arith.constant 0 : index
    %c0_12 = arith.constant 0 : index
    %16 = vector.load %arg3[%c1, %c0_11, %c0_12] : memref<3x384x128xbf16, #tpu.memory_space<vmem>>, vector<1x384x128xbf16>
    %17 = vector.shape_cast %16 : vector<1x384x128xbf16> to vector<384x128xbf16>
    %cst_13 = arith.constant dense<0.000000e+00> : vector<64x128xf32>
    %18 = tpu.matmul %15, %17, %cst_13 {dimension_numbers = #tpu.dot_dimension_numbers<[1], [0], [0], [1], [0, 0, 1, 1], [], []>} : vector<64x384xbf16>, vector<384x128xbf16>, vector<64x128xf32> -> vector<64x128xf32>
    %19 = arith.addf %10, %18 : vector<64x128xf32>
    %c2_i32 = arith.constant 2 : i32
    %20 = arith.addi %0, %c2_i32 : i32
    %c0_14 = arith.constant 0 : index
    %c0_15 = arith.constant 0 : index
    %21 = arith.index_cast %20 : i32 to index
    %c0_16 = arith.constant 0 : index
    %c0_17 = arith.constant 0 : index
    %22 = vector.load %arg2[%c0_14, %c0_15, %21, %c0_16, %c0_17] : memref<1x1x10x8x384xbf16, #tpu.memory_space<vmem>>, vector<1x1x8x8x384xbf16>
    %23 = vector.shape_cast %22 : vector<1x1x8x8x384xbf16> to vector<8x8x384xbf16>
    %24 = vector.shape_cast %23 : vector<8x8x384xbf16> to vector<64x384xbf16>
    %c2 = arith.constant 2 : index
    %c0_18 = arith.constant 0 : index
    %c0_19 = arith.constant 0 : index
    %25 = vector.load %arg3[%c2, %c0_18, %c0_19] : memref<3x384x128xbf16, #tpu.memory_space<vmem>>, vector<1x384x128xbf16>
    %26 = vector.shape_cast %25 : vector<1x384x128xbf16> to vector<384x128xbf16>
    %cst_20 = arith.constant dense<0.000000e+00> : vector<64x128xf32>
    %27 = tpu.matmul %24, %26, %cst_20 {dimension_numbers = #tpu.dot_dimension_numbers<[1], [0], [0], [1], [0, 0, 1, 1], [], []>} : vector<64x384xbf16>, vector<384x128xbf16>, vector<64x128xf32> -> vector<64x128xf32>
    %28 = arith.addf %19, %27 : vector<64x128xf32>
    %c0_21 = arith.constant 0 : index
    %c0_22 = arith.constant 0 : index
    %c0_23 = arith.constant 0 : index
    %29 = vector.load %arg4[%c0_21, %c0_22, %c0_23] : memref<1x64x64xbf16, #tpu.memory_space<vmem>>, vector<1x64x64xbf16>
    %30 = vector.shape_cast %29 : vector<1x64x64xbf16> to vector<64x64xbf16>
    %c0_24 = arith.constant 0 : index
    %c0_25 = arith.constant 0 : index
    %31 = vector.load %arg5[%c0_24, %c0_25] : memref<64x128xbf16, #tpu.memory_space<vmem>>, vector<64x128xbf16>
    %cst_26 = arith.constant dense<0.000000e+00> : vector<64x128xf32>
    %32 = tpu.matmul %30, %31, %cst_26 {dimension_numbers = #tpu.dot_dimension_numbers<[1], [0], [0], [1], [0, 0, 1, 1], [], []>} : vector<64x64xbf16>, vector<64x128xbf16>, vector<64x128xf32> -> vector<64x128xf32>
    %33 = arith.addf %28, %32 : vector<64x128xf32>
    %34 = arith.truncf %33 : vector<64x128xf32> to vector<64x128xbf16>
    %c0_27 = arith.constant 0 : index
    %c0_28 = arith.constant 0 : index
    %c0_29 = arith.constant 0 : index
    %35 = vector.load %arg6[%c0_27, %c0_28, %c0_29] : memref<1x64x128xbf16, #tpu.memory_space<vmem>>, vector<1x64x128xbf16>
    %36 = vector.shape_cast %35 : vector<1x64x128xbf16> to vector<64x128xbf16>
    %37 = vector.shape_cast %34 : vector<64x128xbf16> to vector<1x64x128xbf16>
    tpu.vector_store %arg6[%c0_27, %c0_28, %c0_29], %37 {strides = array<i32>} : memref<1x64x128xbf16, #tpu.memory_space<vmem>>, vector<1x64x128xbf16>,
    %c0_i32_30 = arith.constant 0 : i32
    %38 = arith.cmpi eq, %arg1, %c0_i32_30 : i32
    %39 = arith.extui %38 : i1 to i32
    %c0_i32_31 = arith.constant 0 : i32
    %40 = arith.cmpi ne, %39, %c0_i32_31 : i32
    scf.if %40 {
      %cst_46 = arith.constant 0.000000e+00 : f32
      %58 = vector.broadcast %cst_46 : f32 to vector<1x1x128xf32>
      %c0_47 = arith.constant 0 : index
      %c0_48 = arith.constant 0 : index
      %c0_49 = arith.constant 0 : index
      %59 = vector.load %arg7[%c0_47, %c0_48, %c0_49] : memref<1x1x128xf32, #tpu.memory_space<vmem>>, vector<1x1x128xf32>
      tpu.vector_store %arg7[%c0_47, %c0_48, %c0_49], %58 {strides = array<i32>} : memref<1x1x128xf32, #tpu.memory_space<vmem>>, vector<1x1x128xf32>,
      %cst_50 = arith.constant 0.000000e+00 : f32
      %60 = vector.broadcast %cst_50 : f32 to vector<1x1x128xf32>
      %c0_51 = arith.constant 0 : index
      %c0_52 = arith.constant 0 : index
      %c0_53 = arith.constant 0 : index
      %61 = vector.load %arg8[%c0_51, %c0_52, %c0_53] : memref<1x1x128xf32, #tpu.memory_space<vmem>>, vector<1x1x128xf32>
      tpu.vector_store %arg8[%c0_51, %c0_52, %c0_53], %60 {strides = array<i32>} : memref<1x1x128xf32, #tpu.memory_space<vmem>>, vector<1x1x128xf32>,
    } else {
    }
    %c0_32 = arith.constant 0 : index
    %c0_33 = arith.constant 0 : index
    %c0_34 = arith.constant 0 : index
    %41 = vector.load %arg7[%c0_32, %c0_33, %c0_34] : memref<1x1x128xf32, #tpu.memory_space<vmem>>, vector<1x1x128xf32>
    %42 = vector.shape_cast %41 : vector<1x1x128xf32> to vector<1x128xf32>
    %cst_35 = arith.constant dense<0.000000e+00> : vector<128xf32>
    %43 = vector.multi_reduction <add>, %33, %cst_35 [0] : vector<64x128xf32> to vector<128xf32>
    %44 = vector.shape_cast %43 : vector<128xf32> to vector<1x128xf32>
    %45 = arith.addf %42, %44 : vector<1x128xf32>
    %c0_36 = arith.constant 0 : index
    %c0_37 = arith.constant 0 : index
    %c0_38 = arith.constant 0 : index
    %46 = vector.load %arg7[%c0_36, %c0_37, %c0_38] : memref<1x1x128xf32, #tpu.memory_space<vmem>>, vector<1x1x128xf32>
    %47 = vector.shape_cast %46 : vector<1x1x128xf32> to vector<1x128xf32>
    %48 = vector.shape_cast %45 : vector<1x128xf32> to vector<1x1x128xf32>
    tpu.vector_store %arg7[%c0_36, %c0_37, %c0_38], %48 {strides = array<i32>} : memref<1x1x128xf32, #tpu.memory_space<vmem>>, vector<1x1x128xf32>,
    %c0_39 = arith.constant 0 : index
    %c0_40 = arith.constant 0 : index
    %c0_41 = arith.constant 0 : index
    %49 = vector.load %arg8[%c0_39, %c0_40, %c0_41] : memref<1x1x128xf32, #tpu.memory_space<vmem>>, vector<1x1x128xf32>
    %50 = vector.shape_cast %49 : vector<1x1x128xf32> to vector<1x128xf32>
    %51 = arith.mulf %33, %33 : vector<64x128xf32>
    %cst_42 = arith.constant dense<0.000000e+00> : vector<128xf32>
    %52 = vector.multi_reduction <add>, %51, %cst_42 [0] : vector<64x128xf32> to vector<128xf32>
    %53 = vector.shape_cast %52 : vector<128xf32> to vector<1x128xf32>
    %54 = arith.addf %50, %53 : vector<1x128xf32>
    %c0_43 = arith.constant 0 : index
    %c0_44 = arith.constant 0 : index
    %c0_45 = arith.constant 0 : index
    %55 = vector.load %arg8[%c0_43, %c0_44, %c0_45] : memref<1x1x128xf32, #tpu.memory_space<vmem>>, vector<1x1x128xf32>
    %56 = vector.shape_cast %55 : vector<1x1x128xf32> to vector<1x128xf32>
    %57 = vector.shape_cast %54 : vector<1x128xf32> to vector<1x1x128xf32>
    tpu.vector_store %arg8[%c0_43, %c0_44, %c0_45], %57 {strides = array<i32>} : memref<1x1x128xf32, #tpu.memory_space<vmem>>, vector<1x1x128xf32>,
    return
  }
  func.func @transform_0(%arg0: i32, %arg1: i32) -> (i32, i32, i32, i32, i32) {
    %c0_i32 = arith.constant 0 : i32
    %c0_i32_0 = arith.constant 0 : i32
    %c0_i32_1 = arith.constant 0 : i32
    %c0_i32_2 = arith.constant 0 : i32
    %c0_i32_3 = arith.constant 0 : i32
    return %arg0, %c0_i32, %c0_i32_0, %c0_i32_1, %c0_i32_2 : i32, i32, i32, i32, i32
  }
  func.func @transform_1(%arg0: i32, %arg1: i32) -> (i32, i32, i32) {
    %c0_i32 = arith.constant 0 : i32
    %c0_i32_0 = arith.constant 0 : i32
    %c0_i32_1 = arith.constant 0 : i32
    %c0_i32_2 = arith.constant 0 : i32
    return %c0_i32, %c0_i32_0, %c0_i32_1 : i32, i32, i32
  }
  func.func @transform_2(%arg0: i32, %arg1: i32) -> (i32, i32, i32) {
    %c0_i32 = arith.constant 0 : i32
    %c0_i32_0 = arith.constant 0 : i32
    return %arg0, %arg1, %c0_i32 : i32, i32, i32
  }
  func.func @transform_3(%arg0: i32, %arg1: i32) -> (i32, i32) {
    %c0_i32 = arith.constant 0 : i32
    %c0_i32_0 = arith.constant 0 : i32
    %c0_i32_1 = arith.constant 0 : i32
    return %c0_i32, %c0_i32_0 : i32, i32
  }
  func.func @transform_4(%arg0: i32, %arg1: i32) -> (i32, i32, i32) {
    %c0_i32 = arith.constant 0 : i32
    %c0_i32_0 = arith.constant 0 : i32
    return %arg0, %arg1, %c0_i32 : i32, i32, i32
  }
  func.func @transform_5(%arg0: i32, %arg1: i32) -> (i32, i32, i32) {
    %c0_i32 = arith.constant 0 : i32
    %c0_i32_0 = arith.constant 0 : i32
    %c0_i32_1 = arith.constant 0 : i32
    return %arg0, %c0_i32, %c0_i32_0 : i32, i32, i32
  }
  func.func @transform_6(%arg0: i32, %arg1: i32) -> (i32, i32, i32) {
    %c0_i32 = arith.constant 0 : i32
    %c0_i32_0 = arith.constant 0 : i32
    %c0_i32_1 = arith.constant 0 : i32
    return %arg0, %c0_i32, %c0_i32_0 : i32, i32, i32
  }
}

module attributes {stable_mosaic.version = 11 : i64} {
  func.func @_head_kernel(%arg0: memref<2x64x128xbf16, #tpu.memory_space<vmem>>, %arg1: memref<1x1x128xf32, #tpu.memory_space<vmem>>, %arg2: memref<1x1x128xf32, #tpu.memory_space<vmem>>, %arg3: memref<128x10xf32, #tpu.memory_space<vmem>>, %arg4: memref<1x10xf32, #tpu.memory_space<vmem>>, %arg5: memref<2x10xf32, #tpu.memory_space<vmem>>) attributes {dimension_semantics = [], scalar_prefetch = 0 : i64, scratch_operands = 0 : i64, tpu.core_type = #tpu.core_type<tc>} {
    %c0 = arith.constant 0 : index
    %c0_0 = arith.constant 0 : index
    %c0_1 = arith.constant 0 : index
    %0 = vector.load %arg0[%c0, %c0_0, %c0_1] : memref<2x64x128xbf16, #tpu.memory_space<vmem>>, vector<2x64x128xbf16>
    %1 = arith.extf %0 : vector<2x64x128xbf16> to vector<2x64x128xf32>
    %c0_2 = arith.constant 0 : index
    %c0_3 = arith.constant 0 : index
    %c0_4 = arith.constant 0 : index
    %2 = vector.load %arg1[%c0_2, %c0_3, %c0_4] : memref<1x1x128xf32, #tpu.memory_space<vmem>>, vector<1x1x128xf32>
    %3 = vector.broadcast %2 : vector<1x1x128xf32> to vector<2x64x128xf32>
    %4 = arith.mulf %1, %3 : vector<2x64x128xf32>
    %c0_5 = arith.constant 0 : index
    %c0_6 = arith.constant 0 : index
    %c0_7 = arith.constant 0 : index
    %5 = vector.load %arg2[%c0_5, %c0_6, %c0_7] : memref<1x1x128xf32, #tpu.memory_space<vmem>>, vector<1x1x128xf32>
    %6 = vector.broadcast %5 : vector<1x1x128xf32> to vector<2x64x128xf32>
    %7 = arith.addf %4, %6 : vector<2x64x128xf32>
    %cst = arith.constant 0.000000e+00 : f32
    %8 = vector.broadcast %cst : f32 to vector<2x64x128xf32>
    %9 = arith.maximumf %7, %8 : vector<2x64x128xf32>
    %cst_8 = arith.constant dense<0.000000e+00> : vector<2x128xf32>
    %10 = vector.multi_reduction <add>, %9, %cst_8 [1] : vector<2x64x128xf32> to vector<2x128xf32>
    %cst_9 = arith.constant 6.400000e+01 : f32
    %11 = vector.broadcast %cst_9 : f32 to vector<2x128xf32>
    %12 = arith.divf %10, %11 : vector<2x128xf32>
    %c0_10 = arith.constant 0 : index
    %c0_11 = arith.constant 0 : index
    %13 = vector.load %arg3[%c0_10, %c0_11] : memref<128x10xf32, #tpu.memory_space<vmem>>, vector<128x10xf32>
    %cst_12 = arith.constant dense<0.000000e+00> : vector<2x10xf32>
    %14 = tpu.matmul %12, %13, %cst_12 {dimension_numbers = #tpu.dot_dimension_numbers<[1], [0], [0], [1], [0, 0, 1, 1], [], []>} : vector<2x128xf32>, vector<128x10xf32>, vector<2x10xf32> -> vector<2x10xf32>
    %c0_13 = arith.constant 0 : index
    %c0_14 = arith.constant 0 : index
    %15 = vector.load %arg4[%c0_13, %c0_14] : memref<1x10xf32, #tpu.memory_space<vmem>>, vector<1x10xf32>
    %16 = vector.broadcast %15 : vector<1x10xf32> to vector<2x10xf32>
    %17 = arith.addf %14, %16 : vector<2x10xf32>
    %c0_15 = arith.constant 0 : index
    %c0_16 = arith.constant 0 : index
    %18 = vector.load %arg5[%c0_15, %c0_16] : memref<2x10xf32, #tpu.memory_space<vmem>>, vector<2x10xf32>
    tpu.vector_store %arg5[%c0_15, %c0_16], %17 {strides = array<i32>} : memref<2x10xf32, #tpu.memory_space<vmem>>, vector<2x10xf32>,
    return
  }
}

</mosaic_0001>

<bundles_post_ra>
// kernel: _lambda_.8
= control target key start
LH: loop header
LB: loop body
LE: loop exit
PB: predicated region body
PF: predicated region fallthrough
CT: control target
= control target key end

     0   :  { %s1968_s15 = smov 0   ;;  %s1970_s16 = smov 0   ;;  %s2568_s0 = inlined_call_operand.vmem [shape: bf16[2,1,34,32,9], index: 0, kind: input, shape index: {}]   ;;  %s2569_s1 = inlined_call_operand.vmem [shape: bf16[3,9,16], index: 1, kind: input, shape index: {}]   ;;  %s2570_s2 = inlined_call_operand.vmem [shape: bf16[2,1024,16], index: 2, kind: output, shape index: {0}]   ;;  %s2571_s3 = inlined_call_operand.vmem [shape: f32[2,1,16], index: 3, kind: output, shape index: {1}]   ;;  %s2572_s4 = inlined_call_operand.vmem [shape: f32[2,1,16], index: 4, kind: output, shape index: {2}]  }
   0x1   :  { %s1972_s17 = smov 0   ;;  %s1974_s18 = smov 0  }
   0x2   :  { %s1976_s19 = smov 0  }
   0x3 LB: > { %s24_s20 = sadd.s32 1, %s1931_s17  ;;  %s27_s21 = sadd.s32 1, %s1935_s18  ;;  %s1939_s19 = sphi %s1976_s19, %s15_s19   ;;  %s1935_s18 = sphi %s1974_s18, %s2576_s18   ;;  %s1931_s17 = sphi %s1972_s17, %s2575_s17   ;;  %s1927_s16 = sphi %s1970_s16, %s2574_s16   ;;  %s1923_s15 = sphi %s1968_s15, %s2573_s15  }
   0x4   : > { %p25_p0 = scmp.ge.s32.totalorder %s24_s20, 4  ;;  %p1465_p1 = scmp.ge.s32.totalorder %s1939_s19, 1 }
   0x5   : > { %p181_p2 = scmp.lt.s32.totalorder %s1939_s19, 9 }
   0x6   : > { %s2578_s20 = smov (%p25_p0, %s24_s20), 0  ;;  %s2580_s21 = smov (!%p25_p0, %s27_s21), %s1935_s18 }
   0x7   : > { %p182_p3 = pnand %p1465_p1, %p181_p2  ;;  %p29_p4 = scmp.ge.s32.totalorder %s2580_s21, 2 }
   0x8   : > { %p217_p5 = scmp.lt.s32.totalorder (!%p182_p3), %s1927_s16, 1  ;;  %s1801_s8 = sshll.u32 (!%p182_p3), %s1923_s15, 7 }
   0x9   : > { %s2582_s21 = smov (%p29_p4, %s2580_s21), 0  ;;  %185 = sbr.rel (%p182_p3) target bundleno = 431 (0x1af), region = 28 }
   0xa   : > { %s1467_s27 = sshll.u32 (!%p182_p3), %s1923_s15, 5  ;;  %p1797_p7 = scmp.ne.s32.totalorder (!%p182_p3), %s1923_s15, 0 }
   0xb   : > { %p225_p6 = scmp.lt.s32.totalorder (!%p182_p3), %s1467_s27, 127 }
   0xe   : > { %v1575_v0 = vld [vmem:[%s2569_s1 + $0x8] sm:$0xf]  ;;  %v1836_v1 = vld [vmem:[%s2569_s1 + $0x8] sm:$0x10]  ;;  %vm450_vm0 = vcmask 1043456   ;;  %vm451_vm1 = vcmask 1044480  }
   0xf   : > { %v1576_v2 = vor.u32 %v1836_v1, %v1575_v0  ;;  %v1659_v3 = vld [vmem:[%s2569_s1] sm:$0xf]  ;;  %v1818_v4 = vld [vmem:[%s2569_s1] sm:$0x10]  ;;  %v1941_v5 = vmov 65535   ;;  %s2584_s16 = smov (!%p217_p5, %s1927_s16), 1 }
  0x10   : > { %v452_v6 = vsel %vm450_vm0, 4294967295, %v1941_v5  ;;  %v1660_v7 = vor.u32 %v1818_v4, %v1659_v3  ;;  %v1779_v8 = vld [vmem:[%s2569_s1 + $0x10] sm:$0xf]  ;;  %v1854_v9 = vld [vmem:[%s2569_s1 + $0x10] sm:$0x10]  ;;  %s1858_s9 = smul.u32 544, %s2584_s16  ;;  %s2030_s12 = scalar_lea.vmem %s2571_s3, %s2584_s16 }
  0x11   : > { %v453_v10 = vsel %vm451_vm1, %v452_v6, 0  ;;  %v1780_v11 = vor.u32 %v1854_v9, %v1779_v8  ;;  %s2036_s22 = scalar_lea.vmem %s2572_s4, %s2584_s16  ;;  %vm401_vm2 = vcmask 72704   ;;  %s2586_s27 = smov (!%p225_p6, %s1467_s27), 127  ;;  %vm1099_vm3 = vcmask 125952  }
  0x12   : > { %v455_v12 = vand.u32 %v1576_v2, %v453_v10  ;;  %v680_v13 = vand.u32 %v1660_v7, %v453_v10  ;;  %s221_s25 = scalar_lea.vmem %s2568_s0, %s1858_s9  ;;  %s1468_s28 = sshll.u32 %s2584_s16, 7 }
  0x13   : > { %v944_v14 = vand.u32 %v1780_v11, %v453_v10  ;;  %s2041_s26 = scalar_lea.vmem %s221_s25, %s1801_s8  ;;  %s228_s29 = sadd.s32 %s1468_s28, %s2586_s27 }
  0x14   : > { %464 = vmatpush.bf16.msra.mxu0 %v455_v12  ;;  %1855 = vmatpush.bf16.msra.mxu3 %v455_v12  ;;  %v1820_v15 = vld [vmem:[%s2041_s26 + $0x10] sm:$0xff]  ;;  %v1802_v17 = vld [vmem:[%s2041_s26] sm:$0xff]  ;;  %v1821_v19 = vld [vmem:[%s2041_s26 + $0x18] sm:$0xff]  ;;  %s1469_s30 = sshll.u32 %s228_s29, 2 }
  0x15   : > { %689 = vmatpush.bf16.msra.mxu1 %v680_v13  ;;  %953 = vmatpush.bf16.msra.mxu2 %v944_v14  ;;  %v1832_v16 = vld [vmem:[%s2041_s26 + $0x70] sm:$0xff]  ;;  %v1838_v18 = vld [vmem:[%s2041_s26 + $0x20] sm:$0xff]  ;;  %v1833_v20 = vld [vmem:[%s2041_s26 + $0x78] sm:$0xff]  ;;  %s2124_s6 = scalar_lea.vmem %s2570_s2, %s1469_s30 }
  0x16   : > { %v1803_v21 = vld [vmem:[%s2041_s26 + $0x8] sm:$0xff]  ;;  %v1822_v23 = vld [vmem:[%s2041_s26 + $0x20] sm:$0xff]  ;;  %v1804_v25 = vld [vmem:[%s2041_s26 + $0x10] sm:$0xff] }
  0x17   : > { %1577 = vmatmul.msk.bf16.vlgmr.msra.gmra.mxu0 %vm401_vm2, %v1820_v15  ;;  %1589 = vmatmul.msk.bf16.vlgmr.msra.gmra.mxu3 %vm401_vm2, %v1832_v16  ;;  %v1839_v22 = vld [vmem:[%s2041_s26 + $0x28] sm:$0xff]  ;;  %v1834_v24 = vld [vmem:[%s2041_s26 + $0x80] sm:$0xff]  ;;  %v1840_v26 = vld [vmem:[%s2041_s26 + $0x30] sm:$0xff] }
  0x18   : > { %1856 = vmatpush.bf16.msrb.mxu3 %v680_v13  ;;  %1661 = vmatmul.msk.bf16.vlgmr.msra.gmra.mxu1 %vm401_vm2, %v1802_v17  ;;  %v1823_v27 = vld [vmem:[%s2041_s26 + $0x28] sm:$0xff]  ;;  %v1805_v29 = vld [vmem:[%s2041_s26 + $0x18] sm:$0xff]  ;;  %v1824_v31 = vld [vmem:[%s2041_s26 + $0x30] sm:$0xff] }
  0x19   : > { %1781 = vmatmul.msk.bf16.vlgmr.msra.gmra.mxu2 %vm401_vm2, %v1838_v18  ;;  %v1835_v28 = vld [vmem:[%s2041_s26 + $0x88] sm:$0xff]  ;;  %v1841_v30 = vld [vmem:[%s2041_s26 + $0x38] sm:$0xff]  ;;  %v1814_v32 = vld [vmem:[%s2041_s26 + $0x60] sm:$0xff] }
  0x1a   : > { %v1806_v33 = vld [vmem:[%s2041_s26 + $0x20] sm:$0xff]  ;;  %v1825_v35 = vld [vmem:[%s2041_s26 + $0x38] sm:$0xff]  ;;  %v1815_v36 = vld [vmem:[%s2041_s26 + $0x68] sm:$0xff] }
  0x1b   : > { %v1842_v34 = vld [vmem:[%s2041_s26 + $0x40] sm:$0xff]  ;;  %v1807_v37 = vld [vmem:[%s2041_s26 + $0x28] sm:$0xff]  ;;  %v1816_v40 = vld [vmem:[%s2041_s26 + $0x70] sm:$0xff] }
  0x1c   : > { %1857 = vmatpush.bf16.msra.mxu3 %v944_v14  ;;  %v1843_v38 = vld [vmem:[%s2041_s26 + $0x48] sm:$0xff]  ;;  %v1826_v39 = vld [vmem:[%s2041_s26 + $0x40] sm:$0xff]  ;;  %v1808_v41 = vld [vmem:[%s2041_s26 + $0x30] sm:$0xff] }
  0x1d   : > { %v1844_v42 = vld [vmem:[%s2041_s26 + $0x50] sm:$0xff]  ;;  %v1827_v43 = vld [vmem:[%s2041_s26 + $0x48] sm:$0xff]  ;;  %v1817_v44 = vld [vmem:[%s2041_s26 + $0x78] sm:$0xff] }
  0x1e   : > { %v1809_v45 = vld [vmem:[%s2041_s26 + $0x38] sm:$0xff]  ;;  %v1828_v47 = vld [vmem:[%s2041_s26 + $0x50] sm:$0xff]  ;;  %v1850_v48 = vld [vmem:[%s2041_s26 + $0x80] sm:$0xff] }
  0x1f   : > { %v1845_v46 = vld [vmem:[%s2041_s26 + $0x58] sm:$0xff]  ;;  %v1810_v50 = vld [vmem:[%s2041_s26 + $0x40] sm:$0xff]  ;;  %v1851_v0 = vld [vmem:[%s2041_s26 + $0x88] sm:$0xff] }
  0x20   : > { %v1846_v51 = vld [vmem:[%s2041_s26 + $0x60] sm:$0xff]  ;;  %v1829_v63 = vld [vmem:[%s2041_s26 + $0x58] sm:$0xff]  ;;  %v1811_v3 = vld [vmem:[%s2041_s26 + $0x48] sm:$0xff] }
  0x21   : > { %v1847_v4 = vld [vmem:[%s2041_s26 + $0x68] sm:$0xff]  ;;  %v1830_v17 = vld [vmem:[%s2041_s26 + $0x60] sm:$0xff]  ;;  %v1852_v18 = vld [vmem:[%s2041_s26 + $0x90] sm:$0xff] }
  0x27   : > { %1578 = vmatmul.msk.bf16.gmra.mxu0 %vm401_vm2, %v1821_v19  ;;  %1590 = vmatmul.msk.bf16.gmra.mxu3 %vm401_vm2, %v1833_v20 }
  0x28   : > { %1662 = vmatmul.msk.bf16.gmra.mxu1 %vm401_vm2, %v1803_v21  ;;  %v1812_v21 = vld [vmem:[%s2041_s26 + $0x50] sm:$0xff] }
  0x29   : > { %1782 = vmatmul.msk.bf16.gmra.mxu2 %vm401_vm2, %v1839_v22  ;;  %v1848_v22 = vld [vmem:[%s2041_s26 + $0x70] sm:$0xff] }
  0x37   : > { %1579 = vmatmul.msk.bf16.gmra.mxu0 %vm401_vm2, %v1822_v23  ;;  %1591 = vmatmul.msk.bf16.gmra.mxu3 %vm401_vm2, %v1834_v24 }
  0x38   : > { %1663 = vmatmul.msk.bf16.gmra.mxu1 %vm401_vm2, %v1804_v25 }
  0x39   : > { %1783 = vmatmul.msk.bf16.gmra.mxu2 %vm401_vm2, %v1840_v26 }
  0x47   : > { %1580 = vmatmul.msk.bf16.gmra.mxu0 %vm401_vm2, %v1823_v27  ;;  %1592 = vmatmul.msk.bf16.gmra.mxu3 %vm401_vm2, %v1835_v28 }
  0x48   : > { %1664 = vmatmul.msk.bf16.gmra.mxu1 %vm401_vm2, %v1805_v29 }
  0x49   : > { %1784 = vmatmul.msk.bf16.gmra.mxu2 %vm401_vm2, %v1841_v30 }
  0x57   : > { %1581 = vmatmul.msk.bf16.gmra.mxu0 %vm401_vm2, %v1824_v31  ;;  %1673 = vmatmul.msk.bf16.vlgmr.msrb.gmra.mxu3 %vm401_vm2, %v1814_v32 }
  0x58   : > { %1665 = vmatmul.msk.bf16.gmra.mxu1 %vm401_vm2, %v1806_v33 }
  0x59   : > { %1785 = vmatmul.msk.bf16.gmra.mxu2 %vm401_vm2, %v1842_v34 }
  0x67   : > { %1582 = vmatmul.msk.bf16.gmra.mxu0 %vm401_vm2, %v1825_v35  ;;  %1674 = vmatmul.msk.bf16.gmra.mxu3 %vm401_vm2, %v1815_v36  ;;  %v1831_v35 = vld [vmem:[%s2041_s26 + $0x68] sm:$0xff]  ;;  %v1853_v36 = vld [vmem:[%s2041_s26 + $0x98] sm:$0xff] }
  0x68   : > { %1666 = vmatmul.msk.bf16.gmra.mxu1 %vm401_vm2, %v1807_v37 }
  0x69   : > { %1786 = vmatmul.msk.bf16.gmra.mxu2 %vm401_vm2, %v1843_v38 }
  0x77   : > { %1583 = vmatmul.msk.bf16.gmra.mxu0 %vm401_vm2, %v1826_v39  ;;  %1675 = vmatmul.msk.bf16.gmra.mxu3 %vm401_vm2, %v1816_v40  ;;  %v1813_v39 = vld [vmem:[%s2041_s26 + $0x58] sm:$0xff] }
  0x78   : > { %1667 = vmatmul.msk.bf16.gmra.mxu1 %vm401_vm2, %v1808_v41  ;;  %v1849_v40 = vld [vmem:[%s2041_s26 + $0x78] sm:$0xff] }
  0x79   : > { %1787 = vmatmul.msk.bf16.gmra.mxu2 %vm401_vm2, %v1844_v42 }
  0x87   : > { %1584 = vmatmul.msk.bf16.gmra.mxu0 %vm401_vm2, %v1827_v43  ;;  %1676 = vmatmul.msk.bf16.gmra.mxu3 %vm401_vm2, %v1817_v44 }
  0x88   : > { %1668 = vmatmul.msk.bf16.gmra.mxu1 %vm401_vm2, %v1809_v45 }
  0x89   : > { %1788 = vmatmul.msk.bf16.gmra.mxu2 %vm401_vm2, %v1845_v46 }
  0x94   : > { %v466_v49 = vpop.f32.mrf.mxu0 }
  0x95   : > { %v691_v52 = vpop.f32.mrf.mxu1 }
  0x96   : > { %v692_v53 = vadd.f32 %v691_v52, %v466_v49 }
  0x97   : > { %1585 = vmatmul.msk.bf16.gmra.mxu0 %vm401_vm2, %v1828_v47  ;;  %1793 = vmatmul.msk.bf16.vlgmr.msra.gmra.mxu3 %vm401_vm2, %v1850_v48 }
  0x98   : > { %1669 = vmatmul.msk.bf16.gmra.mxu1 %vm401_vm2, %v1810_v50 }
  0x99   : > { %1789 = vmatmul.msk.bf16.gmra.mxu2 %vm401_vm2, %v1846_v51 }
  0x9a   : > { %v2117_v54 = vpop.f32.mrf.mxu3 }
  0x9c   : > { %v955_v55 = vpop.f32.mrf.mxu2  ;;  %v468_v57 = vpop.f32.mrf.mxu0 }
  0x9d   : > { %v2119_v56 = vadd.f32 %v955_v55, %v692_v53  ;;  %v693_v58 = vpop.f32.mrf.mxu1 }
  0x9e   : > { %v694_v60 = vadd.f32 %v693_v58, %v468_v57 }
  0x9f   : > { %v1067_v59 = vpack.c.bf16 %v2119_v56, %v2119_v56 }
  0xa1   : > { %1100 = vst.msk [vmem:[%s2124_s6] sm:$0xf] %vm1099_vm3, %v1067_v59 }
  0xa2   : > { %v2130_v61 = vpop.f32.mrf.mxu3 }
  0xa4   : > { %v957_v62 = vpop.f32.mrf.mxu2  ;;  %v471_v2 = vpop.f32.mrf.mxu0 }
  0xa5   : > { %v2134_v1 = vadd.f32 %v957_v62, %v694_v60  ;;  %v696_v5 = vpop.f32.mrf.mxu1 }
  0xa6   : > { %v697_v7 = vadd.f32 %v696_v5, %v471_v2 }
  0xa7   : > { %v1068_v6 = vpack.c.bf16 %v2134_v1, %v2134_v1  ;;  %1586 = vmatmul.msk.bf16.gmra.mxu0 %vm401_vm2, %v1829_v63  ;;  %1794 = vmatmul.msk.bf16.gmra.mxu3 %vm401_vm2, %v1851_v0 }
  0xa8   : > { %1670 = vmatmul.msk.bf16.gmra.mxu1 %vm401_vm2, %v1811_v3 }
  0xa9   : > { %1101 = vst.msk [vmem:[%s2124_s6 + $0x4] sm:$0xf] %vm1099_vm3, %v1068_v6  ;;  %1790 = vmatmul.msk.bf16.gmra.mxu2 %vm401_vm2, %v1847_v4 }
  0xaa   : > { %v2146_v8 = vpop.f32.mrf.mxu3 }
  0xac   : > { %v960_v9 = vpop.f32.mrf.mxu2  ;;  %v473_v11 = vpop.f32.mrf.mxu0 }
  0xad   : > { %v2148_v10 = vadd.f32 %v960_v9, %v697_v7  ;;  %v698_v12 = vpop.f32.mrf.mxu1 }
  0xae   : > { %v699_v14 = vadd.f32 %v698_v12, %v473_v11 }
  0xaf   : > { %v1069_v13 = vpack.c.bf16 %v2148_v10, %v2148_v10 }
  0xb1   : > { %1102 = vst.msk [vmem:[%s2124_s6 + $0x8] sm:$0xf] %vm1099_vm3, %v1069_v13 }
  0xb2   : > { %v2154_v15 = vpop.f32.mrf.mxu3 }
  0xb4   : > { %v962_v16 = vpop.f32.mrf.mxu2  ;;  %v476_v20 = vpop.f32.mrf.mxu0 }
  0xb5   : > { %v2158_v19 = vadd.f32 %v962_v16, %v699_v14  ;;  %v701_v23 = vpop.f32.mrf.mxu1 }
  0xb6   : > { %v702_v25 = vadd.f32 %v701_v23, %v476_v20 }
  0xb7   : > { %v1070_v24 = vpack.c.bf16 %v2158_v19, %v2158_v19  ;;  %1587 = vmatmul.msk.bf16.gmra.mxu0 %vm401_vm2, %v1830_v17  ;;  %1795 = vmatmul.msk.bf16.gmra.mxu3 %vm401_vm2, %v1852_v18 }
  0xb8   : > { %1671 = vmatmul.msk.bf16.gmra.mxu1 %vm401_vm2, %v1812_v21 }
  0xb9   : > { %1103 = vst.msk [vmem:[%s2124_s6 + $0xc] sm:$0xf] %vm1099_vm3, %v1070_v24  ;;  %1791 = vmatmul.msk.bf16.gmra.mxu2 %vm401_vm2, %v1848_v22 }
  0xba   : > { %v2170_v26 = vpop.f32.mrf.mxu3 }
  0xbc   : > { %v965_v27 = vpop.f32.mrf.mxu2  ;;  %v478_v29 = vpop.f32.mrf.mxu0 }
  0xbd   : > { %v2172_v28 = vadd.f32 %v965_v27, %v702_v25  ;;  %v703_v30 = vpop.f32.mrf.mxu1 }
  0xbe   : > { %v704_v32 = vadd.f32 %v703_v30, %v478_v29 }
  0xbf   : > { %v1071_v31 = vpack.c.bf16 %v2172_v28, %v2172_v28 }
  0xc1   : > { %1104 = vst.msk [vmem:[%s2124_s6 + $0x10] sm:$0xf] %vm1099_vm3, %v1071_v31 }
  0xc2   : > { %v2178_v33 = vpop.f32.mrf.mxu3 }
  0xc4   : > { %v967_v34 = vpop.f32.mrf.mxu2  ;;  %v481_v38 = vpop.f32.mrf.mxu0 }
  0xc5   : > { %v2182_v37 = vadd.f32 %v967_v34, %v704_v32  ;;  %v706_v41 = vpop.f32.mrf.mxu1 }
  0xc6   : > { %v707_v43 = vadd.f32 %v706_v41, %v481_v38 }
  0xc7   : > { %v1072_v42 = vpack.c.bf16 %v2182_v37, %v2182_v37  ;;  %1588 = vmatmul.msk.bf16.gmra.mxu0 %vm401_vm2, %v1831_v35  ;;  %1796 = vmatmul.msk.bf16.gmra.mxu3 %vm401_vm2, %v1853_v36 }
  0xc8   : > { %1672 = vmatmul.msk.bf16.gmra.mxu1 %vm401_vm2, %v1813_v39 }
  0xc9   : > { %1105 = vst.msk [vmem:[%s2124_s6 + $0x14] sm:$0xf] %vm1099_vm3, %v1072_v42  ;;  %1792 = vmatmul.msk.bf16.gmra.mxu2 %vm401_vm2, %v1849_v40 }
  0xca   : > { %v2194_v44 = vpop.f32.mrf.mxu3 }
  0xcc   : > { %v970_v45 = vpop.f32.mrf.mxu2  ;;  %v483_v47 = vpop.f32.mrf.mxu0 }
  0xcd   : > { %v2196_v46 = vadd.f32 %v970_v45, %v707_v43  ;;  %v708_v48 = vpop.f32.mrf.mxu1 }
  0xce   : > { %v709_v50 = vadd.f32 %v708_v48, %v483_v47 }
  0xcf   : > { %v1073_v49 = vpack.c.bf16 %v2196_v46, %v2196_v46 }
  0xd1   : > { %1106 = vst.msk [vmem:[%s2124_s6 + $0x18] sm:$0xf] %vm1099_vm3, %v1073_v49 }
  0xd2   : > { %v2202_v51 = vpop.f32.mrf.mxu3 }
  0xd4   : > { %v972_v52 = vpop.f32.mrf.mxu2  ;;  %v486_v55 = vpop.f32.mrf.mxu0 }
  0xd5   : > { %v2204_v53 = vadd.f32 %v972_v52, %v709_v50  ;;  %v711_v57 = vpop.f32.mrf.mxu1 }
  0xd6   : > { %v712_v59 = vadd.f32 %v711_v57, %v486_v55 }
  0xd7   : > { %v1074_v58 = vpack.c.bf16 %v2204_v53, %v2204_v53 }
  0xd9   : > { %1107 = vst.msk [vmem:[%s2124_s6 + $0x1c] sm:$0xf] %vm1099_vm3, %v1074_v58 }
  0xda   : > { %v2210_v60 = vpop.f32.mrf.mxu3 }
  0xdc   : > { %v975_v62 = vpop.f32.mrf.mxu2  ;;  %v488_v0 = vpop.f32.mrf.mxu0 }
  0xdd   : > { %v2212_v63 = vadd.f32 %v975_v62, %v712_v59  ;;  %v713_v2 = vpop.f32.mrf.mxu1 }
  0xde   : > { %v714_v4 = vadd.f32 %v713_v2, %v488_v0 }
  0xdf   : > { %v1075_v3 = vpack.c.bf16 %v2212_v63, %v2212_v63 }
  0xe1   : > { %1108 = vst.msk [vmem:[%s2124_s6 + $0x20] sm:$0xf] %vm1099_vm3, %v1075_v3 }
  0xe2   : > { %v2218_v5 = vpop.f32.mrf.mxu3 }
  0xe4   : > { %v977_v6 = vpop.f32.mrf.mxu2  ;;  %v491_v9 = vpop.f32.mrf.mxu0 }
  0xe5   : > { %v2220_v7 = vadd.f32 %v977_v6, %v714_v4  ;;  %v716_v11 = vpop.f32.mrf.mxu1 }
  0xe6   : > { %v717_v13 = vadd.f32 %v716_v11, %v491_v9 }
  0xe7   : > { %v1076_v12 = vpack.c.bf16 %v2220_v7, %v2220_v7 }
  0xe9   : > { %1109 = vst.msk [vmem:[%s2124_s6 + $0x24] sm:$0xf] %vm1099_vm3, %v1076_v12  ;;  %v752_v12 = vadd.f32 %v2210_v60, %v2117_v54  ;;  %v754_v54 = vadd.f32 %v2218_v5, %v2130_v61 }
  0xea   : > { %v2226_v14 = vpop.f32.mrf.mxu3 }
  0xeb   : > { %v757_v5 = vadd.f32 %v2226_v14, %v2146_v8 }
  0xec   : > { %v980_v16 = vpop.f32.mrf.mxu2  ;;  %v493_v18 = vpop.f32.mrf.mxu0 }
  0xed   : > { %v2228_v17 = vadd.f32 %v980_v16, %v717_v13  ;;  %v718_v20 = vpop.f32.mrf.mxu1 }
  0xee   : > { %v719_v22 = vadd.f32 %v718_v20, %v493_v18 }
  0xef   : > { %v1077_v21 = vpack.c.bf16 %v2228_v17, %v2228_v17 }
  0xf1   : > { %1110 = vst.msk [vmem:[%s2124_s6 + $0x28] sm:$0xf] %vm1099_vm3, %v1077_v21 }
  0xf2   : > { %v2234_v23 = vpop.f32.mrf.mxu3 }
  0xf3   : > { %v759_v8 = vadd.f32 %v2234_v23, %v2154_v15 }
  0xf4   : > { %v982_v24 = vpop.f32.mrf.mxu2  ;;  %v496_v27 = vpop.f32.mrf.mxu0 }
  0xf5   : > { %v2236_v25 = vadd.f32 %v982_v24, %v719_v22  ;;  %v721_v29 = vpop.f32.mrf.mxu1 }
  0xf6   : > { %v722_v31 = vadd.f32 %v721_v29, %v496_v27 }
  0xf7   : > { %v1078_v30 = vpack.c.bf16 %v2236_v25, %v2236_v25 }
  0xf9   : > { %1111 = vst.msk [vmem:[%s2124_s6 + $0x2c] sm:$0xf] %vm1099_vm3, %v1078_v30 }
  0xfa   : > { %v2242_v32 = vpop.f32.mrf.mxu3 }
  0xfb   : > { %v762_v23 = vadd.f32 %v2242_v32, %v2170_v26 }
  0xfc   : > { %v985_v34 = vpop.f32.mrf.mxu2  ;;  %v498_v36 = vpop.f32.mrf.mxu0 }
  0xfd   : > { %v2244_v35 = vadd.f32 %v985_v34, %v722_v31  ;;  %v723_v38 = vpop.f32.mrf.mxu1 }
  0xfe   : > { %v724_v40 = vadd.f32 %v723_v38, %v498_v36 }
  0xff   : > { %v1079_v39 = vpack.c.bf16 %v2244_v35, %v2244_v35 }
 0x101   : > { %1112 = vst.msk [vmem:[%s2124_s6 + $0x30] sm:$0xf] %vm1099_vm3, %v1079_v39 }
 0x102   : > { %v2250_v41 = vpop.f32.mrf.mxu3 }
 0x103   : > { %v764_v26 = vadd.f32 %v2250_v41, %v2178_v33 }
 0x104   : > { %v987_v42 = vpop.f32.mrf.mxu2  ;;  %v501_v45 = vpop.f32.mrf.mxu0 }
 0x105   : > { %v2252_v43 = vadd.f32 %v987_v42, %v724_v40  ;;  %v726_v47 = vpop.f32.mrf.mxu1 }
 0x106   : > { %v727_v49 = vadd.f32 %v726_v47, %v501_v45 }
 0x107   : > { %v1080_v48 = vpack.c.bf16 %v2252_v43, %v2252_v43 }
 0x109   : > { %1113 = vst.msk [vmem:[%s2124_s6 + $0x34] sm:$0xf] %vm1099_vm3, %v1080_v48 }
 0x10a   : > { %v2258_v50 = vpop.f32.mrf.mxu3 }
 0x10b   : > { %v767_v41 = vadd.f32 %v2258_v50, %v2194_v44 }
 0x10c   : > { %v990_v52 = vpop.f32.mrf.mxu2  ;;  %v503_v57 = vpop.f32.mrf.mxu0 }
 0x10d   : > { %v2260_v55 = vadd.f32 %v990_v52, %v727_v49  ;;  %v728_v58 = vpop.f32.mrf.mxu1 }
 0x10e   : > { %v729_v62 = vadd.f32 %v728_v58, %v503_v57 }
 0x10f   : > { %v1081_v59 = vpack.c.bf16 %v2260_v55, %v2260_v55 }
 0x111   : > { %1114 = vst.msk [vmem:[%s2124_s6 + $0x38] sm:$0xf] %vm1099_vm3, %v1081_v59 }
 0x112   : > { %v2266_v0 = vpop.f32.mrf.mxu3 }
 0x113   : > { %v769_v44 = vadd.f32 %v2266_v0, %v2202_v51 }
 0x114   : > { %v992_v2 = vpop.f32.mrf.mxu2  ;;  %v506_v4 = vpop.f32.mrf.mxu0 }
 0x115   : > { %v2268_v3 = vadd.f32 %v992_v2, %v729_v62  ;;  %v731_v6 = vpop.f32.mrf.mxu1 }
 0x116   : > { %v732_v11 = vadd.f32 %v731_v6, %v506_v4 }
 0x117   : > { %v1082_v9 = vpack.c.bf16 %v2268_v3, %v2268_v3 }
 0x119   : > { %1115 = vst.msk [vmem:[%s2124_s6 + $0x3c] sm:$0xf] %vm1099_vm3, %v1082_v9 }
 0x11a   : > { %v1015_v13 = vpop.f32.mrf.mxu3 }
 0x11b   : > { %v2276_v18 = vadd.f32 %v1015_v13, %v752_v12 }
 0x11c   : > { %v995_v16 = vpop.f32.mrf.mxu2  ;;  %v508_v21 = vpop.f32.mrf.mxu0 }
 0x11d   : > { %v2278_v20 = vadd.f32 %v995_v16, %v732_v11  ;;  %v1091_v22 = vpack.c.bf16 %v2276_v18, %v2276_v18  ;;  %v733_v24 = vpop.f32.mrf.mxu1 }
 0x11e   : > { %v734_v60 = vadd.f32 %v733_v24, %v508_v21 }
 0x11f   : > { %v1083_v27 = vpack.c.bf16 %v2278_v20, %v2278_v20  ;;  %1124 = vst.msk [vmem:[%s2124_s6 + $0x60] sm:$0xf] %vm1099_vm3, %v1091_v22 }
 0x121   : > { %1116 = vst.msk [vmem:[%s2124_s6 + $0x40] sm:$0xf] %vm1099_vm3, %v1083_v27 }
 0x122   : > { %v1017_v29 = vpop.f32.mrf.mxu3 }
 0x123   : > { %v2290_v31 = vadd.f32 %v1017_v29, %v754_v54 }
 0x124   : > { %v997_v30 = vpop.f32.mrf.mxu2  ;;  %v511_v36 = vpop.f32.mrf.mxu0 }
 0x125   : > { %v2292_v34 = vadd.f32 %v997_v30, %v734_v60  ;;  %v1092_v38 = vpack.c.bf16 %v2290_v31, %v2290_v31  ;;  %v736_v39 = vpop.f32.mrf.mxu1 }
 0x126   : > { %v737_v61 = vadd.f32 %v736_v39, %v511_v36 }
 0x127   : > { %v1084_v40 = vpack.c.bf16 %v2292_v34, %v2292_v34  ;;  %1125 = vst.msk [vmem:[%s2124_s6 + $0x64] sm:$0xf] %vm1099_vm3, %v1092_v38 }
 0x129   : > { %1117 = vst.msk [vmem:[%s2124_s6 + $0x44] sm:$0xf] %vm1099_vm3, %v1084_v40 }
 0x12a   : > { %v1020_v42 = vpop.f32.mrf.mxu3 }
 0x12b   : > { %v2304_v47 = vadd.f32 %v1020_v42, %v757_v5 }
 0x12c   : > { %v1000_v45 = vpop.f32.mrf.mxu2  ;;  %v513_v49 = vpop.f32.mrf.mxu0 }
 0x12d   : > { %v2306_v48 = vadd.f32 %v1000_v45, %v737_v61  ;;  %v1093_v52 = vpack.c.bf16 %v2304_v47, %v2304_v47  ;;  %v738_v57 = vpop.f32.mrf.mxu1 }
 0x12e   : > { %v739_v14 = vadd.f32 %v738_v57, %v513_v49 }
 0x12f   : > { %v1085_v58 = vpack.c.bf16 %v2306_v48, %v2306_v48  ;;  %1126 = vst.msk [vmem:[%s2124_s6 + $0x68] sm:$0xf] %vm1099_vm3, %v1093_v52 }
 0x131   : > { %1118 = vst.msk [vmem:[%s2124_s6 + $0x48] sm:$0xf] %vm1099_vm3, %v1085_v58 }
 0x132   : > { %v1022_v59 = vpop.f32.mrf.mxu3 }
 0x133   : > { %v2318_v2 = vadd.f32 %v1022_v59, %v759_v8 }
 0x134   : > { %v1002_v62 = vpop.f32.mrf.mxu2  ;;  %v516_v6 = vpop.f32.mrf.mxu0 }
 0x135   : > { %v2320_v4 = vadd.f32 %v1002_v62, %v739_v14  ;;  %v1094_v9 = vpack.c.bf16 %v2318_v2, %v2318_v2  ;;  %v741_v11 = vpop.f32.mrf.mxu1 }
 0x136   : > { %v742_v15 = vadd.f32 %v741_v11, %v516_v6 }
 0x137   : > { %v1086_v12 = vpack.c.bf16 %v2320_v4, %v2320_v4  ;;  %1127 = vst.msk [vmem:[%s2124_s6 + $0x6c] sm:$0xf] %vm1099_vm3, %v1094_v9 }
 0x139   : > { %1119 = vst.msk [vmem:[%s2124_s6 + $0x4c] sm:$0xf] %vm1099_vm3, %v1086_v12 }
 0x13a   : > { %v1025_v13 = vpop.f32.mrf.mxu3 }
 0x13b   : > { %v2332_v21 = vadd.f32 %v1025_v13, %v762_v23 }
 0x13c   : > { %v1005_v16 = vpop.f32.mrf.mxu2  ;;  %v518_v24 = vpop.f32.mrf.mxu0 }
 0x13d   : > { %v2334_v22 = vadd.f32 %v1005_v16, %v742_v15  ;;  %v1095_v27 = vpack.c.bf16 %v2332_v21, %v2332_v21  ;;  %v743_v54 = vpop.f32.mrf.mxu1 }
 0x13e   : > { %v744_v32 = vadd.f32 %v743_v54, %v518_v24 }
 0x13f   : > { %v1087_v60 = vpack.c.bf16 %v2334_v22, %v2334_v22  ;;  %1128 = vst.msk [vmem:[%s2124_s6 + $0x70] sm:$0xf] %vm1099_vm3, %v1095_v27 }
 0x141   : > { %1120 = vst.msk [vmem:[%s2124_s6 + $0x50] sm:$0xf] %vm1099_vm3, %v1087_v60 }
 0x142   : > { %v1027_v29 = vpop.f32.mrf.mxu3 }
 0x143   : > { %v2346_v36 = vadd.f32 %v1027_v29, %v764_v26 }
 0x144   : > { %v1007_v30 = vpop.f32.mrf.mxu2  ;;  %v521_v40 = vpop.f32.mrf.mxu0 }
 0x145   : > { %v2348_v38 = vadd.f32 %v1007_v30, %v744_v32  ;;  %v1096_v39 = vpack.c.bf16 %v2346_v36, %v2346_v36  ;;  %v746_v61 = vpop.f32.mrf.mxu1 }
 0x146   : > { %v747_v33 = vadd.f32 %v746_v61, %v521_v40 }
 0x147   : > { %v1088_v5 = vpack.c.bf16 %v2348_v38, %v2348_v38  ;;  %1129 = vst.msk [vmem:[%s2124_s6 + $0x74] sm:$0xf] %vm1099_vm3, %v1096_v39 }
 0x149   : > { %1121 = vst.msk [vmem:[%s2124_s6 + $0x54] sm:$0xf] %vm1099_vm3, %v1088_v5 }
 0x14a   : > { %v1030_v42 = vpop.f32.mrf.mxu3 }
 0x14b   : > { %v2360_v49 = vadd.f32 %v1030_v42, %v767_v41 }
 0x14c   : > { %v1010_v45 = vpop.f32.mrf.mxu2  ;;  %v523_v8 = vpop.f32.mrf.mxu0 }
 0x14d   : > { %v2362_v52 = vadd.f32 %v1010_v45, %v747_v33  ;;  %v1097_v57 = vpack.c.bf16 %v2360_v49, %v2360_v49  ;;  %v748_v14 = vpop.f32.mrf.mxu1 }
 0x14e   : > { %v749_v50 = vadd.f32 %v748_v14, %v523_v8 }
 0x14f   : > { %v1089_v58 = vpack.c.bf16 %v2362_v52, %v2362_v52  ;;  %1130 = vst.msk [vmem:[%s2124_s6 + $0x78] sm:$0xf] %vm1099_vm3, %v1097_v57 }
 0x151   : > { %1122 = vst.msk [vmem:[%s2124_s6 + $0x58] sm:$0xf] %vm1099_vm3, %v1089_v58 }
 0x152   : > { %v1032_v59 = vpop.f32.mrf.mxu3 }
 0x153   : > { %v2374_v6 = vadd.f32 %v1032_v59, %v769_v44 }
 0x154   : > { %v1012_v62 = vpop.f32.mrf.mxu2 }
 0x155   : > { %v2376_v9 = vadd.f32 %v1012_v62, %v749_v50  ;;  %v1098_v11 = vpack.c.bf16 %v2374_v6, %v2374_v6  ;;  %1135 = sbr.rel (%p1797_p7) target bundleno = 349 (0x15d), region = 32 }
 0x157   : > { %v1090_v12 = vpack.c.bf16 %v2376_v9, %v2376_v9  ;;  %1131 = vst.msk [vmem:[%s2124_s6 + $0x7c] sm:$0xf] %vm1099_vm3, %v1098_v11 }
 0x159   : > { %1123 = vst.msk [vmem:[%s2124_s6 + $0x5c] sm:$0xf] %vm1099_vm3, %v1090_v12 }
 0x15a   : > { %vm1136_vm4 = vcmask 122880   ;;  %v1942_v51 = vmov 0.0  }
 0x15b   : > { %1137 = vst.msk [vmem:[%s2030_s12] sm:$0x1] %vm1136_vm4, %v1942_v51 }
 0x15c   : > { %1138 = vst.msk [vmem:[%s2036_s22] sm:$0x1] %vm1136_vm4, %v1942_v51 }
 0x15d PF: > { %vm1140_vm5 = vcmask 130048   ;;  %v1214_v29 = vmul.f32 %v2119_v56, %v2119_v56  ;;  %v1215_v30 = vmul.f32 %v2134_v1, %v2134_v1  ;;  %v1216_v40 = vmul.f32 %v2148_v10, %v2148_v10 }
 0x15e   : > { %v1141_v0 = vsel %vm1140_vm5, %v2119_v56, 0.0  ;;  %v1142_v15 = vsel %vm1140_vm5, %v2134_v1, 0.0  ;;  %v1144_v23 = vsel %vm1140_vm5, %v2148_v10, 0.0  ;;  %v1146_v16 = vsel %vm1140_vm5, %v2158_v19, 0.0 }
 0x15f   : > { %v1143_v13 = vadd.f32 %v1142_v15, %v1141_v0  ;;  %v1148_v27 = vsel %vm1140_vm5, %v2172_v28, 0.0  ;;  %v1150_v60 = vsel %vm1140_vm5, %v2182_v37, 0.0  ;;  %v1152_v32 = vsel %vm1140_vm5, %v2196_v46, 0.0 }
 0x160   : > { %v1154_v61 = vsel %vm1140_vm5, %v2204_v53, 0.0  ;;  %v1217_v5 = vmul.f32 %v2158_v19, %v2158_v19  ;;  %v1156_v41 = vsel %vm1140_vm5, %v2212_v63, 0.0  ;;  %v1218_v56 = vmul.f32 %v2172_v28, %v2172_v28 }
 0x161   : > { %v1145_v24 = vadd.f32 %v1144_v23, %v1143_v13  ;;  %v1246_v42 = vsel %vm1140_vm5, %v1214_v29, 0.0  ;;  %v1247_v1 = vsel %vm1140_vm5, %v1215_v30, 0.0  ;;  %v1249_v10 = vsel %vm1140_vm5, %v1216_v40, 0.0 }
 0x162   : > { %v1248_v57 = vadd.f32 %v1247_v1, %v1246_v42  ;;  %v1158_v58 = vsel %vm1140_vm5, %v2220_v7, 0.0  ;;  %v1219_v19 = vmul.f32 %v2182_v37, %v2182_v37  ;;  %v1251_v8 = vsel %vm1140_vm5, %v1217_v5, 0.0 }
 0x163   : > { %v1147_v54 = vadd.f32 %v1146_v16, %v1145_v24  ;;  %v1160_v28 = vsel %vm1140_vm5, %v2228_v17, 0.0  ;;  %v1220_v50 = vmul.f32 %v2196_v46, %v2196_v46  ;;  %v1253_v59 = vsel %vm1140_vm5, %v1218_v56, 0.0 }
 0x164   : > { %v1250_v44 = vadd.f32 %v1249_v10, %v1248_v57  ;;  %v1162_v12 = vsel %vm1140_vm5, %v2236_v25, 0.0  ;;  %v1221_v37 = vmul.f32 %v2204_v53, %v2204_v53  ;;  %v1255_v51 = vsel %vm1140_vm5, %v1219_v19, 0.0 }
 0x165   : > { %v1149_v26 = vadd.f32 %v1148_v27, %v1147_v54  ;;  %v1164_v23 = vsel %vm1140_vm5, %v2244_v35, 0.0  ;;  %v1222_v46 = vmul.f32 %v2212_v63, %v2212_v63  ;;  %v1257_v13 = vsel %vm1140_vm5, %v1220_v50, 0.0 }
 0x166   : > { %v1252_v11 = vadd.f32 %v1251_v8, %v1250_v44  ;;  %v1166_v27 = vsel %vm1140_vm5, %v2252_v43, 0.0  ;;  %v1223_v53 = vmul.f32 %v2220_v7, %v2220_v7  ;;  %v1259_v54 = vsel %vm1140_vm5, %v1221_v37, 0.0 }
 0x167   : > { %v1151_v39 = vadd.f32 %v1150_v60, %v1149_v26  ;;  %v1224_v63 = vmul.f32 %v2228_v17, %v2228_v17  ;;  %v1261_v29 = vsel %vm1140_vm5, %v1222_v46, 0.0  ;;  %v1170_v40 = vsel %vm1140_vm5, %v2268_v3, 0.0 }
 0x168   : > { %v1254_v15 = vadd.f32 %v1253_v59, %v1252_v11  ;;  %v1225_v7 = vmul.f32 %v2236_v25, %v2236_v25  ;;  %v1226_v17 = vmul.f32 %v2244_v35, %v2244_v35  ;;  %v1227_v25 = vmul.f32 %v2252_v43, %v2252_v43 }
 0x169   : > { %v1153_v33 = vadd.f32 %v1152_v32, %v1151_v39  ;;  %v1168_v32 = vsel %vm1140_vm5, %v2260_v55, 0.0  ;;  %v1265_v56 = vsel %vm1140_vm5, %v1224_v63, 0.0  ;;  %v1176_v19 = vsel %vm1140_vm5, %v2306_v48, 0.0 }
 0x16a   : > { %v1256_v24 = vadd.f32 %v1255_v51, %v1254_v15  ;;  %v1267_v57 = vsel %vm1140_vm5, %v1225_v7, 0.0  ;;  %v1228_v35 = vmul.f32 %v2260_v55, %v2260_v55  ;;  %v1269_v8 = vsel %vm1140_vm5, %v1226_v17, 0.0 }
 0x16b   : > { %v1155_v45 = vadd.f32 %v1154_v61, %v1153_v33  ;;  %v1263_v61 = vsel %vm1140_vm5, %v1223_v53, 0.0  ;;  %v1229_v43 = vmul.f32 %v2268_v3, %v2268_v3  ;;  %v1271_v50 = vsel %vm1140_vm5, %v1227_v25, 0.0 }
 0x16c   : > { %v1258_v26 = vadd.f32 %v1257_v13, %v1256_v24  ;;  %v1180_v11 = vsel %vm1140_vm5, %v2334_v22, 0.0  ;;  %v1230_v55 = vmul.f32 %v2278_v20, %v2278_v20  ;;  %v1231_v3 = vmul.f32 %v2292_v34, %v2292_v34 }
 0x16d   : > { %v1157_v14 = vadd.f32 %v1156_v41, %v1155_v45  ;;  %v1172_v41 = vsel %vm1140_vm5, %v2278_v20, 0.0  ;;  %v1174_v45 = vsel %vm1140_vm5, %v2292_v34, 0.0  ;;  %v1275_v15 = vsel %vm1140_vm5, %v1229_v43, 0.0 }
 0x16e   : > { %v1260_v39 = vadd.f32 %v1259_v54, %v1258_v26  ;;  %v1184_v13 = vsel %vm1140_vm5, %v2362_v52, 0.0  ;;  %v1232_v20 = vmul.f32 %v2306_v48, %v2306_v48  ;;  %v1186_v53 = vsel %vm1140_vm5, %v2376_v9, 0.0 }
 0x16f   : > { %v1159_v62 = vadd.f32 %v1158_v58, %v1157_v14  ;;  %v1233_v34 = vmul.f32 %v2320_v4, %v2320_v4  ;;  %v1279_v54 = vsel %vm1140_vm5, %v1231_v3, 0.0  ;;  %v1234_v48 = vmul.f32 %v2334_v22, %v2334_v22 }
 0x170   : > { %v1262_v33 = vadd.f32 %v1261_v29, %v1260_v39  ;;  %v1281_v63 = vsel %vm1140_vm5, %v1232_v20, 0.0  ;;  %v1190_v39 = vsel %vm1140_vm5, %v2290_v31, 0.0  ;;  %v1236_v22 = vmul.f32 %v2362_v52, %v2362_v52 }
 0x171   : > { %v1161_v0 = vadd.f32 %v1160_v28, %v1159_v62  ;;  %v1178_v28 = vsel %vm1140_vm5, %v2320_v4, 0.0  ;;  %v1235_v4 = vmul.f32 %v2348_v38, %v2348_v38  ;;  %v1196_v25 = vsel %vm1140_vm5, %v2332_v21, 0.0 }
 0x172   : > { %v1264_v1 = vadd.f32 %v1263_v61, %v1262_v33  ;;  %v1285_v33 = vsel %vm1140_vm5, %v1234_v48, 0.0  ;;  %v1238_v52 = vmul.f32 %v2276_v18, %v2276_v18  ;;  %vm1211_vm6 = vcmask 122880  }
 0x173   : > { %v1163_v16 = vadd.f32 %v1162_v12, %v1161_v0  ;;  %v1273_v12 = vsel %vm1140_vm5, %v1228_v35, 0.0  ;;  %v1182_v0 = vsel %vm1140_vm5, %v2348_v38, 0.0  ;;  %v1237_v38 = vmul.f32 %v2376_v9, %v2376_v9 }
 0x174   : > { %v1266_v58 = vadd.f32 %v1265_v56, %v1264_v1  ;;  %v1194_v56 = vsel %vm1140_vm5, %v2318_v2, 0.0  ;;  %v1239_v9 = vmul.f32 %v2290_v31, %v2290_v31  ;;  %v1241_v31 = vmul.f32 %v2318_v2, %v2318_v2 }
 0x175   : > { %v1165_v60 = vadd.f32 %v1164_v23, %v1163_v16  ;;  %v1277_v16 = vsel %vm1140_vm5, %v1230_v55, 0.0  ;;  %v1291_v35 = vsel %vm1140_vm5, %v1237_v38, 0.0  ;;  %v1244_v2 = vmul.f32 %v2360_v49, %v2360_v49 }
 0x176   : > { %v1268_v44 = vadd.f32 %v1267_v57, %v1266_v58  ;;  %v1289_v57 = vsel %vm1140_vm5, %v1236_v22, 0.0  ;;  %v1299_v3 = vsel %vm1140_vm5, %v1241_v31, 0.0 }
 0x177   : > { %v1167_v30 = vadd.f32 %v1166_v27, %v1165_v60 }
 0x178   : > { %v1270_v62 = vadd.f32 %v1269_v8, %v1268_v44  ;;  %v1200_v44 = vsel %vm1140_vm5, %v2360_v49, 0.0 }
 0x179   : > { %v1169_v5 = vadd.f32 %v1168_v32, %v1167_v30  ;;  %v1188_v32 = vsel %vm1140_vm5, %v2276_v18, 0.0  ;;  %v1240_v18 = vmul.f32 %v2304_v47, %v2304_v47 }
 0x17a   : > { %v1272_v51 = vadd.f32 %v1271_v50, %v1270_v62  ;;  %v1295_v62 = vsel %vm1140_vm5, %v1239_v9, 0.0 }
 0x17b   : > { %v1171_v42 = vadd.f32 %v1170_v40, %v1169_v5  ;;  %v1283_v40 = vsel %vm1140_vm5, %v1233_v34, 0.0  ;;  %v1192_v5 = vsel %vm1140_vm5, %v2304_v47, 0.0 }
 0x17c   : > { %v1274_v46 = vadd.f32 %v1273_v12, %v1272_v51  ;;  %v1242_v12 = vmul.f32 %v2332_v21, %v2332_v21  ;;  %v1245_v21 = vmul.f32 %v2374_v6, %v2374_v6 }
 0x17d   : > { %v1173_v10 = vadd.f32 %v1172_v41, %v1171_v42  ;;  %v1287_v42 = vsel %vm1140_vm5, %v1235_v4, 0.0 }
 0x17e   : > { %v1276_v27 = vadd.f32 %v1275_v15, %v1274_v46  ;;  %v1301_v46 = vsel %vm1140_vm5, %v1242_v12, 0.0 }
 0x17f   : > { %v1175_v14 = vadd.f32 %v1174_v45, %v1173_v10 }
 0x180   : > { %v1278_v26 = vadd.f32 %v1277_v16, %v1276_v27  ;;  %v1305_v27 = vsel %vm1140_vm5, %v1244_v2, 0.0 }
 0x181   : > { %v1177_v59 = vadd.f32 %v1176_v19, %v1175_v14  ;;  %v1198_v19 = vsel %vm1140_vm5, %v2346_v36, 0.0 }
 0x182   : > { %v1280_v30 = vadd.f32 %v1279_v54, %v1278_v26  ;;  %v1307_v54 = vsel %vm1140_vm5, %v1245_v21, 0.0  ;;  %v1139_v26 = vld [vmem:[%s2030_s12] sm:$0x1] }
 0x183   : > { %v1179_v37 = vadd.f32 %v1178_v28, %v1177_v59  ;;  %v1293_v28 = vsel %vm1140_vm5, %v1238_v52, 0.0  ;;  %v1202_v59 = vsel %vm1140_vm5, %v2374_v6, 0.0 }
 0x184   : > { %v1282_v61 = vadd.f32 %v1281_v63, %v1280_v30 }
 0x185   : > { %v1181_v23 = vadd.f32 %v1180_v11, %v1179_v37  ;;  %v1297_v37 = vsel %vm1140_vm5, %v1240_v18, 0.0 }
 0x186   : > { %v1284_v17 = vadd.f32 %v1283_v40, %v1282_v61  ;;  %v1213_v40 = vld [vmem:[%s2036_s22] sm:$0x1] }
 0x187   : > { %v1183_v24 = vadd.f32 %v1182_v0, %v1181_v23  ;;  %v1243_v0 = vmul.f32 %v2346_v36, %v2346_v36 }
 0x188   : > { %v1286_v45 = vadd.f32 %v1285_v33, %v1284_v17 }
 0x189   : > { %v1185_v60 = vadd.f32 %v1184_v13, %v1183_v24  ;;  %v1303_v16 = vsel %vm1140_vm5, %v1243_v0, 0.0 }
 0x18a   : > { %v1288_v58 = vadd.f32 %v1287_v42, %v1286_v45 }
 0x18b   : > { %v1187_v29 = vadd.f32 %v1186_v53, %v1185_v60 }
 0x18c   : > { %v1290_v14 = vadd.f32 %v1289_v57, %v1288_v58 }
 0x18d   : > { %v1189_v7 = vadd.f32 %v1188_v32, %v1187_v29 }
 0x18e   : > { %v1292_v50 = vadd.f32 %v1291_v35, %v1290_v14 }
 0x18f   : > { %v1191_v41 = vadd.f32 %v1190_v39, %v1189_v7 }
 0x190   : > { %v1294_v55 = vadd.f32 %v1293_v28, %v1292_v50 }
 0x191   : > { %v1193_v1 = vadd.f32 %v1192_v5, %v1191_v41 }
 0x192   : > { %v1296_v51 = vadd.f32 %v1295_v62, %v1294_v55 }
 0x193   : > { %v1195_v10 = vadd.f32 %v1194_v56, %v1193_v1 }
 0x194   : > { %v1298_v23 = vadd.f32 %v1297_v37, %v1296_v51 }
 0x195   : > { %v1197_v8 = vadd.f32 %v1196_v25, %v1195_v10 }
 0x196   : > { %v1300_v20 = vadd.f32 %v1299_v3, %v1298_v23 }
 0x197   : > { %v1199_v43 = vadd.f32 %v1198_v19, %v1197_v8 }
 0x198   : > { %v1302_v36 = vadd.f32 %v1301_v46, %v1300_v20 }
 0x199   : > { %v1201_v11 = vadd.f32 %v1200_v44, %v1199_v43 }
 0x19a   : > { %v1304_v34 = vadd.f32 %v1303_v16, %v1302_v36 }
 0x19b   : > { %v1203_v47 = vadd.f32 %v1202_v59, %v1201_v11 }
 0x19c   : > { %v1306_v60 = vadd.f32 %v1305_v27, %v1304_v34 }
 0x19d   : > { %v1204_v15 = vrot.slane %v1203_v47, 4 }
 0x19e   : > { %v1308_v48 = vadd.f32 %v1307_v54, %v1306_v60 }
 0x19f   : > { %v1205_v13 = vadd.f32 %v1204_v15, %v1203_v47 }
 0x1a0   : > { %v1309_v63 = vrot.slane %v1308_v48, 4 }
 0x1a1   : > { %v1206_v24 = vrot.slane %v1205_v13, 2 }
 0x1a2   : > { %v1310_v29 = vadd.f32 %v1309_v63, %v1308_v48 }
 0x1a3   : > { %v1207_v53 = vadd.f32 %v1206_v24, %v1205_v13 }
 0x1a4   : > { %v1311_v30 = vrot.slane %v1310_v29, 2 }
 0x1a5   : > { %v1208_v49 = vrot.slane %v1207_v53, 1 }
 0x1a6   : > { %v1312_v39 = vadd.f32 %v1311_v30, %v1310_v29 }
 0x1a7   : > { %v1209_v32 = vadd.f32 %v1208_v49, %v1207_v53 }
 0x1a8   : > { %v1313_v4 = vrot.slane %v1312_v39, 1 }
 0x1a9   : > { %v1210_v6 = vadd.f32 %v1209_v32, %v1139_v26 }
 0x1aa   : > { %v1314_v7 = vadd.f32 %v1313_v4, %v1312_v39 }
 0x1ab   : > { %1212 = vst.msk [vmem:[%s2030_s12] sm:$0x1] %vm1211_vm6, %v1210_v6 }
 0x1ac   : > { %v1315_v61 = vadd.f32 %v1314_v7, %v1213_v40 }
 0x1ae   : > { %1316 = vst.msk [vmem:[%s2036_s22] sm:$0x1] %vm1211_vm6, %v1315_v61 }
 0x1af PF: > { %s15_s19 = sadd.s32 1, %s1939_s19   ;;  %s2573_s15 = smov %s1931_s17 }
 0x1b0   : > { %p12_p8 = scmp.ge.s32.totalorder %s15_s19, 10   ;;  %s2574_s16 = smov %s1935_s18 }
 0x1b1   : > { %s2575_s17 = smov %s2578_s20  ;;  %s2576_s18 = smov %s2582_s21 }
 0x1b2   :  { %14 = sbr.rel (!%p12_p8) target bundleno = 3 (0x3), region = 91 }

// kernel: _lambda_.9
= control target key start
LH: loop header
LB: loop body
LE: loop exit
PB: predicated region body
PF: predicated region fallthrough
CT: control target
= control target key end

     0   :  { %s2048_s15 = smov 0   ;;  %s2050_s16 = smov 0   ;;  %s2653_s0 = inlined_call_operand.vmem [shape: bf16[2,1,34,32,48], index: 0, kind: input, shape index: {}]   ;;  %s2654_s1 = inlined_call_operand.vmem [shape: bf16[3,48,32], index: 1, kind: input, shape index: {}]   ;;  %s2655_s2 = inlined_call_operand.vmem [shape: bf16[2,1024,32], index: 2, kind: output, shape index: {0}]   ;;  %s2656_s3 = inlined_call_operand.vmem [shape: f32[2,1,32], index: 3, kind: output, shape index: {1}]   ;;  %s2657_s4 = inlined_call_operand.vmem [shape: f32[2,1,32], index: 4, kind: output, shape index: {2}]  }
   0x1   :  { %s2052_s17 = smov 0   ;;  %s2054_s18 = smov 0  }
   0x2   :  { %s2056_s19 = smov 0  }
   0x3 LB: > { %s24_s20 = sadd.s32 1, %s2012_s17  ;;  %s27_s21 = sadd.s32 1, %s2016_s18  ;;  %s2020_s19 = sphi %s2056_s19, %s15_s19   ;;  %s2016_s18 = sphi %s2054_s18, %s2661_s18   ;;  %s2012_s17 = sphi %s2052_s17, %s2660_s17   ;;  %s2008_s16 = sphi %s2050_s16, %s2659_s16   ;;  %s2004_s15 = sphi %s2048_s15, %s2658_s15  }
   0x4   : > { %p25_p0 = scmp.ge.s32.totalorder %s24_s20, 4  ;;  %p1503_p1 = scmp.ge.s32.totalorder %s2020_s19, 1 }
   0x5   : > { %p181_p2 = scmp.lt.s32.totalorder %s2020_s19, 9 }
   0x6   : > { %s2663_s20 = smov (%p25_p0, %s24_s20), 0  ;;  %s2665_s21 = smov (!%p25_p0, %s27_s21), %s2016_s18 }
   0x7   : > { %p182_p3 = pnand %p1503_p1, %p181_p2  ;;  %p29_p4 = scmp.ge.s32.totalorder %s2665_s21, 2 }
   0x8   : > { %p217_p5 = scmp.lt.s32.totalorder (!%p182_p3), %s2008_s16, 1  ;;  %s1871_s8 = sshll.u32 (!%p182_p3), %s2004_s15, 7 }
   0x9   : > { %s2667_s21 = smov (%p29_p4, %s2665_s21), 0  ;;  %185 = sbr.rel (%p182_p3) target bundleno = 434 (0x1b2), region = 28 }
   0xa   : > { %s1505_s7 = sshll.u32 (!%p182_p3), %s2004_s15, 5  ;;  %p1867_p7 = scmp.ne.s32.totalorder (!%p182_p3), %s2004_s15, 0 }
   0xb   : > { %p225_p6 = scmp.lt.s32.totalorder (!%p182_p3), %s1505_s7, 127 }
   0xe   : > { %v1910_v0 = vld [vmem:[%s2654_s1 + $0x28] sm:$0xff]  ;;  %v1890_v1 = vld [vmem:[%s2654_s1 + $0x10] sm:$0xff]  ;;  %v1930_v2 = vld [vmem:[%s2654_s1 + $0x40] sm:$0xff]  ;;  %s2669_s16 = smov (!%p217_p5, %s2008_s16), 1  ;;  %vm422_vm0 = vcmask 392192   ;;  %s2671_s7 = smov (!%p225_p6, %s1505_s7), 127 }
   0xf   : > { %476 = vmatpush.bf16.msra.mxu0 %v1910_v0  ;;  %1931 = vmatpush.bf16.msra.mxu3 %v1910_v0  ;;  %v1909_v3 = vld [vmem:[%s2654_s1 + $0x20] sm:$0xff]  ;;  %v1889_v4 = vld [vmem:[%s2654_s1 + $0x8] sm:$0xff]  ;;  %v1929_v5 = vld [vmem:[%s2654_s1 + $0x38] sm:$0xff]  ;;  %s1940_s9 = smul.u32 544, %s2669_s16  ;;  %s2106_s12 = scalar_lea.vmem %s2656_s3, %s2669_s16  ;;  %vm1137_vm1 = vcmask 257024  }
  0x10   : > { %711 = vmatpush.bf16.msra.mxu1 %v1890_v1  ;;  %989 = vmatpush.bf16.msra.mxu2 %v1930_v2  ;;  %s2112_s22 = scalar_lea.vmem %s2657_s4, %s2669_s16  ;;  %v1908_v6 = vld [vmem:[%s2654_s1 + $0x18] sm:$0xff]  ;;  %v1888_v7 = vld [vmem:[%s2654_s1] sm:$0xff]  ;;  %v1928_v8 = vld [vmem:[%s2654_s1 + $0x30] sm:$0xff] }
  0x11   : > { %s221_s27 = scalar_lea.vmem %s2653_s0, %s1940_s9 }
  0x12   : > { %s2126_s6 = scalar_lea.vmem %s221_s27, %s1871_s8  ;;  %s1506_s8 = sshll.u32 %s2669_s16, 7 }
  0x13   : > { %477 = vmatpush.bf16.msra.mxu0 %v1909_v3  ;;  %1932 = vmatpush.bf16.msra.mxu3 %v1909_v3  ;;  %v1892_v9 = vld [vmem:[%s2126_s6 + $0x10] sm:$0xff]  ;;  %v1872_v11 = vld [vmem:[%s2126_s6] sm:$0xff]  ;;  %v1893_v13 = vld [vmem:[%s2126_s6 + $0x18] sm:$0xff]  ;;  %s228_s9 = sadd.s32 %s1506_s8, %s2671_s7 }
  0x14   : > { %712 = vmatpush.bf16.msra.mxu1 %v1889_v4  ;;  %990 = vmatpush.bf16.msra.mxu2 %v1929_v5  ;;  %v1904_v10 = vld [vmem:[%s2126_s6 + $0x70] sm:$0xff]  ;;  %v1912_v12 = vld [vmem:[%s2126_s6 + $0x20] sm:$0xff]  ;;  %v1905_v14 = vld [vmem:[%s2126_s6 + $0x78] sm:$0xff]  ;;  %s1507_s10 = sshll.u32 %s228_s9, 2 }
  0x15   : > { %v1873_v15 = vld [vmem:[%s2126_s6 + $0x8] sm:$0xff]  ;;  %v1894_v17 = vld [vmem:[%s2126_s6 + $0x20] sm:$0xff]  ;;  %v1874_v19 = vld [vmem:[%s2126_s6 + $0x10] sm:$0xff]  ;;  %s2209_s13 = scalar_lea.vmem %s2655_s2, %s1507_s10 }
  0x16   : > { %v1913_v16 = vld [vmem:[%s2126_s6 + $0x28] sm:$0xff]  ;;  %v1906_v18 = vld [vmem:[%s2126_s6 + $0x80] sm:$0xff]  ;;  %v1914_v20 = vld [vmem:[%s2126_s6 + $0x30] sm:$0xff] }
  0x17   : > { %478 = vmatpush.bf16.msra.mxu0 %v1908_v6  ;;  %1933 = vmatpush.bf16.msra.mxu3 %v1908_v6  ;;  %v1895_v21 = vld [vmem:[%s2126_s6 + $0x28] sm:$0xff]  ;;  %v1875_v23 = vld [vmem:[%s2126_s6 + $0x18] sm:$0xff]  ;;  %v1896_v25 = vld [vmem:[%s2126_s6 + $0x30] sm:$0xff] }
  0x18   : > { %713 = vmatpush.bf16.msra.mxu1 %v1888_v7  ;;  %991 = vmatpush.bf16.msra.mxu2 %v1928_v8  ;;  %v1907_v22 = vld [vmem:[%s2126_s6 + $0x88] sm:$0xff]  ;;  %v1915_v24 = vld [vmem:[%s2126_s6 + $0x38] sm:$0xff]  ;;  %v1884_v26 = vld [vmem:[%s2126_s6 + $0x60] sm:$0xff] }
  0x19   : > { %v1876_v27 = vld [vmem:[%s2126_s6 + $0x20] sm:$0xff]  ;;  %v1897_v29 = vld [vmem:[%s2126_s6 + $0x38] sm:$0xff]  ;;  %v1885_v30 = vld [vmem:[%s2126_s6 + $0x68] sm:$0xff] }
  0x1a   : > { %1627 = vmatmul.msk.bf16.vlgmr.msra.gmra.mxu0 %vm422_vm0, %v1892_v9  ;;  %1639 = vmatmul.msk.bf16.vlgmr.msra.gmra.mxu3 %vm422_vm0, %v1904_v10  ;;  %v1916_v28 = vld [vmem:[%s2126_s6 + $0x40] sm:$0xff]  ;;  %v1877_v31 = vld [vmem:[%s2126_s6 + $0x28] sm:$0xff]  ;;  %v1886_v34 = vld [vmem:[%s2126_s6 + $0x70] sm:$0xff] }
  0x1b   : > { %1934 = vmatpush.bf16.msrb.mxu3 %v1890_v1  ;;  %1719 = vmatmul.msk.bf16.vlgmr.msra.gmra.mxu1 %vm422_vm0, %v1872_v11  ;;  %v1917_v32 = vld [vmem:[%s2126_s6 + $0x48] sm:$0xff]  ;;  %v1898_v33 = vld [vmem:[%s2126_s6 + $0x40] sm:$0xff]  ;;  %v1878_v35 = vld [vmem:[%s2126_s6 + $0x30] sm:$0xff] }
  0x1c   : > { %1851 = vmatmul.msk.bf16.vlgmr.msra.gmra.mxu2 %vm422_vm0, %v1912_v12  ;;  %v1918_v36 = vld [vmem:[%s2126_s6 + $0x50] sm:$0xff]  ;;  %v1899_v37 = vld [vmem:[%s2126_s6 + $0x48] sm:$0xff]  ;;  %v1887_v38 = vld [vmem:[%s2126_s6 + $0x78] sm:$0xff] }
  0x1d   : > { %v1879_v39 = vld [vmem:[%s2126_s6 + $0x38] sm:$0xff]  ;;  %v1900_v41 = vld [vmem:[%s2126_s6 + $0x50] sm:$0xff]  ;;  %v1924_v42 = vld [vmem:[%s2126_s6 + $0x80] sm:$0xff] }
  0x1e   : > { %v1919_v40 = vld [vmem:[%s2126_s6 + $0x58] sm:$0xff]  ;;  %v1880_v44 = vld [vmem:[%s2126_s6 + $0x40] sm:$0xff]  ;;  %v1925_v58 = vld [vmem:[%s2126_s6 + $0x88] sm:$0xff] }
  0x1f   : > { %1935 = vmatpush.bf16.msrb.mxu3 %v1889_v4  ;;  %v1920_v45 = vld [vmem:[%s2126_s6 + $0x60] sm:$0xff]  ;;  %v1901_v57 = vld [vmem:[%s2126_s6 + $0x58] sm:$0xff]  ;;  %v1881_v61 = vld [vmem:[%s2126_s6 + $0x48] sm:$0xff] }
  0x20   : > { %v1921_v62 = vld [vmem:[%s2126_s6 + $0x68] sm:$0xff]  ;;  %v1902_v11 = vld [vmem:[%s2126_s6 + $0x60] sm:$0xff]  ;;  %v1926_v12 = vld [vmem:[%s2126_s6 + $0x90] sm:$0xff] }
  0x23   : > { %1936 = vmatpush.bf16.msrb.mxu3 %v1888_v7 }
  0x27   : > { %1937 = vmatpush.bf16.msra.mxu3 %v1930_v2 }
  0x2a   : > { %1628 = vmatmul.msk.bf16.gmra.mxu0 %vm422_vm0, %v1893_v13  ;;  %1640 = vmatmul.msk.bf16.gmra.mxu3 %vm422_vm0, %v1905_v14 }
  0x2b   : > { %1938 = vmatpush.bf16.msra.mxu3 %v1929_v5  ;;  %1720 = vmatmul.msk.bf16.gmra.mxu1 %vm422_vm0, %v1873_v15  ;;  %v1882_v15 = vld [vmem:[%s2126_s6 + $0x50] sm:$0xff] }
  0x2c   : > { %1852 = vmatmul.msk.bf16.gmra.mxu2 %vm422_vm0, %v1913_v16  ;;  %v1922_v16 = vld [vmem:[%s2126_s6 + $0x70] sm:$0xff] }
  0x2f   : > { %1939 = vmatpush.bf16.msra.mxu3 %v1928_v8 }
  0x3a   : > { %1629 = vmatmul.msk.bf16.gmra.mxu0 %vm422_vm0, %v1894_v17  ;;  %1641 = vmatmul.msk.bf16.gmra.mxu3 %vm422_vm0, %v1906_v18 }
  0x3b   : > { %1721 = vmatmul.msk.bf16.gmra.mxu1 %vm422_vm0, %v1874_v19 }
  0x3c   : > { %1853 = vmatmul.msk.bf16.gmra.mxu2 %vm422_vm0, %v1914_v20 }
  0x4a   : > { %1630 = vmatmul.msk.bf16.gmra.mxu0 %vm422_vm0, %v1895_v21  ;;  %1642 = vmatmul.msk.bf16.gmra.mxu3 %vm422_vm0, %v1907_v22 }
  0x4b   : > { %1722 = vmatmul.msk.bf16.gmra.mxu1 %vm422_vm0, %v1875_v23 }
  0x4c   : > { %1854 = vmatmul.msk.bf16.gmra.mxu2 %vm422_vm0, %v1915_v24 }
  0x5a   : > { %1631 = vmatmul.msk.bf16.gmra.mxu0 %vm422_vm0, %v1896_v25  ;;  %1731 = vmatmul.msk.bf16.vlgmr.msrb.gmra.mxu3 %vm422_vm0, %v1884_v26 }
  0x5b   : > { %1723 = vmatmul.msk.bf16.gmra.mxu1 %vm422_vm0, %v1876_v27 }
  0x5c   : > { %1855 = vmatmul.msk.bf16.gmra.mxu2 %vm422_vm0, %v1916_v28 }
  0x6a   : > { %1632 = vmatmul.msk.bf16.gmra.mxu0 %vm422_vm0, %v1897_v29  ;;  %1732 = vmatmul.msk.bf16.gmra.mxu3 %vm422_vm0, %v1885_v30  ;;  %v1903_v29 = vld [vmem:[%s2126_s6 + $0x68] sm:$0xff]  ;;  %v1927_v30 = vld [vmem:[%s2126_s6 + $0x98] sm:$0xff] }
  0x6b   : > { %1724 = vmatmul.msk.bf16.gmra.mxu1 %vm422_vm0, %v1877_v31 }
  0x6c   : > { %1856 = vmatmul.msk.bf16.gmra.mxu2 %vm422_vm0, %v1917_v32 }
  0x7a   : > { %1633 = vmatmul.msk.bf16.gmra.mxu0 %vm422_vm0, %v1898_v33  ;;  %1733 = vmatmul.msk.bf16.gmra.mxu3 %vm422_vm0, %v1886_v34  ;;  %v1883_v33 = vld [vmem:[%s2126_s6 + $0x58] sm:$0xff] }
  0x7b   : > { %1725 = vmatmul.msk.bf16.gmra.mxu1 %vm422_vm0, %v1878_v35  ;;  %v1923_v34 = vld [vmem:[%s2126_s6 + $0x78] sm:$0xff] }
  0x7c   : > { %1857 = vmatmul.msk.bf16.gmra.mxu2 %vm422_vm0, %v1918_v36 }
  0x8a   : > { %1634 = vmatmul.msk.bf16.gmra.mxu0 %vm422_vm0, %v1899_v37  ;;  %1734 = vmatmul.msk.bf16.gmra.mxu3 %vm422_vm0, %v1887_v38 }
  0x8b   : > { %1726 = vmatmul.msk.bf16.gmra.mxu1 %vm422_vm0, %v1879_v39 }
  0x8c   : > { %1858 = vmatmul.msk.bf16.gmra.mxu2 %vm422_vm0, %v1919_v40 }
  0x97   : > { %v480_v43 = vpop.f32.mrf.mxu0 }
  0x98   : > { %v715_v46 = vpop.f32.mrf.mxu1 }
  0x99   : > { %v716_v47 = vadd.f32 %v715_v46, %v480_v43 }
  0x9a   : > { %1635 = vmatmul.msk.bf16.gmra.mxu0 %vm422_vm0, %v1900_v41  ;;  %1863 = vmatmul.msk.bf16.vlgmr.msra.gmra.mxu3 %vm422_vm0, %v1924_v42 }
  0x9b   : > { %1727 = vmatmul.msk.bf16.gmra.mxu1 %vm422_vm0, %v1880_v44 }
  0x9c   : > { %1859 = vmatmul.msk.bf16.gmra.mxu2 %vm422_vm0, %v1920_v45 }
  0x9d   : > { %v2202_v48 = vpop.f32.mrf.mxu3 }
  0x9f   : > { %v993_v49 = vpop.f32.mrf.mxu2  ;;  %v482_v51 = vpop.f32.mrf.mxu0 }
  0xa0   : > { %v2204_v50 = vadd.f32 %v993_v49, %v716_v47  ;;  %v717_v52 = vpop.f32.mrf.mxu1 }
  0xa1   : > { %v718_v54 = vadd.f32 %v717_v52, %v482_v51 }
  0xa2   : > { %v1105_v53 = vpack.c.bf16 %v2204_v50, %v2204_v50 }
  0xa4   : > { %1138 = vst.msk [vmem:[%s2209_s13] sm:$0xf] %vm1137_vm1, %v1105_v53 }
  0xa5   : > { %v2215_v55 = vpop.f32.mrf.mxu3 }
  0xa7   : > { %v995_v56 = vpop.f32.mrf.mxu2  ;;  %v485_v60 = vpop.f32.mrf.mxu0 }
  0xa8   : > { %v2219_v59 = vadd.f32 %v995_v56, %v718_v54  ;;  %v720_v63 = vpop.f32.mrf.mxu1 }
  0xa9   : > { %v721_v1 = vadd.f32 %v720_v63, %v485_v60 }
  0xaa   : > { %v1106_v0 = vpack.c.bf16 %v2219_v59, %v2219_v59  ;;  %1636 = vmatmul.msk.bf16.gmra.mxu0 %vm422_vm0, %v1901_v57  ;;  %1864 = vmatmul.msk.bf16.gmra.mxu3 %vm422_vm0, %v1925_v58 }
  0xab   : > { %1728 = vmatmul.msk.bf16.gmra.mxu1 %vm422_vm0, %v1881_v61 }
  0xac   : > { %1139 = vst.msk [vmem:[%s2209_s13 + $0x4] sm:$0xf] %vm1137_vm1, %v1106_v0  ;;  %1860 = vmatmul.msk.bf16.gmra.mxu2 %vm422_vm0, %v1921_v62 }
  0xad   : > { %v2231_v2 = vpop.f32.mrf.mxu3 }
  0xaf   : > { %v998_v3 = vpop.f32.mrf.mxu2  ;;  %v487_v5 = vpop.f32.mrf.mxu0 }
  0xb0   : > { %v2233_v4 = vadd.f32 %v998_v3, %v721_v1  ;;  %v722_v6 = vpop.f32.mrf.mxu1 }
  0xb1   : > { %v723_v8 = vadd.f32 %v722_v6, %v487_v5 }
  0xb2   : > { %v1107_v7 = vpack.c.bf16 %v2233_v4, %v2233_v4 }
  0xb4   : > { %1140 = vst.msk [vmem:[%s2209_s13 + $0x8] sm:$0xf] %vm1137_vm1, %v1107_v7 }
  0xb5   : > { %v2239_v9 = vpop.f32.mrf.mxu3 }
  0xb7   : > { %v1000_v10 = vpop.f32.mrf.mxu2  ;;  %v490_v14 = vpop.f32.mrf.mxu0 }
  0xb8   : > { %v2243_v13 = vadd.f32 %v1000_v10, %v723_v8  ;;  %v725_v17 = vpop.f32.mrf.mxu1 }
  0xb9   : > { %v726_v19 = vadd.f32 %v725_v17, %v490_v14 }
  0xba   : > { %v1108_v18 = vpack.c.bf16 %v2243_v13, %v2243_v13  ;;  %1637 = vmatmul.msk.bf16.gmra.mxu0 %vm422_vm0, %v1902_v11  ;;  %1865 = vmatmul.msk.bf16.gmra.mxu3 %vm422_vm0, %v1926_v12 }
  0xbb   : > { %1729 = vmatmul.msk.bf16.gmra.mxu1 %vm422_vm0, %v1882_v15 }
  0xbc   : > { %1141 = vst.msk [vmem:[%s2209_s13 + $0xc] sm:$0xf] %vm1137_vm1, %v1108_v18  ;;  %1861 = vmatmul.msk.bf16.gmra.mxu2 %vm422_vm0, %v1922_v16 }
  0xbd   : > { %v2255_v20 = vpop.f32.mrf.mxu3 }
  0xbf   : > { %v1003_v21 = vpop.f32.mrf.mxu2  ;;  %v492_v23 = vpop.f32.mrf.mxu0 }
  0xc0   : > { %v2257_v22 = vadd.f32 %v1003_v21, %v726_v19  ;;  %v727_v24 = vpop.f32.mrf.mxu1 }
  0xc1   : > { %v728_v26 = vadd.f32 %v727_v24, %v492_v23 }
  0xc2   : > { %v1109_v25 = vpack.c.bf16 %v2257_v22, %v2257_v22 }
  0xc4   : > { %1142 = vst.msk [vmem:[%s2209_s13 + $0x10] sm:$0xf] %vm1137_vm1, %v1109_v25 }
  0xc5   : > { %v2263_v27 = vpop.f32.mrf.mxu3 }
  0xc7   : > { %v1005_v28 = vpop.f32.mrf.mxu2  ;;  %v495_v32 = vpop.f32.mrf.mxu0 }
  0xc8   : > { %v2267_v31 = vadd.f32 %v1005_v28, %v728_v26  ;;  %v730_v35 = vpop.f32.mrf.mxu1 }
  0xc9   : > { %v731_v37 = vadd.f32 %v730_v35, %v495_v32 }
  0xca   : > { %v1110_v36 = vpack.c.bf16 %v2267_v31, %v2267_v31  ;;  %1638 = vmatmul.msk.bf16.gmra.mxu0 %vm422_vm0, %v1903_v29  ;;  %1866 = vmatmul.msk.bf16.gmra.mxu3 %vm422_vm0, %v1927_v30 }
  0xcb   : > { %1730 = vmatmul.msk.bf16.gmra.mxu1 %vm422_vm0, %v1883_v33 }
  0xcc   : > { %1143 = vst.msk [vmem:[%s2209_s13 + $0x14] sm:$0xf] %vm1137_vm1, %v1110_v36  ;;  %1862 = vmatmul.msk.bf16.gmra.mxu2 %vm422_vm0, %v1923_v34 }
  0xcd   : > { %v2279_v38 = vpop.f32.mrf.mxu3 }
  0xcf   : > { %v1008_v39 = vpop.f32.mrf.mxu2  ;;  %v497_v41 = vpop.f32.mrf.mxu0 }
  0xd0   : > { %v2281_v40 = vadd.f32 %v1008_v39, %v731_v37  ;;  %v732_v42 = vpop.f32.mrf.mxu1 }
  0xd1   : > { %v733_v44 = vadd.f32 %v732_v42, %v497_v41 }
  0xd2   : > { %v1111_v43 = vpack.c.bf16 %v2281_v40, %v2281_v40 }
  0xd4   : > { %1144 = vst.msk [vmem:[%s2209_s13 + $0x18] sm:$0xf] %vm1137_vm1, %v1111_v43 }
  0xd5   : > { %v2287_v45 = vpop.f32.mrf.mxu3 }
  0xd7   : > { %v1010_v46 = vpop.f32.mrf.mxu2  ;;  %v500_v49 = vpop.f32.mrf.mxu0 }
  0xd8   : > { %v2289_v47 = vadd.f32 %v1010_v46, %v733_v44  ;;  %v735_v51 = vpop.f32.mrf.mxu1 }
  0xd9   : > { %v736_v53 = vadd.f32 %v735_v51, %v500_v49 }
  0xda   : > { %v1112_v52 = vpack.c.bf16 %v2289_v47, %v2289_v47 }
  0xdc   : > { %1145 = vst.msk [vmem:[%s2209_s13 + $0x1c] sm:$0xf] %vm1137_vm1, %v1112_v52 }
  0xdd   : > { %v2295_v54 = vpop.f32.mrf.mxu3 }
  0xdf   : > { %v1013_v56 = vpop.f32.mrf.mxu2  ;;  %v502_v58 = vpop.f32.mrf.mxu0 }
  0xe0   : > { %v2297_v57 = vadd.f32 %v1013_v56, %v736_v53  ;;  %v737_v60 = vpop.f32.mrf.mxu1 }
  0xe1   : > { %v738_v62 = vadd.f32 %v737_v60, %v502_v58 }
  0xe2   : > { %v1113_v61 = vpack.c.bf16 %v2297_v57, %v2297_v57 }
  0xe4   : > { %1146 = vst.msk [vmem:[%s2209_s13 + $0x20] sm:$0xf] %vm1137_vm1, %v1113_v61 }
  0xe5   : > { %v2303_v63 = vpop.f32.mrf.mxu3 }
  0xe7   : > { %v1015_v0 = vpop.f32.mrf.mxu2  ;;  %v505_v3 = vpop.f32.mrf.mxu0 }
  0xe8   : > { %v2305_v1 = vadd.f32 %v1015_v0, %v738_v62  ;;  %v740_v5 = vpop.f32.mrf.mxu1 }
  0xe9   : > { %v741_v7 = vadd.f32 %v740_v5, %v505_v3 }
  0xea   : > { %v1114_v6 = vpack.c.bf16 %v2305_v1, %v2305_v1 }
  0xec   : > { %1147 = vst.msk [vmem:[%s2209_s13 + $0x24] sm:$0xf] %vm1137_vm1, %v1114_v6  ;;  %v776_v6 = vadd.f32 %v2295_v54, %v2202_v48  ;;  %v778_v48 = vadd.f32 %v2303_v63, %v2215_v55 }
  0xed   : > { %v2311_v8 = vpop.f32.mrf.mxu3 }
  0xee   : > { %v781_v63 = vadd.f32 %v2311_v8, %v2231_v2 }
  0xef   : > { %v1018_v10 = vpop.f32.mrf.mxu2  ;;  %v507_v12 = vpop.f32.mrf.mxu0 }
  0xf0   : > { %v2313_v11 = vadd.f32 %v1018_v10, %v741_v7  ;;  %v742_v14 = vpop.f32.mrf.mxu1 }
  0xf1   : > { %v743_v16 = vadd.f32 %v742_v14, %v507_v12 }
  0xf2   : > { %v1115_v15 = vpack.c.bf16 %v2313_v11, %v2313_v11 }
  0xf4   : > { %1148 = vst.msk [vmem:[%s2209_s13 + $0x28] sm:$0xf] %vm1137_vm1, %v1115_v15 }
  0xf5   : > { %v2319_v17 = vpop.f32.mrf.mxu3 }
  0xf6   : > { %v783_v2 = vadd.f32 %v2319_v17, %v2239_v9 }
  0xf7   : > { %v1020_v18 = vpop.f32.mrf.mxu2  ;;  %v510_v21 = vpop.f32.mrf.mxu0 }
  0xf8   : > { %v2321_v19 = vadd.f32 %v1020_v18, %v743_v16  ;;  %v745_v23 = vpop.f32.mrf.mxu1 }
  0xf9   : > { %v746_v25 = vadd.f32 %v745_v23, %v510_v21 }
  0xfa   : > { %v1116_v24 = vpack.c.bf16 %v2321_v19, %v2321_v19 }
  0xfc   : > { %1149 = vst.msk [vmem:[%s2209_s13 + $0x2c] sm:$0xf] %vm1137_vm1, %v1116_v24 }
  0xfd   : > { %v2327_v26 = vpop.f32.mrf.mxu3 }
  0xfe   : > { %v786_v17 = vadd.f32 %v2327_v26, %v2255_v20 }
  0xff   : > { %v1023_v28 = vpop.f32.mrf.mxu2  ;;  %v512_v30 = vpop.f32.mrf.mxu0 }
 0x100   : > { %v2329_v29 = vadd.f32 %v1023_v28, %v746_v25  ;;  %v747_v32 = vpop.f32.mrf.mxu1 }
 0x101   : > { %v748_v34 = vadd.f32 %v747_v32, %v512_v30 }
 0x102   : > { %v1117_v33 = vpack.c.bf16 %v2329_v29, %v2329_v29 }
 0x104   : > { %1150 = vst.msk [vmem:[%s2209_s13 + $0x30] sm:$0xf] %vm1137_vm1, %v1117_v33 }
 0x105   : > { %v2335_v35 = vpop.f32.mrf.mxu3 }
 0x106   : > { %v788_v20 = vadd.f32 %v2335_v35, %v2263_v27 }
 0x107   : > { %v1025_v36 = vpop.f32.mrf.mxu2  ;;  %v515_v39 = vpop.f32.mrf.mxu0 }
 0x108   : > { %v2337_v37 = vadd.f32 %v1025_v36, %v748_v34  ;;  %v750_v41 = vpop.f32.mrf.mxu1 }
 0x109   : > { %v751_v43 = vadd.f32 %v750_v41, %v515_v39 }
 0x10a   : > { %v1118_v42 = vpack.c.bf16 %v2337_v37, %v2337_v37 }
 0x10c   : > { %1151 = vst.msk [vmem:[%s2209_s13 + $0x34] sm:$0xf] %vm1137_vm1, %v1118_v42 }
 0x10d   : > { %v2343_v44 = vpop.f32.mrf.mxu3 }
 0x10e   : > { %v791_v35 = vadd.f32 %v2343_v44, %v2279_v38 }
 0x10f   : > { %v1028_v46 = vpop.f32.mrf.mxu2  ;;  %v517_v51 = vpop.f32.mrf.mxu0 }
 0x110   : > { %v2345_v49 = vadd.f32 %v1028_v46, %v751_v43  ;;  %v752_v52 = vpop.f32.mrf.mxu1 }
 0x111   : > { %v753_v56 = vadd.f32 %v752_v52, %v517_v51 }
 0x112   : > { %v1119_v53 = vpack.c.bf16 %v2345_v49, %v2345_v49 }
 0x114   : > { %1152 = vst.msk [vmem:[%s2209_s13 + $0x38] sm:$0xf] %vm1137_vm1, %v1119_v53 }
 0x115   : > { %v2351_v58 = vpop.f32.mrf.mxu3 }
 0x116   : > { %v793_v38 = vadd.f32 %v2351_v58, %v2287_v45 }
 0x117   : > { %v1030_v60 = vpop.f32.mrf.mxu2  ;;  %v520_v62 = vpop.f32.mrf.mxu0 }
 0x118   : > { %v2353_v61 = vadd.f32 %v1030_v60, %v753_v56  ;;  %v755_v0 = vpop.f32.mrf.mxu1 }
 0x119   : > { %v756_v5 = vadd.f32 %v755_v0, %v520_v62 }
 0x11a   : > { %v1120_v3 = vpack.c.bf16 %v2353_v61, %v2353_v61 }
 0x11c   : > { %1153 = vst.msk [vmem:[%s2209_s13 + $0x3c] sm:$0xf] %vm1137_vm1, %v1120_v3 }
 0x11d   : > { %v1053_v7 = vpop.f32.mrf.mxu3 }
 0x11e   : > { %v2361_v12 = vadd.f32 %v1053_v7, %v776_v6 }
 0x11f   : > { %v1033_v10 = vpop.f32.mrf.mxu2  ;;  %v522_v15 = vpop.f32.mrf.mxu0 }
 0x120   : > { %v2363_v14 = vadd.f32 %v1033_v10, %v756_v5  ;;  %v1129_v16 = vpack.c.bf16 %v2361_v12, %v2361_v12  ;;  %v757_v18 = vpop.f32.mrf.mxu1 }
 0x121   : > { %v758_v54 = vadd.f32 %v757_v18, %v522_v15 }
 0x122   : > { %v1121_v21 = vpack.c.bf16 %v2363_v14, %v2363_v14  ;;  %1162 = vst.msk [vmem:[%s2209_s13 + $0x60] sm:$0xf] %vm1137_vm1, %v1129_v16 }
 0x124   : > { %1154 = vst.msk [vmem:[%s2209_s13 + $0x40] sm:$0xf] %vm1137_vm1, %v1121_v21 }
 0x125   : > { %v1055_v23 = vpop.f32.mrf.mxu3 }
 0x126   : > { %v2375_v25 = vadd.f32 %v1055_v23, %v778_v48 }
 0x127   : > { %v1035_v24 = vpop.f32.mrf.mxu2  ;;  %v525_v30 = vpop.f32.mrf.mxu0 }
 0x128   : > { %v2377_v28 = vadd.f32 %v1035_v24, %v758_v54  ;;  %v1130_v32 = vpack.c.bf16 %v2375_v25, %v2375_v25  ;;  %v760_v33 = vpop.f32.mrf.mxu1 }
 0x129   : > { %v761_v55 = vadd.f32 %v760_v33, %v525_v30 }
 0x12a   : > { %v1122_v34 = vpack.c.bf16 %v2377_v28, %v2377_v28  ;;  %1163 = vst.msk [vmem:[%s2209_s13 + $0x64] sm:$0xf] %vm1137_vm1, %v1130_v32 }
 0x12c   : > { %1155 = vst.msk [vmem:[%s2209_s13 + $0x44] sm:$0xf] %vm1137_vm1, %v1122_v34 }
 0x12d   : > { %v1058_v36 = vpop.f32.mrf.mxu3 }
 0x12e   : > { %v2389_v41 = vadd.f32 %v1058_v36, %v781_v63 }
 0x12f   : > { %v1038_v39 = vpop.f32.mrf.mxu2  ;;  %v527_v43 = vpop.f32.mrf.mxu0 }
 0x130   : > { %v2391_v42 = vadd.f32 %v1038_v39, %v761_v55  ;;  %v1131_v46 = vpack.c.bf16 %v2389_v41, %v2389_v41  ;;  %v762_v51 = vpop.f32.mrf.mxu1 }
 0x131   : > { %v763_v8 = vadd.f32 %v762_v51, %v527_v43 }
 0x132   : > { %v1123_v52 = vpack.c.bf16 %v2391_v42, %v2391_v42  ;;  %1164 = vst.msk [vmem:[%s2209_s13 + $0x68] sm:$0xf] %vm1137_vm1, %v1131_v46 }
 0x134   : > { %1156 = vst.msk [vmem:[%s2209_s13 + $0x48] sm:$0xf] %vm1137_vm1, %v1123_v52 }
 0x135   : > { %v1060_v53 = vpop.f32.mrf.mxu3 }
 0x136   : > { %v2403_v60 = vadd.f32 %v1060_v53, %v783_v2 }
 0x137   : > { %v1040_v56 = vpop.f32.mrf.mxu2  ;;  %v530_v0 = vpop.f32.mrf.mxu0 }
 0x138   : > { %v2405_v62 = vadd.f32 %v1040_v56, %v763_v8  ;;  %v1132_v3 = vpack.c.bf16 %v2403_v60, %v2403_v60  ;;  %v765_v5 = vpop.f32.mrf.mxu1 }
 0x139   : > { %v766_v9 = vadd.f32 %v765_v5, %v530_v0 }
 0x13a   : > { %v1124_v6 = vpack.c.bf16 %v2405_v62, %v2405_v62  ;;  %1165 = vst.msk [vmem:[%s2209_s13 + $0x6c] sm:$0xf] %vm1137_vm1, %v1132_v3 }
 0x13c   : > { %1157 = vst.msk [vmem:[%s2209_s13 + $0x4c] sm:$0xf] %vm1137_vm1, %v1124_v6 }
 0x13d   : > { %v1063_v7 = vpop.f32.mrf.mxu3 }
 0x13e   : > { %v2417_v15 = vadd.f32 %v1063_v7, %v786_v17 }
 0x13f   : > { %v1043_v10 = vpop.f32.mrf.mxu2  ;;  %v532_v18 = vpop.f32.mrf.mxu0 }
 0x140   : > { %v2419_v16 = vadd.f32 %v1043_v10, %v766_v9  ;;  %v1133_v21 = vpack.c.bf16 %v2417_v15, %v2417_v15  ;;  %v767_v48 = vpop.f32.mrf.mxu1 }
 0x141   : > { %v768_v26 = vadd.f32 %v767_v48, %v532_v18 }
 0x142   : > { %v1125_v54 = vpack.c.bf16 %v2419_v16, %v2419_v16  ;;  %1166 = vst.msk [vmem:[%s2209_s13 + $0x70] sm:$0xf] %vm1137_vm1, %v1133_v21 }
 0x144   : > { %1158 = vst.msk [vmem:[%s2209_s13 + $0x50] sm:$0xf] %vm1137_vm1, %v1125_v54 }
 0x145   : > { %v1065_v23 = vpop.f32.mrf.mxu3 }
 0x146   : > { %v2431_v30 = vadd.f32 %v1065_v23, %v788_v20 }
 0x147   : > { %v1045_v24 = vpop.f32.mrf.mxu2  ;;  %v535_v34 = vpop.f32.mrf.mxu0 }
 0x148   : > { %v2433_v32 = vadd.f32 %v1045_v24, %v768_v26  ;;  %v1134_v33 = vpack.c.bf16 %v2431_v30, %v2431_v30  ;;  %v770_v55 = vpop.f32.mrf.mxu1 }
 0x149   : > { %v771_v27 = vadd.f32 %v770_v55, %v535_v34 }
 0x14a   : > { %v1126_v63 = vpack.c.bf16 %v2433_v32, %v2433_v32  ;;  %1167 = vst.msk [vmem:[%s2209_s13 + $0x74] sm:$0xf] %vm1137_vm1, %v1134_v33 }
 0x14c   : > { %1159 = vst.msk [vmem:[%s2209_s13 + $0x54] sm:$0xf] %vm1137_vm1, %v1126_v63 }
 0x14d   : > { %v1068_v36 = vpop.f32.mrf.mxu3 }
 0x14e   : > { %v2445_v43 = vadd.f32 %v1068_v36, %v791_v35 }
 0x14f   : > { %v1048_v39 = vpop.f32.mrf.mxu2  ;;  %v537_v2 = vpop.f32.mrf.mxu0 }
 0x150   : > { %v2447_v46 = vadd.f32 %v1048_v39, %v771_v27  ;;  %v1135_v51 = vpack.c.bf16 %v2445_v43, %v2445_v43  ;;  %v772_v8 = vpop.f32.mrf.mxu1 }
 0x151   : > { %v773_v44 = vadd.f32 %v772_v8, %v537_v2 }
 0x152   : > { %v1127_v52 = vpack.c.bf16 %v2447_v46, %v2447_v46  ;;  %1168 = vst.msk [vmem:[%s2209_s13 + $0x78] sm:$0xf] %vm1137_vm1, %v1135_v51 }
 0x154   : > { %1160 = vst.msk [vmem:[%s2209_s13 + $0x58] sm:$0xf] %vm1137_vm1, %v1127_v52 }
 0x155   : > { %v1070_v53 = vpop.f32.mrf.mxu3 }
 0x156   : > { %v2459_v0 = vadd.f32 %v1070_v53, %v793_v38 }
 0x157   : > { %v1050_v56 = vpop.f32.mrf.mxu2 }
 0x158   : > { %v2461_v3 = vadd.f32 %v1050_v56, %v773_v44  ;;  %v1136_v5 = vpack.c.bf16 %v2459_v0, %v2459_v0  ;;  %1173 = sbr.rel (%p1867_p7) target bundleno = 352 (0x160), region = 32 }
 0x15a   : > { %v1128_v6 = vpack.c.bf16 %v2461_v3, %v2461_v3  ;;  %1169 = vst.msk [vmem:[%s2209_s13 + $0x7c] sm:$0xf] %vm1137_vm1, %v1136_v5 }
 0x15c   : > { %1161 = vst.msk [vmem:[%s2209_s13 + $0x5c] sm:$0xf] %vm1137_vm1, %v1128_v6 }
 0x15d   : > { %vm1174_vm2 = vcmask 253952   ;;  %v2022_v45 = vmov 0.0  }
 0x15e   : > { %1175 = vst.msk [vmem:[%s2106_s12] sm:$0x1] %vm1174_vm2, %v2022_v45 }
 0x15f   : > { %1176 = vst.msk [vmem:[%s2112_s22] sm:$0x1] %vm1174_vm2, %v2022_v45 }
 0x160 PF: > { %vm1178_vm3 = vcmask 261120   ;;  %v1252_v23 = vmul.f32 %v2204_v50, %v2204_v50  ;;  %v1253_v24 = vmul.f32 %v2219_v59, %v2219_v59  ;;  %v1254_v34 = vmul.f32 %v2233_v4, %v2233_v4 }
 0x161   : > { %v1179_v58 = vsel %vm1178_vm3, %v2204_v50, 0.0  ;;  %v1180_v9 = vsel %vm1178_vm3, %v2219_v59, 0.0  ;;  %v1182_v17 = vsel %vm1178_vm3, %v2233_v4, 0.0  ;;  %v1184_v10 = vsel %vm1178_vm3, %v2243_v13, 0.0 }
 0x162   : > { %v1181_v7 = vadd.f32 %v1180_v9, %v1179_v58  ;;  %v1186_v21 = vsel %vm1178_vm3, %v2257_v22, 0.0  ;;  %v1188_v54 = vsel %vm1178_vm3, %v2267_v31, 0.0  ;;  %v1190_v26 = vsel %vm1178_vm3, %v2281_v40, 0.0 }
 0x163   : > { %v1192_v55 = vsel %vm1178_vm3, %v2289_v47, 0.0  ;;  %v1255_v63 = vmul.f32 %v2243_v13, %v2243_v13  ;;  %v1194_v35 = vsel %vm1178_vm3, %v2297_v57, 0.0  ;;  %v1256_v50 = vmul.f32 %v2257_v22, %v2257_v22 }
 0x164   : > { %v1183_v18 = vadd.f32 %v1182_v17, %v1181_v7  ;;  %v1284_v36 = vsel %vm1178_vm3, %v1252_v23, 0.0  ;;  %v1285_v59 = vsel %vm1178_vm3, %v1253_v24, 0.0  ;;  %v1287_v4 = vsel %vm1178_vm3, %v1254_v34, 0.0 }
 0x165   : > { %v1286_v51 = vadd.f32 %v1285_v59, %v1284_v36  ;;  %v1196_v52 = vsel %vm1178_vm3, %v2305_v1, 0.0  ;;  %v1257_v13 = vmul.f32 %v2267_v31, %v2267_v31  ;;  %v1289_v2 = vsel %vm1178_vm3, %v1255_v63, 0.0 }
 0x166   : > { %v1185_v48 = vadd.f32 %v1184_v10, %v1183_v18  ;;  %v1198_v22 = vsel %vm1178_vm3, %v2313_v11, 0.0  ;;  %v1258_v44 = vmul.f32 %v2281_v40, %v2281_v40  ;;  %v1291_v53 = vsel %vm1178_vm3, %v1256_v50, 0.0 }
 0x167   : > { %v1288_v38 = vadd.f32 %v1287_v4, %v1286_v51  ;;  %v1200_v6 = vsel %vm1178_vm3, %v2321_v19, 0.0  ;;  %v1259_v31 = vmul.f32 %v2289_v47, %v2289_v47  ;;  %v1293_v45 = vsel %vm1178_vm3, %v1257_v13, 0.0 }
 0x168   : > { %v1187_v20 = vadd.f32 %v1186_v21, %v1185_v48  ;;  %v1202_v17 = vsel %vm1178_vm3, %v2329_v29, 0.0  ;;  %v1260_v40 = vmul.f32 %v2297_v57, %v2297_v57  ;;  %v1295_v7 = vsel %vm1178_vm3, %v1258_v44, 0.0 }
 0x169   : > { %v1290_v5 = vadd.f32 %v1289_v2, %v1288_v38  ;;  %v1204_v21 = vsel %vm1178_vm3, %v2337_v37, 0.0  ;;  %v1261_v47 = vmul.f32 %v2305_v1, %v2305_v1  ;;  %v1297_v48 = vsel %vm1178_vm3, %v1259_v31, 0.0 }
 0x16a   : > { %v1189_v33 = vadd.f32 %v1188_v54, %v1187_v20  ;;  %v1262_v57 = vmul.f32 %v2313_v11, %v2313_v11  ;;  %v1299_v23 = vsel %vm1178_vm3, %v1260_v40, 0.0  ;;  %v1208_v34 = vsel %vm1178_vm3, %v2353_v61, 0.0 }
 0x16b   : > { %v1292_v9 = vadd.f32 %v1291_v53, %v1290_v5  ;;  %v1263_v1 = vmul.f32 %v2321_v19, %v2321_v19  ;;  %v1264_v11 = vmul.f32 %v2329_v29, %v2329_v29  ;;  %v1265_v19 = vmul.f32 %v2337_v37, %v2337_v37 }
 0x16c   : > { %v1191_v27 = vadd.f32 %v1190_v26, %v1189_v33  ;;  %v1206_v26 = vsel %vm1178_vm3, %v2345_v49, 0.0  ;;  %v1303_v50 = vsel %vm1178_vm3, %v1262_v57, 0.0  ;;  %v1214_v13 = vsel %vm1178_vm3, %v2391_v42, 0.0 }
 0x16d   : > { %v1294_v18 = vadd.f32 %v1293_v45, %v1292_v9  ;;  %v1305_v51 = vsel %vm1178_vm3, %v1263_v1, 0.0  ;;  %v1266_v29 = vmul.f32 %v2345_v49, %v2345_v49  ;;  %v1307_v2 = vsel %vm1178_vm3, %v1264_v11, 0.0 }
 0x16e   : > { %v1193_v39 = vadd.f32 %v1192_v55, %v1191_v27  ;;  %v1301_v55 = vsel %vm1178_vm3, %v1261_v47, 0.0  ;;  %v1267_v37 = vmul.f32 %v2353_v61, %v2353_v61  ;;  %v1309_v44 = vsel %vm1178_vm3, %v1265_v19, 0.0 }
 0x16f   : > { %v1296_v20 = vadd.f32 %v1295_v7, %v1294_v18  ;;  %v1218_v5 = vsel %vm1178_vm3, %v2419_v16, 0.0  ;;  %v1268_v49 = vmul.f32 %v2363_v14, %v2363_v14  ;;  %v1269_v61 = vmul.f32 %v2377_v28, %v2377_v28 }
 0x170   : > { %v1195_v8 = vadd.f32 %v1194_v35, %v1193_v39  ;;  %v1210_v35 = vsel %vm1178_vm3, %v2363_v14, 0.0  ;;  %v1212_v39 = vsel %vm1178_vm3, %v2377_v28, 0.0  ;;  %v1313_v9 = vsel %vm1178_vm3, %v1267_v37, 0.0 }
 0x171   : > { %v1298_v33 = vadd.f32 %v1297_v48, %v1296_v20  ;;  %v1222_v7 = vsel %vm1178_vm3, %v2447_v46, 0.0  ;;  %v1270_v14 = vmul.f32 %v2391_v42, %v2391_v42  ;;  %v1224_v47 = vsel %vm1178_vm3, %v2461_v3, 0.0 }
 0x172   : > { %v1197_v56 = vadd.f32 %v1196_v52, %v1195_v8  ;;  %v1271_v28 = vmul.f32 %v2405_v62, %v2405_v62  ;;  %v1317_v48 = vsel %vm1178_vm3, %v1269_v61, 0.0  ;;  %v1272_v42 = vmul.f32 %v2419_v16, %v2419_v16 }
 0x173   : > { %v1300_v27 = vadd.f32 %v1299_v23, %v1298_v33  ;;  %v1319_v57 = vsel %vm1178_vm3, %v1270_v14, 0.0  ;;  %v1228_v33 = vsel %vm1178_vm3, %v2375_v25, 0.0  ;;  %v1274_v16 = vmul.f32 %v2447_v46, %v2447_v46 }
 0x174   : > { %v1199_v58 = vadd.f32 %v1198_v22, %v1197_v56  ;;  %v1216_v22 = vsel %vm1178_vm3, %v2405_v62, 0.0  ;;  %v1273_v62 = vmul.f32 %v2433_v32, %v2433_v32  ;;  %v1234_v19 = vsel %vm1178_vm3, %v2417_v15, 0.0 }
 0x175   : > { %v1302_v59 = vadd.f32 %v1301_v55, %v1300_v27  ;;  %v1323_v27 = vsel %vm1178_vm3, %v1272_v42, 0.0  ;;  %v1276_v46 = vmul.f32 %v2361_v12, %v2361_v12  ;;  %vm1249_vm4 = vcmask 253952  }
 0x176   : > { %v1201_v10 = vadd.f32 %v1200_v6, %v1199_v58  ;;  %v1311_v6 = vsel %vm1178_vm3, %v1266_v29, 0.0  ;;  %v1220_v58 = vsel %vm1178_vm3, %v2433_v32, 0.0  ;;  %v1275_v32 = vmul.f32 %v2461_v3, %v2461_v3 }
 0x177   : > { %v1304_v52 = vadd.f32 %v1303_v50, %v1302_v59  ;;  %v1232_v50 = vsel %vm1178_vm3, %v2403_v60, 0.0  ;;  %v1277_v3 = vmul.f32 %v2375_v25, %v2375_v25  ;;  %v1279_v25 = vmul.f32 %v2403_v60, %v2403_v60 }
 0x178   : > { %v1203_v54 = vadd.f32 %v1202_v17, %v1201_v10  ;;  %v1315_v10 = vsel %vm1178_vm3, %v1268_v49, 0.0  ;;  %v1329_v29 = vsel %vm1178_vm3, %v1275_v32, 0.0  ;;  %v1282_v60 = vmul.f32 %v2445_v43, %v2445_v43 }
 0x179   : > { %v1306_v38 = vadd.f32 %v1305_v51, %v1304_v52  ;;  %v1327_v51 = vsel %vm1178_vm3, %v1274_v16, 0.0  ;;  %v1337_v61 = vsel %vm1178_vm3, %v1279_v25, 0.0 }
 0x17a   : > { %v1205_v24 = vadd.f32 %v1204_v21, %v1203_v54 }
 0x17b   : > { %v1308_v56 = vadd.f32 %v1307_v2, %v1306_v38  ;;  %v1238_v38 = vsel %vm1178_vm3, %v2445_v43, 0.0 }
 0x17c   : > { %v1207_v63 = vadd.f32 %v1206_v26, %v1205_v24  ;;  %v1226_v26 = vsel %vm1178_vm3, %v2361_v12, 0.0  ;;  %v1278_v12 = vmul.f32 %v2389_v41, %v2389_v41 }
 0x17d   : > { %v1310_v45 = vadd.f32 %v1309_v44, %v1308_v56  ;;  %v1333_v56 = vsel %vm1178_vm3, %v1277_v3, 0.0 }
 0x17e   : > { %v1209_v36 = vadd.f32 %v1208_v34, %v1207_v63  ;;  %v1321_v34 = vsel %vm1178_vm3, %v1271_v28, 0.0  ;;  %v1230_v63 = vsel %vm1178_vm3, %v2389_v41, 0.0 }
 0x17f   : > { %v1312_v40 = vadd.f32 %v1311_v6, %v1310_v45  ;;  %v1280_v6 = vmul.f32 %v2417_v15, %v2417_v15  ;;  %v1283_v15 = vmul.f32 %v2459_v0, %v2459_v0 }
 0x180   : > { %v1211_v4 = vadd.f32 %v1210_v35, %v1209_v36  ;;  %v1325_v36 = vsel %vm1178_vm3, %v1273_v62, 0.0 }
 0x181   : > { %v1314_v21 = vadd.f32 %v1313_v9, %v1312_v40  ;;  %v1339_v40 = vsel %vm1178_vm3, %v1280_v6, 0.0 }
 0x182   : > { %v1213_v8 = vadd.f32 %v1212_v39, %v1211_v4 }
 0x183   : > { %v1316_v20 = vadd.f32 %v1315_v10, %v1314_v21  ;;  %v1343_v21 = vsel %vm1178_vm3, %v1282_v60, 0.0 }
 0x184   : > { %v1215_v53 = vadd.f32 %v1214_v13, %v1213_v8  ;;  %v1236_v13 = vsel %vm1178_vm3, %v2431_v30, 0.0 }
 0x185   : > { %v1318_v24 = vadd.f32 %v1317_v48, %v1316_v20  ;;  %v1345_v48 = vsel %vm1178_vm3, %v1283_v15, 0.0  ;;  %v1177_v20 = vld [vmem:[%s2106_s12] sm:$0x1] }
 0x186   : > { %v1217_v31 = vadd.f32 %v1216_v22, %v1215_v53  ;;  %v1331_v22 = vsel %vm1178_vm3, %v1276_v46, 0.0  ;;  %v1240_v53 = vsel %vm1178_vm3, %v2459_v0, 0.0 }
 0x187   : > { %v1320_v55 = vadd.f32 %v1319_v57, %v1318_v24 }
 0x188   : > { %v1219_v17 = vadd.f32 %v1218_v5, %v1217_v31  ;;  %v1335_v31 = vsel %vm1178_vm3, %v1278_v12, 0.0 }
 0x189   : > { %v1322_v11 = vadd.f32 %v1321_v34, %v1320_v55  ;;  %v1251_v34 = vld [vmem:[%s2112_s22] sm:$0x1] }
 0x18a   : > { %v1221_v18 = vadd.f32 %v1220_v58, %v1219_v17  ;;  %v1281_v58 = vmul.f32 %v2431_v30, %v2431_v30 }
 0x18b   : > { %v1324_v39 = vadd.f32 %v1323_v27, %v1322_v11 }
 0x18c   : > { %v1223_v54 = vadd.f32 %v1222_v7, %v1221_v18  ;;  %v1341_v10 = vsel %vm1178_vm3, %v1281_v58, 0.0 }
 0x18d   : > { %v1326_v52 = vadd.f32 %v1325_v36, %v1324_v39 }
 0x18e   : > { %v1225_v23 = vadd.f32 %v1224_v47, %v1223_v54 }
 0x18f   : > { %v1328_v8 = vadd.f32 %v1327_v51, %v1326_v52 }
 0x190   : > { %v1227_v1 = vadd.f32 %v1226_v26, %v1225_v23 }
 0x191   : > { %v1330_v44 = vadd.f32 %v1329_v29, %v1328_v8 }
 0x192   : > { %v1229_v35 = vadd.f32 %v1228_v33, %v1227_v1 }
 0x193   : > { %v1332_v49 = vadd.f32 %v1331_v22, %v1330_v44 }
 0x194   : > { %v1231_v59 = vadd.f32 %v1230_v63, %v1229_v35 }
 0x195   : > { %v1334_v45 = vadd.f32 %v1333_v56, %v1332_v49 }
 0x196   : > { %v1233_v4 = vadd.f32 %v1232_v50, %v1231_v59 }
 0x197   : > { %v1336_v17 = vadd.f32 %v1335_v31, %v1334_v45 }
 0x198   : > { %v1235_v2 = vadd.f32 %v1234_v19, %v1233_v4 }
 0x199   : > { %v1338_v14 = vadd.f32 %v1337_v61, %v1336_v17 }
 0x19a   : > { %v1237_v37 = vadd.f32 %v1236_v13, %v1235_v2 }
 0x19b   : > { %v1340_v30 = vadd.f32 %v1339_v40, %v1338_v14 }
 0x19c   : > { %v1239_v5 = vadd.f32 %v1238_v38, %v1237_v37 }
 0x19d   : > { %v1342_v28 = vadd.f32 %v1341_v10, %v1340_v30 }
 0x19e   : > { %v1241_v41 = vadd.f32 %v1240_v53, %v1239_v5 }
 0x19f   : > { %v1344_v54 = vadd.f32 %v1343_v21, %v1342_v28 }
 0x1a0   : > { %v1242_v9 = vrot.slane %v1241_v41, 4 }
 0x1a1   : > { %v1346_v42 = vadd.f32 %v1345_v48, %v1344_v54 }
 0x1a2   : > { %v1243_v7 = vadd.f32 %v1242_v9, %v1241_v41 }
 0x1a3   : > { %v1347_v57 = vrot.slane %v1346_v42, 4 }
 0x1a4   : > { %v1244_v18 = vrot.slane %v1243_v7, 2 }
 0x1a5   : > { %v1348_v23 = vadd.f32 %v1347_v57, %v1346_v42 }
 0x1a6   : > { %v1245_v47 = vadd.f32 %v1244_v18, %v1243_v7 }
 0x1a7   : > { %v1349_v24 = vrot.slane %v1348_v23, 2 }
 0x1a8   : > { %v1246_v43 = vrot.slane %v1245_v47, 1 }
 0x1a9   : > { %v1350_v33 = vadd.f32 %v1349_v24, %v1348_v23 }
 0x1aa   : > { %v1247_v26 = vadd.f32 %v1246_v43, %v1245_v47 }
 0x1ab   : > { %v1351_v62 = vrot.slane %v1350_v33, 1 }
 0x1ac   : > { %v1248_v0 = vadd.f32 %v1247_v26, %v1177_v20 }
 0x1ad   : > { %v1352_v1 = vadd.f32 %v1351_v62, %v1350_v33 }
 0x1ae   : > { %1250 = vst.msk [vmem:[%s2106_s12] sm:$0x1] %vm1249_vm4, %v1248_v0 }
 0x1af   : > { %v1353_v55 = vadd.f32 %v1352_v1, %v1251_v34 }
 0x1b1   : > { %1354 = vst.msk [vmem:[%s2112_s22] sm:$0x1] %vm1249_vm4, %v1353_v55 }
 0x1b2 PF: > { %s15_s19 = sadd.s32 1, %s2020_s19   ;;  %s2658_s15 = smov %s2012_s17 }
 0x1b3   : > { %p12_p8 = scmp.ge.s32.totalorder %s15_s19, 10   ;;  %s2659_s16 = smov %s2016_s18 }
 0x1b4   : > { %s2660_s17 = smov %s2663_s20  ;;  %s2661_s18 = smov %s2667_s21 }
 0x1b5   :  { %14 = sbr.rel (!%p12_p8) target bundleno = 3 (0x3), region = 91 }

// kernel: _lambda_.10
= control target key start
LH: loop header
LB: loop body
LE: loop exit
PB: predicated region body
PF: predicated region fallthrough
CT: control target
= control target key end

     0   :  { %s2680_s21 = smov 0   ;;  %s2682_s22 = smov 0   ;;  %s3311_s0 = inlined_call_operand.vmem [shape: bf16[2,1,34,32,96], index: 0, kind: input, shape index: {}]   ;;  %s3312_s1 = inlined_call_operand.vmem [shape: bf16[3,96,32], index: 1, kind: input, shape index: {}]   ;;  %s3313_s2 = inlined_call_operand.vmem [shape: bf16[2,1024,16], index: 2, kind: input, shape index: {}]   ;;  %s3314_s3 = inlined_call_operand.vmem [shape: bf16[16,32], index: 3, kind: input, shape index: {}]   ;;  %s3315_s4 = inlined_call_operand.vmem [shape: bf16[2,1024,32], index: 4, kind: output, shape index: {0}]   ;;  %s3316_s5 = inlined_call_operand.vmem [shape: f32[2,1,32], index: 5, kind: output, shape index: {1}]   ;;  %s3317_s6 = inlined_call_operand.vmem [shape: f32[2,1,32], index: 6, kind: output, shape index: {2}]  }
   0x1   :  { %s2684_s23 = smov 0   ;;  %s2686_s24 = smov 0  }
   0x2   :  { %s2688_s25 = smov 0  }
   0x3 LB: > { %s26_s26 = sadd.s32 1, %s2634_s23  ;;  %s29_s27 = sadd.s32 1, %s2638_s24  ;;  %s2642_s25 = sphi %s2688_s25, %s17_s25   ;;  %s2638_s24 = sphi %s2686_s24, %s3321_s24   ;;  %s2634_s23 = sphi %s2684_s23, %s3320_s23   ;;  %s2630_s22 = sphi %s2682_s22, %s3319_s22   ;;  %s2626_s21 = sphi %s2680_s21, %s3318_s21  }
   0x4   : > { %p27_p0 = scmp.ge.s32.totalorder %s26_s26, 4  ;;  %p1973_p1 = scmp.ge.s32.totalorder %s2642_s25, 1 }
   0x5   : > { %p248_p2 = scmp.lt.s32.totalorder %s2642_s25, 9 }
   0x6   : > { %s3323_s26 = smov (%p27_p0, %s26_s26), 0  ;;  %s3325_s27 = smov (!%p27_p0, %s29_s27), %s2638_s24 }
   0x7   : > { %p249_p3 = pnand %p1973_p1, %p248_p2  ;;  %p31_p4 = scmp.ge.s32.totalorder %s3325_s27, 2 }
   0x8   : > { %p297_p5 = scmp.lt.s32.totalorder (!%p249_p3), %s2630_s22, 1  ;;  %s1975_s10 = sshll.u32 (!%p249_p3), %s2626_s21, 5 }
   0x9   : > { %s3327_s27 = smov (%p31_p4, %s3325_s27), 0  ;;  %252 = sbr.rel (%p249_p3) target bundleno = 511 (0x1ff), region = 36 }
   0xa   : > { %p305_p6 = scmp.lt.s32.totalorder (!%p249_p3), %s1975_s10, 127  ;;  %s2476_s8 = sshll.u32 (!%p249_p3), %s2626_s21, 7 }
   0xb   : > { %p2472_p7 = scmp.ne.s32.totalorder (!%p249_p3), %s2626_s21, 0 }
   0xe   : > { %v2521_v0 = vld [vmem:[%s3312_s1 + $0x58] sm:$0xff]  ;;  %v2498_v1 = vld [vmem:[%s3312_s1 + $0x28] sm:$0xff]  ;;  %v2520_v3 = vld [vmem:[%s3312_s1 + $0x50] sm:$0xff]  ;;  %s3329_s22 = smov (!%p297_p5, %s2630_s22), 1  ;;  %s3331_s10 = smov (!%p305_p6, %s1975_s10), 127  ;;  %vm1387_vm0 = vcmask 130048  }
   0xf   : > { %v2544_v2 = vld [vmem:[%s3312_s1 + $0x88] sm:$0xff]  ;;  %593 = vmatpush.bf16.msra.mxu0 %v2521_v0  ;;  %846 = vmatpush.bf16.msra.mxu1 %v2498_v1  ;;  %v2497_v4 = vld [vmem:[%s3312_s1 + $0x20] sm:$0xff]  ;;  %s1976_s19 = sshll.u32 %s3329_s22, 7  ;;  %s2743_s30 = scalar_lea.vmem %s3316_s5, %s3329_s22  ;;  %v2496_v8 = vld [vmem:[%s3312_s1 + $0x18] sm:$0xff]  ;;  %vm542_vm1 = vcmask 785408   ;;  %vm1589_vm2 = vcmask 257024  }
  0x10   : > { %1148 = vmatpush.bf16.msra.mxu2 %v2544_v2  ;;  %v2543_v5 = vld [vmem:[%s3312_s1 + $0x80] sm:$0xff]  ;;  %s2737_s20 = sadd.s32 %s1976_s19, %s3331_s10  ;;  %v2519_v7 = vld [vmem:[%s3312_s1 + $0x48] sm:$0xff]  ;;  %v2542_v9 = vld [vmem:[%s3312_s1 + $0x78] sm:$0xff]  ;;  %s2766_s19 = scalar_lea.vmem %s3317_s6, %s3329_s22 }
  0x11   : > { %v2561_v6 = vld [vmem:[%s3314_s3] sm:$0xff]  ;;  %s1977_s10 = sshll.u32 %s2737_s20, 2  ;;  %v2495_v12 = vld [vmem:[%s3312_s1 + $0x10] sm:$0xff]  ;;  %s2562_s12 = smul.u32 544, %s3329_s22  ;;  %v2517_v14 = vld [vmem:[%s3312_s1 + $0x38] sm:$0xff] }
  0x12   : > { %1443 = vmatpush.bf16.msra.mxu3 %v2561_v6  ;;  %s2760_s16 = scalar_lea.vmem %s3313_s2, %s1977_s10  ;;  %v2518_v11 = vld [vmem:[%s3312_s1 + $0x40] sm:$0xff]  ;;  %v2541_v13 = vld [vmem:[%s3312_s1 + $0x70] sm:$0xff]  ;;  %v2494_v15 = vld [vmem:[%s3312_s1 + $0x8] sm:$0xff]  ;;  %s2883_s29 = scalar_lea.vmem %s3315_s4, %s1977_s10 }
  0x13   : > { %594 = vmatpush.bf16.msra.mxu0 %v2520_v3  ;;  %847 = vmatpush.bf16.msra.mxu1 %v2497_v4  ;;  %v2545_v10 = vld [vmem:[%s2760_s16] sm:$0xff]  ;;  %v2540_v16 = vld [vmem:[%s3312_s1 + $0x68] sm:$0xff]  ;;  %s301_s22 = scalar_lea.vmem %s3311_s0, %s2562_s12  ;;  %v2516_v17 = vld [vmem:[%s3312_s1 + $0x30] sm:$0xff] }
  0x14   : > { %1149 = vmatpush.bf16.msra.mxu2 %v2543_v5  ;;  %s2793_s9 = scalar_lea.vmem %s301_s22, %s2476_s8  ;;  %v2493_v18 = vld [vmem:[%s3312_s1] sm:$0xff]  ;;  %v2546_v23 = vld [vmem:[%s2760_s16 + $0x8] sm:$0xff]  ;;  %v2547_v27 = vld [vmem:[%s2760_s16 + $0x10] sm:$0xff] }
  0x15   : > { %2456 = vmatmul.msk.bf16.vlgmr.msra.gmra.mxu3 %vm1387_vm0, %v2545_v10  ;;  %v2539_v19 = vld [vmem:[%s3312_s1 + $0x60] sm:$0xff]  ;;  %v2500_v20 = vld [vmem:[%s2793_s9 + $0x10] sm:$0xff]  ;;  %v2501_v24 = vld [vmem:[%s2793_s9 + $0x18] sm:$0xff] }
  0x16   : > { %v2477_v21 = vld [vmem:[%s2793_s9] sm:$0xff]  ;;  %v2478_v25 = vld [vmem:[%s2793_s9 + $0x8] sm:$0xff]  ;;  %v2479_v29 = vld [vmem:[%s2793_s9 + $0x10] sm:$0xff] }
  0x17   : > { %595 = vmatpush.bf16.msra.mxu0 %v2519_v7  ;;  %848 = vmatpush.bf16.msra.mxu1 %v2496_v8  ;;  %v2523_v22 = vld [vmem:[%s2793_s9 + $0x20] sm:$0xff]  ;;  %v2524_v26 = vld [vmem:[%s2793_s9 + $0x28] sm:$0xff]  ;;  %v2525_v30 = vld [vmem:[%s2793_s9 + $0x30] sm:$0xff] }
  0x18   : > { %1150 = vmatpush.bf16.msra.mxu2 %v2542_v9  ;;  %v2502_v28 = vld [vmem:[%s2793_s9 + $0x20] sm:$0xff]  ;;  %v2548_v31 = vld [vmem:[%s2760_s16 + $0x18] sm:$0xff]  ;;  %v2503_v32 = vld [vmem:[%s2793_s9 + $0x28] sm:$0xff] }
  0x19   : > { %v2480_v33 = vld [vmem:[%s2793_s9 + $0x18] sm:$0xff]  ;;  %v2549_v35 = vld [vmem:[%s2760_s16 + $0x20] sm:$0xff]  ;;  %v2504_v36 = vld [vmem:[%s2793_s9 + $0x30] sm:$0xff] }
  0x1a   : > { %v2526_v34 = vld [vmem:[%s2793_s9 + $0x38] sm:$0xff]  ;;  %v2481_v37 = vld [vmem:[%s2793_s9 + $0x20] sm:$0xff]  ;;  %v2550_v39 = vld [vmem:[%s2760_s16 + $0x28] sm:$0xff] }
  0x1b   : > { %596 = vmatpush.bf16.msra.mxu0 %v2518_v11  ;;  %849 = vmatpush.bf16.msra.mxu1 %v2495_v12  ;;  %v2527_v38 = vld [vmem:[%s2793_s9 + $0x40] sm:$0xff]  ;;  %v2505_v40 = vld [vmem:[%s2793_s9 + $0x38] sm:$0xff]  ;;  %v2482_v41 = vld [vmem:[%s2793_s9 + $0x28] sm:$0xff] }
  0x1c   : > { %1151 = vmatpush.bf16.msra.mxu2 %v2541_v13  ;;  %v2528_v42 = vld [vmem:[%s2793_s9 + $0x48] sm:$0xff]  ;;  %v2551_v43 = vld [vmem:[%s2760_s16 + $0x30] sm:$0xff]  ;;  %v2506_v44 = vld [vmem:[%s2793_s9 + $0x40] sm:$0xff] }
  0x1d   : > { %v2483_v45 = vld [vmem:[%s2793_s9 + $0x30] sm:$0xff]  ;;  %v2552_v47 = vld [vmem:[%s2760_s16 + $0x38] sm:$0xff]  ;;  %v2507_v48 = vld [vmem:[%s2793_s9 + $0x48] sm:$0xff] }
  0x1e   : > { %v2529_v46 = vld [vmem:[%s2793_s9 + $0x50] sm:$0xff]  ;;  %v2484_v49 = vld [vmem:[%s2793_s9 + $0x38] sm:$0xff]  ;;  %v2553_v51 = vld [vmem:[%s2760_s16 + $0x40] sm:$0xff] }
  0x1f   : > { %597 = vmatpush.bf16.msra.mxu0 %v2517_v14  ;;  %850 = vmatpush.bf16.msra.mxu1 %v2494_v15  ;;  %v2530_v50 = vld [vmem:[%s2793_s9 + $0x58] sm:$0xff]  ;;  %v2508_v53 = vld [vmem:[%s2793_s9 + $0x50] sm:$0xff]  ;;  %v2485_v54 = vld [vmem:[%s2793_s9 + $0x40] sm:$0xff] }
  0x20   : > { %1152 = vmatpush.bf16.msra.mxu2 %v2540_v16  ;;  %v2531_v57 = vld [vmem:[%s2793_s9 + $0x60] sm:$0xff]  ;;  %v2554_v59 = vld [vmem:[%s2760_s16 + $0x48] sm:$0xff]  ;;  %v2509_v6 = vld [vmem:[%s2793_s9 + $0x58] sm:$0xff] }
  0x21   : > { %v2486_v7 = vld [vmem:[%s2793_s9 + $0x48] sm:$0xff]  ;;  %v2555_v13 = vld [vmem:[%s2760_s16 + $0x50] sm:$0xff] }
  0x22   : > { %v2532_v11 = vld [vmem:[%s2793_s9 + $0x68] sm:$0xff] }
  0x23   : > { %598 = vmatpush.bf16.msra.mxu0 %v2516_v17  ;;  %851 = vmatpush.bf16.msra.mxu1 %v2493_v18 }
  0x24   : > { %1153 = vmatpush.bf16.msra.mxu2 %v2539_v19 }
  0x25   : > { %2457 = vmatmul.msk.bf16.gmra.mxu3 %vm1387_vm0, %v2546_v23 }
  0x26   : > { %2118 = vmatmul.msk.bf16.vlgmr.msra.gmra.mxu0 %vm542_vm1, %v2500_v20  ;;  %2222 = vmatmul.msk.bf16.vlgmr.msra.gmra.mxu1 %vm542_vm1, %v2477_v21 }
  0x27   : > { %2372 = vmatmul.msk.bf16.vlgmr.msra.gmra.mxu2 %vm542_vm1, %v2523_v22 }
  0x35   : > { %2458 = vmatmul.msk.bf16.gmra.mxu3 %vm1387_vm0, %v2547_v27  ;;  %v2487_v27 = vld [vmem:[%s2793_s9 + $0x50] sm:$0xff] }
  0x36   : > { %2119 = vmatmul.msk.bf16.gmra.mxu0 %vm542_vm1, %v2501_v24  ;;  %2223 = vmatmul.msk.bf16.gmra.mxu1 %vm542_vm1, %v2478_v25 }
  0x37   : > { %2373 = vmatmul.msk.bf16.gmra.mxu2 %vm542_vm1, %v2524_v26  ;;  %v2510_v26 = vld [vmem:[%s2793_s9 + $0x60] sm:$0xff] }
  0x45   : > { %2459 = vmatmul.msk.bf16.gmra.mxu3 %vm1387_vm0, %v2548_v31  ;;  %v2533_v31 = vld [vmem:[%s2793_s9 + $0x70] sm:$0xff] }
  0x46   : > { %2120 = vmatmul.msk.bf16.gmra.mxu0 %vm542_vm1, %v2502_v28  ;;  %2224 = vmatmul.msk.bf16.gmra.mxu1 %vm542_vm1, %v2479_v29 }
  0x47   : > { %2374 = vmatmul.msk.bf16.gmra.mxu2 %vm542_vm1, %v2525_v30 }
  0x55   : > { %2460 = vmatmul.msk.bf16.gmra.mxu3 %vm1387_vm0, %v2549_v35 }
  0x56   : > { %2121 = vmatmul.msk.bf16.gmra.mxu0 %vm542_vm1, %v2503_v32  ;;  %2225 = vmatmul.msk.bf16.gmra.mxu1 %vm542_vm1, %v2480_v33  ;;  %v2556_v33 = vld [vmem:[%s2760_s16 + $0x58] sm:$0xff] }
  0x57   : > { %2375 = vmatmul.msk.bf16.gmra.mxu2 %vm542_vm1, %v2526_v34 }
  0x65   : > { %2461 = vmatmul.msk.bf16.gmra.mxu3 %vm1387_vm0, %v2550_v39 }
  0x66   : > { %2122 = vmatmul.msk.bf16.gmra.mxu0 %vm542_vm1, %v2504_v36  ;;  %2226 = vmatmul.msk.bf16.gmra.mxu1 %vm542_vm1, %v2481_v37 }
  0x67   : > { %2376 = vmatmul.msk.bf16.gmra.mxu2 %vm542_vm1, %v2527_v38 }
  0x75   : > { %2462 = vmatmul.msk.bf16.gmra.mxu3 %vm1387_vm0, %v2551_v43 }
  0x76   : > { %2123 = vmatmul.msk.bf16.gmra.mxu0 %vm542_vm1, %v2505_v40  ;;  %2227 = vmatmul.msk.bf16.gmra.mxu1 %vm542_vm1, %v2482_v41 }
  0x77   : > { %2377 = vmatmul.msk.bf16.gmra.mxu2 %vm542_vm1, %v2528_v42 }
  0x85   : > { %2463 = vmatmul.msk.bf16.gmra.mxu3 %vm1387_vm0, %v2552_v47  ;;  %v2488_v47 = vld [vmem:[%s2793_s9 + $0x58] sm:$0xff] }
  0x86   : > { %2124 = vmatmul.msk.bf16.gmra.mxu0 %vm542_vm1, %v2506_v44  ;;  %2228 = vmatmul.msk.bf16.gmra.mxu1 %vm542_vm1, %v2483_v45 }
  0x87   : > { %2378 = vmatmul.msk.bf16.gmra.mxu2 %vm542_vm1, %v2529_v46  ;;  %v2511_v46 = vld [vmem:[%s2793_s9 + $0x68] sm:$0xff] }
  0x95   : > { %2464 = vmatmul.msk.bf16.gmra.mxu3 %vm1387_vm0, %v2553_v51  ;;  %v2534_v51 = vld [vmem:[%s2793_s9 + $0x78] sm:$0xff] }
  0x96   : > { %2125 = vmatmul.msk.bf16.gmra.mxu0 %vm542_vm1, %v2507_v48  ;;  %2229 = vmatmul.msk.bf16.gmra.mxu1 %vm542_vm1, %v2484_v49 }
  0x97   : > { %2379 = vmatmul.msk.bf16.gmra.mxu2 %vm542_vm1, %v2530_v50 }
  0x98   : > { %v1445_v52 = vpop.f32.mrf.mxu3 }
  0xa0   : > { %v1447_v58 = vpop.f32.mrf.mxu3 }
  0xa3   : > { %v600_v55 = vpop.f32.mrf.mxu0  ;;  %v853_v56 = vpop.f32.mrf.mxu1 }
  0xa4   : > { %v854_v60 = vadd.f32 %v853_v56, %v600_v55 }
  0xa5   : > { %2465 = vmatmul.msk.bf16.gmra.mxu3 %vm1387_vm0, %v2554_v59 }
  0xa6   : > { %2126 = vmatmul.msk.bf16.gmra.mxu0 %vm542_vm1, %v2508_v53  ;;  %2230 = vmatmul.msk.bf16.gmra.mxu1 %vm542_vm1, %v2485_v54  ;;  %v2557_v53 = vld [vmem:[%s2760_s16 + $0x60] sm:$0xff] }
  0xa7   : > { %2380 = vmatmul.msk.bf16.gmra.mxu2 %vm542_vm1, %v2531_v57 }
  0xa8   : > { %v1450_v1 = vpop.f32.mrf.mxu3 }
  0xaa   : > { %v1155_v61 = vpop.f32.mrf.mxu2 }
  0xab   : > { %v1235_v62 = vadd.f32 %v1155_v61, %v854_v60  ;;  %v602_v63 = vpop.f32.mrf.mxu0  ;;  %v855_v0 = vpop.f32.mrf.mxu1 }
  0xac   : > { %v856_v4 = vadd.f32 %v855_v0, %v602_v63 }
  0xad   : > { %v2876_v2 = vadd.f32 %v1445_v52, %v1235_v62 }
  0xaf   : > { %v1557_v3 = vpack.c.bf16 %v2876_v2, %v2876_v2 }
  0xb0   : > { %v1452_v12 = vpop.f32.mrf.mxu3 }
  0xb1   : > { %1590 = vst.msk [vmem:[%s2883_s29] sm:$0xf] %vm1589_vm2, %v1557_v3  ;;  %v2512_v3 = vld [vmem:[%s2793_s9 + $0x70] sm:$0xff] }
  0xb2   : > { %v1157_v5 = vpop.f32.mrf.mxu2 }
  0xb3   : > { %v1236_v8 = vadd.f32 %v1157_v5, %v856_v4  ;;  %v605_v9 = vpop.f32.mrf.mxu0  ;;  %v858_v10 = vpop.f32.mrf.mxu1  ;;  %v2489_v4 = vld [vmem:[%s2793_s9 + $0x60] sm:$0xff] }
  0xb4   : > { %v859_v16 = vadd.f32 %v858_v10, %v605_v9  ;;  %v2558_v10 = vld [vmem:[%s2760_s16 + $0x68] sm:$0xff] }
  0xb5   : > { %v2893_v14 = vadd.f32 %v1447_v58, %v1236_v8  ;;  %2466 = vmatmul.msk.bf16.gmra.mxu3 %vm1387_vm0, %v2555_v13  ;;  %v2535_v8 = vld [vmem:[%s2793_s9 + $0x80] sm:$0xff] }
  0xb6   : > { %2127 = vmatmul.msk.bf16.gmra.mxu0 %vm542_vm1, %v2509_v6  ;;  %2231 = vmatmul.msk.bf16.gmra.mxu1 %vm542_vm1, %v2486_v7 }
  0xb7   : > { %v1558_v15 = vpack.c.bf16 %v2893_v14, %v2893_v14  ;;  %2381 = vmatmul.msk.bf16.gmra.mxu2 %vm542_vm1, %v2532_v11 }
  0xb8   : > { %v1455_v21 = vpop.f32.mrf.mxu3 }
  0xb9   : > { %1591 = vst.msk [vmem:[%s2883_s29 + $0x4] sm:$0xf] %vm1589_vm2, %v1558_v15 }
  0xba   : > { %v1160_v17 = vpop.f32.mrf.mxu2 }
  0xbb   : > { %v1237_v18 = vadd.f32 %v1160_v17, %v859_v16  ;;  %v607_v19 = vpop.f32.mrf.mxu0  ;;  %v860_v20 = vpop.f32.mrf.mxu1 }
  0xbc   : > { %v861_v24 = vadd.f32 %v860_v20, %v607_v19 }
  0xbd   : > { %v2903_v22 = vadd.f32 %v1450_v1, %v1237_v18 }
  0xbf   : > { %v1559_v23 = vpack.c.bf16 %v2903_v22, %v2903_v22 }
  0xc0   : > { %v1457_v32 = vpop.f32.mrf.mxu3 }
  0xc1   : > { %1592 = vst.msk [vmem:[%s2883_s29 + $0x8] sm:$0xf] %vm1589_vm2, %v1559_v23 }
  0xc2   : > { %v1162_v25 = vpop.f32.mrf.mxu2 }
  0xc3   : > { %v1238_v28 = vadd.f32 %v1162_v25, %v861_v24  ;;  %v610_v29 = vpop.f32.mrf.mxu0  ;;  %v863_v30 = vpop.f32.mrf.mxu1  ;;  %v2513_v25 = vld [vmem:[%s2793_s9 + $0x78] sm:$0xff] }
  0xc4   : > { %v864_v36 = vadd.f32 %v863_v30, %v610_v29  ;;  %v2536_v30 = vld [vmem:[%s2793_s9 + $0x88] sm:$0xff] }
  0xc5   : > { %v2913_v34 = vadd.f32 %v1452_v12, %v1238_v28  ;;  %2467 = vmatmul.msk.bf16.gmra.mxu3 %vm1387_vm0, %v2556_v33 }
  0xc6   : > { %2128 = vmatmul.msk.bf16.gmra.mxu0 %vm542_vm1, %v2510_v26  ;;  %2232 = vmatmul.msk.bf16.gmra.mxu1 %vm542_vm1, %v2487_v27  ;;  %v2490_v26 = vld [vmem:[%s2793_s9 + $0x68] sm:$0xff] }
  0xc7   : > { %v1560_v35 = vpack.c.bf16 %v2913_v34, %v2913_v34  ;;  %2382 = vmatmul.msk.bf16.gmra.mxu2 %vm542_vm1, %v2533_v31 }
  0xc8   : > { %v1460_v41 = vpop.f32.mrf.mxu3 }
  0xc9   : > { %1593 = vst.msk [vmem:[%s2883_s29 + $0xc] sm:$0xf] %vm1589_vm2, %v1560_v35 }
  0xca   : > { %v1165_v37 = vpop.f32.mrf.mxu2 }
  0xcb   : > { %v1239_v38 = vadd.f32 %v1165_v37, %v864_v36  ;;  %v612_v39 = vpop.f32.mrf.mxu0  ;;  %v865_v40 = vpop.f32.mrf.mxu1 }
  0xcc   : > { %v866_v44 = vadd.f32 %v865_v40, %v612_v39 }
  0xcd   : > { %v2923_v42 = vadd.f32 %v1455_v21, %v1239_v38 }
  0xcf   : > { %v1561_v43 = vpack.c.bf16 %v2923_v42, %v2923_v42 }
  0xd0   : > { %v1462_v52 = vpop.f32.mrf.mxu3 }
  0xd1   : > { %1594 = vst.msk [vmem:[%s2883_s29 + $0x10] sm:$0xf] %vm1589_vm2, %v1561_v43 }
  0xd2   : > { %v1167_v45 = vpop.f32.mrf.mxu2 }
  0xd3   : > { %v1240_v48 = vadd.f32 %v1167_v45, %v866_v44  ;;  %v615_v49 = vpop.f32.mrf.mxu0  ;;  %v868_v50 = vpop.f32.mrf.mxu1 }
  0xd4   : > { %v869_v56 = vadd.f32 %v868_v50, %v615_v49 }
  0xd5   : > { %v2933_v54 = vadd.f32 %v1457_v32, %v1240_v48  ;;  %2468 = vmatmul.msk.bf16.gmra.mxu3 %vm1387_vm0, %v2557_v53  ;;  %v2559_v32 = vld [vmem:[%s2760_s16 + $0x70] sm:$0xff] }
  0xd6   : > { %2129 = vmatmul.msk.bf16.gmra.mxu0 %vm542_vm1, %v2511_v46  ;;  %2233 = vmatmul.msk.bf16.gmra.mxu1 %vm542_vm1, %v2488_v47  ;;  %v2514_v47 = vld [vmem:[%s2793_s9 + $0x80] sm:$0xff]  ;;  %v2491_v48 = vld [vmem:[%s2793_s9 + $0x70] sm:$0xff] }
  0xd7   : > { %v1562_v55 = vpack.c.bf16 %v2933_v54, %v2933_v54  ;;  %2383 = vmatmul.msk.bf16.gmra.mxu2 %vm542_vm1, %v2534_v51 }
  0xd8   : > { %v1465_v61 = vpop.f32.mrf.mxu3 }
  0xd9   : > { %1595 = vst.msk [vmem:[%s2883_s29 + $0x14] sm:$0xf] %vm1589_vm2, %v1562_v55  ;;  %v2560_v55 = vld [vmem:[%s2760_s16 + $0x78] sm:$0xff] }
  0xda   : > { %v1170_v57 = vpop.f32.mrf.mxu2 }
  0xdb   : > { %v1241_v58 = vadd.f32 %v1170_v57, %v869_v56  ;;  %v617_v59 = vpop.f32.mrf.mxu0  ;;  %v870_v60 = vpop.f32.mrf.mxu1 }
  0xdc   : > { %v871_v0 = vadd.f32 %v870_v60, %v617_v59 }
  0xdd   : > { %v2943_v62 = vadd.f32 %v1460_v41, %v1241_v58 }
  0xdf   : > { %v1563_v63 = vpack.c.bf16 %v2943_v62, %v2943_v62 }
  0xe0   : > { %v1467_v9 = vpop.f32.mrf.mxu3 }
  0xe1   : > { %1596 = vst.msk [vmem:[%s2883_s29 + $0x18] sm:$0xf] %vm1589_vm2, %v1563_v63 }
  0xe2   : > { %v1172_v1 = vpop.f32.mrf.mxu2 }
  0xe3   : > { %v1242_v5 = vadd.f32 %v1172_v1, %v871_v0  ;;  %v620_v6 = vpop.f32.mrf.mxu0  ;;  %v873_v7 = vpop.f32.mrf.mxu1 }
  0xe4   : > { %v874_v13 = vadd.f32 %v873_v7, %v620_v6  ;;  %v2515_v6 = vld [vmem:[%s2793_s9 + $0x88] sm:$0xff]  ;;  %v2492_v7 = vld [vmem:[%s2793_s9 + $0x78] sm:$0xff] }
  0xe5   : > { %v2953_v11 = vadd.f32 %v1462_v52, %v1242_v5  ;;  %2469 = vmatmul.msk.bf16.gmra.mxu3 %vm1387_vm0, %v2558_v10  ;;  %v2537_v52 = vld [vmem:[%s2793_s9 + $0x90] sm:$0xff] }
  0xe6   : > { %2130 = vmatmul.msk.bf16.gmra.mxu0 %vm542_vm1, %v2512_v3  ;;  %2234 = vmatmul.msk.bf16.gmra.mxu1 %vm542_vm1, %v2489_v4 }
  0xe7   : > { %v1564_v12 = vpack.c.bf16 %v2953_v11, %v2953_v11  ;;  %2384 = vmatmul.msk.bf16.gmra.mxu2 %vm542_vm1, %v2535_v8 }
  0xe8   : > { %v1470_v19 = vpop.f32.mrf.mxu3 }
  0xe9   : > { %1597 = vst.msk [vmem:[%s2883_s29 + $0x1c] sm:$0xf] %vm1589_vm2, %v1564_v12  ;;  %v2538_v12 = vld [vmem:[%s2793_s9 + $0x98] sm:$0xff] }
  0xea   : > { %v1175_v15 = vpop.f32.mrf.mxu2 }
  0xeb   : > { %v1243_v16 = vadd.f32 %v1175_v15, %v874_v13  ;;  %v622_v17 = vpop.f32.mrf.mxu0  ;;  %v875_v18 = vpop.f32.mrf.mxu1 }
  0xec   : > { %v876_v23 = vadd.f32 %v875_v18, %v622_v17 }
  0xed   : > { %v2963_v20 = vadd.f32 %v1465_v61, %v1243_v16 }
  0xef   : > { %v1565_v21 = vpack.c.bf16 %v2963_v20, %v2963_v20 }
  0xf0   : > { %v1472_v31 = vpop.f32.mrf.mxu3 }
  0xf1   : > { %1598 = vst.msk [vmem:[%s2883_s29 + $0x20] sm:$0xf] %vm1589_vm2, %v1565_v21 }
  0xf2   : > { %v1177_v24 = vpop.f32.mrf.mxu2 }
  0xf3   : > { %v1244_v27 = vadd.f32 %v1177_v24, %v876_v23  ;;  %v625_v28 = vpop.f32.mrf.mxu0  ;;  %v878_v29 = vpop.f32.mrf.mxu1 }
  0xf4   : > { %v879_v36 = vadd.f32 %v878_v29, %v625_v28 }
  0xf5   : > { %v2973_v33 = vadd.f32 %v1467_v9, %v1244_v27  ;;  %2470 = vmatmul.msk.bf16.gmra.mxu3 %vm1387_vm0, %v2559_v32 }
  0xf6   : > { %2131 = vmatmul.msk.bf16.gmra.mxu0 %vm542_vm1, %v2513_v25  ;;  %2235 = vmatmul.msk.bf16.gmra.mxu1 %vm542_vm1, %v2490_v26 }
  0xf7   : > { %v1566_v35 = vpack.c.bf16 %v2973_v33, %v2973_v33  ;;  %2385 = vmatmul.msk.bf16.gmra.mxu2 %vm542_vm1, %v2536_v30 }
  0xf8   : > { %v1475_v41 = vpop.f32.mrf.mxu3 }
  0xf9   : > { %1599 = vst.msk [vmem:[%s2883_s29 + $0x24] sm:$0xf] %vm1589_vm2, %v1566_v35 }
  0xfa   : > { %v1180_v37 = vpop.f32.mrf.mxu2 }
  0xfb   : > { %v1245_v38 = vadd.f32 %v1180_v37, %v879_v36  ;;  %v627_v39 = vpop.f32.mrf.mxu0  ;;  %v880_v40 = vpop.f32.mrf.mxu1 }
  0xfc   : > { %v881_v45 = vadd.f32 %v880_v40, %v627_v39 }
  0xfd   : > { %v2983_v43 = vadd.f32 %v1470_v19, %v1245_v38 }
  0xff   : > { %v1567_v44 = vpack.c.bf16 %v2983_v43, %v2983_v43 }
 0x100   : > { %v1477_v53 = vpop.f32.mrf.mxu3 }
 0x101   : > { %1600 = vst.msk [vmem:[%s2883_s29 + $0x28] sm:$0xf] %vm1589_vm2, %v1567_v44 }
 0x102   : > { %v1182_v46 = vpop.f32.mrf.mxu2 }
 0x103   : > { %v1246_v49 = vadd.f32 %v1182_v46, %v881_v45  ;;  %v630_v50 = vpop.f32.mrf.mxu0  ;;  %v883_v51 = vpop.f32.mrf.mxu1 }
 0x104   : > { %v884_v58 = vadd.f32 %v883_v51, %v630_v50 }
 0x105   : > { %v2993_v56 = vadd.f32 %v1472_v31, %v1246_v49  ;;  %2471 = vmatmul.msk.bf16.gmra.mxu3 %vm1387_vm0, %v2560_v55 }
 0x106   : > { %2132 = vmatmul.msk.bf16.gmra.mxu0 %vm542_vm1, %v2514_v47  ;;  %2236 = vmatmul.msk.bf16.gmra.mxu1 %vm542_vm1, %v2491_v48 }
 0x107   : > { %v1568_v57 = vpack.c.bf16 %v2993_v56, %v2993_v56  ;;  %2386 = vmatmul.msk.bf16.gmra.mxu2 %vm542_vm1, %v2537_v52 }
 0x108   : > { %v1480_v0 = vpop.f32.mrf.mxu3 }
 0x109   : > { %1601 = vst.msk [vmem:[%s2883_s29 + $0x2c] sm:$0xf] %vm1589_vm2, %v1568_v57 }
 0x10a   : > { %v1185_v59 = vpop.f32.mrf.mxu2 }
 0x10b   : > { %v1247_v60 = vadd.f32 %v1185_v59, %v884_v58  ;;  %v632_v61 = vpop.f32.mrf.mxu0  ;;  %v885_v63 = vpop.f32.mrf.mxu1 }
 0x10c   : > { %v886_v4 = vadd.f32 %v885_v63, %v632_v61 }
 0x10d   : > { %v3003_v1 = vadd.f32 %v1475_v41, %v1247_v60 }
 0x10f   : > { %v1569_v3 = vpack.c.bf16 %v3003_v1, %v3003_v1 }
 0x110   : > { %v1482_v13 = vpop.f32.mrf.mxu3 }
 0x111   : > { %1602 = vst.msk [vmem:[%s2883_s29 + $0x30] sm:$0xf] %vm1589_vm2, %v1569_v3 }
 0x112   : > { %v1187_v5 = vpop.f32.mrf.mxu2 }
 0x113   : > { %v1248_v8 = vadd.f32 %v1187_v5, %v886_v4  ;;  %v635_v9 = vpop.f32.mrf.mxu0  ;;  %v888_v10 = vpop.f32.mrf.mxu1 }
 0x114   : > { %v889_v17 = vadd.f32 %v888_v10, %v635_v9 }
 0x115   : > { %v3012_v15 = vadd.f32 %v1477_v53, %v1248_v8 }
 0x116   : > { %2133 = vmatmul.msk.bf16.gmra.mxu0 %vm542_vm1, %v2515_v6  ;;  %2237 = vmatmul.msk.bf16.gmra.mxu1 %vm542_vm1, %v2492_v7 }
 0x117   : > { %v1570_v16 = vpack.c.bf16 %v3012_v15, %v3012_v15  ;;  %2387 = vmatmul.msk.bf16.gmra.mxu2 %vm542_vm1, %v2538_v12 }
 0x118   : > { %v1485_v24 = vpop.f32.mrf.mxu3 }
 0x119   : > { %1603 = vst.msk [vmem:[%s2883_s29 + $0x34] sm:$0xf] %vm1589_vm2, %v1570_v16 }
 0x11a   : > { %v1190_v18 = vpop.f32.mrf.mxu2 }
 0x11b   : > { %v1249_v19 = vadd.f32 %v1190_v18, %v889_v17  ;;  %v637_v21 = vpop.f32.mrf.mxu0  ;;  %v890_v23 = vpop.f32.mrf.mxu1 }
 0x11c   : > { %v891_v27 = vadd.f32 %v890_v23, %v637_v21 }
 0x11d   : > { %v3021_v25 = vadd.f32 %v1480_v0, %v1249_v19 }
 0x11f   : > { %v1571_v26 = vpack.c.bf16 %v3021_v25, %v3021_v25 }
 0x120   : > { %v1487_v32 = vpop.f32.mrf.mxu3 }
 0x121   : > { %1604 = vst.msk [vmem:[%s2883_s29 + $0x38] sm:$0xf] %vm1589_vm2, %v1571_v26 }
 0x122   : > { %v1192_v28 = vpop.f32.mrf.mxu2 }
 0x123   : > { %v1250_v29 = vadd.f32 %v1192_v28, %v891_v27  ;;  %v640_v30 = vpop.f32.mrf.mxu0  ;;  %v893_v31 = vpop.f32.mrf.mxu1 }
 0x124   : > { %v894_v37 = vadd.f32 %v893_v31, %v640_v30 }
 0x125   : > { %v3027_v35 = vadd.f32 %v1482_v13, %v1250_v29 }
 0x127   : > { %v1572_v36 = vpack.c.bf16 %v3027_v35, %v3027_v35 }
 0x128   : > { %v1490_v44 = vpop.f32.mrf.mxu3 }
 0x129   : > { %1605 = vst.msk [vmem:[%s2883_s29 + $0x3c] sm:$0xf] %vm1589_vm2, %v1572_v36 }
 0x12a   : > { %v1195_v38 = vpop.f32.mrf.mxu2 }
 0x12b   : > { %v1251_v39 = vadd.f32 %v1195_v38, %v894_v37  ;;  %v642_v40 = vpop.f32.mrf.mxu0  ;;  %v895_v41 = vpop.f32.mrf.mxu1 }
 0x12c   : > { %v896_v47 = vadd.f32 %v895_v41, %v642_v40 }
 0x12d   : > { %v3033_v45 = vadd.f32 %v1485_v24, %v1251_v39 }
 0x12f   : > { %v1573_v46 = vpack.c.bf16 %v3033_v45, %v3033_v45 }
 0x130   : > { %v1492_v52 = vpop.f32.mrf.mxu3 }
 0x131   : > { %1606 = vst.msk [vmem:[%s2883_s29 + $0x40] sm:$0xf] %vm1589_vm2, %v1573_v46 }
 0x132   : > { %v1197_v48 = vpop.f32.mrf.mxu2 }
 0x133   : > { %v1252_v49 = vadd.f32 %v1197_v48, %v896_v47  ;;  %v645_v50 = vpop.f32.mrf.mxu0  ;;  %v898_v51 = vpop.f32.mrf.mxu1 }
 0x134   : > { %v899_v57 = vadd.f32 %v898_v51, %v645_v50 }
 0x135   : > { %v3039_v53 = vadd.f32 %v1487_v32, %v1252_v49 }
 0x137   : > { %v1574_v55 = vpack.c.bf16 %v3039_v53, %v3039_v53 }
 0x138   : > { %v1495_v63 = vpop.f32.mrf.mxu3 }
 0x139   : > { %1607 = vst.msk [vmem:[%s2883_s29 + $0x44] sm:$0xf] %vm1589_vm2, %v1574_v55 }
 0x13a   : > { %v1200_v58 = vpop.f32.mrf.mxu2 }
 0x13b   : > { %v1253_v59 = vadd.f32 %v1200_v58, %v899_v57  ;;  %v647_v60 = vpop.f32.mrf.mxu0  ;;  %v900_v61 = vpop.f32.mrf.mxu1 }
 0x13c   : > { %v901_v4 = vadd.f32 %v900_v61, %v647_v60 }
 0x13d   : > { %v3045_v0 = vadd.f32 %v1490_v44, %v1253_v59 }
 0x13f   : > { %v1575_v3 = vpack.c.bf16 %v3045_v0, %v3045_v0 }
 0x140   : > { %v1497_v9 = vpop.f32.mrf.mxu3 }
 0x141   : > { %1608 = vst.msk [vmem:[%s2883_s29 + $0x48] sm:$0xf] %vm1589_vm2, %v1575_v3 }
 0x142   : > { %v1202_v5 = vpop.f32.mrf.mxu2 }
 0x143   : > { %v1254_v6 = vadd.f32 %v1202_v5, %v901_v4  ;;  %v650_v7 = vpop.f32.mrf.mxu0  ;;  %v903_v8 = vpop.f32.mrf.mxu1 }
 0x144   : > { %v904_v13 = vadd.f32 %v903_v8, %v650_v7 }
 0x145   : > { %v3051_v10 = vadd.f32 %v1492_v52, %v1254_v6 }
 0x147   : > { %v1576_v12 = vpack.c.bf16 %v3051_v10, %v3051_v10 }
 0x148   : > { %v1500_v21 = vpop.f32.mrf.mxu3 }
 0x149   : > { %1609 = vst.msk [vmem:[%s2883_s29 + $0x4c] sm:$0xf] %vm1589_vm2, %v1576_v12 }
 0x14a   : > { %v1205_v16 = vpop.f32.mrf.mxu2 }
 0x14b   : > { %v1255_v17 = vadd.f32 %v1205_v16, %v904_v13  ;;  %v652_v18 = vpop.f32.mrf.mxu0  ;;  %v905_v19 = vpop.f32.mrf.mxu1 }
 0x14c   : > { %v906_v26 = vadd.f32 %v905_v19, %v652_v18 }
 0x14d   : > { %v3057_v23 = vadd.f32 %v1495_v63, %v1255_v17 }
 0x14f   : > { %v1577_v24 = vpack.c.bf16 %v3057_v23, %v3057_v23 }
 0x150   : > { %v1502_v31 = vpop.f32.mrf.mxu3 }
 0x151   : > { %1610 = vst.msk [vmem:[%s2883_s29 + $0x50] sm:$0xf] %vm1589_vm2, %v1577_v24 }
 0x152   : > { %v1207_v27 = vpop.f32.mrf.mxu2 }
 0x153   : > { %v1256_v28 = vadd.f32 %v1207_v27, %v906_v26  ;;  %v655_v29 = vpop.f32.mrf.mxu0  ;;  %v908_v30 = vpop.f32.mrf.mxu1 }
 0x154   : > { %v909_v37 = vadd.f32 %v908_v30, %v655_v29 }
 0x155   : > { %v3063_v32 = vadd.f32 %v1497_v9, %v1256_v28 }
 0x157   : > { %v1578_v36 = vpack.c.bf16 %v3063_v32, %v3063_v32 }
 0x158   : > { %v1505_v46 = vpop.f32.mrf.mxu3 }
 0x159   : > { %1611 = vst.msk [vmem:[%s2883_s29 + $0x54] sm:$0xf] %vm1589_vm2, %v1578_v36 }
 0x15a   : > { %v1210_v38 = vpop.f32.mrf.mxu2 }
 0x15b   : > { %v1257_v39 = vadd.f32 %v1210_v38, %v909_v37  ;;  %v657_v40 = vpop.f32.mrf.mxu0  ;;  %v910_v41 = vpop.f32.mrf.mxu1 }
 0x15c   : > { %v911_v48 = vadd.f32 %v910_v41, %v657_v40 }
 0x15d   : > { %v3069_v44 = vadd.f32 %v1500_v21, %v1257_v39 }
 0x15f   : > { %v1579_v47 = vpack.c.bf16 %v3069_v44, %v3069_v44 }
 0x160   : > { %v1507_v59 = vpop.f32.mrf.mxu3 }
 0x161   : > { %1612 = vst.msk [vmem:[%s2883_s29 + $0x58] sm:$0xf] %vm1589_vm2, %v1579_v47 }
 0x162   : > { %v1212_v49 = vpop.f32.mrf.mxu2 }
 0x163   : > { %v1258_v50 = vadd.f32 %v1212_v49, %v911_v48  ;;  %v660_v51 = vpop.f32.mrf.mxu0  ;;  %v913_v52 = vpop.f32.mrf.mxu1 }
 0x164   : > { %v914_v58 = vadd.f32 %v913_v52, %v660_v51 }
 0x165   : > { %v3075_v55 = vadd.f32 %v1502_v31, %v1258_v50 }
 0x167   : > { %v1580_v57 = vpack.c.bf16 %v3075_v55, %v3075_v55 }
 0x168   : > { %v1510_v8 = vpop.f32.mrf.mxu3 }
 0x169   : > { %1613 = vst.msk [vmem:[%s2883_s29 + $0x5c] sm:$0xf] %vm1589_vm2, %v1580_v57 }
 0x16a   : > { %v1215_v60 = vpop.f32.mrf.mxu2 }
 0x16b   : > { %v1259_v61 = vadd.f32 %v1215_v60, %v914_v58  ;;  %v662_v63 = vpop.f32.mrf.mxu0  ;;  %v915_v3 = vpop.f32.mrf.mxu1 }
 0x16c   : > { %v916_v6 = vadd.f32 %v915_v3, %v662_v63 }
 0x16d   : > { %v3081_v4 = vadd.f32 %v1505_v46, %v1259_v61 }
 0x16f   : > { %v1581_v5 = vpack.c.bf16 %v3081_v4, %v3081_v4 }
 0x170   : > { %v1512_v27 = vpop.f32.mrf.mxu3 }
 0x171   : > { %1614 = vst.msk [vmem:[%s2883_s29 + $0x60] sm:$0xf] %vm1589_vm2, %v1581_v5 }
 0x172   : > { %v1217_v7 = vpop.f32.mrf.mxu2 }
 0x173   : > { %v1260_v9 = vadd.f32 %v1217_v7, %v916_v6  ;;  %v665_v12 = vpop.f32.mrf.mxu0  ;;  %v918_v13 = vpop.f32.mrf.mxu1 }
 0x174   : > { %v919_v18 = vadd.f32 %v918_v13, %v665_v12 }
 0x175   : > { %v3087_v16 = vadd.f32 %v1507_v59, %v1260_v9 }
 0x177   : > { %v1582_v17 = vpack.c.bf16 %v3087_v16, %v3087_v16 }
 0x178   : > { %v1515_v40 = vpop.f32.mrf.mxu3 }
 0x179   : > { %1615 = vst.msk [vmem:[%s2883_s29 + $0x64] sm:$0xf] %vm1589_vm2, %v1582_v17 }
 0x17a   : > { %v1220_v19 = vpop.f32.mrf.mxu2 }
 0x17b   : > { %v1261_v21 = vadd.f32 %v1220_v19, %v919_v18  ;;  %v667_v24 = vpop.f32.mrf.mxu0  ;;  %v920_v26 = vpop.f32.mrf.mxu1 }
 0x17c   : > { %v921_v30 = vadd.f32 %v920_v26, %v667_v24 }
 0x17d   : > { %v3093_v28 = vadd.f32 %v1510_v8, %v1261_v21 }
 0x17f   : > { %v1583_v29 = vpack.c.bf16 %v3093_v28, %v3093_v28 }
 0x180   : > { %v1517_v57 = vpop.f32.mrf.mxu3 }
 0x181   : > { %1616 = vst.msk [vmem:[%s2883_s29 + $0x68] sm:$0xf] %vm1589_vm2, %v1583_v29 }
 0x182   : > { %v1222_v31 = vpop.f32.mrf.mxu2 }
 0x183   : > { %v1262_v36 = vadd.f32 %v1222_v31, %v921_v30  ;;  %v670_v37 = vpop.f32.mrf.mxu0  ;;  %v923_v38 = vpop.f32.mrf.mxu1 }
 0x184   : > { %v924_v46 = vadd.f32 %v923_v38, %v670_v37 }
 0x185   : > { %v3099_v39 = vadd.f32 %v1512_v27, %v1262_v36 }
 0x187   : > { %v1584_v41 = vpack.c.bf16 %v3099_v39, %v3099_v39 }
 0x188   : > { %v1520_v7 = vpop.f32.mrf.mxu3 }
 0x189   : > { %1617 = vst.msk [vmem:[%s2883_s29 + $0x6c] sm:$0xf] %vm1589_vm2, %v1584_v41 }
 0x18a   : > { %v1225_v47 = vpop.f32.mrf.mxu2 }
 0x18b   : > { %v1263_v48 = vadd.f32 %v1225_v47, %v924_v46  ;;  %v672_v49 = vpop.f32.mrf.mxu0  ;;  %v925_v50 = vpop.f32.mrf.mxu1 }
 0x18c   : > { %v926_v58 = vadd.f32 %v925_v50, %v672_v49 }
 0x18d   : > { %v3105_v51 = vadd.f32 %v1515_v40, %v1263_v48 }
 0x18f   : > { %v1585_v52 = vpack.c.bf16 %v3105_v51, %v3105_v51 }
 0x190   : > { %v1522_v26 = vpop.f32.mrf.mxu3 }
 0x191   : > { %1618 = vst.msk [vmem:[%s2883_s29 + $0x70] sm:$0xf] %vm1589_vm2, %v1585_v52 }
 0x192   : > { %v1227_v59 = vpop.f32.mrf.mxu2 }
 0x193   : > { %v1264_v60 = vadd.f32 %v1227_v59, %v926_v58  ;;  %v675_v61 = vpop.f32.mrf.mxu0  ;;  %v928_v63 = vpop.f32.mrf.mxu1 }
 0x194   : > { %v929_v6 = vadd.f32 %v928_v63, %v675_v61 }
 0x195   : > { %v3111_v3 = vadd.f32 %v1517_v57, %v1264_v60 }
 0x197   : > { %v1586_v5 = vpack.c.bf16 %v3111_v3, %v3111_v3 }
 0x199   : > { %1619 = vst.msk [vmem:[%s2883_s29 + $0x74] sm:$0xf] %vm1589_vm2, %v1586_v5 }
 0x19a   : > { %v1230_v8 = vpop.f32.mrf.mxu2 }
 0x19b   : > { %v1265_v9 = vadd.f32 %v1230_v8, %v929_v6  ;;  %v677_v13 = vpop.f32.mrf.mxu0  ;;  %v930_v17 = vpop.f32.mrf.mxu1 }
 0x19c   : > { %v931_v19 = vadd.f32 %v930_v17, %v677_v13 }
 0x19d   : > { %v3117_v12 = vadd.f32 %v1520_v7, %v1265_v9 }
 0x19f   : > { %v1587_v18 = vpack.c.bf16 %v3117_v12, %v3117_v12 }
 0x1a1   : > { %1620 = vst.msk [vmem:[%s2883_s29 + $0x78] sm:$0xf] %vm1589_vm2, %v1587_v18 }
 0x1a2   : > { %v1232_v21 = vpop.f32.mrf.mxu2 }
 0x1a3   : > { %v1266_v24 = vadd.f32 %v1232_v21, %v931_v19 }
 0x1a5   : > { %v3123_v27 = vadd.f32 %v1522_v26, %v1266_v24  ;;  %1625 = sbr.rel (%p2472_p7) target bundleno = 429 (0x1ad), region = 40 }
 0x1a7   : > { %v1588_v29 = vpack.c.bf16 %v3123_v27, %v3123_v27 }
 0x1a9   : > { %1621 = vst.msk [vmem:[%s2883_s29 + $0x7c] sm:$0xf] %vm1589_vm2, %v1588_v29 }
 0x1aa   : > { %vm1626_vm3 = vcmask 253952   ;;  %v2644_v30 = vmov 0.0  }
 0x1ab   : > { %1627 = vst.msk [vmem:[%s2743_s30] sm:$0x1] %vm1626_vm3, %v2644_v30 }
 0x1ac   : > { %1628 = vst.msk [vmem:[%s2766_s19] sm:$0x1] %vm1626_vm3, %v2644_v30 }
 0x1ad PF: > { %vm1630_vm4 = vcmask 261120   ;;  %v1704_v52 = vmul.f32 %v2876_v2, %v2876_v2  ;;  %v1705_v57 = vmul.f32 %v2893_v14, %v2893_v14  ;;  %v1706_v59 = vmul.f32 %v2903_v22, %v2903_v22 }
 0x1ae   : > { %v1631_v31 = vsel %vm1630_vm4, %v2876_v2, 0.0  ;;  %v1632_v36 = vsel %vm1630_vm4, %v2893_v14, 0.0  ;;  %v1634_v37 = vsel %vm1630_vm4, %v2903_v22, 0.0  ;;  %v1636_v40 = vsel %vm1630_vm4, %v2913_v34, 0.0 }
 0x1af   : > { %v1633_v38 = vadd.f32 %v1632_v36, %v1631_v31  ;;  %v1638_v46 = vsel %vm1630_vm4, %v2923_v42, 0.0  ;;  %v1640_v48 = vsel %vm1630_vm4, %v2933_v54, 0.0  ;;  %v1642_v50 = vsel %vm1630_vm4, %v2943_v62, 0.0 }
 0x1b0   : > { %v1644_v60 = vsel %vm1630_vm4, %v2953_v11, 0.0  ;;  %v1707_v61 = vmul.f32 %v2913_v34, %v2913_v34  ;;  %v1646_v5 = vsel %vm1630_vm4, %v2963_v20, 0.0  ;;  %v1708_v2 = vmul.f32 %v2923_v42, %v2923_v42 }
 0x1b1   : > { %v1635_v41 = vadd.f32 %v1634_v37, %v1633_v38  ;;  %v1736_v6 = vsel %vm1630_vm4, %v1704_v52, 0.0  ;;  %v1737_v14 = vsel %vm1630_vm4, %v1705_v57, 0.0  ;;  %v1739_v22 = vsel %vm1630_vm4, %v1706_v59, 0.0 }
 0x1b2   : > { %v1738_v8 = vadd.f32 %v1737_v14, %v1736_v6  ;;  %v1648_v9 = vsel %vm1630_vm4, %v2973_v33, 0.0  ;;  %v1709_v34 = vmul.f32 %v2933_v54, %v2933_v54  ;;  %v1741_v13 = vsel %vm1630_vm4, %v1707_v61, 0.0 }
 0x1b3   : > { %v1637_v47 = vadd.f32 %v1636_v40, %v1635_v41  ;;  %v1650_v42 = vsel %vm1630_vm4, %v2983_v43, 0.0  ;;  %v1710_v19 = vmul.f32 %v2943_v62, %v2943_v62  ;;  %v1743_v21 = vsel %vm1630_vm4, %v1708_v2, 0.0 }
 0x1b4   : > { %v1740_v18 = vadd.f32 %v1739_v22, %v1738_v8  ;;  %v1652_v29 = vsel %vm1630_vm4, %v2993_v56, 0.0  ;;  %v1711_v54 = vmul.f32 %v2953_v11, %v2953_v11  ;;  %v1745_v30 = vsel %vm1630_vm4, %v1709_v34, 0.0 }
 0x1b5   : > { %v1639_v49 = vadd.f32 %v1638_v46, %v1637_v47  ;;  %v1654_v37 = vsel %vm1630_vm4, %v3003_v1, 0.0  ;;  %v1712_v62 = vmul.f32 %v2963_v20, %v2963_v20  ;;  %v1747_v38 = vsel %vm1630_vm4, %v1710_v19, 0.0 }
 0x1b6   : > { %v1742_v26 = vadd.f32 %v1741_v13, %v1740_v18  ;;  %v1656_v46 = vsel %vm1630_vm4, %v3012_v15, 0.0  ;;  %v1713_v11 = vmul.f32 %v2973_v33, %v2973_v33  ;;  %v1749_v47 = vsel %vm1630_vm4, %v1711_v54, 0.0 }
 0x1b7   : > { %v1641_v58 = vadd.f32 %v1640_v48, %v1639_v49  ;;  %v1714_v20 = vmul.f32 %v2983_v43, %v2983_v43  ;;  %v1751_v52 = vsel %vm1630_vm4, %v1712_v62, 0.0  ;;  %v1660_v59 = vsel %vm1630_vm4, %v3027_v35, 0.0 }
 0x1b8   : > { %v1744_v36 = vadd.f32 %v1743_v21, %v1742_v26  ;;  %v1715_v33 = vmul.f32 %v2993_v56, %v2993_v56  ;;  %v1716_v43 = vmul.f32 %v3003_v1, %v3003_v1  ;;  %v1717_v56 = vmul.f32 %v3012_v15, %v3012_v15 }
 0x1b9   : > { %v1643_v63 = vadd.f32 %v1642_v50, %v1641_v58  ;;  %v1658_v50 = vsel %vm1630_vm4, %v3021_v25, 0.0  ;;  %v1755_v2 = vsel %vm1630_vm4, %v1714_v20, 0.0  ;;  %v1666_v34 = vsel %vm1630_vm4, %v3045_v0, 0.0 }
 0x1ba   : > { %v1746_v41 = vadd.f32 %v1745_v30, %v1744_v36  ;;  %v1757_v8 = vsel %vm1630_vm4, %v1715_v33, 0.0  ;;  %v1718_v1 = vmul.f32 %v3021_v25, %v3021_v25  ;;  %v1759_v13 = vsel %vm1630_vm4, %v1716_v43, 0.0 }
 0x1bb   : > { %v1645_v7 = vadd.f32 %v1644_v60, %v1643_v63  ;;  %v1753_v60 = vsel %vm1630_vm4, %v1713_v11, 0.0  ;;  %v1719_v15 = vmul.f32 %v3027_v35, %v3027_v35  ;;  %v1761_v19 = vsel %vm1630_vm4, %v1717_v56, 0.0 }
 0x1bc   : > { %v1748_v49 = vadd.f32 %v1747_v38, %v1746_v41  ;;  %v1670_v26 = vsel %vm1630_vm4, %v3057_v23, 0.0  ;;  %v1720_v25 = vmul.f32 %v3033_v45, %v3033_v45  ;;  %v1721_v35 = vmul.f32 %v3039_v53, %v3039_v53 }
 0x1bd   : > { %v1647_v17 = vadd.f32 %v1646_v5, %v1645_v7  ;;  %v1662_v5 = vsel %vm1630_vm4, %v3033_v45, 0.0  ;;  %v1664_v7 = vsel %vm1630_vm4, %v3039_v53, 0.0  ;;  %v1765_v36 = vsel %vm1630_vm4, %v1719_v15, 0.0 }
 0x1be   : > { %v1750_v58 = vadd.f32 %v1749_v47, %v1748_v49  ;;  %v1674_v38 = vsel %vm1630_vm4, %v3069_v44, 0.0  ;;  %v1722_v45 = vmul.f32 %v3045_v0, %v3045_v0  ;;  %v1676_v11 = vsel %vm1630_vm4, %v3075_v55, 0.0 }
 0x1bf   : > { %v1649_v24 = vadd.f32 %v1648_v9, %v1647_v17  ;;  %v1723_v53 = vmul.f32 %v3051_v10, %v3051_v10  ;;  %v1769_v47 = vsel %vm1630_vm4, %v1721_v35, 0.0  ;;  %v1724_v0 = vmul.f32 %v3057_v23, %v3057_v23 }
 0x1c0   : > { %v1752_v63 = vadd.f32 %v1751_v52, %v1750_v58  ;;  %v1771_v20 = vsel %vm1630_vm4, %v1722_v45, 0.0  ;;  %v1680_v58 = vsel %vm1630_vm4, %v3087_v16, 0.0  ;;  %v1726_v23 = vmul.f32 %v3069_v44, %v3069_v44 }
 0x1c1   : > { %v1651_v31 = vadd.f32 %v1650_v42, %v1649_v24  ;;  %v1668_v42 = vsel %vm1630_vm4, %v3051_v10, 0.0  ;;  %v1725_v10 = vmul.f32 %v3063_v32, %v3063_v32  ;;  %v1686_v56 = vsel %vm1630_vm4, %v3105_v51, 0.0 }
 0x1c2   : > { %v1754_v14 = vadd.f32 %v1753_v60, %v1752_v63  ;;  %v1775_v63 = vsel %vm1630_vm4, %v1724_v0, 0.0  ;;  %v1728_v44 = vmul.f32 %v3081_v4, %v3081_v4  ;;  %vm1701_vm5 = vcmask 253952  }
 0x1c3   : > { %v1653_v40 = vadd.f32 %v1652_v29, %v1651_v31  ;;  %v1763_v29 = vsel %vm1630_vm4, %v1718_v1, 0.0  ;;  %v1672_v31 = vsel %vm1630_vm4, %v3063_v32, 0.0  ;;  %v1727_v32 = vmul.f32 %v3075_v55, %v3075_v55 }
 0x1c4   : > { %v1756_v9 = vadd.f32 %v1755_v2, %v1754_v14  ;;  %v1684_v2 = vsel %vm1630_vm4, %v3099_v39, 0.0  ;;  %v1729_v55 = vmul.f32 %v3087_v16, %v3087_v16  ;;  %v1731_v16 = vmul.f32 %v3099_v39, %v3099_v39 }
 0x1c5   : > { %v1655_v48 = vadd.f32 %v1654_v37, %v1653_v40  ;;  %v1767_v40 = vsel %vm1630_vm4, %v1720_v25, 0.0  ;;  %v1781_v1 = vsel %vm1630_vm4, %v1727_v32, 0.0  ;;  %v1734_v39 = vmul.f32 %v3117_v12, %v3117_v12 }
 0x1c6   : > { %v1758_v18 = vadd.f32 %v1757_v8, %v1756_v9  ;;  %v1779_v8 = vsel %vm1630_vm4, %v1726_v23, 0.0  ;;  %v1789_v35 = vsel %vm1630_vm4, %v1731_v16, 0.0 }
 0x1c7   : > { %v1657_v57 = vadd.f32 %v1656_v46, %v1655_v48 }
 0x1c8   : > { %v1760_v24 = vadd.f32 %v1759_v13, %v1758_v18  ;;  %v1690_v18 = vsel %vm1630_vm4, %v3117_v12, 0.0 }
 0x1c9   : > { %v1659_v61 = vadd.f32 %v1658_v50, %v1657_v57  ;;  %v1678_v50 = vsel %vm1630_vm4, %v3081_v4, 0.0  ;;  %v1730_v4 = vmul.f32 %v3093_v28, %v3093_v28 }
 0x1ca   : > { %v1762_v30 = vadd.f32 %v1761_v19, %v1760_v24  ;;  %v1785_v24 = vsel %vm1630_vm4, %v1729_v55, 0.0 }
 0x1cb   : > { %v1661_v6 = vadd.f32 %v1660_v59, %v1659_v61  ;;  %v1773_v59 = vsel %vm1630_vm4, %v1723_v53, 0.0  ;;  %v1682_v61 = vsel %vm1630_vm4, %v3093_v28, 0.0 }
 0x1cc   : > { %v1764_v62 = vadd.f32 %v1763_v29, %v1762_v30  ;;  %v1732_v29 = vmul.f32 %v3105_v51, %v3105_v51  ;;  %v1735_v51 = vmul.f32 %v3123_v27, %v3123_v27 }
 0x1cd   : > { %v1663_v22 = vadd.f32 %v1662_v5, %v1661_v6  ;;  %v1777_v6 = vsel %vm1630_vm4, %v1725_v10, 0.0 }
 0x1ce   : > { %v1766_v46 = vadd.f32 %v1765_v36, %v1764_v62  ;;  %v1791_v62 = vsel %vm1630_vm4, %v1732_v29, 0.0 }
 0x1cf   : > { %v1665_v17 = vadd.f32 %v1664_v7, %v1663_v22 }
 0x1d0   : > { %v1768_v49 = vadd.f32 %v1767_v40, %v1766_v46  ;;  %v1795_v46 = vsel %vm1630_vm4, %v1734_v39, 0.0 }
 0x1d1   : > { %v1667_v21 = vadd.f32 %v1666_v34, %v1665_v17  ;;  %v1688_v34 = vsel %vm1630_vm4, %v3111_v3, 0.0 }
 0x1d2   : > { %v1770_v57 = vadd.f32 %v1769_v47, %v1768_v49  ;;  %v1797_v47 = vsel %vm1630_vm4, %v1735_v51, 0.0  ;;  %v1629_v49 = vld [vmem:[%s2743_s30] sm:$0x1] }
 0x1d3   : > { %v1669_v54 = vadd.f32 %v1668_v42, %v1667_v21  ;;  %v1783_v42 = vsel %vm1630_vm4, %v1728_v44, 0.0  ;;  %v1692_v21 = vsel %vm1630_vm4, %v3123_v27, 0.0 }
 0x1d4   : > { %v1772_v60 = vadd.f32 %v1771_v20, %v1770_v57 }
 0x1d5   : > { %v1671_v37 = vadd.f32 %v1670_v26, %v1669_v54  ;;  %v1787_v54 = vsel %vm1630_vm4, %v1730_v4, 0.0 }
 0x1d6   : > { %v1774_v43 = vadd.f32 %v1773_v59, %v1772_v60  ;;  %v1703_v59 = vld [vmem:[%s2766_s19] sm:$0x1] }
 0x1d7   : > { %v1673_v41 = vadd.f32 %v1672_v31, %v1671_v37  ;;  %v1733_v31 = vmul.f32 %v3111_v3, %v3111_v3 }
 0x1d8   : > { %v1776_v7 = vadd.f32 %v1775_v63, %v1774_v43 }
 0x1d9   : > { %v1675_v48 = vadd.f32 %v1674_v38, %v1673_v41  ;;  %v1793_v40 = vsel %vm1630_vm4, %v1733_v31, 0.0 }
 0x1da   : > { %v1778_v9 = vadd.f32 %v1777_v6, %v1776_v7 }
 0x1db   : > { %v1677_v52 = vadd.f32 %v1676_v11, %v1675_v48 }
 0x1dc   : > { %v1780_v17 = vadd.f32 %v1779_v8, %v1778_v9 }
 0x1dd   : > { %v1679_v33 = vadd.f32 %v1678_v50, %v1677_v52 }
 0x1de   : > { %v1782_v19 = vadd.f32 %v1781_v1, %v1780_v17 }
 0x1df   : > { %v1681_v5 = vadd.f32 %v1680_v58, %v1679_v33 }
 0x1e0   : > { %v1784_v25 = vadd.f32 %v1783_v42, %v1782_v19 }
 0x1e1   : > { %v1683_v14 = vadd.f32 %v1682_v61, %v1681_v5 }
 0x1e2   : > { %v1786_v30 = vadd.f32 %v1785_v24, %v1784_v25 }
 0x1e3   : > { %v1685_v22 = vadd.f32 %v1684_v2, %v1683_v14 }
 0x1e4   : > { %v1788_v37 = vadd.f32 %v1787_v54, %v1786_v30 }
 0x1e5   : > { %v1687_v13 = vadd.f32 %v1686_v56, %v1685_v22 }
 0x1e6   : > { %v1790_v45 = vadd.f32 %v1789_v35, %v1788_v37 }
 0x1e7   : > { %v1689_v15 = vadd.f32 %v1688_v34, %v1687_v13 }
 0x1e8   : > { %v1792_v3 = vadd.f32 %v1791_v62, %v1790_v45 }
 0x1e9   : > { %v1691_v26 = vadd.f32 %v1690_v18, %v1689_v15 }
 0x1ea   : > { %v1794_v53 = vadd.f32 %v1793_v40, %v1792_v3 }
 0x1eb   : > { %v1693_v28 = vadd.f32 %v1692_v21, %v1691_v26 }
 0x1ec   : > { %v1796_v48 = vadd.f32 %v1795_v46, %v1794_v53 }
 0x1ed   : > { %v1694_v36 = vrot.slane %v1693_v28, 4 }
 0x1ee   : > { %v1798_v0 = vadd.f32 %v1797_v47, %v1796_v48 }
 0x1ef   : > { %v1695_v38 = vadd.f32 %v1694_v36, %v1693_v28 }
 0x1f0   : > { %v1799_v20 = vrot.slane %v1798_v0, 4 }
 0x1f1   : > { %v1696_v41 = vrot.slane %v1695_v38, 2 }
 0x1f2   : > { %v1800_v52 = vadd.f32 %v1799_v20, %v1798_v0 }
 0x1f3   : > { %v1697_v11 = vadd.f32 %v1696_v41, %v1695_v38 }
 0x1f4   : > { %v1801_v57 = vrot.slane %v1800_v52, 2 }
 0x1f5   : > { %v1698_v12 = vrot.slane %v1697_v11, 1 }
 0x1f6   : > { %v1802_v58 = vadd.f32 %v1801_v57, %v1800_v52 }
 0x1f7   : > { %v1699_v50 = vadd.f32 %v1698_v12, %v1697_v11 }
 0x1f8   : > { %v1803_v10 = vrot.slane %v1802_v58, 1 }
 0x1f9   : > { %v1700_v27 = vadd.f32 %v1699_v50, %v1629_v49 }
 0x1fa   : > { %v1804_v33 = vadd.f32 %v1803_v10, %v1802_v58 }
 0x1fb   : > { %1702 = vst.msk [vmem:[%s2743_s30] sm:$0x1] %vm1701_vm5, %v1700_v27 }
 0x1fc   : > { %v1805_v60 = vadd.f32 %v1804_v33, %v1703_v59 }
 0x1fe   : > { %1806 = vst.msk [vmem:[%s2766_s19] sm:$0x1] %vm1701_vm5, %v1805_v60 }
 0x1ff PF: > { %s17_s25 = sadd.s32 1, %s2642_s25   ;;  %s3318_s21 = smov %s2634_s23 }
 0x200   : > { %p14_p8 = scmp.ge.s32.totalorder %s17_s25, 10   ;;  %s3319_s22 = smov %s2638_s24 }
 0x201   : > { %s3320_s23 = smov %s3323_s26  ;;  %s3321_s24 = smov %s3327_s27 }
 0x202   :  { %16 = sbr.rel (!%p14_p8) target bundleno = 3 (0x3), region = 102 }

// kernel: _lambda_.11
= control target key start
LH: loop header
LB: loop body
LE: loop exit
PB: predicated region body
PF: predicated region fallthrough
CT: control target
= control target key end

     0   :  { %s1521_s15 = smov 0   ;;  %s1523_s16 = smov 0   ;;  %s1897_s0 = inlined_call_operand.vmem [shape: bf16[2,2,17,16,96], index: 0, kind: input, shape index: {}]   ;;  %s1898_s1 = inlined_call_operand.vmem [shape: bf16[3,96,64], index: 1, kind: input, shape index: {}]   ;;  %s1899_s2 = inlined_call_operand.vmem [shape: bf16[2,256,64], index: 2, kind: output, shape index: {0}]   ;;  %s1900_s3 = inlined_call_operand.vmem [shape: f32[2,1,64], index: 3, kind: output, shape index: {1}]   ;;  %s1901_s4 = inlined_call_operand.vmem [shape: f32[2,1,64], index: 4, kind: output, shape index: {2}]  }
   0x1   :  { %s1525_s17 = smov 0   ;;  %s1527_s18 = smov 0  }
   0x2   :  { %s1529_s19 = smov 0  }
   0x3 LB: > { %s24_s20 = sadd.s32 1, %s1485_s17  ;;  %s27_s21 = sadd.s32 1, %s1489_s18  ;;  %s1493_s19 = sphi %s1529_s19, %s15_s19   ;;  %s1489_s18 = sphi %s1527_s18, %s1905_s18   ;;  %s1485_s17 = sphi %s1525_s17, %s1904_s17   ;;  %s1481_s16 = sphi %s1523_s16, %s1903_s16   ;;  %s1477_s15 = sphi %s1521_s15, %s1902_s15  }
   0x4   : > { %p25_p0 = scmp.ge.s32.totalorder %s24_s20, 2  ;;  %p1086_p1 = scmp.ge.s32.totalorder %s1493_s19, 1 }
   0x5   : > { %p181_p2 = scmp.lt.s32.totalorder %s1493_s19, 5 }
   0x6   : > { %s1907_s20 = smov (%p25_p0, %s24_s20), 0  ;;  %s1909_s21 = smov (!%p25_p0, %s27_s21), %s1489_s18 }
   0x7   : > { %p182_p3 = pnand %p1086_p1, %p181_p2  ;;  %p29_p4 = scmp.ge.s32.totalorder %s1909_s21, 2 }
   0x8   : > { %p217_p5 = scmp.lt.s32.totalorder (!%p182_p3), %s1481_s16, 1  ;;  %s1350_s26 = sshll.u32 (!%p182_p3), %s1477_s15, 6 }
   0x9   : > { %s1911_s21 = smov (%p29_p4, %s1909_s21), 0  ;;  %185 = sbr.rel (%p182_p3) target bundleno = 317 (0x13d), region = 28 }
   0xa   : > { %s1088_s8 = sshll.u32 (!%p182_p3), %s1477_s15, 4  ;;  %p1346_p7 = scmp.ne.s32.totalorder (!%p182_p3), %s1477_s15, 0 }
   0xb   : > { %p225_p6 = scmp.lt.s32.totalorder (!%p182_p3), %s1088_s8, 31 }
   0xe   : > { %v1379_v0 = vld [vmem:[%s1898_s1 + $0x58] sm:$0xff]  ;;  %v1364_v1 = vld [vmem:[%s1898_s1 + $0x28] sm:$0xff]  ;;  %v1378_v3 = vld [vmem:[%s1898_s1 + $0x50] sm:$0xff]  ;;  %s1913_s16 = smov (!%p217_p5, %s1481_s16), 1  ;;  %vm379_vm0 = vcmask 785408   ;;  %s1915_s8 = smov (!%p225_p6, %s1088_s8), 31 }
   0xf   : > { %v1562_v2 = vld [vmem:[%s1898_s1 + $0x88] sm:$0xff]  ;;  %406 = vmatpush.bf16.msra.mxu0 %v1379_v0  ;;  %1395 = vmatpush.bf16.msra.mxu3 %v1379_v0  ;;  %v1363_v4 = vld [vmem:[%s1898_s1 + $0x20] sm:$0xff]  ;;  %s1580_s10 = scalar_lea.vmem %s1900_s3, %s1913_s16  ;;  %s1586_s13 = scalar_lea.vmem %s1901_s4, %s1913_s16  ;;  %v1362_v7 = vld [vmem:[%s1898_s1 + $0x18] sm:$0xff]  ;;  %vm816_vm1 = vcmask 519168  }
  0x10   : > { %555 = vmatpush.bf16.msra.mxu1 %v1364_v1  ;;  %737 = vmatpush.bf16.msra.mxu2 %v1562_v2  ;;  %v1393_v5 = vld [vmem:[%s1898_s1 + $0x80] sm:$0xff]  ;;  %v1377_v6 = vld [vmem:[%s1898_s1 + $0x48] sm:$0xff]  ;;  %v1392_v8 = vld [vmem:[%s1898_s1 + $0x78] sm:$0xff]  ;;  %s1413_s7 = smul.u32 272, %s1913_s16  ;;  %s1089_s9 = sshll.u32 %s1913_s16, 5 }
  0x11   : > { %v1376_v9 = vld [vmem:[%s1898_s1 + $0x40] sm:$0xff]  ;;  %v1361_v10 = vld [vmem:[%s1898_s1 + $0x10] sm:$0xff]  ;;  %v1375_v12 = vld [vmem:[%s1898_s1 + $0x38] sm:$0xff]  ;;  %s228_s11 = sadd.s32 %s1089_s9, %s1915_s8 }
  0x12   : > { %v1391_v11 = vld [vmem:[%s1898_s1 + $0x70] sm:$0xff]  ;;  %v1360_v13 = vld [vmem:[%s1898_s1 + $0x8] sm:$0xff]  ;;  %s221_s25 = scalar_lea.vmem %s1897_s0, %s1413_s7  ;;  %v1359_v16 = vld [vmem:[%s1898_s1] sm:$0xff]  ;;  %s1090_s12 = sshll.u32 %s228_s11, 2 }
  0x13   : > { %407 = vmatpush.bf16.msra.mxu0 %v1378_v3  ;;  %1396 = vmatpush.bf16.msra.mxu3 %v1378_v3  ;;  %v1390_v14 = vld [vmem:[%s1898_s1 + $0x68] sm:$0xff]  ;;  %v1374_v15 = vld [vmem:[%s1898_s1 + $0x30] sm:$0xff]  ;;  %s1623_s29 = scalar_lea.vmem %s221_s25, %s1350_s26  ;;  %v1389_v17 = vld [vmem:[%s1898_s1 + $0x60] sm:$0xff]  ;;  %s1689_s23 = scalar_lea.vmem %s1899_s2, %s1090_s12 }
  0x14   : > { %556 = vmatpush.bf16.msra.mxu1 %v1363_v4  ;;  %738 = vmatpush.bf16.msra.mxu2 %v1393_v5  ;;  %v1366_v18 = vld [vmem:[%s1623_s29 + $0x88] sm:$0xff]  ;;  %v1372_v19 = vld [vmem:[%s1623_s29 + $0xb8] sm:$0xff]  ;;  %v1351_v20 = vld [vmem:[%s1623_s29] sm:$0xff] }
  0x15   : > { %v1381_v21 = vld [vmem:[%s1623_s29 + $0x8] sm:$0xff]  ;;  %v1367_v22 = vld [vmem:[%s1623_s29 + $0x90] sm:$0xff]  ;;  %v1373_v23 = vld [vmem:[%s1623_s29 + $0xc0] sm:$0xff] }
  0x16   : > { %v1352_v24 = vld [vmem:[%s1623_s29 + $0x8] sm:$0xff]  ;;  %v1382_v25 = vld [vmem:[%s1623_s29 + $0x10] sm:$0xff]  ;;  %v1368_v26 = vld [vmem:[%s1623_s29 + $0x98] sm:$0xff] }
  0x17   : > { %408 = vmatpush.bf16.msra.mxu0 %v1377_v6  ;;  %1397 = vmatpush.bf16.msra.mxu3 %v1377_v6  ;;  %v1357_v27 = vld [vmem:[%s1623_s29 + $0x30] sm:$0xff]  ;;  %v1383_v29 = vld [vmem:[%s1623_s29 + $0x18] sm:$0xff]  ;;  %v1369_v30 = vld [vmem:[%s1623_s29 + $0xa0] sm:$0xff] }
  0x18   : > { %557 = vmatpush.bf16.msra.mxu1 %v1362_v7  ;;  %739 = vmatpush.bf16.msra.mxu2 %v1392_v8  ;;  %v1353_v28 = vld [vmem:[%s1623_s29 + $0x10] sm:$0xff]  ;;  %v1358_v31 = vld [vmem:[%s1623_s29 + $0x38] sm:$0xff]  ;;  %v1384_v33 = vld [vmem:[%s1623_s29 + $0x20] sm:$0xff] }
  0x19   : > { %v1354_v32 = vld [vmem:[%s1623_s29 + $0x18] sm:$0xff]  ;;  %v1370_v34 = vld [vmem:[%s1623_s29 + $0xa8] sm:$0xff]  ;;  %v1355_v36 = vld [vmem:[%s1623_s29 + $0x20] sm:$0xff] }
  0x1a   : > { %v1387_v35 = vld [vmem:[%s1623_s29 + $0x38] sm:$0xff]  ;;  %v1385_v37 = vld [vmem:[%s1623_s29 + $0x28] sm:$0xff]  ;;  %v1371_v38 = vld [vmem:[%s1623_s29 + $0xb0] sm:$0xff] }
  0x1b   : > { %409 = vmatpush.bf16.msra.mxu0 %v1376_v9  ;;  %1398 = vmatpush.bf16.msra.mxu3 %v1376_v9  ;;  %v1388_v39 = vld [vmem:[%s1623_s29 + $0x40] sm:$0xff]  ;;  %v1356_v40 = vld [vmem:[%s1623_s29 + $0x28] sm:$0xff]  ;;  %v1386_v41 = vld [vmem:[%s1623_s29 + $0x30] sm:$0xff] }
  0x1c   : > { %558 = vmatpush.bf16.msra.mxu1 %v1361_v10  ;;  %740 = vmatpush.bf16.msra.mxu2 %v1391_v11 }
  0x1f   : > { %410 = vmatpush.bf16.msra.mxu0 %v1375_v12  ;;  %1399 = vmatpush.bf16.msra.mxu3 %v1375_v12 }
  0x20   : > { %559 = vmatpush.bf16.msra.mxu1 %v1360_v13  ;;  %741 = vmatpush.bf16.msra.mxu2 %v1390_v14 }
  0x23   : > { %411 = vmatpush.bf16.msra.mxu0 %v1374_v15  ;;  %1400 = vmatpush.bf16.msra.mxu3 %v1374_v15 }
  0x24   : > { %560 = vmatpush.bf16.msra.mxu1 %v1359_v16  ;;  %742 = vmatpush.bf16.msra.mxu2 %v1389_v17 }
  0x26   : > { %1180 = vmatmul.msk.bf16.vlgmr.msra.gmra.mxu0 %vm379_vm0, %v1366_v18  ;;  %1186 = vmatmul.msk.bf16.vlgmr.msra.gmra.mxu3 %vm379_vm0, %v1372_v19 }
  0x27   : > { %1401 = vmatpush.bf16.msrb.mxu3 %v1364_v1  ;;  %1244 = vmatmul.msk.bf16.vlgmr.msra.gmra.mxu1 %vm379_vm0, %v1351_v20 }
  0x28   : > { %1338 = vmatmul.msk.bf16.vlgmr.msra.gmra.mxu2 %vm379_vm0, %v1381_v21 }
  0x2b   : > { %1402 = vmatpush.bf16.msrb.mxu3 %v1363_v4 }
  0x2f   : > { %1403 = vmatpush.bf16.msrb.mxu3 %v1362_v7 }
  0x33   : > { %1404 = vmatpush.bf16.msrb.mxu3 %v1361_v10 }
  0x36   : > { %1181 = vmatmul.msk.bf16.gmra.mxu0 %vm379_vm0, %v1367_v22  ;;  %1187 = vmatmul.msk.bf16.gmra.mxu3 %vm379_vm0, %v1373_v23 }
  0x37   : > { %1405 = vmatpush.bf16.msrb.mxu3 %v1360_v13  ;;  %1245 = vmatmul.msk.bf16.gmra.mxu1 %vm379_vm0, %v1352_v24 }
  0x38   : > { %1339 = vmatmul.msk.bf16.gmra.mxu2 %vm379_vm0, %v1382_v25 }
  0x3b   : > { %1406 = vmatpush.bf16.msrb.mxu3 %v1359_v16 }
  0x3f   : > { %1407 = vmatpush.bf16.msra.mxu3 %v1562_v2 }
  0x43   : > { %1408 = vmatpush.bf16.msra.mxu3 %v1393_v5 }
  0x46   : > { %1182 = vmatmul.msk.bf16.gmra.mxu0 %vm379_vm0, %v1368_v26  ;;  %1250 = vmatmul.msk.bf16.vlgmr.msrb.gmra.mxu3 %vm379_vm0, %v1357_v27 }
  0x47   : > { %1409 = vmatpush.bf16.msra.mxu3 %v1392_v8  ;;  %1246 = vmatmul.msk.bf16.gmra.mxu1 %vm379_vm0, %v1353_v28 }
  0x48   : > { %1340 = vmatmul.msk.bf16.gmra.mxu2 %vm379_vm0, %v1383_v29 }
  0x4b   : > { %1410 = vmatpush.bf16.msra.mxu3 %v1391_v11 }
  0x4f   : > { %1411 = vmatpush.bf16.msra.mxu3 %v1390_v14 }
  0x53   : > { %1412 = vmatpush.bf16.msra.mxu3 %v1389_v17 }
  0x56   : > { %1183 = vmatmul.msk.bf16.gmra.mxu0 %vm379_vm0, %v1369_v30  ;;  %1251 = vmatmul.msk.bf16.gmra.mxu3 %vm379_vm0, %v1358_v31 }
  0x57   : > { %1247 = vmatmul.msk.bf16.gmra.mxu1 %vm379_vm0, %v1354_v32 }
  0x58   : > { %1341 = vmatmul.msk.bf16.gmra.mxu2 %vm379_vm0, %v1384_v33 }
  0x66   : > { %1184 = vmatmul.msk.bf16.gmra.mxu0 %vm379_vm0, %v1370_v34  ;;  %1344 = vmatmul.msk.bf16.vlgmr.msra.gmra.mxu3 %vm379_vm0, %v1387_v35 }
  0x67   : > { %1248 = vmatmul.msk.bf16.gmra.mxu1 %vm379_vm0, %v1355_v36 }
  0x68   : > { %1342 = vmatmul.msk.bf16.gmra.mxu2 %vm379_vm0, %v1385_v37 }
  0x76   : > { %1185 = vmatmul.msk.bf16.gmra.mxu0 %vm379_vm0, %v1371_v38  ;;  %1345 = vmatmul.msk.bf16.gmra.mxu3 %vm379_vm0, %v1388_v39 }
  0x77   : > { %1249 = vmatmul.msk.bf16.gmra.mxu1 %vm379_vm0, %v1356_v40 }
  0x78   : > { %1343 = vmatmul.msk.bf16.gmra.mxu2 %vm379_vm0, %v1386_v41 }
  0xa3   : > { %v413_v42 = vpop.f32.mrf.mxu0 }
  0xa4   : > { %v562_v43 = vpop.f32.mrf.mxu1 }
  0xa5   : > { %v563_v44 = vadd.f32 %v562_v43, %v413_v42 }
  0xa9   : > { %v1682_v45 = vpop.f32.mrf.mxu3 }
  0xab   : > { %v744_v46 = vpop.f32.mrf.mxu2  ;;  %v415_v48 = vpop.f32.mrf.mxu0 }
  0xac   : > { %v1684_v47 = vadd.f32 %v744_v46, %v563_v44  ;;  %v564_v49 = vpop.f32.mrf.mxu1 }
  0xad   : > { %v565_v51 = vadd.f32 %v564_v49, %v415_v48 }
  0xae   : > { %v800_v50 = vpack.c.bf16 %v1684_v47, %v1684_v47 }
  0xb0   : > { %817 = vst.msk [vmem:[%s1689_s23] sm:$0xf] %vm816_vm1, %v800_v50 }
  0xb1   : > { %v1695_v52 = vpop.f32.mrf.mxu3 }
  0xb3   : > { %v746_v53 = vpop.f32.mrf.mxu2  ;;  %v418_v55 = vpop.f32.mrf.mxu0 }
  0xb4   : > { %v1697_v54 = vadd.f32 %v746_v53, %v565_v51  ;;  %v567_v56 = vpop.f32.mrf.mxu1 }
  0xb5   : > { %v568_v58 = vadd.f32 %v567_v56, %v418_v55 }
  0xb6   : > { %v801_v57 = vpack.c.bf16 %v1697_v54, %v1697_v54 }
  0xb8   : > { %818 = vst.msk [vmem:[%s1689_s23 + $0x4] sm:$0xf] %vm816_vm1, %v801_v57 }
  0xb9   : > { %v1703_v59 = vpop.f32.mrf.mxu3 }
  0xbb   : > { %v749_v60 = vpop.f32.mrf.mxu2  ;;  %v420_v62 = vpop.f32.mrf.mxu0 }
  0xbc   : > { %v1705_v61 = vadd.f32 %v749_v60, %v568_v58  ;;  %v569_v63 = vpop.f32.mrf.mxu1 }
  0xbd   : > { %v570_v1 = vadd.f32 %v569_v63, %v420_v62 }
  0xbe   : > { %v802_v0 = vpack.c.bf16 %v1705_v61, %v1705_v61 }
  0xc0   : > { %819 = vst.msk [vmem:[%s1689_s23 + $0x8] sm:$0xf] %vm816_vm1, %v802_v0 }
  0xc1   : > { %v1711_v2 = vpop.f32.mrf.mxu3 }
  0xc3   : > { %v751_v3 = vpop.f32.mrf.mxu2  ;;  %v423_v5 = vpop.f32.mrf.mxu0 }
  0xc4   : > { %v1713_v4 = vadd.f32 %v751_v3, %v570_v1  ;;  %v572_v6 = vpop.f32.mrf.mxu1 }
  0xc5   : > { %v573_v8 = vadd.f32 %v572_v6, %v423_v5 }
  0xc6   : > { %v803_v7 = vpack.c.bf16 %v1713_v4, %v1713_v4 }
  0xc8   : > { %820 = vst.msk [vmem:[%s1689_s23 + $0xc] sm:$0xf] %vm816_vm1, %v803_v7 }
  0xc9   : > { %v592_v9 = vpop.f32.mrf.mxu3 }
  0xca   : > { %v593_v37 = vadd.f32 %v592_v9, %v1682_v45 }
  0xcb   : > { %v754_v10 = vpop.f32.mrf.mxu2  ;;  %v425_v12 = vpop.f32.mrf.mxu0 }
  0xcc   : > { %v1719_v11 = vadd.f32 %v754_v10, %v573_v8  ;;  %v574_v13 = vpop.f32.mrf.mxu1 }
  0xcd   : > { %v575_v15 = vadd.f32 %v574_v13, %v425_v12 }
  0xce   : > { %v804_v14 = vpack.c.bf16 %v1719_v11, %v1719_v11 }
  0xd0   : > { %821 = vst.msk [vmem:[%s1689_s23 + $0x10] sm:$0xf] %vm816_vm1, %v804_v14 }
  0xd1   : > { %v594_v16 = vpop.f32.mrf.mxu3 }
  0xd2   : > { %v595_v45 = vadd.f32 %v594_v16, %v1695_v52 }
  0xd3   : > { %v756_v17 = vpop.f32.mrf.mxu2  ;;  %v428_v19 = vpop.f32.mrf.mxu0 }
  0xd4   : > { %v1725_v18 = vadd.f32 %v756_v17, %v575_v15  ;;  %v577_v20 = vpop.f32.mrf.mxu1 }
  0xd5   : > { %v578_v22 = vadd.f32 %v577_v20, %v428_v19 }
  0xd6   : > { %v805_v21 = vpack.c.bf16 %v1725_v18, %v1725_v18 }
  0xd8   : > { %822 = vst.msk [vmem:[%s1689_s23 + $0x14] sm:$0xf] %vm816_vm1, %v805_v21 }
  0xd9   : > { %v597_v23 = vpop.f32.mrf.mxu3 }
  0xda   : > { %v598_v60 = vadd.f32 %v597_v23, %v1703_v59 }
  0xdb   : > { %v759_v24 = vpop.f32.mrf.mxu2  ;;  %v430_v26 = vpop.f32.mrf.mxu0 }
  0xdc   : > { %v1731_v25 = vadd.f32 %v759_v24, %v578_v22  ;;  %v579_v27 = vpop.f32.mrf.mxu1 }
  0xdd   : > { %v580_v29 = vadd.f32 %v579_v27, %v430_v26 }
  0xde   : > { %v806_v28 = vpack.c.bf16 %v1731_v25, %v1731_v25 }
  0xe0   : > { %823 = vst.msk [vmem:[%s1689_s23 + $0x18] sm:$0xf] %vm816_vm1, %v806_v28 }
  0xe1   : > { %v599_v30 = vpop.f32.mrf.mxu3 }
  0xe2   : > { %v600_v59 = vadd.f32 %v599_v30, %v1711_v2 }
  0xe3   : > { %v761_v31 = vpop.f32.mrf.mxu2  ;;  %v433_v33 = vpop.f32.mrf.mxu0 }
  0xe4   : > { %v1737_v32 = vadd.f32 %v761_v31, %v580_v29  ;;  %v582_v34 = vpop.f32.mrf.mxu1 }
  0xe5   : > { %v583_v36 = vadd.f32 %v582_v34, %v433_v33 }
  0xe6   : > { %v807_v35 = vpack.c.bf16 %v1737_v32, %v1737_v32 }
  0xe8   : > { %824 = vst.msk [vmem:[%s1689_s23 + $0x1c] sm:$0xf] %vm816_vm1, %v807_v35 }
  0xe9   : > { %v774_v38 = vpop.f32.mrf.mxu3 }
  0xea   : > { %v1744_v40 = vadd.f32 %v774_v38, %v593_v37 }
  0xeb   : > { %v764_v39 = vpop.f32.mrf.mxu2  ;;  %v435_v42 = vpop.f32.mrf.mxu0 }
  0xec   : > { %v1746_v41 = vadd.f32 %v764_v39, %v583_v36  ;;  %v812_v43 = vpack.c.bf16 %v1744_v40, %v1744_v40  ;;  %v584_v44 = vpop.f32.mrf.mxu1 }
  0xed   : > { %v585_v48 = vadd.f32 %v584_v44, %v435_v42 }
  0xee   : > { %v808_v46 = vpack.c.bf16 %v1746_v41, %v1746_v41  ;;  %829 = vst.msk [vmem:[%s1689_s23 + $0x30] sm:$0xf] %vm816_vm1, %v812_v43 }
  0xf0   : > { %825 = vst.msk [vmem:[%s1689_s23 + $0x20] sm:$0xf] %vm816_vm1, %v808_v46 }
  0xf1   : > { %v776_v49 = vpop.f32.mrf.mxu3 }
  0xf2   : > { %v1757_v51 = vadd.f32 %v776_v49, %v595_v45 }
  0xf3   : > { %v766_v50 = vpop.f32.mrf.mxu2  ;;  %v438_v56 = vpop.f32.mrf.mxu0 }
  0xf4   : > { %v1759_v53 = vadd.f32 %v766_v50, %v585_v48  ;;  %v813_v55 = vpack.c.bf16 %v1757_v51, %v1757_v51  ;;  %v587_v57 = vpop.f32.mrf.mxu1 }
  0xf5   : > { %v588_v52 = vadd.f32 %v587_v57, %v438_v56 }
  0xf6   : > { %v809_v58 = vpack.c.bf16 %v1759_v53, %v1759_v53  ;;  %830 = vst.msk [vmem:[%s1689_s23 + $0x34] sm:$0xf] %vm816_vm1, %v813_v55 }
  0xf8   : > { %826 = vst.msk [vmem:[%s1689_s23 + $0x24] sm:$0xf] %vm816_vm1, %v809_v58 }
  0xf9   : > { %v779_v62 = vpop.f32.mrf.mxu3 }
  0xfa   : > { %v1770_v0 = vadd.f32 %v779_v62, %v598_v60 }
  0xfb   : > { %v769_v63 = vpop.f32.mrf.mxu2  ;;  %v440_v6 = vpop.f32.mrf.mxu0 }
  0xfc   : > { %v1772_v1 = vadd.f32 %v769_v63, %v588_v52  ;;  %v814_v3 = vpack.c.bf16 %v1770_v0, %v1770_v0  ;;  %v589_v7 = vpop.f32.mrf.mxu1 }
  0xfd   : > { %v590_v8 = vadd.f32 %v589_v7, %v440_v6 }
  0xfe   : > { %v810_v5 = vpack.c.bf16 %v1772_v1, %v1772_v1  ;;  %831 = vst.msk [vmem:[%s1689_s23 + $0x38] sm:$0xf] %vm816_vm1, %v814_v3 }
 0x100   : > { %827 = vst.msk [vmem:[%s1689_s23 + $0x28] sm:$0xf] %vm816_vm1, %v810_v5 }
 0x101   : > { %v781_v9 = vpop.f32.mrf.mxu3 }
 0x102   : > { %v1783_v12 = vadd.f32 %v781_v9, %v600_v59 }
 0x103   : > { %v771_v10 = vpop.f32.mrf.mxu2 }
 0x104   : > { %v1785_v13 = vadd.f32 %v771_v10, %v590_v8  ;;  %v815_v14 = vpack.c.bf16 %v1783_v12, %v1783_v12  ;;  %836 = sbr.rel (%p1346_p7) target bundleno = 268 (0x10c), region = 32 }
 0x106   : > { %v811_v15 = vpack.c.bf16 %v1785_v13, %v1785_v13  ;;  %832 = vst.msk [vmem:[%s1689_s23 + $0x3c] sm:$0xf] %vm816_vm1, %v815_v14 }
 0x108   : > { %828 = vst.msk [vmem:[%s1689_s23 + $0x2c] sm:$0xf] %vm816_vm1, %v811_v15 }
 0x109   : > { %vm837_vm2 = vcmask 516096   ;;  %v1495_v2 = vmov 0.0  }
 0x10a   : > { %838 = vst.msk [vmem:[%s1580_s10] sm:$0x1] %vm837_vm2, %v1495_v2 }
 0x10b   : > { %839 = vst.msk [vmem:[%s1586_s13] sm:$0x1] %vm837_vm2, %v1495_v2 }
 0x10c PF: > { %vm841_vm3 = vcmask 523264   ;;  %v883_v24 = vmul.f32 %v1684_v47, %v1684_v47  ;;  %v884_v26 = vmul.f32 %v1697_v54, %v1697_v54  ;;  %v885_v27 = vmul.f32 %v1705_v61, %v1705_v61 }
 0x10d   : > { %v842_v16 = vsel %vm841_vm3, %v1684_v47, 0.0  ;;  %v843_v17 = vsel %vm841_vm3, %v1697_v54, 0.0  ;;  %v845_v19 = vsel %vm841_vm3, %v1705_v61, 0.0  ;;  %v847_v21 = vsel %vm841_vm3, %v1713_v4, 0.0 }
 0x10e   : > { %v844_v20 = vadd.f32 %v843_v17, %v842_v16  ;;  %v849_v23 = vsel %vm841_vm3, %v1719_v11, 0.0  ;;  %v851_v29 = vsel %vm841_vm3, %v1725_v18, 0.0  ;;  %v886_v30 = vmul.f32 %v1713_v4, %v1713_v4 }
 0x10f   : > { %v853_v33 = vsel %vm841_vm3, %v1731_v25, 0.0  ;;  %v887_v47 = vmul.f32 %v1719_v11, %v1719_v11  ;;  %v899_v34 = vsel %vm841_vm3, %v883_v24, 0.0  ;;  %v900_v54 = vsel %vm841_vm3, %v884_v26, 0.0 }
 0x110   : > { %v846_v22 = vadd.f32 %v845_v19, %v844_v20  ;;  %v902_v61 = vsel %vm841_vm3, %v885_v27, 0.0  ;;  %v901_v36 = vadd.f32 %v900_v54, %v899_v34  ;;  %v855_v37 = vsel %vm841_vm3, %v1737_v32, 0.0 }
 0x111   : > { %v888_v4 = vmul.f32 %v1725_v18, %v1725_v18  ;;  %v904_v38 = vsel %vm841_vm3, %v886_v30, 0.0  ;;  %v857_v11 = vsel %vm841_vm3, %v1746_v41, 0.0  ;;  %v889_v43 = vmul.f32 %v1731_v25, %v1731_v25 }
 0x112   : > { %v848_v28 = vadd.f32 %v847_v21, %v846_v22  ;;  %v903_v42 = vadd.f32 %v902_v61, %v901_v36  ;;  %v906_v44 = vsel %vm841_vm3, %v887_v47, 0.0  ;;  %v859_v48 = vsel %vm841_vm3, %v1759_v53, 0.0 }
 0x113   : > { %v890_v18 = vmul.f32 %v1737_v32, %v1737_v32  ;;  %v908_v49 = vsel %vm841_vm3, %v888_v4, 0.0  ;;  %v861_v56 = vsel %vm841_vm3, %v1772_v1, 0.0  ;;  %v891_v25 = vmul.f32 %v1746_v41, %v1746_v41 }
 0x114   : > { %v850_v31 = vadd.f32 %v849_v23, %v848_v28  ;;  %v905_v45 = vadd.f32 %v904_v38, %v903_v42  ;;  %v910_v57 = vsel %vm841_vm3, %v889_v43, 0.0  ;;  %v863_v60 = vsel %vm841_vm3, %v1785_v13, 0.0  ;;  %v882_v43 = vld [vmem:[%s1586_s13] sm:$0x1] }
 0x115   : > { %v892_v32 = vmul.f32 %v1759_v53, %v1759_v53  ;;  %v912_v62 = vsel %vm841_vm3, %v890_v18, 0.0  ;;  %v865_v5 = vsel %vm841_vm3, %v1744_v40, 0.0  ;;  %v893_v41 = vmul.f32 %v1772_v1, %v1772_v1 }
 0x116   : > { %v852_v35 = vadd.f32 %v851_v29, %v850_v31  ;;  %v907_v55 = vadd.f32 %v906_v44, %v905_v45  ;;  %v914_v6 = vsel %vm841_vm3, %v891_v25, 0.0  ;;  %v867_v8 = vsel %vm841_vm3, %v1757_v51, 0.0 }
 0x117   : > { %v894_v53 = vmul.f32 %v1785_v13, %v1785_v13  ;;  %v916_v9 = vsel %vm841_vm3, %v892_v32, 0.0  ;;  %v869_v15 = vsel %vm841_vm3, %v1770_v0, 0.0  ;;  %v895_v1 = vmul.f32 %v1744_v40, %v1744_v40 }
 0x118   : > { %v854_v39 = vadd.f32 %v853_v33, %v852_v35  ;;  %v909_v52 = vadd.f32 %v908_v49, %v907_v55  ;;  %v918_v2 = vsel %vm841_vm3, %v893_v41, 0.0  ;;  %v871_v19 = vsel %vm841_vm3, %v1783_v12, 0.0 }
 0x119   : > { %v896_v13 = vmul.f32 %v1757_v51, %v1757_v51  ;;  %v920_v20 = vsel %vm841_vm3, %v894_v53, 0.0  ;;  %v897_v23 = vmul.f32 %v1770_v0, %v1770_v0  ;;  %v922_v24 = vsel %vm841_vm3, %v895_v1, 0.0 }
 0x11a   : > { %v856_v46 = vadd.f32 %v855_v37, %v854_v39  ;;  %v911_v3 = vadd.f32 %v910_v57, %v909_v52  ;;  %v898_v27 = vmul.f32 %v1783_v12, %v1783_v12  ;;  %v840_v12 = vld [vmem:[%s1580_s10] sm:$0x1]  ;;  %vm880_vm4 = vcmask 516096  }
 0x11b   : > { %v924_v28 = vsel %vm841_vm3, %v896_v13, 0.0  ;;  %v926_v51 = vsel %vm841_vm3, %v897_v23, 0.0 }
 0x11c   : > { %v858_v50 = vadd.f32 %v857_v11, %v856_v46  ;;  %v913_v59 = vadd.f32 %v912_v62, %v911_v3  ;;  %v928_v47 = vsel %vm841_vm3, %v898_v27, 0.0 }
 0x11e   : > { %v860_v58 = vadd.f32 %v859_v48, %v858_v50  ;;  %v915_v14 = vadd.f32 %v914_v6, %v913_v59 }
 0x120   : > { %v862_v63 = vadd.f32 %v861_v56, %v860_v58  ;;  %v917_v17 = vadd.f32 %v916_v9, %v915_v14 }
 0x122   : > { %v864_v7 = vadd.f32 %v863_v60, %v862_v63  ;;  %v919_v22 = vadd.f32 %v918_v2, %v917_v17 }
 0x124   : > { %v866_v10 = vadd.f32 %v865_v5, %v864_v7  ;;  %v921_v26 = vadd.f32 %v920_v20, %v919_v22 }
 0x126   : > { %v868_v16 = vadd.f32 %v867_v8, %v866_v10  ;;  %v923_v30 = vadd.f32 %v922_v24, %v921_v26 }
 0x128   : > { %v870_v21 = vadd.f32 %v869_v15, %v868_v16  ;;  %v925_v33 = vadd.f32 %v924_v28, %v923_v30 }
 0x12a   : > { %v872_v40 = vadd.f32 %v871_v19, %v870_v21  ;;  %v927_v34 = vadd.f32 %v926_v51, %v925_v33 }
 0x12c   : > { %v873_v29 = vrot.slane %v872_v40, 4  ;;  %v929_v61 = vadd.f32 %v928_v47, %v927_v34 }
 0x12e   : > { %v874_v31 = vadd.f32 %v873_v29, %v872_v40  ;;  %v930_v36 = vrot.slane %v929_v61, 4 }
 0x130   : > { %v875_v0 = vrot.slane %v874_v31, 2  ;;  %v931_v4 = vadd.f32 %v930_v36, %v929_v61 }
 0x132   : > { %v876_v54 = vadd.f32 %v875_v0, %v874_v31  ;;  %v932_v39 = vrot.slane %v931_v4, 2 }
 0x134   : > { %v877_v35 = vrot.slane %v876_v54, 1  ;;  %v933_v42 = vadd.f32 %v932_v39, %v931_v4 }
 0x136   : > { %v878_v37 = vadd.f32 %v877_v35, %v876_v54  ;;  %v934_v11 = vrot.slane %v933_v42, 1 }
 0x138   : > { %v879_v38 = vadd.f32 %v878_v37, %v840_v12  ;;  %v935_v44 = vadd.f32 %v934_v11, %v933_v42 }
 0x13a   : > { %881 = vst.msk [vmem:[%s1580_s10] sm:$0x1] %vm880_vm4, %v879_v38  ;;  %v936_v46 = vadd.f32 %v935_v44, %v882_v43 }
 0x13c   : > { %937 = vst.msk [vmem:[%s1586_s13] sm:$0x1] %vm880_vm4, %v936_v46 }
 0x13d PF: > { %s15_s19 = sadd.s32 1, %s1493_s19   ;;  %s1902_s15 = smov %s1485_s17 }
 0x13e   : > { %p12_p8 = scmp.ge.s32.totalorder %s15_s19, 6   ;;  %s1903_s16 = smov %s1489_s18 }
 0x13f   : > { %s1904_s17 = smov %s1907_s20  ;;  %s1905_s18 = smov %s1911_s21 }
 0x140   :  { %14 = sbr.rel (!%p12_p8) target bundleno = 3 (0x3), region = 91 }

// kernel: _lambda_.12
= control target key start
LH: loop header
LB: loop body
LE: loop exit
PB: predicated region body
PF: predicated region fallthrough
CT: control target
= control target key end

     0   :  { %s2485_s21 = smov 0   ;;  %s2487_s22 = smov 0   ;;  %s3130_s0 = inlined_call_operand.vmem [shape: bf16[2,1,18,16,192], index: 0, kind: input, shape index: {}]   ;;  %s3131_s1 = inlined_call_operand.vmem [shape: bf16[3,192,64], index: 1, kind: input, shape index: {}]   ;;  %s3132_s2 = inlined_call_operand.vmem [shape: bf16[2,256,32], index: 2, kind: input, shape index: {}]   ;;  %s3133_s3 = inlined_call_operand.vmem [shape: bf16[32,64], index: 3, kind: input, shape index: {}]   ;;  %s3134_s4 = inlined_call_operand.vmem [shape: bf16[2,256,64], index: 4, kind: output, shape index: {0}]   ;;  %s3135_s5 = inlined_call_operand.vmem [shape: f32[2,1,64], index: 5, kind: output, shape index: {1}]   ;;  %s3136_s6 = inlined_call_operand.vmem [shape: f32[2,1,64], index: 6, kind: output, shape index: {2}]  }
   0x1   :  { %s2489_s23 = smov 0   ;;  %s2491_s24 = smov 0  }
   0x2   :  { %s2493_s25 = smov 0  }
   0x3 LB: > { %s26_s26 = sadd.s32 1, %s2439_s23  ;;  %s29_s27 = sadd.s32 1, %s2443_s24  ;;  %s2447_s25 = sphi %s2493_s25, %s17_s25   ;;  %s2443_s24 = sphi %s2491_s24, %s3140_s24   ;;  %s2439_s23 = sphi %s2489_s23, %s3139_s23   ;;  %s2435_s22 = sphi %s2487_s22, %s3138_s22   ;;  %s2431_s21 = sphi %s2485_s21, %s3137_s21  }
   0x4   : > { %p27_p0 = scmp.ge.s32.totalorder %s26_s26, 2  ;;  %p1743_p1 = scmp.ge.s32.totalorder %s2447_s25, 1 }
   0x5   : > { %p248_p2 = scmp.lt.s32.totalorder %s2447_s25, 5 }
   0x6   : > { %s3142_s26 = smov (%p27_p0, %s26_s26), 0  ;;  %s3144_s27 = smov (!%p27_p0, %s29_s27), %s2443_s24 }
   0x7   : > { %p249_p3 = pnand %p1743_p1, %p248_p2  ;;  %p31_p4 = scmp.ge.s32.totalorder %s3144_s27, 2 }
   0x8   : > { %p297_p5 = scmp.lt.s32.totalorder (!%p249_p3), %s2435_s22, 1  ;;  %s2250_s16 = sshll.u32 (!%p249_p3), %s2431_s21, 7 }
   0x9   : > { %s3146_s27 = smov (%p31_p4, %s3144_s27), 0  ;;  %252 = sbr.rel (%p249_p3) target bundleno = 457 (0x1c9), region = 36 }
   0xa   : > { %p2246_p7 = scmp.ne.s32.totalorder (!%p249_p3), %s2431_s21, 0 }
   0xe   : > { %v2303_v0 = vld [vmem:[%s3131_s1 + $0x98] sm:$0xff]  ;;  %v2302_v3 = vld [vmem:[%s3131_s1 + $0x90] sm:$0xff]  ;;  %s3148_s22 = smov (!%p297_p5, %s2435_s22), 1  ;;  %v2301_v6 = vld [vmem:[%s3131_s1 + $0x88] sm:$0xff]  ;;  %vm562_vm0 = vcmask 523264   ;;  %vm1350_vm1 = vcmask 261120  }
   0xf   : > { %v2307_v1 = vld [vmem:[%s3131_s1 + $0xb8] sm:$0xff]  ;;  %587 = vmatpush.bf16.msra.mxu0 %v2303_v0  ;;  %2347 = vmatpush.bf16.msra.mxu2 %v2303_v0  ;;  %v2306_v4 = vld [vmem:[%s3131_s1 + $0xb0] sm:$0xff]  ;;  %s2367_s17 = smul.u32 288, %s3148_s22  ;;  %s2543_s20 = scalar_lea.vmem %s3135_s5, %s3148_s22  ;;  %v2305_v7 = vld [vmem:[%s3131_s1 + $0xa8] sm:$0xff]  ;;  %vm1456_vm2 = vcmask 519168  }
  0x10   : > { %v2278_v2 = vld [vmem:[%s3131_s1 + $0x58] sm:$0xff]  ;;  %640 = vmatpush.bf16.msra.mxu1 %v2307_v1  ;;  %v2277_v5 = vld [vmem:[%s3131_s1 + $0x50] sm:$0xff]  ;;  %s2549_s30 = scalar_lea.vmem %s3136_s6, %s3148_s22  ;;  %v2276_v8 = vld [vmem:[%s3131_s1 + $0x48] sm:$0xff]  ;;  %s1746_s29 = sshll.u32 %s3148_s22, 5 }
  0x11   : > { %906 = vmatpush.bf16.msra.mxu3 %v2278_v2  ;;  %s301_s11 = scalar_lea.vmem %s3130_s0, %s2367_s17  ;;  %v2300_v9 = vld [vmem:[%s3131_s1 + $0x80] sm:$0xff]  ;;  %v2581_v16 = vld [vmem:[%s3131_s1 + $0x118] sm:$0xff]  ;;  %v2596_v21 = vld [vmem:[%s3131_s1 + $0xf0] sm:$0xff]  ;;  %s1745_s17 = sshll.u32 %s2431_s21, 4 }
  0x12   : > { %s2563_s18 = scalar_lea.vmem %s301_s11, %s2250_s16  ;;  %v2304_v10 = vld [vmem:[%s3131_s1 + $0xa0] sm:$0xff]  ;;  %v2586_v17 = vld [vmem:[%s3131_s1 + $0xf8] sm:$0xff]  ;;  %v2298_v22 = vld [vmem:[%s3131_s1 + $0x70] sm:$0xff]  ;;  %p305_p6 = scmp.lt.s32.totalorder %s1745_s17, 31 }
  0x13   : > { %588 = vmatpush.bf16.msra.mxu0 %v2302_v3  ;;  %2348 = vmatpush.bf16.msra.mxu2 %v2302_v3  ;;  %v2275_v11 = vld [vmem:[%s3131_s1 + $0x40] sm:$0xff]  ;;  %v2280_v12 = vld [vmem:[%s2563_s18 + $0x14] sm:$0xf]  ;;  %v1800_v13 = vld [vmem:[%s2563_s18 + $0x18] sm:$0xf0] }
  0x14   : > { %641 = vmatpush.bf16.msra.mxu1 %v2306_v4  ;;  %v2251_v14 = vld [vmem:[%s2563_s18 + $0x4] sm:$0xf]  ;;  %v1920_v15 = vld [vmem:[%s2563_s18 + $0x8] sm:$0xf0]  ;;  %v1803_v18 = vor.u32 %v2280_v12, %v1800_v13  ;;  %v2299_v20 = vld [vmem:[%s3131_s1 + $0x78] sm:$0xff]  ;;  %s3150_s17 = smov (!%p305_p6, %s1745_s17), 31 }
  0x15   : > { %907 = vmatpush.bf16.msra.mxu3 %v2277_v5  ;;  %v1923_v19 = vor.u32 %v2251_v14, %v1920_v15  ;;  %v2606_v23 = vld [vmem:[%s3131_s1 + $0x110] sm:$0xff]  ;;  %v2612_v24 = vld [vmem:[%s3131_s1 + $0xe8] sm:$0xff]  ;;  %v2296_v26 = vld [vmem:[%s3131_s1 + $0x60] sm:$0xff]  ;;  %s2744_s7 = sadd.s32 %s1746_s29, %s3150_s17 }
  0x16   : > { %v2297_v25 = vld [vmem:[%s3131_s1 + $0x68] sm:$0xff]  ;;  %v1798_v27 = vld [vmem:[%s2563_s18 + $0x10] sm:$0xf]  ;;  %v2281_v28 = vld [vmem:[%s2563_s18 + $0x14] sm:$0xf0]  ;;  %s1747_s8 = sshll.u32 %s2744_s7, 2 }
  0x17   : > { %589 = vmatpush.bf16.msra.mxu0 %v2301_v6  ;;  %2349 = vmatpush.bf16.msra.mxu2 %v2301_v6  ;;  %v1846_v29 = vld [vmem:[%s2563_s18 + $0x70] sm:$0xf]  ;;  %v2274_v30 = vld [vmem:[%s3131_s1 + $0x38] sm:$0xff]  ;;  %v2282_v32 = vld [vmem:[%s2563_s18 + $0x24] sm:$0xf]  ;;  %v1799_v37 = vor.u32 %v2281_v28, %v1798_v27  ;;  %s2755_s22 = scalar_lea.vmem %s3132_s2, %s1747_s8  ;;  %s2902_s11 = scalar_lea.vmem %s3134_s4, %s1747_s8 }
  0x18   : > { %642 = vmatpush.bf16.msra.mxu1 %v2305_v7  ;;  %v2293_v31 = vld [vmem:[%s2563_s18 + $0x74] sm:$0xf0]  ;;  %v1808_v33 = vld [vmem:[%s2563_s18 + $0x28] sm:$0xf0]  ;;  %v2253_v34 = vld [vmem:[%s2563_s18 + $0x14] sm:$0xf] }
  0x19   : > { %908 = vmatpush.bf16.msra.mxu3 %v2276_v8  ;;  %v1928_v35 = vld [vmem:[%s2563_s18 + $0x18] sm:$0xf0]  ;;  %v2346_v36 = vld [vmem:[%s3133_s3 + $0x8] sm:$0xff]  ;;  %v1847_v38 = vor.u32 %v2293_v31, %v1846_v29  ;;  %v1811_v39 = vor.u32 %v2282_v32, %v1808_v33  ;;  %v2273_v41 = vld [vmem:[%s3131_s1 + $0x30] sm:$0xff] }
  0x1a   : > { %v1931_v40 = vor.u32 %v2253_v34, %v1928_v35  ;;  %v2329_v42 = vld [vmem:[%s3131_s1 + $0xe0] sm:$0xff]  ;;  %v2272_v43 = vld [vmem:[%s3131_s1 + $0x28] sm:$0xff]  ;;  %v2284_v49 = vld [vmem:[%s2563_s18 + $0x34] sm:$0xf] }
  0x1b   : > { %590 = vmatpush.bf16.msra.mxu0 %v2300_v9  ;;  %2350 = vmatpush.bf16.msra.mxu2 %v2300_v9  ;;  %v2271_v44 = vld [vmem:[%s3131_s1 + $0x20] sm:$0xff]  ;;  %v2283_v46 = vld [vmem:[%s2563_s18 + $0x24] sm:$0xf0]  ;;  %v1816_v50 = vld [vmem:[%s2563_s18 + $0x38] sm:$0xf0] }
  0x1c   : > { %643 = vmatpush.bf16.msra.mxu1 %v2304_v10  ;;  %v1806_v45 = vld [vmem:[%s2563_s18 + $0x20] sm:$0xf]  ;;  %v2295_v48 = vld [vmem:[%s2563_s18 + $0x84] sm:$0xf0]  ;;  %v2255_v51 = vld [vmem:[%s2563_s18 + $0x24] sm:$0xf]  ;;  %v1819_v56 = vor.u32 %v2284_v49, %v1816_v50 }
  0x1d   : > { %909 = vmatpush.bf16.msra.mxu3 %v2275_v11  ;;  %v1854_v47 = vld [vmem:[%s2563_s18 + $0x80] sm:$0xf]  ;;  %v1936_v52 = vld [vmem:[%s2563_s18 + $0x28] sm:$0xf0]  ;;  %v2270_v53 = vld [vmem:[%s3131_s1 + $0x18] sm:$0xff]  ;;  %v1807_v54 = vor.u32 %v2283_v46, %v1806_v45 }
  0x1e   : > { %v1855_v55 = vor.u32 %v2295_v48, %v1854_v47  ;;  %v1939_v57 = vor.u32 %v2255_v51, %v1936_v52  ;;  %v2269_v58 = vld [vmem:[%s3131_s1 + $0x10] sm:$0xff]  ;;  %v2669_v59 = vld [vmem:[%s3131_s1 + $0x108] sm:$0xff]  ;;  %v2328_v60 = vld [vmem:[%s3131_s1 + $0xd8] sm:$0xff] }
  0x1f   : > { %1908 = vmatmul.msk.bf16.vlgmr.msra.gmra.mxu1 %vm562_vm0, %v1803_v18  ;;  %591 = vmatpush.bf16.msra.mxu0 %v2299_v20  ;;  %v2345_v61 = vld [vmem:[%s3133_s3] sm:$0xff]  ;;  %v2268_v62 = vld [vmem:[%s3131_s1 + $0x8] sm:$0xff]  ;;  %v1814_v0 = vld [vmem:[%s2563_s18 + $0x30] sm:$0xf] }
  0x20   : > { %1164 = vmatpush.bf16.msrb.mxu1 %v2586_v17  ;;  %2028 = vmatmul.msk.bf16.vlgmr.msra.gmra.mxu3 %vm562_vm0, %v1923_v19  ;;  %v2267_v63 = vld [vmem:[%s3131_s1] sm:$0xff]  ;;  %v2285_v1 = vld [vmem:[%s2563_s18 + $0x34] sm:$0xf0]  ;;  %v2252_v4 = vld [vmem:[%s2563_s18 + $0x4] sm:$0xf0] }
  0x21   : > { %2363 = vmatpush.bf16.msrb.mxu3 %v2581_v16  ;;  %2351 = vmatpush.bf16.msra.mxu2 %v2299_v20  ;;  %v2286_v2 = vld [vmem:[%s2563_s18 + $0x44] sm:$0xf]  ;;  %v1918_v3 = vld [vmem:[%s2563_s18] sm:$0xf]  ;;  %v1824_v5 = vld [vmem:[%s2563_s18 + $0x48] sm:$0xf0]  ;;  %v1815_v8 = vor.u32 %v2285_v1, %v1814_v0 }
  0x22   : > { %v2257_v6 = vld [vmem:[%s2563_s18 + $0x34] sm:$0xf]  ;;  %v1944_v7 = vld [vmem:[%s2563_s18 + $0x38] sm:$0xf0]  ;;  %v1919_v9 = vor.u32 %v2252_v4, %v1918_v3  ;;  %v1827_v10 = vor.u32 %v2286_v2, %v1824_v5  ;;  %v1822_v13 = vld [vmem:[%s2563_s18 + $0x40] sm:$0xf] }
  0x23   : > { %592 = vmatpush.bf16.msra.mxu0 %v2298_v22  ;;  %v1947_v11 = vor.u32 %v2257_v6, %v1944_v7  ;;  %v2327_v12 = vld [vmem:[%s3131_s1 + $0xd0] sm:$0xff]  ;;  %v2287_v14 = vld [vmem:[%s2563_s18 + $0x44] sm:$0xf0]  ;;  %v2254_v18 = vld [vmem:[%s2563_s18 + $0x14] sm:$0xf0] }
  0x24   : > { %1165 = vmatpush.bf16.msrb.mxu1 %v2596_v21  ;;  %v2288_v15 = vld [vmem:[%s2563_s18 + $0x54] sm:$0xf]  ;;  %v1832_v19 = vld [vmem:[%s2563_s18 + $0x58] sm:$0xf0]  ;;  %v2259_v20 = vld [vmem:[%s2563_s18 + $0x44] sm:$0xf] }
  0x25   : > { %2364 = vmatpush.bf16.msrb.mxu3 %v2606_v23  ;;  %2352 = vmatpush.bf16.msra.mxu2 %v2298_v22  ;;  %v1823_v22 = vor.u32 %v2287_v14, %v1822_v13  ;;  %v2326_v28 = vld [vmem:[%s3131_s1 + $0xc8] sm:$0xff]  ;;  %v1830_v29 = vld [vmem:[%s2563_s18 + $0x50] sm:$0xf]  ;;  %v2290_v31 = vld [vmem:[%s2563_s18 + $0x64] sm:$0xf] }
  0x26   : > { %v1934_v32 = vld [vmem:[%s2563_s18 + $0x20] sm:$0xf]  ;;  %v2256_v33 = vld [vmem:[%s2563_s18 + $0x24] sm:$0xf0]  ;;  %v1840_v34 = vld [vmem:[%s2563_s18 + $0x68] sm:$0xf0] }
  0x27   : > { %593 = vmatpush.bf16.msra.mxu0 %v2297_v25  ;;  %v2261_v35 = vld [vmem:[%s2563_s18 + $0x54] sm:$0xf]  ;;  %v1942_v45 = vld [vmem:[%s2563_s18 + $0x30] sm:$0xf]  ;;  %v2258_v46 = vld [vmem:[%s2563_s18 + $0x34] sm:$0xf0] }
  0x28   : > { %1166 = vmatpush.bf16.msrb.mxu1 %v2612_v24  ;;  %v1848_v47 = vld [vmem:[%s2563_s18 + $0x78] sm:$0xf0]  ;;  %v2263_v48 = vld [vmem:[%s2563_s18 + $0x64] sm:$0xf]  ;;  %v1968_v49 = vld [vmem:[%s2563_s18 + $0x68] sm:$0xf0]  ;;  %v1943_v51 = vor.u32 %v2258_v46, %v1942_v45 }
  0x29   : > { %2353 = vmatpush.bf16.msra.mxu2 %v2297_v25  ;;  %2365 = vmatpush.bf16.msrb.mxu3 %v2669_v59  ;;  %v1971_v52 = vor.u32 %v2263_v48, %v1968_v49  ;;  %v2080_v0 = vld [vmem:[%s2563_s18 + $0x20] sm:$0xf]  ;;  %v2310_v1 = vld [vmem:[%s2563_s18 + $0x24] sm:$0xf0]  ;;  %v2311_v2 = vld [vmem:[%s2563_s18 + $0x34] sm:$0xf] }
  0x2a   : > { %v2090_v3 = vld [vmem:[%s2563_s18 + $0x38] sm:$0xf0]  ;;  %v2338_v5 = vld [vmem:[%s2755_s22 + $0x8] sm:$0xff]  ;;  %v2081_v7 = vor.u32 %v2310_v1, %v2080_v0  ;;  %v2088_v13 = vld [vmem:[%s2563_s18 + $0x30] sm:$0xf] }
  0x2b   : > { %594 = vmatpush.bf16.msra.mxu0 %v2296_v26  ;;  %v2312_v14 = vld [vmem:[%s2563_s18 + $0x34] sm:$0xf0] }
  0x2c   : > { %1167 = vmatpush.bf16.msrb.mxu1 %v2329_v42 }
  0x2d   : > { %2354 = vmatpush.bf16.msra.mxu2 %v2296_v26  ;;  %v1835_v26 = vor.u32 %v2288_v15, %v1832_v19  ;;  %v2313_v15 = vld [vmem:[%s2563_s18 + $0x44] sm:$0xf] }
  0x2e   : > { %595 = vmatmul.bf16.vlgmr.msra.gmra.mxu0 %v1799_v37 }
  0x2f   : > { %1381 = vmatpush.bf16.msrb.mxu0 %v2346_v36  ;;  %1909 = vmatmul.msk.bf16.gmra.mxu1 %vm562_vm0, %v1811_v39  ;;  %v1960_v36 = vld [vmem:[%s2563_s18 + $0x58] sm:$0xf0]  ;;  %v1843_v39 = vor.u32 %v2290_v31, %v1840_v34  ;;  %v2096_v34 = vld [vmem:[%s2563_s18 + $0x40] sm:$0xf] }
  0x30   : > { %625 = vmatmul.bf16.vlgmr.msra.gmra.mxu2 %v1847_v38  ;;  %2029 = vmatmul.msk.bf16.gmra.mxu3 %vm562_vm0, %v1931_v40  ;;  %v1935_v38 = vor.u32 %v2256_v33, %v1934_v32  ;;  %v1963_v40 = vor.u32 %v2261_v35, %v1960_v36  ;;  %v1974_v32 = vld [vmem:[%s2563_s18 + $0x70] sm:$0xf]  ;;  %v2266_v33 = vld [vmem:[%s2563_s18 + $0x74] sm:$0xf0]  ;;  %v2314_v35 = vld [vmem:[%s2563_s18 + $0x44] sm:$0xf0] }
  0x31   : > { %853 = vmatpush.bf16.msrb.mxu2 %v2274_v30  ;;  %1168 = vmatpush.bf16.msrb.mxu1 %v2328_v60  ;;  %v2289_v30 = vld [vmem:[%s2563_s18 + $0x54] sm:$0xf0]  ;;  %v2315_v36 = vld [vmem:[%s2563_s18 + $0x54] sm:$0xf] }
  0x32   : > { %v1831_v37 = vor.u32 %v2289_v30, %v1830_v29 }
  0x33   : > { %1382 = vmatpush.bf16.msrb.mxu0 %v2345_v61 }
  0x35   : > { %854 = vmatpush.bf16.msrb.mxu2 %v2273_v41  ;;  %1169 = vmatpush.bf16.msrb.mxu1 %v2327_v12  ;;  %v2325_v41 = vld [vmem:[%s3131_s1 + $0xc0] sm:$0xff] }
  0x39   : > { %855 = vmatpush.bf16.msrb.mxu2 %v2272_v43  ;;  %1170 = vmatpush.bf16.msrb.mxu1 %v2326_v28  ;;  %v2291_v43 = vld [vmem:[%s2563_s18 + $0x64] sm:$0xf0] }
  0x3d   : > { %856 = vmatpush.bf16.msrb.mxu2 %v2271_v44  ;;  %1171 = vmatpush.bf16.msrb.mxu1 %v2325_v41  ;;  %v2292_v44 = vld [vmem:[%s2563_s18 + $0x74] sm:$0xf] }
  0x3e   : > { %600 = vmatmul.bf16.gmra.mxu0 %v1807_v54  ;;  %v2260_v54 = vld [vmem:[%s2563_s18 + $0x44] sm:$0xf0] }
  0x3f   : > { %1910 = vmatmul.msk.bf16.gmra.mxu1 %vm562_vm0, %v1819_v56  ;;  %v2265_v56 = vld [vmem:[%s2563_s18 + $0x74] sm:$0xf] }
  0x40   : > { %630 = vmatmul.bf16.gmra.mxu2 %v1855_v55  ;;  %2030 = vmatmul.msk.bf16.gmra.mxu3 %vm562_vm0, %v1939_v57  ;;  %v1856_v55 = vld [vmem:[%s2563_s18 + $0x88] sm:$0xf0]  ;;  %v1976_v57 = vld [vmem:[%s2563_s18 + $0x78] sm:$0xf0] }
  0x41   : > { %857 = vmatpush.bf16.msrb.mxu2 %v2270_v53  ;;  %v1950_v53 = vld [vmem:[%s2563_s18 + $0x40] sm:$0xf]  ;;  %v1979_v61 = vor.u32 %v2265_v56, %v1976_v57 }
  0x45   : > { %858 = vmatpush.bf16.msrb.mxu2 %v2269_v58  ;;  %v1951_v58 = vor.u32 %v2260_v54, %v1950_v53  ;;  %v2316_v53 = vld [vmem:[%s2563_s18 + $0x54] sm:$0xf0]  ;;  %v2317_v54 = vld [vmem:[%s2563_s18 + $0x64] sm:$0xf] }
  0x49   : > { %859 = vmatpush.bf16.msrb.mxu2 %v2268_v62  ;;  %v1958_v62 = vld [vmem:[%s2563_s18 + $0x50] sm:$0xf] }
  0x4d   : > { %860 = vmatpush.bf16.msrb.mxu2 %v2267_v63  ;;  %v2262_v63 = vld [vmem:[%s2563_s18 + $0x54] sm:$0xf0] }
  0x4e   : > { %605 = vmatmul.bf16.gmra.mxu0 %v1815_v8  ;;  %v1959_v4 = vor.u32 %v2262_v63, %v1958_v62  ;;  %v2093_v8 = vor.u32 %v2311_v2, %v2090_v3 }
  0x4f   : > { %1911 = vmatmul.msk.bf16.gmra.mxu1 %vm562_vm0, %v1827_v10 }
  0x50   : > { %861 = vmatmul.bf16.vlgmr.msrb.gmra.mxu2 %v1919_v9  ;;  %2031 = vmatmul.msk.bf16.gmra.mxu3 %vm562_vm0, %v1947_v11  ;;  %v1966_v11 = vld [vmem:[%s2563_s18 + $0x60] sm:$0xf] }
  0x51   : > { %2355 = vmatpush.bf16.msra.mxu2 %v2586_v17  ;;  %v1926_v17 = vld [vmem:[%s2563_s18 + $0x10] sm:$0xf] }
  0x52   : > { %v1927_v25 = vor.u32 %v2254_v18, %v1926_v17  ;;  %v2098_v17 = vld [vmem:[%s2563_s18 + $0x48] sm:$0xf0] }
  0x55   : > { %2356 = vmatpush.bf16.msra.mxu2 %v2596_v21  ;;  %v1952_v21 = vld [vmem:[%s2563_s18 + $0x48] sm:$0xf0] }
  0x56   : > { %v1955_v27 = vor.u32 %v2259_v20, %v1952_v21  ;;  %v2339_v20 = vld [vmem:[%s2755_s22 + $0x10] sm:$0xff] }
  0x59   : > { %2357 = vmatpush.bf16.msra.mxu2 %v2612_v24  ;;  %v2333_v24 = vld [vmem:[%s3131_s1 + $0x100] sm:$0xff] }
  0x5a   : > { %2366 = vmatpush.bf16.msrb.mxu3 %v2333_v24 }
  0x5d   : > { %2358 = vmatpush.bf16.msra.mxu2 %v2329_v42  ;;  %v1838_v42 = vld [vmem:[%s2563_s18 + $0x60] sm:$0xf] }
  0x5e   : > { %610 = vmatmul.bf16.gmra.mxu0 %v1823_v22  ;;  %v1839_v50 = vor.u32 %v2291_v43, %v1838_v42  ;;  %v2089_v22 = vor.u32 %v2312_v14, %v2088_v13  ;;  %v2097_v43 = vor.u32 %v2314_v35, %v2096_v34  ;;  %v2319_v13 = vld [vmem:[%s2563_s18 + $0x74] sm:$0xf]  ;;  %v2122_v14 = vld [vmem:[%s2563_s18 + $0x78] sm:$0xf0] }
  0x5f   : > { %1912 = vmatmul.msk.bf16.gmra.mxu1 %vm562_vm0, %v1835_v26 }
  0x60   : > { %866 = vmatmul.bf16.gmra.mxu2 %v1927_v25  ;;  %2032 = vmatmul.msk.bf16.gmra.mxu3 %vm562_vm0, %v1955_v27  ;;  %v2101_v25 = vor.u32 %v2313_v15, %v2098_v17 }
  0x61   : > { %2359 = vmatpush.bf16.msra.mxu2 %v2328_v60 }
  0x65   : > { %2360 = vmatpush.bf16.msra.mxu2 %v2327_v12  ;;  %v2264_v12 = vld [vmem:[%s2563_s18 + $0x64] sm:$0xf0] }
  0x66   : > { %v1967_v19 = vor.u32 %v2264_v12, %v1966_v11  ;;  %v2082_v11 = vld [vmem:[%s2563_s18 + $0x28] sm:$0xf0]  ;;  %v2318_v12 = vld [vmem:[%s2563_s18 + $0x64] sm:$0xf0] }
  0x69   : > { %2361 = vmatpush.bf16.msra.mxu2 %v2326_v28 }
  0x6d   : > { %2362 = vmatpush.bf16.msra.mxu2 %v2325_v41  ;;  %v2340_v41 = vld [vmem:[%s2755_s22 + $0x18] sm:$0xff] }
  0x6e   : > { %615 = vmatmul.bf16.gmra.mxu0 %v1831_v37  ;;  %v2106_v37 = vld [vmem:[%s2563_s18 + $0x58] sm:$0xf0] }
  0x6f   : > { %1913 = vmatmul.msk.bf16.gmra.mxu1 %vm562_vm0, %v1843_v39 }
  0x70   : > { %871 = vmatmul.bf16.gmra.mxu2 %v1935_v38  ;;  %2033 = vmatmul.msk.bf16.gmra.mxu3 %vm562_vm0, %v1963_v40  ;;  %v1975_v40 = vor.u32 %v2266_v33, %v1974_v32 }
  0x71   : > { %1217 = vmatpush.bf16.msrb.mxu2 %v2581_v16  ;;  %v1851_v16 = vor.u32 %v2292_v44, %v1848_v47  ;;  %v2109_v44 = vor.u32 %v2315_v36, %v2106_v37  ;;  %v2120_v36 = vld [vmem:[%s2563_s18 + $0x70] sm:$0xf]  ;;  %v2320_v37 = vld [vmem:[%s2563_s18 + $0x74] sm:$0xf0] }
  0x75   : > { %1218 = vmatpush.bf16.msrb.mxu2 %v2606_v23  ;;  %v2294_v23 = vld [vmem:[%s2563_s18 + $0x84] sm:$0xf] }
  0x76   : > { %v1859_v60 = vor.u32 %v2294_v23, %v1856_v55  ;;  %v2324_v23 = vld [vmem:[%s2563_s18 + $0x94] sm:$0xf0]  ;;  %v2114_v55 = vld [vmem:[%s2563_s18 + $0x68] sm:$0xf0] }
  0x77   : > { %v2117_v62 = vor.u32 %v2317_v54, %v2114_v55 }
  0x79   : > { %1219 = vmatpush.bf16.msrb.mxu2 %v2669_v59  ;;  %v2337_v59 = vld [vmem:[%s2755_s22] sm:$0xff] }
  0x7d   : > { %1220 = vmatpush.bf16.msrb.mxu2 %v2333_v24 }
  0x7e   : > { %620 = vmatmul.bf16.gmra.mxu0 %v1839_v50 }
  0x7f   : > { %1914 = vmatmul.msk.bf16.gmra.mxu1 %vm562_vm0, %v1851_v16  ;;  %v2104_v16 = vld [vmem:[%s2563_s18 + $0x50] sm:$0xf] }
  0x80   : > { %876 = vmatmul.bf16.gmra.mxu2 %v1943_v51  ;;  %2034 = vmatmul.msk.bf16.gmra.mxu3 %vm562_vm0, %v1971_v52  ;;  %v2136_v52 = vld [vmem:[%s2563_s18 + $0x90] sm:$0xf] }
  0x8e   : > { %2238 = vmatmul.msk.bf16.vlgmr.msrb.gmra.mxu0 %vm1350_vm1, %v2337_v59  ;;  %v2341_v59 = vld [vmem:[%s2755_s22 + $0x20] sm:$0xff] }
  0x8f   : > { %1915 = vmatmul.msk.bf16.gmra.mxu1 %vm562_vm0, %v1859_v60 }
  0x90   : > { %881 = vmatmul.bf16.gmra.mxu2 %v1951_v58  ;;  %2035 = vmatmul.msk.bf16.gmra.mxu3 %vm562_vm0, %v1979_v61  ;;  %v2137_v58 = vor.u32 %v2324_v23, %v2136_v52  ;;  %v2105_v61 = vor.u32 %v2316_v53, %v2104_v16 }
  0x9c   : > { %v645_v6 = vpop.f32.mrf.mxu1 }
  0x9e   : > { %2239 = vmatmul.msk.bf16.gmra.mxu0 %vm1350_vm1, %v2338_v5 }
  0x9f   : > { %1172 = vmatmul.bf16.vlgmr.msrb.gmra.mxu1 %v2081_v7 }
  0xa0   : > { %886 = vmatmul.bf16.gmra.mxu2 %v1959_v4  ;;  %2191 = vmatmul.msk.bf16.vlgmr.msrb.gmra.mxu3 %vm562_vm0, %v2093_v8  ;;  %v2112_v8 = vld [vmem:[%s2563_s18 + $0x60] sm:$0xf] }
  0xa3   : > { %v2773_v9 = vpop.f32.mrf.mxu3 }
  0xa4   : > { %v647_v10 = vpop.f32.mrf.mxu1 }
  0xab   : > { %v2781_v18 = vpop.f32.mrf.mxu3  ;;  %v596_v21 = vpop.f32.mrf.mxu0 }
  0xac   : > { %v646_v26 = vadd.f32 %v645_v6, %v596_v21  ;;  %v650_v27 = vpop.f32.mrf.mxu1  ;;  %v2342_v21 = vld [vmem:[%s2755_s22 + $0x28] sm:$0xff] }
  0xae   : > { %2240 = vmatmul.msk.bf16.gmra.mxu0 %vm1350_vm1, %v2339_v20 }
  0xaf   : > { %1177 = vmatmul.bf16.gmra.mxu1 %v2089_v22 }
  0xb0   : > { %891 = vmatmul.bf16.gmra.mxu2 %v1967_v19  ;;  %2192 = vmatmul.msk.bf16.gmra.mxu3 %vm562_vm0, %v2101_v25  ;;  %v2113_v25 = vor.u32 %v2318_v12, %v2112_v8 }
  0xb3   : > { %v2786_v24 = vpop.f32.mrf.mxu2  ;;  %v2788_v28 = vpop.f32.mrf.mxu3 }
  0xb4   : > { %v598_v29 = vpop.f32.mrf.mxu0  ;;  %v652_v31 = vpop.f32.mrf.mxu1 }
  0xb5   : > { %v648_v30 = vadd.f32 %v647_v10, %v598_v29  ;;  %v2309_v10 = vld [vmem:[%s2563_s18 + $0x24] sm:$0xf] }
  0xb6   : > { %v2085_v20 = vor.u32 %v2309_v10, %v2082_v11 }
  0xbb   : > { %v2796_v38 = vpop.f32.mrf.mxu2  ;;  %v2798_v39 = vpop.f32.mrf.mxu3 }
  0xbc   : > { %v601_v42 = vpop.f32.mrf.mxu0  ;;  %v655_v46 = vpop.f32.mrf.mxu1 }
  0xbd   : > { %v651_v45 = vadd.f32 %v650_v27, %v601_v42 }
  0xbe   : > { %2241 = vmatmul.msk.bf16.gmra.mxu0 %vm1350_vm1, %v2340_v41  ;;  %v2130_v41 = vld [vmem:[%s2563_s18 + $0x88] sm:$0xf0] }
  0xbf   : > { %1182 = vmatmul.bf16.gmra.mxu1 %v2097_v43 }
  0xc0   : > { %896 = vmatmul.bf16.gmra.mxu2 %v1975_v40  ;;  %2193 = vmatmul.msk.bf16.gmra.mxu3 %vm562_vm0, %v2109_v44  ;;  %v2321_v40 = vld [vmem:[%s2563_s18 + $0x84] sm:$0xf] }
  0xc3   : > { %v2803_v47 = vpop.f32.mrf.mxu2  ;;  %v2805_v48 = vpop.f32.mrf.mxu3 }
  0xc4   : > { %v603_v49 = vpop.f32.mrf.mxu0  ;;  %v657_v51 = vpop.f32.mrf.mxu1 }
  0xc5   : > { %v653_v50 = vadd.f32 %v652_v31, %v603_v49 }
  0xcb   : > { %v2813_v56 = vpop.f32.mrf.mxu2  ;;  %v2815_v57 = vpop.f32.mrf.mxu3 }
  0xcc   : > { %v606_v60 = vpop.f32.mrf.mxu0  ;;  %v660_v0 = vpop.f32.mrf.mxu1 }
  0xcd   : > { %v656_v63 = vadd.f32 %v655_v46, %v606_v60  ;;  %v2343_v46 = vld [vmem:[%s2755_s22 + $0x30] sm:$0xff]  ;;  %v2322_v60 = vld [vmem:[%s2563_s18 + $0x84] sm:$0xf0] }
  0xce   : > { %2242 = vmatmul.msk.bf16.gmra.mxu0 %vm1350_vm1, %v2341_v59 }
  0xcf   : > { %1187 = vmatmul.bf16.gmra.mxu1 %v2105_v61  ;;  %v2323_v61 = vld [vmem:[%s2563_s18 + $0x94] sm:$0xf] }
  0xd0   : > { %1207 = vmatmul.bf16.vlgmr.msra.gmra.mxu2 %v2137_v58  ;;  %2194 = vmatmul.msk.bf16.gmra.mxu3 %vm562_vm0, %v2117_v62  ;;  %v2138_v62 = vld [vmem:[%s2563_s18 + $0x98] sm:$0xf0] }
  0xd1   : > { %v2141_v10 = vor.u32 %v2323_v61, %v2138_v62 }
  0xd3   : > { %v862_v1 = vpop.f32.mrf.mxu2  ;;  %v2820_v3 = vpop.f32.mrf.mxu3 }
  0xd4   : > { %v863_v2 = vadd.f32 %v862_v1, %v646_v26  ;;  %v608_v4 = vpop.f32.mrf.mxu0  ;;  %v662_v7 = vpop.f32.mrf.mxu1  ;;  %v2125_v26 = vor.u32 %v2319_v13, %v2122_v14 }
  0xd5   : > { %v658_v6 = vadd.f32 %v657_v51, %v608_v4  ;;  %v2121_v51 = vor.u32 %v2320_v37, %v2120_v36  ;;  %v2344_v4 = vld [vmem:[%s2755_s22 + $0x38] sm:$0xff] }
  0xd6   : > { %v2823_v5 = vadd.f32 %v2773_v9, %v863_v2 }
  0xdb   : > { %v864_v15 = vpop.f32.mrf.mxu2  ;;  %v2831_v19 = vpop.f32.mrf.mxu3 }
  0xdc   : > { %v865_v17 = vadd.f32 %v864_v15, %v648_v30  ;;  %v611_v22 = vpop.f32.mrf.mxu0  ;;  %v665_v29 = vpop.f32.mrf.mxu1 }
  0xdd   : > { %v661_v27 = vadd.f32 %v660_v0, %v611_v22 }
  0xde   : > { %v2835_v9 = vadd.f32 %v2781_v18, %v865_v17  ;;  %2243 = vmatmul.msk.bf16.gmra.mxu0 %vm1350_vm1, %v2342_v21 }
  0xdf   : > { %1192 = vmatmul.bf16.gmra.mxu1 %v2113_v25 }
  0xe0   : > { %2190 = vmatmul.msk.bf16.vlgmr.msrb.gmra.mxu2 %vm562_vm0, %v2085_v20  ;;  %2195 = vmatmul.msk.bf16.gmra.mxu3 %vm562_vm0, %v2125_v26 }
  0xe3   : > { %v867_v30 = vpop.f32.mrf.mxu2  ;;  %v2840_v32 = vpop.f32.mrf.mxu3 }
  0xe4   : > { %v868_v31 = vadd.f32 %v867_v30, %v651_v45  ;;  %v613_v33 = vpop.f32.mrf.mxu0  ;;  %v667_v35 = vpop.f32.mrf.mxu1  ;;  %v2133_v45 = vor.u32 %v2321_v40, %v2130_v41 }
  0xe5   : > { %v663_v34 = vadd.f32 %v662_v7, %v613_v33 }
  0xe6   : > { %v2843_v18 = vadd.f32 %v2788_v28, %v868_v31 }
  0xeb   : > { %v869_v42 = vpop.f32.mrf.mxu2  ;;  %v933_v44 = vpop.f32.mrf.mxu3 }
  0xec   : > { %v870_v43 = vadd.f32 %v869_v42, %v653_v50  ;;  %v616_v49 = vpop.f32.mrf.mxu0  ;;  %v670_v52 = vpop.f32.mrf.mxu1 }
  0xed   : > { %v666_v28 = vadd.f32 %v665_v29, %v616_v49 }
  0xee   : > { %v2851_v16 = vadd.f32 %v2798_v39, %v870_v43  ;;  %2244 = vmatmul.msk.bf16.gmra.mxu0 %vm1350_vm1, %v2343_v46  ;;  %v2128_v39 = vld [vmem:[%s2563_s18 + $0x80] sm:$0xf] }
  0xef   : > { %1197 = vmatmul.bf16.gmra.mxu1 %v2121_v51  ;;  %v2129_v8 = vor.u32 %v2322_v60, %v2128_v39 }
  0xf0   : > { %2196 = vmatmul.msk.bf16.gmra.mxu3 %vm562_vm0, %v2133_v45 }
  0xf3   : > { %v872_v50 = vpop.f32.mrf.mxu2  ;;  %v936_v53 = vpop.f32.mrf.mxu3 }
  0xf4   : > { %v873_v23 = vadd.f32 %v872_v50, %v656_v63  ;;  %v618_v54 = vpop.f32.mrf.mxu0  ;;  %v672_v59 = vpop.f32.mrf.mxu1 }
  0xf5   : > { %v668_v58 = vadd.f32 %v667_v35, %v618_v54 }
  0xf6   : > { %v2856_v55 = vadd.f32 %v2805_v48, %v873_v23 }
  0xfb   : > { %v874_v0 = vpop.f32.mrf.mxu2  ;;  %v938_v2 = vpop.f32.mrf.mxu3 }
  0xfc   : > { %v875_v1 = vadd.f32 %v874_v0, %v658_v6  ;;  %v621_v7 = vpop.f32.mrf.mxu0  ;;  %v675_v12 = vpop.f32.mrf.mxu1 }
  0xfd   : > { %v671_v11 = vadd.f32 %v670_v52, %v621_v7 }
  0xfe   : > { %v2864_v63 = vadd.f32 %v2815_v57, %v875_v1  ;;  %2245 = vmatmul.msk.bf16.gmra.mxu0 %vm1350_vm1, %v2344_v4 }
  0xff   : > { %1202 = vmatmul.bf16.gmra.mxu1 %v2129_v8 }
 0x100   : > { %2197 = vmatmul.msk.bf16.gmra.mxu3 %vm562_vm0, %v2141_v10 }
 0x103   : > { %v877_v48 = vpop.f32.mrf.mxu2  ;;  %v941_v14 = vpop.f32.mrf.mxu3 }
 0x104   : > { %v878_v13 = vadd.f32 %v877_v48, %v661_v27  ;;  %v623_v15 = vpop.f32.mrf.mxu0  ;;  %v677_v20 = vpop.f32.mrf.mxu1 }
 0x105   : > { %v673_v17 = vadd.f32 %v672_v59, %v623_v15  ;;  %v676_v59 = vadd.f32 %v675_v12, %v2786_v24  ;;  %v678_v4 = vadd.f32 %v677_v20, %v2796_v38 }
 0x106   : > { %v2869_v6 = vadd.f32 %v2820_v3, %v878_v13 }
 0x10b   : > { %v879_v21 = vpop.f32.mrf.mxu2  ;;  %v943_v57 = vpop.f32.mrf.mxu3 }
 0x10c   : > { %v880_v22 = vadd.f32 %v879_v21, %v663_v34  ;;  %v2871_v25 = vpop.f32.mrf.mxu0  ;;  %v680_v29 = vpop.f32.mrf.mxu1 }
 0x10d   : > { %v681_v38 = vadd.f32 %v680_v29, %v2803_v47 }
 0x10e   : > { %v2874_v26 = vadd.f32 %v2831_v19, %v880_v22 }
 0x113   : > { %v882_v30 = vpop.f32.mrf.mxu2  ;;  %v946_v33 = vpop.f32.mrf.mxu3 }
 0x114   : > { %v883_v31 = vadd.f32 %v882_v30, %v666_v28  ;;  %v2876_v27 = vpop.f32.mrf.mxu0  ;;  %v682_v3 = vpop.f32.mrf.mxu1 }
 0x115   : > { %v683_v47 = vadd.f32 %v682_v3, %v2813_v56 }
 0x116   : > { %v2879_v35 = vadd.f32 %v2840_v32, %v883_v31 }
 0x11b   : > { %v884_v36 = vpop.f32.mrf.mxu2  ;;  %v2881_v40 = vpop.f32.mrf.mxu3 }
 0x11c   : > { %v885_v37 = vadd.f32 %v884_v36, %v668_v58  ;;  %v1389_v34 = vpop.f32.mrf.mxu0  ;;  %v2885_v42 = vpop.f32.mrf.mxu1 }
 0x11e   : > { %v2883_v41 = vadd.f32 %v933_v44, %v885_v37 }
 0x123   : > { %v887_v19 = vpop.f32.mrf.mxu2  ;;  %v1227_v46 = vpop.f32.mrf.mxu3 }
 0x124   : > { %v888_v43 = vadd.f32 %v887_v19, %v671_v11  ;;  %v1391_v49 = vpop.f32.mrf.mxu0  ;;  %v2889_v45 = vpop.f32.mrf.mxu1 }
 0x126   : > { %v2887_v51 = vadd.f32 %v936_v53, %v888_v43 }
 0x12b   : > { %v889_v32 = vpop.f32.mrf.mxu2  ;;  %v1229_v52 = vpop.f32.mrf.mxu3 }
 0x12c   : > { %v890_v28 = vadd.f32 %v889_v32, %v673_v17  ;;  %v1394_v50 = vpop.f32.mrf.mxu0  ;;  %v1178_v54 = vpop.f32.mrf.mxu1 }
 0x12d   : > { %v1228_v44 = vadd.f32 %v1227_v46, %v1178_v54 }
 0x12e   : > { %v2891_v23 = vadd.f32 %v938_v2, %v890_v28 }
 0x12f   : > { %v1264_v58 = vadd.f32 %v1228_v44, %v2843_v18 }
 0x131   : > { %v2895_v39 = vadd.f32 %v1389_v34, %v1264_v58 }
 0x133   : > { %v892_v60 = vpop.f32.mrf.mxu2  ;;  %v1232_v61 = vpop.f32.mrf.mxu3  ;;  %v1442_v62 = vpack.c.bf16 %v2895_v39, %v2895_v39 }
 0x134   : > { %v893_v53 = vadd.f32 %v892_v60, %v676_v59  ;;  %v1396_v18 = vpop.f32.mrf.mxu0  ;;  %v1180_v24 = vpop.f32.mrf.mxu1 }
 0x135   : > { %1459 = vst.msk [vmem:[%s2902_s11 + $0x8] sm:$0xf] %vm1456_vm2, %v1442_v62  ;;  %v1230_v1 = vadd.f32 %v1229_v52, %v1180_v24 }
 0x136   : > { %v2906_v0 = vadd.f32 %v941_v14, %v893_v53 }
 0x137   : > { %v1265_v2 = vadd.f32 %v1230_v1, %v2851_v16 }
 0x139   : > { %v2912_v7 = vadd.f32 %v1391_v49, %v1265_v2 }
 0x13b   : > { %v894_v8 = vpop.f32.mrf.mxu2  ;;  %v1234_v11 = vpop.f32.mrf.mxu3  ;;  %v1443_v12 = vpack.c.bf16 %v2912_v7, %v2912_v7 }
 0x13c   : > { %v895_v10 = vadd.f32 %v894_v8, %v678_v4  ;;  %v1399_v48 = vpop.f32.mrf.mxu0  ;;  %v1183_v14 = vpop.f32.mrf.mxu1 }
 0x13d   : > { %1460 = vst.msk [vmem:[%s2902_s11 + $0xc] sm:$0xf] %vm1456_vm2, %v1443_v12  ;;  %v1233_v15 = vadd.f32 %v1232_v61, %v1183_v14 }
 0x13e   : > { %v2916_v13 = vadd.f32 %v943_v57, %v895_v10 }
 0x13f   : > { %v1266_v16 = vadd.f32 %v1233_v15, %v2856_v55 }
 0x141   : > { %v2922_v17 = vadd.f32 %v1394_v50, %v1266_v16 }
 0x143   : > { %v897_v20 = vpop.f32.mrf.mxu2  ;;  %v1237_v22 = vpop.f32.mrf.mxu3  ;;  %v1444_v30 = vpack.c.bf16 %v2922_v17, %v2922_v17 }
 0x144   : > { %v898_v21 = vadd.f32 %v897_v20, %v681_v38  ;;  %v1401_v31 = vpop.f32.mrf.mxu0  ;;  %v1185_v36 = vpop.f32.mrf.mxu1 }
 0x145   : > { %1461 = vst.msk [vmem:[%s2902_s11 + $0x10] sm:$0xf] %vm1456_vm2, %v1444_v30  ;;  %v1235_v37 = vadd.f32 %v1234_v11, %v1185_v36 }
 0x146   : > { %v2926_v57 = vadd.f32 %v946_v33, %v898_v21 }
 0x147   : > { %v1267_v55 = vadd.f32 %v1235_v37, %v2864_v63 }
 0x149   : > { %v2932_v29 = vadd.f32 %v1396_v18, %v1267_v55 }
 0x14b   : > { %v899_v34 = vpop.f32.mrf.mxu2  ;;  %v1239_v43 = vpop.f32.mrf.mxu3  ;;  %v1445_v46 = vpack.c.bf16 %v2932_v29, %v2932_v29 }
 0x14c   : > { %v900_v19 = vadd.f32 %v899_v34, %v683_v47  ;;  %v1404_v49 = vpop.f32.mrf.mxu0  ;;  %v1188_v32 = vpop.f32.mrf.mxu1 }
 0x14d   : > { %1462 = vst.msk [vmem:[%s2902_s11 + $0x14] sm:$0xf] %vm1456_vm2, %v1445_v46  ;;  %v1238_v28 = vadd.f32 %v1237_v22, %v1188_v32 }
 0x14e   : > { %v2937_v33 = vadd.f32 %v2881_v40, %v900_v19 }
 0x14f   : > { %v1268_v63 = vadd.f32 %v1238_v28, %v2869_v6 }
 0x151   : > { %v2942_v56 = vadd.f32 %v1399_v48, %v1268_v63 }
 0x153   : > { %v2944_v3 = vpop.f32.mrf.mxu2  ;;  %v1242_v52 = vpop.f32.mrf.mxu3  ;;  %v1446_v50 = vpack.c.bf16 %v2942_v56, %v2942_v56 }
 0x154   : > { %v1406_v54 = vpop.f32.mrf.mxu0  ;;  %v1190_v44 = vpop.f32.mrf.mxu1 }
 0x155   : > { %1463 = vst.msk [vmem:[%s2902_s11 + $0x18] sm:$0xf] %vm1456_vm2, %v1446_v50  ;;  %v1240_v40 = vadd.f32 %v1239_v43, %v1190_v44 }
 0x157   : > { %v1269_v58 = vadd.f32 %v1240_v40, %v2874_v26 }
 0x159   : > { %v2951_v59 = vadd.f32 %v1401_v31, %v1269_v58 }
 0x15b   : > { %v2953_v6 = vpop.f32.mrf.mxu2  ;;  %v1244_v60 = vpop.f32.mrf.mxu3  ;;  %v1447_v53 = vpack.c.bf16 %v2951_v59, %v2951_v59 }
 0x15c   : > { %v1193_v61 = vpop.f32.mrf.mxu1  ;;  %v1409_v62 = vpop.f32.mrf.mxu0 }
 0x15d   : > { %1464 = vst.msk [vmem:[%s2902_s11 + $0x1c] sm:$0xf] %vm1456_vm2, %v1447_v53  ;;  %v1243_v18 = vadd.f32 %v1242_v52, %v1193_v61 }
 0x15f   : > { %v1270_v24 = vadd.f32 %v1243_v18, %v2879_v35 }
 0x161   : > { %v2960_v1 = vadd.f32 %v1404_v49, %v1270_v24 }
 0x163   : > { %v1222_v26 = vpop.f32.mrf.mxu2  ;;  %v1247_v4 = vpop.f32.mrf.mxu3  ;;  %v1448_v8 = vpack.c.bf16 %v2960_v1, %v2960_v1 }
 0x164   : > { %v1223_v2 = vadd.f32 %v1222_v26, %v2885_v42  ;;  %v1195_v11 = vpop.f32.mrf.mxu1  ;;  %v1411_v35 = vpop.f32.mrf.mxu0 }
 0x165   : > { %1465 = vst.msk [vmem:[%s2902_s11 + $0x20] sm:$0xf] %vm1456_vm2, %v1448_v8  ;;  %v1245_v12 = vadd.f32 %v1244_v60, %v1195_v11 }
 0x166   : > { %v1262_v10 = vadd.f32 %v1223_v2, %v2823_v5 }
 0x167   : > { %v1271_v14 = vadd.f32 %v1245_v12, %v2883_v41 }
 0x168   : > { %v2969_v48 = vadd.f32 %v2871_v25, %v1262_v10 }
 0x169   : > { %v2974_v15 = vadd.f32 %v1406_v54, %v1271_v14 }
 0x16a   : > { %v1440_v42 = vpack.c.bf16 %v2969_v48, %v2969_v48 }
 0x16b   : > { %v1224_v16 = vpop.f32.mrf.mxu2  ;;  %v1249_v38 = vpop.f32.mrf.mxu3  ;;  %v1449_v25 = vpack.c.bf16 %v2974_v15, %v2974_v15 }
 0x16c   : > { %1457 = vst.msk [vmem:[%s2902_s11] sm:$0xf] %vm1456_vm2, %v1440_v42  ;;  %v1225_v5 = vadd.f32 %v1224_v16, %v2889_v45  ;;  %v1198_v21 = vpop.f32.mrf.mxu1  ;;  %v1414_v36 = vpop.f32.mrf.mxu0 }
 0x16d   : > { %1466 = vst.msk [vmem:[%s2902_s11 + $0x24] sm:$0xf] %vm1456_vm2, %v1449_v25  ;;  %v1248_v41 = vadd.f32 %v1247_v4, %v1198_v21 }
 0x16e   : > { %v1263_v20 = vadd.f32 %v1225_v5, %v2835_v9 }
 0x16f   : > { %v1272_v30 = vadd.f32 %v1248_v41, %v2887_v51 }
 0x170   : > { %v1425_v22 = vadd.f32 %v2876_v27, %v1263_v20 }
 0x171   : > { %v2986_v37 = vadd.f32 %v1409_v62, %v1272_v30 }
 0x172   : > { %v1441_v31 = vpack.c.bf16 %v1425_v22, %v1425_v22 }
 0x173   : > { %v1252_v45 = vpop.f32.mrf.mxu3  ;;  %v1450_v55 = vpack.c.bf16 %v2986_v37, %v2986_v37 }
 0x174   : > { %1458 = vst.msk [vmem:[%s2902_s11 + $0x4] sm:$0xf] %vm1456_vm2, %v1441_v31  ;;  %v1200_v9 = vpop.f32.mrf.mxu1  ;;  %v1416_v51 = vpop.f32.mrf.mxu0 }
 0x175   : > { %1467 = vst.msk [vmem:[%s2902_s11 + $0x28] sm:$0xf] %vm1456_vm2, %v1450_v55  ;;  %v1250_v47 = vadd.f32 %v1249_v38, %v1200_v9 }
 0x177   : > { %v1273_v27 = vadd.f32 %v1250_v47, %v2891_v23 }
 0x179   : > { %v2995_v34 = vadd.f32 %v1411_v35, %v1273_v27 }
 0x17b   : > { %v1254_v19 = vpop.f32.mrf.mxu3  ;;  %v1451_v43 = vpack.c.bf16 %v2995_v34, %v2995_v34 }
 0x17c   : > { %v1203_v46 = vpop.f32.mrf.mxu1  ;;  %v1419_v50 = vpop.f32.mrf.mxu0 }
 0x17d   : > { %1468 = vst.msk [vmem:[%s2902_s11 + $0x2c] sm:$0xf] %vm1456_vm2, %v1451_v43  ;;  %v1253_v49 = vadd.f32 %v1252_v45, %v1203_v46 }
 0x17f   : > { %v1274_v32 = vadd.f32 %v1253_v49, %v2906_v0 }
 0x181   : > { %v3002_v28 = vadd.f32 %v1414_v36, %v1274_v32 }
 0x183   : > { %v1257_v63 = vpop.f32.mrf.mxu3  ;;  %v1452_v23 = vpack.c.bf16 %v3002_v28, %v3002_v28 }
 0x184   : > { %v1258_v52 = vadd.f32 %v1257_v63, %v2944_v3  ;;  %v1205_v54 = vpop.f32.mrf.mxu1  ;;  %v1421_v18 = vpop.f32.mrf.mxu0 }
 0x185   : > { %1469 = vst.msk [vmem:[%s2902_s11 + $0x30] sm:$0xf] %vm1456_vm2, %v1452_v23  ;;  %v1255_v40 = vadd.f32 %v1254_v19, %v1205_v54 }
 0x186   : > { %v1276_v44 = vadd.f32 %v1258_v52, %v2926_v57 }
 0x187   : > { %v1275_v0 = vadd.f32 %v1255_v40, %v2916_v13 }
 0x188   : > { %v3010_v58 = vadd.f32 %v1419_v50, %v1276_v44 }
 0x189   : > { %v3015_v53 = vadd.f32 %v1416_v51, %v1275_v0 }
 0x18a   : > { %v1454_v60 = vpack.c.bf16 %v3010_v58, %v3010_v58 }
 0x18b   : > { %v1259_v61 = vpop.f32.mrf.mxu3  ;;  %v1453_v3 = vpack.c.bf16 %v3015_v53, %v3015_v53 }
 0x18c   : > { %1471 = vst.msk [vmem:[%s2902_s11 + $0x38] sm:$0xf] %vm1456_vm2, %v1454_v60  ;;  %v1260_v62 = vadd.f32 %v1259_v61, %v2953_v6 }
 0x18d   : > { %1470 = vst.msk [vmem:[%s2902_s11 + $0x34] sm:$0xf] %vm1456_vm2, %v1453_v3 }
 0x18e   : > { %v1277_v57 = vadd.f32 %v1260_v62, %v2937_v33 }
 0x190   : > { %v3025_v24 = vadd.f32 %v1421_v18, %v1277_v57  ;;  %1476 = sbr.rel (%p2246_p7) target bundleno = 408 (0x198), region = 40 }
 0x192   : > { %v1455_v13 = vpack.c.bf16 %v3025_v24, %v3025_v24 }
 0x194   : > { %1472 = vst.msk [vmem:[%s2902_s11 + $0x3c] sm:$0xf] %vm1456_vm2, %v1455_v13 }
 0x195   : > { %vm1477_vm3 = vcmask 516096   ;;  %v2449_v26 = vmov 0.0  }
 0x196   : > { %1478 = vst.msk [vmem:[%s2543_s20] sm:$0x1] %vm1477_vm3, %v2449_v26 }
 0x197   : > { %1479 = vst.msk [vmem:[%s2549_s30] sm:$0x1] %vm1477_vm3, %v2449_v26 }
 0x198 PF: > { %v1481_v33 = vsel %vm562_vm0, %v2969_v48, 0.0  ;;  %v1482_v6 = vsel %vm562_vm0, %v1425_v22, 0.0  ;;  %v1484_v2 = vsel %vm562_vm0, %v2895_v39, 0.0  ;;  %v1486_v8 = vsel %vm562_vm0, %v2912_v7, 0.0 }
 0x199   : > { %v1483_v4 = vadd.f32 %v1482_v6, %v1481_v33  ;;  %v1488_v11 = vsel %vm562_vm0, %v2922_v17, 0.0  ;;  %v1522_v35 = vmul.f32 %v2969_v48, %v2969_v48  ;;  %v1523_v14 = vmul.f32 %v1425_v22, %v1425_v22 }
 0x19a   : > { %v1524_v42 = vmul.f32 %v2895_v39, %v2895_v39  ;;  %v1490_v16 = vsel %vm562_vm0, %v2932_v29, 0.0  ;;  %v1525_v38 = vmul.f32 %v2912_v7, %v2912_v7  ;;  %v1492_v25 = vsel %vm562_vm0, %v2942_v56, 0.0 }
 0x19b   : > { %v1485_v10 = vadd.f32 %v1484_v2, %v1483_v4  ;;  %v1526_v20 = vmul.f32 %v2922_v17, %v2922_v17  ;;  %v1538_v48 = vsel %vm562_vm0, %v1522_v35, 0.0  ;;  %v1539_v41 = vsel %vm562_vm0, %v1523_v14, 0.0 }
 0x19c   : > { %v1541_v39 = vsel %vm562_vm0, %v1524_v42, 0.0  ;;  %v1494_v22 = vsel %vm562_vm0, %v2951_v59, 0.0  ;;  %v1540_v30 = vadd.f32 %v1539_v41, %v1538_v48  ;;  %v1527_v7 = vmul.f32 %v2932_v29, %v2932_v29 }
 0x19d   : > { %v1487_v12 = vadd.f32 %v1486_v8, %v1485_v10  ;;  %v1543_v36 = vsel %vm562_vm0, %v1525_v38, 0.0  ;;  %v1496_v17 = vsel %vm562_vm0, %v2960_v1, 0.0  ;;  %v1528_v9 = vmul.f32 %v2942_v56, %v2942_v56 }
 0x19e   : > { %v1542_v45 = vadd.f32 %v1541_v39, %v1540_v30  ;;  %v1545_v47 = vsel %vm562_vm0, %v1526_v20, 0.0  ;;  %v1498_v27 = vsel %vm562_vm0, %v2974_v15, 0.0  ;;  %v1529_v29 = vmul.f32 %v2951_v59, %v2951_v59 }
 0x19f   : > { %v1489_v5 = vadd.f32 %v1488_v11, %v1487_v12  ;;  %v1547_v43 = vsel %vm562_vm0, %v1527_v7, 0.0  ;;  %v1500_v46 = vsel %vm562_vm0, %v2986_v37, 0.0  ;;  %v1530_v56 = vmul.f32 %v2960_v1, %v2960_v1 }
 0x1a0   : > { %v1544_v51 = vadd.f32 %v1543_v36, %v1542_v45  ;;  %v1549_v63 = vsel %vm562_vm0, %v1528_v9, 0.0  ;;  %v1502_v23 = vsel %vm562_vm0, %v2995_v34, 0.0  ;;  %v1531_v59 = vmul.f32 %v2974_v15, %v2974_v15 }
 0x1a1   : > { %v1491_v21 = vadd.f32 %v1490_v16, %v1489_v5  ;;  %v1551_v54 = vsel %vm562_vm0, %v1529_v29, 0.0  ;;  %v1504_v44 = vsel %vm562_vm0, %v3002_v28, 0.0  ;;  %v1532_v1 = vmul.f32 %v2986_v37, %v2986_v37 }
 0x1a2   : > { %v1546_v49 = vadd.f32 %v1545_v47, %v1544_v51  ;;  %v1553_v60 = vsel %vm562_vm0, %v1530_v56, 0.0  ;;  %v1506_v61 = vsel %vm562_vm0, %v3015_v53, 0.0  ;;  %v1533_v15 = vmul.f32 %v2995_v34, %v2995_v34 }
 0x1a3   : > { %v1493_v31 = vadd.f32 %v1492_v25, %v1491_v21  ;;  %v1555_v57 = vsel %vm562_vm0, %v1531_v59, 0.0  ;;  %v1508_v18 = vsel %vm562_vm0, %v3010_v58, 0.0  ;;  %v1534_v37 = vmul.f32 %v3002_v28, %v3002_v28 }
 0x1a4   : > { %v1548_v52 = vadd.f32 %v1547_v43, %v1546_v49  ;;  %v1557_v33 = vsel %vm562_vm0, %v1532_v1, 0.0  ;;  %v1510_v6 = vsel %vm562_vm0, %v3025_v24, 0.0  ;;  %v1535_v34 = vmul.f32 %v3015_v53, %v3015_v53 }
 0x1a5   : > { %v1495_v55 = vadd.f32 %v1494_v22, %v1493_v31  ;;  %v1559_v8 = vsel %vm562_vm0, %v1533_v15, 0.0  ;;  %v1536_v12 = vmul.f32 %v3010_v58, %v3010_v58  ;;  %v1561_v28 = vsel %vm562_vm0, %v1534_v37, 0.0  ;;  %v1480_v22 = vld [vmem:[%s2543_s20] sm:$0x1] }
 0x1a6   : > { %v1550_v40 = vadd.f32 %v1549_v63, %v1548_v52  ;;  %v1537_v42 = vmul.f32 %v3025_v24, %v3025_v24  ;;  %v1563_v16 = vsel %vm562_vm0, %v1535_v34, 0.0  ;;  %vm1519_vm4 = vcmask 516096  }
 0x1a7   : > { %v1497_v19 = vadd.f32 %v1496_v17, %v1495_v55  ;;  %v1565_v53 = vsel %vm562_vm0, %v1536_v12, 0.0  ;;  %v1521_v55 = vld [vmem:[%s2549_s30] sm:$0x1] }
 0x1a8   : > { %v1552_v3 = vadd.f32 %v1551_v54, %v1550_v40  ;;  %v1567_v58 = vsel %vm562_vm0, %v1537_v42, 0.0 }
 0x1a9   : > { %v1499_v32 = vadd.f32 %v1498_v27, %v1497_v19 }
 0x1aa   : > { %v1554_v13 = vadd.f32 %v1553_v60, %v1552_v3 }
 0x1ab   : > { %v1501_v50 = vadd.f32 %v1500_v46, %v1499_v32 }
 0x1ac   : > { %v1556_v2 = vadd.f32 %v1555_v57, %v1554_v13 }
 0x1ad   : > { %v1503_v0 = vadd.f32 %v1502_v23, %v1501_v50 }
 0x1ae   : > { %v1558_v10 = vadd.f32 %v1557_v33, %v1556_v2 }
 0x1af   : > { %v1505_v62 = vadd.f32 %v1504_v44, %v1503_v0 }
 0x1b0   : > { %v1560_v35 = vadd.f32 %v1559_v8, %v1558_v10 }
 0x1b1   : > { %v1507_v26 = vadd.f32 %v1506_v61, %v1505_v62 }
 0x1b2   : > { %v1562_v5 = vadd.f32 %v1561_v28, %v1560_v35 }
 0x1b3   : > { %v1509_v4 = vadd.f32 %v1508_v18, %v1507_v26 }
 0x1b4   : > { %v1564_v25 = vadd.f32 %v1563_v16, %v1562_v5 }
 0x1b5   : > { %v1511_v11 = vadd.f32 %v1510_v6, %v1509_v4 }
 0x1b6   : > { %v1566_v21 = vadd.f32 %v1565_v53, %v1564_v25 }
 0x1b7   : > { %v1512_v14 = vrot.slane %v1511_v11, 4 }
 0x1b8   : > { %v1568_v41 = vadd.f32 %v1567_v58, %v1566_v21 }
 0x1b9   : > { %v1513_v38 = vadd.f32 %v1512_v14, %v1511_v11 }
 0x1ba   : > { %v1569_v30 = vrot.slane %v1568_v41, 4 }
 0x1bb   : > { %v1514_v20 = vrot.slane %v1513_v38, 2 }
 0x1bc   : > { %v1570_v31 = vadd.f32 %v1569_v30, %v1568_v41 }
 0x1bd   : > { %v1515_v48 = vadd.f32 %v1514_v20, %v1513_v38 }
 0x1be   : > { %v1571_v36 = vrot.slane %v1570_v31, 2 }
 0x1bf   : > { %v1516_v39 = vrot.slane %v1515_v48, 1 }
 0x1c0   : > { %v1572_v17 = vadd.f32 %v1571_v36, %v1570_v31 }
 0x1c1   : > { %v1517_v24 = vadd.f32 %v1516_v39, %v1515_v48 }
 0x1c2   : > { %v1573_v45 = vrot.slane %v1572_v17, 1 }
 0x1c3   : > { %v1518_v7 = vadd.f32 %v1517_v24, %v1480_v22 }
 0x1c4   : > { %v1574_v9 = vadd.f32 %v1573_v45, %v1572_v17 }
 0x1c5   : > { %1520 = vst.msk [vmem:[%s2543_s20] sm:$0x1] %vm1519_vm4, %v1518_v7 }
 0x1c6   : > { %v1575_v47 = vadd.f32 %v1574_v9, %v1521_v55 }
 0x1c8   : > { %1576 = vst.msk [vmem:[%s2549_s30] sm:$0x1] %vm1519_vm4, %v1575_v47 }
 0x1c9 PF: > { %s17_s25 = sadd.s32 1, %s2447_s25   ;;  %s3137_s21 = smov %s2439_s23 }
 0x1ca   : > { %p14_p8 = scmp.ge.s32.totalorder %s17_s25, 6   ;;  %s3138_s22 = smov %s2443_s24 }
 0x1cb   : > { %s3139_s23 = smov %s3142_s26  ;;  %s3140_s24 = smov %s3146_s27 }
 0x1cc   :  { %16 = sbr.rel (!%p14_p8) target bundleno = 3 (0x3), region = 102 }

// kernel: _lambda_.15
= control target key start
LH: loop header
LB: loop body
LE: loop exit
PB: predicated region body
PF: predicated region fallthrough
CT: control target
= control target key end

     0   :  { %s420_s0 = inlined_call_operand.vmem [shape: bf16[2,64,128], index: 0, kind: input, shape index: {}]   ;;  %s421_s1 = inlined_call_operand.vmem [shape: f32[1,1,128], index: 1, kind: input, shape index: {}]   ;;  %s422_s2 = inlined_call_operand.vmem [shape: f32[1,1,128], index: 2, kind: input, shape index: {}]   ;;  %s423_s3 = inlined_call_operand.vmem [shape: f32[128,10], index: 3, kind: input, shape index: {}]   ;;  %s424_s4 = inlined_call_operand.vmem [shape: f32[1,10], index: 4, kind: input, shape index: {}]   ;;  %s425_s5 = inlined_call_operand.hbm [shape: f32[2,10], index: 5, kind: output, shape index: {}]  }
   0x1   :  { %v159_v0 = vld [vmem:[%s423_s3 + $0x78] sm:$0xff]  ;;  %v158_v1 = vld [vmem:[%s423_s3 + $0x70] sm:$0xff]  ;;  %v157_v2 = vld [vmem:[%s423_s3 + $0x68] sm:$0xff] }
   0x2   :  { %169 = vmatpush.msra.mxu0 %v159_v0  ;;  %v156_v3 = vld [vmem:[%s423_s3 + $0x60] sm:$0xff]  ;;  %v239_v5 = vld [vmem:[%s420_s0 + $0x8] sm:$0xff]   ;;  %v155_v6 = vld [vmem:[%s423_s3 + $0x58] sm:$0xff] }
   0x3   :  { %v208_v4 = vld [vmem:[%s420_s0] sm:$0xff]   ;;  %v154_v7 = vld [vmem:[%s423_s3 + $0x50] sm:$0xff]  ;;  %v243_v12 = vld [vmem:[%s420_s0 + $0x28] sm:$0xff]   ;;  %v213_v14 = vunpack.c.l.bf16 %v239_v5 }
   0x4   :  { %170 = vmatpush.msra.mxu0 %v158_v1  ;;  %v209_v8 = vunpack.c.l.bf16 %v208_v4  ;;  %v210_v9 = vunpack.c.h.bf16 %v208_v4  ;;  %v242_v10 = vld [vmem:[%s420_s0 + $0x20] sm:$0xff]   ;;  %v240_v11 = vld [vmem:[%s420_s0 + $0x10] sm:$0xff]   ;;  %v229_v17 = vunpack.c.l.bf16 %v243_v12 }
   0x5   :  { %v244_v13 = vld [vmem:[%s420_s0 + $0x30] sm:$0xff]   ;;  %v225_v15 = vunpack.c.l.bf16 %v242_v10  ;;  %v226_v16 = vunpack.c.h.bf16 %v242_v10  ;;  %v248_v18 = vld [vmem:[%s421_s1] ss:$0 sm:$0xff] }
   0x6   :  { %171 = vmatpush.msra.mxu0 %v157_v2 }
   0x8   :  { %172 = vmatpush.msra.mxu0 %v156_v3 }
   0xa   :  { %173 = vmatpush.msra.mxu0 %v155_v6 }
   0xb   :  { %10 = vsyncpa [#allocation3], 0  ;;  %v153_v19 = vld [vmem:[%s423_s3 + $0x48] sm:$0xff]  ;;  %v214_v20 = vunpack.c.h.bf16 %v239_v5  ;;  %v230_v21 = vunpack.c.h.bf16 %v243_v12  ;;  %v57_v22 = vmul.f32 %v248_v18, %v209_v8  ;;  %v58_v23 = vmul.f32 %v248_v18, %v210_v9  ;;  %v356_v24 = vld [vmem:[%s422_s2] ss:$0 sm:$0xff]  ;;  %s280_s18 = smov [#allocation2]  }
   0xc   :  { %174 = vmatpush.msra.mxu0 %v154_v7  ;;  %v217_v25 = vunpack.c.l.bf16 %v240_v11  ;;  %v233_v26 = vunpack.c.l.bf16 %v244_v13  ;;  %v152_v27 = vld [vmem:[%s423_s3 + $0x40] sm:$0xff]  ;;  %v241_v28 = vld [vmem:[%s420_s0 + $0x18] sm:$0xff]   ;;  %v59_v30 = vmul.f32 %v248_v18, %v213_v14  ;;  %v65_v31 = vmul.f32 %v248_v18, %v225_v15  ;;  %v150_v46 = vld [vmem:[%s423_s3 + $0x30] sm:$0xff]  ;;  %s196_s19 = sshll.u32 %s280_s18, 4  ;;  %s198_s22 = sshll.u32 %s425_s5, 4  ;;  %s197_s19 = int_to_ptr.vmem [resolvable:$true] %s196_s19  ;;  %s199_s22 = int_to_ptr.hbm [resolvable:$true] %s198_s22 }
   0xd   :  { %v245_v29 = vld [vmem:[%s420_s0 + $0x38] sm:$0xff]   ;;  %v66_v32 = vmul.f32 %v248_v18, %v226_v16  ;;  %v67_v33 = vmul.f32 %v248_v18, %v229_v17  ;;  %v218_v34 = vunpack.c.h.bf16 %v240_v11  ;;  %v234_v35 = vunpack.c.h.bf16 %v244_v13  ;;  %v149_v55 = vld [vmem:[%s423_s3 + $0x28] sm:$0xff]  ;;  %v148_v1 = vld [vmem:[%s423_s3 + $0x20] sm:$0xff] }
   0xe   :  { %175 = vmatpush.msra.mxu0 %v153_v19  ;;  %v279_v36 = vmov 64.0   ;;  %v151_v37 = vld [vmem:[%s423_s3 + $0x38] sm:$0xff]  ;;  %v60_v38 = vmul.f32 %v248_v18, %v214_v20  ;;  %v68_v39 = vmul.f32 %v248_v18, %v230_v21  ;;  %v77_v40 = vadd.f32 %v356_v24, %v57_v22  ;;  %v146_v17 = vld [vmem:[%s423_s3 + $0x10] sm:$0xff] }
   0xf   :  { %251 = vrcp.f32 %v279_v36  ;;  %v78_v41 = vadd.f32 %v356_v24, %v58_v23  ;;  %v221_v42 = vunpack.c.l.bf16 %v241_v28  ;;  %v237_v43 = vunpack.c.l.bf16 %v245_v29  ;;  %v147_v10 = vld [vmem:[%s423_s3 + $0x18] sm:$0xff] }
  0x10   :  { %176 = vmatpush.msra.mxu0 %v152_v27  ;;  %v61_v44 = vmul.f32 %v248_v18, %v217_v25  ;;  %v69_v45 = vmul.f32 %v248_v18, %v233_v26  ;;  %v79_v47 = vadd.f32 %v356_v24, %v59_v30  ;;  %v85_v48 = vadd.f32 %v356_v24, %v65_v31  ;;  %v145_v25 = vld [vmem:[%s423_s3 + $0x8] sm:$0xff]  ;;  %v144_v30 = vld [vmem:[%s423_s3] sm:$0xff] }
  0x11   :  { %v86_v49 = vadd.f32 %v356_v24, %v66_v32  ;;  %v87_v50 = vadd.f32 %v356_v24, %v67_v33  ;;  %v222_v51 = vunpack.c.h.bf16 %v241_v28  ;;  %v238_v52 = vunpack.c.h.bf16 %v245_v29 }
  0x12   :  { %177 = vmatpush.msra.mxu0 %v151_v37  ;;  %v62_v53 = vmul.f32 %v248_v18, %v218_v34  ;;  %v70_v54 = vmul.f32 %v248_v18, %v234_v35  ;;  %v80_v56 = vadd.f32 %v356_v24, %v60_v38  ;;  %v88_v57 = vadd.f32 %v356_v24, %v68_v39 }
  0x13   :  { %v93_v58 = vmax.f32 %v77_v40, 0.0  ;;  %v94_v59 = vmax.f32 %v78_v41, 0.0  ;;  %v63_v61 = vmul.f32 %v248_v18, %v221_v42  ;;  %v71_v62 = vmul.f32 %v248_v18, %v237_v43 }
  0x14   :  { %178 = vmatpush.msra.mxu0 %v150_v46  ;;  %v81_v63 = vadd.f32 %v356_v24, %v61_v44  ;;  %v89_v0 = vadd.f32 %v356_v24, %v69_v45  ;;  %v95_v2 = vmax.f32 %v79_v47, 0.0  ;;  %v101_v3 = vmax.f32 %v85_v48, 0.0 }
  0x15   :  { %v384_v60 = vpop.eup %251  ;;  %v102_v4 = vmax.f32 %v86_v49, 0.0  ;;  %v103_v5 = vmax.f32 %v87_v50, 0.0  ;;  %v64_v6 = vmul.f32 %v248_v18, %v222_v51  ;;  %v72_v7 = vmul.f32 %v248_v18, %v238_v52 }
  0x16   :  { %179 = vmatpush.msra.mxu0 %v149_v55  ;;  %v82_v8 = vadd.f32 %v356_v24, %v62_v53  ;;  %v90_v9 = vadd.f32 %v356_v24, %v70_v54  ;;  %v96_v11 = vmax.f32 %v80_v56, 0.0  ;;  %v104_v12 = vmax.f32 %v88_v57, 0.0 }
  0x17   :  { %v109_v13 = vadd.f32 %v94_v59, %v93_v58  ;;  %v122_v14 = vadd.f32 %v102_v4, %v101_v3  ;;  %v83_v15 = vadd.f32 %v356_v24, %v63_v61  ;;  %v91_v16 = vadd.f32 %v356_v24, %v71_v62 }
  0x18   :  { %180 = vmatpush.msra.mxu0 %v148_v1  ;;  %v97_v18 = vmax.f32 %v81_v63, 0.0  ;;  %v105_v19 = vmax.f32 %v89_v0, 0.0  ;;  %v84_v22 = vadd.f32 %v356_v24, %v64_v6  ;;  %v92_v23 = vadd.f32 %v356_v24, %v72_v7  ;;  %v250_v63 = vld [vmem:[%s424_s4] ss:$0 sm:$0xff] }
  0x19   :  { %v110_v20 = vadd.f32 %v109_v13, %v95_v2  ;;  %v123_v21 = vadd.f32 %v122_v14, %v103_v5  ;;  %v98_v26 = vmax.f32 %v82_v8, 0.0  ;;  %v106_v27 = vmax.f32 %v90_v9, 0.0 }
  0x1a   :  { %181 = vmatpush.msra.mxu0 %v147_v10  ;;  %v99_v31 = vmax.f32 %v83_v15, 0.0  ;;  %v107_v32 = vmax.f32 %v91_v16, 0.0  ;;  %v136_v24 = vmul.f32 64.0, %v384_v60  ;;  %v100_v35 = vmax.f32 %v84_v22, 0.0 }
  0x1b   :  { %v111_v28 = vadd.f32 %v110_v20, %v96_v11  ;;  %v124_v29 = vadd.f32 %v123_v21, %v104_v12  ;;  %v108_v36 = vmax.f32 %v92_v23, 0.0  ;;  %vm140_vm0 = vweird.f32 %v384_v60 }
  0x1c   :  { %182 = vmatpush.msra.mxu0 %v146_v17  ;;  %v137_v41 = vsub.f32 1.0, %v136_v24  ;;  %vm166_vm1 = vcmask 1041409   ;;  %vm189_vm2 = vcmask 74752  }
  0x1d   :  { %v112_v33 = vadd.f32 %v111_v28, %v97_v18  ;;  %v125_v34 = vadd.f32 %v124_v29, %v105_v19 }
  0x1e   :  { %183 = vmatpush.msra.mxu0 %v145_v25  ;;  %v138_v46 = vmul.f32 %v384_v60, %v137_v41 }
  0x1f   :  { %v113_v37 = vadd.f32 %v112_v33, %v98_v26  ;;  %v126_v38 = vadd.f32 %v125_v34, %v106_v27 }
  0x20   :  { %184 = vmatpush.msra.mxu0 %v144_v30  ;;  %v139_v51 = vadd.f32 %v384_v60, %v138_v46 }
  0x21   :  { %v114_v39 = vadd.f32 %v113_v37, %v99_v31  ;;  %v127_v40 = vadd.f32 %v126_v38, %v107_v32 }
  0x22   :  { %v141_v56 = vsel %vm140_vm0, %v384_v60, %v139_v51 }
  0x23   :  { %v115_v42 = vadd.f32 %v114_v39, %v100_v35  ;;  %v128_v43 = vadd.f32 %v127_v40, %v108_v36 }
  0x25   :  { %v116_v44 = vrot.slane %v115_v42, 4  ;;  %v129_v45 = vrot.slane %v128_v43, 4 }
  0x27   :  { %v117_v47 = vadd.f32 %v116_v44, %v115_v42  ;;  %v130_v48 = vadd.f32 %v129_v45, %v128_v43 }
  0x29   :  { %v118_v49 = vrot.slane %v117_v47, 2  ;;  %v131_v50 = vrot.slane %v130_v48, 2 }
  0x2b   :  { %v119_v52 = vadd.f32 %v118_v49, %v117_v47  ;;  %v132_v53 = vadd.f32 %v131_v50, %v130_v48 }
  0x2d   :  { %v120_v54 = vrot.slane %v119_v52, 1  ;;  %v133_v55 = vrot.slane %v132_v53, 1 }
  0x2f   :  { %v121_v57 = vadd.f32 %v120_v54, %v119_v52  ;;  %v134_v58 = vadd.f32 %v133_v55, %v132_v53 }
  0x31   :  { %v142_v59 = vmul.f32 %v141_v56, %v121_v57  ;;  %v143_v61 = vmul.f32 %v141_v56, %v134_v58 }
  0x33   :  { %v167_v62 = vsel %vm166_vm1, %v143_v61, %v142_v59 }
  0x34   :  { %185 = vmatmul.f32.vlgmr.msra.gmra.mxu0 %v167_v62 }
  0xb1   :  { %v186_v0 = vpop.f32.mrf.mxu0 }
  0xb2   :  { %v187_v60 = vadd.f32 %v250_v63, %v186_v0 }
  0xb4   :  { %190 = vst.msk [vmem:[#allocation2] sm:$0x3] %vm189_vm2, %v187_v60 }
  0xb5   :  { %201 = dma.vmem_to_hbm [thread:$0]  %s197_s19, 32, %s199_s22, [#allocation3]  }
  0xb6   :  { %277 = dma.done.wait [#allocation3], 32  }
  0xb7   :  { %278 = vsyncadd [#allocation3], 4294967264 }
  0xb8   :  { %206 = vsyncpa [#allocation3], 1 }

// kernel: _lambda_.13
= control target key start
LH: loop header
LB: loop body
LE: loop exit
PB: predicated region body
PF: predicated region fallthrough
CT: control target
= control target key end

     0   :  { %s1588_s15 = smov 0   ;;  %s1590_s16 = smov 0   ;;  %s1875_s0 = inlined_call_operand.vmem [shape: bf16[2,2,9,8,192], index: 0, kind: input, shape index: {}]   ;;  %s1876_s1 = inlined_call_operand.vmem [shape: bf16[3,192,128], index: 1, kind: input, shape index: {}]   ;;  %s1877_s2 = inlined_call_operand.vmem [shape: bf16[2,64,128], index: 2, kind: output, shape index: {0}]   ;;  %s1878_s3 = inlined_call_operand.vmem [shape: f32[2,1,128], index: 3, kind: output, shape index: {1}]   ;;  %s1879_s4 = inlined_call_operand.vmem [shape: f32[2,1,128], index: 4, kind: output, shape index: {2}]  }
   0x1   :  { %s1592_s17 = smov 0  }
   0x2 LB: > { %s27_s18 = sadd.s32 1, %s1556_s16  ;;  %p1098_p0 = scmp.ge.s32.totalorder %s1560_s17, 1  ;;  %s1560_s17 = sphi %s1592_s17, %s15_s17   ;;  %s1556_s16 = sphi %s1590_s16, %s1881_s16   ;;  %s1552_s15 = sphi %s1588_s15, %s1880_s15  }
   0x3   : > { %p29_p1 = scmp.ge.s32.totalorder %s27_s18, 2  ;;  %p181_p2 = scmp.lt.s32.totalorder %s1560_s17, 3 }
   0x5   : > { %s1883_s18 = smov (%p29_p1, %s27_s18), 0  ;;  %p182_p3 = pnand %p1098_p0, %p181_p2 }
   0x6   : > { %p217_p4 = scmp.lt.s32.totalorder (!%p182_p3), %s1552_s15, 1 }
   0x7   : > { %185 = sbr.rel (%p182_p3) target bundleno = 293 (0x125), region = 28 }
   0xc   : > { %v1456_v0 = vld [vmem:[%s1876_s1 + $0x98] sm:$0xff]  ;;  %v1455_v3 = vld [vmem:[%s1876_s1 + $0x90] sm:$0xff]  ;;  %s1885_s15 = smov (!%p217_p4, %s1552_s15), 1  ;;  %v1454_v7 = vld [vmem:[%s1876_s1 + $0x88] sm:$0xff]  ;;  %vm419_vm0 = vcmask 523264  }
   0xd   : > { %v1436_v1 = vld [vmem:[%s1876_s1 + $0x38] sm:$0xff]  ;;  %432 = vmatpush.bf16.msra.mxu0 %v1456_v0  ;;  %v1435_v4 = vld [vmem:[%s1876_s1 + $0x30] sm:$0xff]  ;;  %s1512_s5 = smul.u32 144, %s1885_s15  ;;  %v1434_v8 = vld [vmem:[%s1876_s1 + $0x28] sm:$0xff]  ;;  %s1834_s6 = scalar_lea.vmem %s1878_s3, %s1885_s15 }
   0xe   : > { %v1615_v2 = vld [vmem:[%s1876_s1 + $0x58] sm:$0xff]  ;;  %610 = vmatpush.bf16.msra.mxu2 %v1436_v1  ;;  %v1629_v5 = vld [vmem:[%s1876_s1 + $0x50] sm:$0xff]  ;;  %v1647_v9 = vld [vmem:[%s1876_s1 + $0x48] sm:$0xff]  ;;  %s1840_s9 = scalar_lea.vmem %s1879_s4, %s1885_s15  ;;  %s1420_s10 = sshll.u32 %s1885_s15, 5 }
   0xf   : > { %1508 = vmatpush.bf16.msra.mxu3 %v1615_v2  ;;  %v1635_v6 = vld [vmem:[%s1876_s1 + $0xb8] sm:$0xff]  ;;  %v1653_v10 = vld [vmem:[%s1876_s1 + $0xb0] sm:$0xff]  ;;  %s1658_s22 = scalar_lea.vmem %s1875_s0, %s1512_s5  ;;  %v1453_v11 = vld [vmem:[%s1876_s1 + $0x80] sm:$0xff]  ;;  %s1848_s13 = scalar_lea.vmem %s1877_s2, %s1420_s10 }
  0x10   : > { %1504 = vmatpush.bf16.msra.mxu1 %v1635_v6  ;;  %v1433_v12 = vld [vmem:[%s1876_s1 + $0x20] sm:$0xff]  ;;  %v1423_v14 = vld [vmem:[%s1658_s22 + $0x14] sm:$0xf]  ;;  %v1230_v15 = vld [vmem:[%s1658_s22 + $0x18] sm:$0xf0] }
  0x11   : > { %433 = vmatpush.bf16.msra.mxu0 %v1455_v3  ;;  %v1669_v13 = vld [vmem:[%s1876_s1 + $0x40] sm:$0xff]  ;;  %v1678_v16 = vld [vmem:[%s1876_s1 + $0xa8] sm:$0xff]  ;;  %v1480_v17 = vld [vmem:[%s1876_s1 + $0x118] sm:$0xff]  ;;  %v1233_v18 = vor.u32 %v1423_v14, %v1230_v15 }
  0x12   : > { %611 = vmatpush.bf16.msra.mxu2 %v1435_v4  ;;  %v1452_v19 = vld [vmem:[%s1876_s1 + $0x78] sm:$0xff]  ;;  %v1694_v21 = vld [vmem:[%s1876_s1 + $0xa0] sm:$0xff]  ;;  %v1445_v22 = vld [vmem:[%s1658_s22 + $0x6c] sm:$0xf] }
  0x13   : > { %1509 = vmatpush.bf16.msra.mxu3 %v1629_v5  ;;  %v1432_v20 = vld [vmem:[%s1876_s1 + $0x18] sm:$0xff]  ;;  %v1154_v23 = vld [vmem:[%s1658_s22 + $0x70] sm:$0xf0]  ;;  %v1478_v30 = vld [vmem:[%s1876_s1 + $0x108] sm:$0xff] }
  0x14   : > { %1505 = vmatpush.bf16.msra.mxu1 %v1653_v10  ;;  %v1479_v24 = vld [vmem:[%s1876_s1 + $0x110] sm:$0xff]  ;;  %v1476_v25 = vld [vmem:[%s1876_s1 + $0xf8] sm:$0xff]  ;;  %v1157_v27 = vor.u32 %v1445_v22, %v1154_v23  ;;  %v1450_v31 = vld [vmem:[%s1876_s1 + $0x68] sm:$0xff] }
  0x15   : > { %434 = vmatpush.bf16.msra.mxu0 %v1454_v7  ;;  %v1451_v26 = vld [vmem:[%s1876_s1 + $0x70] sm:$0xff]  ;;  %v1430_v32 = vld [vmem:[%s1876_s1 + $0x8] sm:$0xff]  ;;  %v1477_v34 = vld [vmem:[%s1876_s1 + $0x100] sm:$0xff] }
  0x16   : > { %612 = vmatpush.bf16.msra.mxu2 %v1434_v8  ;;  %v1431_v28 = vld [vmem:[%s1876_s1 + $0x10] sm:$0xff]  ;;  %v1474_v33 = vld [vmem:[%s1876_s1 + $0xe8] sm:$0xff]  ;;  %v1449_v35 = vld [vmem:[%s1876_s1 + $0x60] sm:$0xff] }
  0x17   : > { %1510 = vmatpush.bf16.msra.mxu3 %v1647_v9  ;;  %v1475_v29 = vld [vmem:[%s1876_s1 + $0xf0] sm:$0xff]  ;;  %v1429_v36 = vld [vmem:[%s1876_s1] sm:$0xff]  ;;  %v1136_v37 = vld [vmem:[%s1658_s22 + $0x48] sm:$0xf] }
  0x18   : > { %1506 = vmatpush.bf16.msra.mxu1 %v1678_v16  ;;  %v1442_v38 = vld [vmem:[%s1658_s22 + $0x4c] sm:$0xf0]  ;;  %v1220_v39 = vld [vmem:[%s1658_s22] sm:$0xf]  ;;  %v1422_v40 = vld [vmem:[%s1658_s22 + $0x4] sm:$0xf0] }
  0x19   : > { %435 = vmatpush.bf16.msra.mxu0 %v1453_v11  ;;  %v1425_v41 = vld [vmem:[%s1658_s22 + $0x24] sm:$0xf]  ;;  %v1238_v42 = vld [vmem:[%s1658_s22 + $0x28] sm:$0xf0]  ;;  %v1137_v44 = vor.u32 %v1442_v38, %v1136_v37  ;;  %v1221_v45 = vor.u32 %v1422_v40, %v1220_v39  ;;  %v1447_v47 = vld [vmem:[%s1658_s22 + $0x7c] sm:$0xf] }
  0x1a   : > { %613 = vmatpush.bf16.msra.mxu2 %v1433_v12  ;;  %v1473_v43 = vld [vmem:[%s1876_s1 + $0xe0] sm:$0xff]  ;;  %v1241_v46 = vor.u32 %v1425_v41, %v1238_v42  ;;  %v1472_v49 = vld [vmem:[%s1876_s1 + $0xd8] sm:$0xff]  ;;  %v1471_v51 = vld [vmem:[%s1876_s1 + $0xd0] sm:$0xff] }
  0x1b   : > { %1511 = vmatpush.bf16.msra.mxu3 %v1669_v13  ;;  %v1162_v48 = vld [vmem:[%s1658_s22 + $0x80] sm:$0xf0]  ;;  %v1470_v52 = vld [vmem:[%s1876_s1 + $0xc8] sm:$0xff]  ;;  %v1144_v53 = vld [vmem:[%s1658_s22 + $0x58] sm:$0xf] }
  0x1c   : > { %1507 = vmatpush.bf16.msra.mxu1 %v1694_v21  ;;  %v1165_v50 = vor.u32 %v1447_v47, %v1162_v48  ;;  %v1444_v54 = vld [vmem:[%s1658_s22 + $0x5c] sm:$0xf0]  ;;  %v1228_v55 = vld [vmem:[%s1658_s22 + $0x10] sm:$0xf]  ;;  %v1424_v56 = vld [vmem:[%s1658_s22 + $0x14] sm:$0xf0] }
  0x1d   : > { %436 = vmatpush.bf16.msra.mxu0 %v1452_v19  ;;  %v1427_v57 = vld [vmem:[%s1658_s22 + $0x34] sm:$0xf]  ;;  %v1246_v58 = vld [vmem:[%s1658_s22 + $0x38] sm:$0xf0]  ;;  %v1469_v59 = vld [vmem:[%s1876_s1 + $0xc0] sm:$0xff]  ;;  %v1145_v60 = vor.u32 %v1444_v54, %v1144_v53  ;;  %v1229_v61 = vor.u32 %v1424_v56, %v1228_v55 }
  0x1e   : > { %1299 = vmatmul.msk.bf16.vlgmr.msra.gmra.mxu3 %vm419_vm0, %v1233_v18  ;;  %614 = vmatpush.bf16.msra.mxu2 %v1432_v20  ;;  %v1249_v62 = vor.u32 %v1427_v57, %v1246_v58  ;;  %v1336_v63 = vld [vmem:[%s1658_s22 + $0x8] sm:$0xf]  ;;  %v1462_v0 = vld [vmem:[%s1658_s22 + $0xc] sm:$0xf0]  ;;  %v1236_v4 = vld [vmem:[%s1658_s22 + $0x20] sm:$0xf] }
  0x1f   : > { %858 = vmatpush.bf16.msrb.mxu3 %v1480_v17  ;;  %1216 = vmatmul.msk.bf16.vlgmr.msra.gmra.mxu1 %vm419_vm0, %v1157_v27  ;;  %v1337_v1 = vor.u32 %v1462_v0, %v1336_v63  ;;  %v1446_v3 = vld [vmem:[%s1658_s22 + $0x6c] sm:$0xf0]  ;;  %v1338_v7 = vld [vmem:[%s1658_s22 + $0x10] sm:$0xf0]  ;;  %v1344_v11 = vld [vmem:[%s1658_s22 + $0x18] sm:$0xf] }
  0x20   : > { %825 = vmatpush.bf16.msrb.mxu1 %v1476_v25  ;;  %v1464_v12 = vld [vmem:[%s1658_s22 + $0x1c] sm:$0xf0]  ;;  %v1160_v14 = vld [vmem:[%s1658_s22 + $0x78] sm:$0xf]  ;;  %v1463_v18 = vld [vmem:[%s1658_s22 + $0x1c] sm:$0xf] }
  0x21   : > { %437 = vmatpush.bf16.msra.mxu0 %v1451_v26  ;;  %v1448_v15 = vld [vmem:[%s1658_s22 + $0x7c] sm:$0xf0]  ;;  %v1428_v17 = vld [vmem:[%s1658_s22 + $0x34] sm:$0xf0]  ;;  %v1346_v19 = vld [vmem:[%s1658_s22 + $0x20] sm:$0xf0] }
  0x22   : > { %615 = vmatpush.bf16.msra.mxu2 %v1431_v28  ;;  %v1161_v20 = vor.u32 %v1448_v15, %v1160_v14  ;;  %v1349_v22 = vor.u32 %v1463_v18, %v1346_v19  ;;  %v1352_v23 = vld [vmem:[%s1658_s22 + $0x28] sm:$0xf]  ;;  %v1441_v26 = vld [vmem:[%s1658_s22 + $0x4c] sm:$0xf]  ;;  %v1138_v27 = vld [vmem:[%s1658_s22 + $0x50] sm:$0xf0] }
  0x23   : > { %859 = vmatpush.bf16.msrb.mxu3 %v1479_v24  ;;  %v1466_v24 = vld [vmem:[%s1658_s22 + $0x2c] sm:$0xf0]  ;;  %v1421_v28 = vld [vmem:[%s1658_s22 + $0x4] sm:$0xf]  ;;  %v1443_v38 = vld [vmem:[%s1658_s22 + $0x5c] sm:$0xf] }
  0x24   : > { %826 = vmatpush.bf16.msrb.mxu1 %v1475_v29  ;;  %v1353_v25 = vor.u32 %v1466_v24, %v1352_v23  ;;  %v1222_v29 = vld [vmem:[%s1658_s22 + $0x8] sm:$0xf0]  ;;  %v1146_v39 = vld [vmem:[%s1658_s22 + $0x60] sm:$0xf0]  ;;  %v1467_v40 = vld [vmem:[%s1658_s22 + $0x3c] sm:$0xf] }
  0x25   : > { %438 = vmatpush.bf16.msra.mxu0 %v1450_v31  ;;  %v1354_v31 = vld [vmem:[%s1658_s22 + $0x30] sm:$0xf0]  ;;  %v1362_v41 = vld [vmem:[%s1658_s22 + $0x40] sm:$0xf0]  ;;  %v1149_v42 = vor.u32 %v1443_v38, %v1146_v39 }
  0x26   : > { %616 = vmatpush.bf16.msra.mxu2 %v1430_v32  ;;  %v1141_v32 = vor.u32 %v1441_v26, %v1138_v27  ;;  %v1562_v26 = vmov 0.0  }
  0x27   : > { %860 = vmatpush.bf16.msrb.mxu3 %v1478_v30  ;;  %v1465_v30 = vld [vmem:[%s1658_s22 + $0x2c] sm:$0xf]  ;;  %911 = vst [vmem:[%s1834_s6] sm:$0x1] %v1562_v26 }
  0x28   : > { %827 = vmatpush.bf16.msrb.mxu1 %v1474_v33  ;;  %v1225_v33 = vor.u32 %v1421_v28, %v1222_v29  ;;  %912 = vst [vmem:[%s1840_s9] sm:$0x1] %v1562_v26 }
  0x29   : > { %439 = vmatpush.bf16.msra.mxu0 %v1449_v35  ;;  %v1360_v35 = vld [vmem:[%s1658_s22 + $0x38] sm:$0xf] }
  0x2a   : > { %617 = vmatpush.bf16.msra.mxu2 %v1429_v36  ;;  %v1468_v36 = vld [vmem:[%s1658_s22 + $0x3c] sm:$0xf0] }
  0x2b   : > { %861 = vmatpush.bf16.msrb.mxu3 %v1477_v34  ;;  %v1357_v34 = vor.u32 %v1465_v30, %v1354_v31  ;;  %v1361_v37 = vor.u32 %v1468_v36, %v1360_v35 }
  0x2c   : > { %828 = vmatpush.bf16.msrb.mxu1 %v1473_v43  ;;  %440 = vmatmul.bf16.vlgmr.msra.gmra.mxu0 %v1137_v44  ;;  %v1365_v43 = vor.u32 %v1467_v40, %v1362_v41 }
  0x2d   : > { %465 = vmatpush.bf16.msrb.mxu0 %v1635_v6  ;;  %618 = vmatmul.bf16.vlgmr.msra.gmra.mxu2 %v1221_v45  ;;  %v1461_v6 = vld [vmem:[%s1658_s22 + $0xc] sm:$0xf] }
  0x2e   : > { %643 = vmatpush.bf16.msrb.mxu2 %v1615_v2  ;;  %1300 = vmatmul.msk.bf16.gmra.mxu3 %vm419_vm0, %v1241_v46  ;;  %v1152_v2 = vld [vmem:[%s1658_s22 + $0x68] sm:$0xf] }
  0x2f   : > { %1217 = vmatmul.msk.bf16.gmra.mxu1 %vm419_vm0, %v1165_v50  ;;  %v1153_v8 = vor.u32 %v1446_v3, %v1152_v2 }
  0x30   : > { %829 = vmatpush.bf16.msrb.mxu1 %v1472_v49 }
  0x31   : > { %466 = vmatpush.bf16.msrb.mxu0 %v1653_v10  ;;  %v1341_v10 = vor.u32 %v1461_v6, %v1338_v7 }
  0x32   : > { %644 = vmatpush.bf16.msrb.mxu2 %v1629_v5  ;;  %v1426_v5 = vld [vmem:[%s1658_s22 + $0x24] sm:$0xf0] }
  0x34   : > { %830 = vmatpush.bf16.msrb.mxu1 %v1471_v51 }
  0x35   : > { %467 = vmatpush.bf16.msrb.mxu0 %v1678_v16  ;;  %v1244_v16 = vld [vmem:[%s1658_s22 + $0x30] sm:$0xf] }
  0x36   : > { %645 = vmatpush.bf16.msrb.mxu2 %v1647_v9  ;;  %v1237_v9 = vor.u32 %v1426_v5, %v1236_v4 }
  0x38   : > { %831 = vmatpush.bf16.msrb.mxu1 %v1470_v52 }
  0x39   : > { %468 = vmatpush.bf16.msrb.mxu0 %v1694_v21  ;;  %v1245_v21 = vor.u32 %v1428_v17, %v1244_v16 }
  0x3a   : > { %646 = vmatpush.bf16.msrb.mxu2 %v1669_v13  ;;  %v1345_v13 = vor.u32 %v1464_v12, %v1344_v11 }
  0x3c   : > { %832 = vmatpush.bf16.msrb.mxu1 %v1469_v59  ;;  %445 = vmatmul.bf16.gmra.mxu0 %v1145_v60 }
  0x3d   : > { %623 = vmatmul.bf16.gmra.mxu2 %v1229_v61 }
  0x3e   : > { %1301 = vmatmul.msk.bf16.gmra.mxu3 %vm419_vm0, %v1249_v62 }
  0x3f   : > { %833 = vmatmul.bf16.vlgmr.msrb.gmra.mxu1 %v1337_v1 }
  0x4c   : > { %450 = vmatmul.bf16.gmra.mxu0 %v1153_v8 }
  0x4d   : > { %628 = vmatmul.bf16.gmra.mxu2 %v1237_v9 }
  0x4e   : > { %1414 = vmatmul.msk.bf16.vlgmr.msrb.gmra.mxu3 %vm419_vm0, %v1341_v10 }
  0x4f   : > { %838 = vmatmul.bf16.gmra.mxu1 %v1345_v13 }
  0x5c   : > { %455 = vmatmul.bf16.gmra.mxu0 %v1161_v20 }
  0x5d   : > { %633 = vmatmul.bf16.gmra.mxu2 %v1245_v21 }
  0x5e   : > { %1415 = vmatmul.msk.bf16.gmra.mxu3 %vm419_vm0, %v1349_v22 }
  0x5f   : > { %843 = vmatmul.bf16.gmra.mxu1 %v1353_v25 }
  0x6c   : > { %1214 = vmatmul.msk.bf16.vlgmr.msrb.gmra.mxu0 %vm419_vm0, %v1141_v32 }
  0x6d   : > { %1298 = vmatmul.msk.bf16.vlgmr.msrb.gmra.mxu2 %vm419_vm0, %v1225_v33 }
  0x6e   : > { %1416 = vmatmul.msk.bf16.gmra.mxu3 %vm419_vm0, %v1357_v34 }
  0x6f   : > { %848 = vmatmul.bf16.gmra.mxu1 %v1361_v37 }
  0x7c   : > { %1215 = vmatmul.msk.bf16.gmra.mxu0 %vm419_vm0, %v1149_v42 }
  0x7e   : > { %1417 = vmatmul.msk.bf16.gmra.mxu3 %vm419_vm0, %v1365_v43 }
  0x9c   : > { %v480_v44 = vpop.f32.mrf.mxu1 }
  0xa1   : > { %v1814_v45 = vpop.f32.mrf.mxu3 }
  0xa4   : > { %v482_v46 = vpop.f32.mrf.mxu1 }
  0xa9   : > { %v1816_v47 = vpop.f32.mrf.mxu3  ;;  %v441_v48 = vpop.f32.mrf.mxu0 }
  0xac   : > { %v485_v49 = vpop.f32.mrf.mxu1 }
  0xb0   : > { %v619_v50 = vpop.f32.mrf.mxu2 }
  0xb1   : > { %v658_v51 = vpop.f32.mrf.mxu3  ;;  %v443_v52 = vpop.f32.mrf.mxu0 }
  0xb4   : > { %v1818_v53 = vpop.f32.mrf.mxu1 }
  0xb8   : > { %v621_v54 = vpop.f32.mrf.mxu2 }
  0xb9   : > { %v660_v55 = vpop.f32.mrf.mxu3  ;;  %v446_v56 = vpop.f32.mrf.mxu0 }
  0xbc   : > { %v834_v60 = vpop.f32.mrf.mxu1 }
  0xc0   : > { %v624_v57 = vpop.f32.mrf.mxu2 }
  0xc1   : > { %v663_v58 = vpop.f32.mrf.mxu3  ;;  %v1820_v59 = vpop.f32.mrf.mxu0 }
  0xc4   : > { %v836_v0 = vpop.f32.mrf.mxu1 }
  0xc8   : > { %v1822_v61 = vpop.f32.mrf.mxu2 }
  0xc9   : > { %v1824_v62 = vpop.f32.mrf.mxu3  ;;  %v451_v63 = vpop.f32.mrf.mxu0 }
  0xca   : > { %v481_v1 = vadd.f32 %v480_v44, %v451_v63 }
  0xcc   : > { %v839_v7 = vpop.f32.mrf.mxu1 }
  0xd0   : > { %v629_v2 = vpop.f32.mrf.mxu2 }
  0xd1   : > { %v863_v3 = vpop.f32.mrf.mxu3  ;;  %v630_v4 = vadd.f32 %v629_v2, %v481_v1  ;;  %v453_v5 = vpop.f32.mrf.mxu0 }
  0xd2   : > { %v483_v28 = vadd.f32 %v482_v46, %v453_v5  ;;  %v864_v33 = vadd.f32 %v863_v3, %v834_v60 }
  0xd3   : > { %v659_v6 = vadd.f32 %v658_v51, %v630_v4 }
  0xd4   : > { %v1826_v12 = vpop.f32.mrf.mxu1 }
  0xd8   : > { %v631_v8 = vpop.f32.mrf.mxu2 }
  0xd9   : > { %v865_v9 = vpop.f32.mrf.mxu3  ;;  %v456_v10 = vpop.f32.mrf.mxu0  ;;  %v632_v32 = vadd.f32 %v631_v8, %v483_v28 }
  0xda   : > { %v486_v11 = vadd.f32 %v485_v49, %v456_v10  ;;  %v866_v40 = vadd.f32 %v865_v9, %v836_v0 }
  0xdb   : > { %v661_v39 = vadd.f32 %v660_v55, %v632_v32 }
  0xdc   : > { %v844_v22 = vpop.f32.mrf.mxu1 }
  0xe0   : > { %v634_v13 = vpop.f32.mrf.mxu2 }
  0xe1   : > { %v868_v14 = vpop.f32.mrf.mxu3  ;;  %v635_v15 = vadd.f32 %v634_v13, %v486_v11  ;;  %v458_v16 = vpop.f32.mrf.mxu0 }
  0xe2   : > { %v869_v60 = vadd.f32 %v868_v14, %v839_v7 }
  0xe3   : > { %v1828_v17 = vadd.f32 %v663_v58, %v635_v15 }
  0xe4   : > { %v846_v31 = vpop.f32.mrf.mxu1 }
  0xe8   : > { %v636_v18 = vpop.f32.mrf.mxu2 }
  0xe9   : > { %v870_v19 = vpop.f32.mrf.mxu3  ;;  %v470_v20 = vpop.f32.mrf.mxu0 }
  0xea   : > { %v471_v21 = vadd.f32 %v470_v20, %v441_v48 }
  0xec   : > { %v620_v23 = vadd.f32 %v619_v50, %v471_v21 }
  0xf0   : > { %v648_v24 = vpop.f32.mrf.mxu2 }
  0xf1   : > { %v873_v25 = vpop.f32.mrf.mxu3  ;;  %v472_v27 = vpop.f32.mrf.mxu0  ;;  %v649_v30 = vadd.f32 %v648_v24, %v620_v23 }
  0xf2   : > { %v473_v29 = vadd.f32 %v472_v27, %v443_v52  ;;  %v874_v34 = vadd.f32 %v873_v25, %v844_v22 }
  0xf3   : > { %v883_v36 = vadd.f32 %v864_v33, %v649_v30 }
  0xf4   : > { %v622_v35 = vadd.f32 %v621_v54, %v473_v29  ;;  %v887_v48 = vadd.f32 %v874_v34, %v659_v6 }
  0xf5   : > { %v930_v50 = vmul.f32 %v883_v36, %v883_v36 }
  0xf6   : > { %v934_v23 = vmul.f32 %v887_v48, %v887_v48 }
  0xf8   : > { %v650_v37 = vpop.f32.mrf.mxu2 }
  0xf9   : > { %v875_v38 = vpop.f32.mrf.mxu3  ;;  %v651_v41 = vadd.f32 %v650_v37, %v622_v35  ;;  %v475_v43 = vpop.f32.mrf.mxu0 }
  0xfa   : > { %v876_v42 = vadd.f32 %v875_v38, %v846_v31  ;;  %v476_v44 = vadd.f32 %v475_v43, %v446_v56  ;;  %v849_v56 = vpop.f32.mrf.mxu1  ;;  %v929_v43 = vld [vmem:[%s1840_s9] sm:$0x1] }
  0xfb   : > { %v884_v49 = vadd.f32 %v866_v40, %v651_v41  ;;  %v913_v40 = vld [vmem:[%s1834_s6] sm:$0x1] }
  0xfc   : > { %v888_v46 = vadd.f32 %v876_v42, %v661_v39  ;;  %v625_v51 = vadd.f32 %v624_v57, %v476_v44  ;;  %v488_v57 = vadd.f32 %v1818_v53, %v458_v16 }
  0xfd   : > { %v1484_v52 = vpack.c.bf16 %v884_v49, %v883_v36  ;;  %v914_v54 = vadd.f32 %v884_v49, %v883_v36  ;;  %v931_v55 = vmul.f32 %v884_v49, %v884_v49 }
  0xfe   : > { %v1494_v58 = vpack.c.bf16 %v888_v46, %v887_v48  ;;  %v654_v63 = vadd.f32 %v1814_v45, %v625_v51  ;;  %v637_v7 = vadd.f32 %v636_v18, %v488_v57  ;;  %v871_v45 = vadd.f32 %v870_v19, %v1826_v12 }
  0xff   : > { %1485 = vst [vmem:[%s1848_s13] sm:$0xff] %v1484_v52   ;;  %v938_v0 = vadd.f32 %v931_v55, %v930_v50 }
 0x100   : > { %1502 = vst [vmem:[%s1848_s13 + $0x10] sm:$0xff] %v1494_v58   ;;  %v885_v1 = vadd.f32 %v869_v60, %v654_v63  ;;  %v666_v20 = vadd.f32 %v1824_v62, %v637_v7 }
 0x101   : > { %v878_v2 = vpop.f32.mrf.mxu3  ;;  %v477_v3 = vpop.f32.mrf.mxu0 }
 0x102   : > { %v915_v4 = vadd.f32 %v914_v54, %v885_v1  ;;  %v932_v5 = vmul.f32 %v885_v1, %v885_v1  ;;  %v478_v6 = vadd.f32 %v477_v3, %v1820_v59  ;;  %v879_v11 = vadd.f32 %v878_v2, %v849_v56  ;;  %v851_v14 = vpop.f32.mrf.mxu1 }
 0x104   : > { %v939_v8 = vadd.f32 %v938_v0, %v932_v5  ;;  %v627_v9 = vadd.f32 %v1822_v61, %v478_v6  ;;  %v889_v16 = vadd.f32 %v879_v11, %v1828_v17 }
 0x106   : > { %v656_v10 = vadd.f32 %v1816_v47, %v627_v9  ;;  %v935_v47 = vmul.f32 %v888_v46, %v888_v46  ;;  %v936_v26 = vmul.f32 %v889_v16, %v889_v16 }
 0x108   : > { %v886_v13 = vadd.f32 %v871_v45, %v656_v10 }
 0x109   : > { %v880_v15 = vpop.f32.mrf.mxu3 }
 0x10a   : > { %v881_v21 = vadd.f32 %v880_v15, %v851_v14  ;;  %v1489_v59 = vpack.c.bf16 %v886_v13, %v885_v1  ;;  %v916_v22 = vadd.f32 %v915_v4, %v886_v13  ;;  %v933_v53 = vmul.f32 %v886_v13, %v886_v13 }
 0x10c   : > { %v890_v61 = vadd.f32 %v881_v21, %v666_v20  ;;  %1501 = vst [vmem:[%s1848_s13 + $0x8] sm:$0xff] %v1489_v59   ;;  %v940_v18 = vadd.f32 %v939_v8, %v933_v53  ;;  %v917_v12 = vadd.f32 %v916_v22, %v887_v48 }
 0x10e   : > { %v1499_v19 = vpack.c.bf16 %v890_v61, %v889_v16  ;;  %v918_v24 = vadd.f32 %v917_v12, %v888_v46  ;;  %v941_v25 = vadd.f32 %v940_v18, %v934_v23  ;;  %v937_v29 = vmul.f32 %v890_v61, %v890_v61 }
 0x110   : > { %1503 = vst [vmem:[%s1848_s13 + $0x18] sm:$0xff] %v1499_v19   ;;  %v919_v27 = vadd.f32 %v918_v24, %v889_v16  ;;  %v942_v62 = vadd.f32 %v941_v25, %v935_v47 }
 0x112   : > { %v920_v28 = vadd.f32 %v919_v27, %v890_v61  ;;  %v943_v30 = vadd.f32 %v942_v62, %v936_v26 }
 0x114   : > { %v921_v31 = vrot.slane %v920_v28, 4  ;;  %v944_v17 = vadd.f32 %v943_v30, %v937_v29 }
 0x116   : > { %v922_v32 = vadd.f32 %v921_v31, %v920_v28  ;;  %v945_v33 = vrot.slane %v944_v17, 4 }
 0x118   : > { %v923_v34 = vrot.slane %v922_v32, 2  ;;  %v946_v35 = vadd.f32 %v945_v33, %v944_v17 }
 0x11a   : > { %v924_v36 = vadd.f32 %v923_v34, %v922_v32  ;;  %v947_v37 = vrot.slane %v946_v35, 2 }
 0x11c   : > { %v925_v38 = vrot.slane %v924_v36, 1  ;;  %v948_v39 = vadd.f32 %v947_v37, %v946_v35 }
 0x11e   : > { %v926_v41 = vadd.f32 %v925_v38, %v924_v36  ;;  %v949_v42 = vrot.slane %v948_v39, 1 }
 0x120   : > { %v927_v44 = vadd.f32 %v926_v41, %v913_v40  ;;  %v950_v48 = vadd.f32 %v949_v42, %v948_v39 }
 0x122   : > { %928 = vst [vmem:[%s1834_s6] sm:$0x1] %v927_v44  ;;  %v951_v49 = vadd.f32 %v950_v48, %v929_v43 }
 0x124   : > { %952 = vst [vmem:[%s1840_s9] sm:$0x1] %v951_v49 }
 0x125 PF: > { %s15_s17 = sadd.s32 1, %s1560_s17   ;;  %s1880_s15 = smov %s1556_s16 }
 0x126   : > { %p12_p5 = scmp.ge.s32.totalorder %s15_s17, 4   ;;  %s1881_s16 = smov %s1883_s18 }
 0x128   :  { %14 = sbr.rel (!%p12_p5) target bundleno = 2 (0x2), region = 91 }

// kernel: _lambda_.14
= control target key start
LH: loop header
LB: loop body
LE: loop exit
PB: predicated region body
PF: predicated region fallthrough
CT: control target
= control target key end

     0   :  { %s2610_s21 = smov 0   ;;  %s2612_s22 = smov 0   ;;  %s3045_s0 = inlined_call_operand.vmem [shape: bf16[2,1,10,8,384], index: 0, kind: input, shape index: {}]   ;;  %s3046_s1 = inlined_call_operand.vmem [shape: bf16[3,384,128], index: 1, kind: input, shape index: {}]   ;;  %s3047_s2 = inlined_call_operand.vmem [shape: bf16[2,64,64], index: 2, kind: input, shape index: {}]   ;;  %s3048_s3 = inlined_call_operand.vmem [shape: bf16[64,128], index: 3, kind: input, shape index: {}]   ;;  %s3049_s4 = inlined_call_operand.vmem [shape: bf16[2,64,128], index: 4, kind: output, shape index: {0}]   ;;  %s3050_s5 = inlined_call_operand.vmem [shape: f32[2,1,128], index: 5, kind: output, shape index: {1}]   ;;  %s3051_s6 = inlined_call_operand.vmem [shape: f32[2,1,128], index: 6, kind: output, shape index: {2}]  }
   0x1   :  { %s2614_s23 = smov 0  }
   0x2 LB: > { %s29_s24 = sadd.s32 1, %s2568_s22  ;;  %p1763_p0 = scmp.ge.s32.totalorder %s2572_s23, 1  ;;  %s2572_s23 = sphi %s2614_s23, %s17_s23   ;;  %s2568_s22 = sphi %s2612_s22, %s3053_s22   ;;  %s2564_s21 = sphi %s2610_s21, %s3052_s21  }
   0x3   : > { %p31_p1 = scmp.ge.s32.totalorder %s29_s24, 2  ;;  %p248_p2 = scmp.lt.s32.totalorder %s2572_s23, 3 }
   0x5   : > { %s3055_s24 = smov (%p31_p1, %s29_s24), 0  ;;  %p249_p3 = pnand %p1763_p0, %p248_p2 }
   0x6   : > { %p297_p4 = scmp.lt.s32.totalorder (!%p249_p3), %s2564_s21, 1 }
   0x7   : > { %252 = sbr.rel (%p249_p3) target bundleno = 358 (0x166), region = 36 }
   0xc   : > { %v2424_v0 = vld [vmem:[%s3046_s1 + $0xf8] sm:$0xff]  ;;  %v2423_v2 = vld [vmem:[%s3046_s1 + $0xf0] sm:$0xff]  ;;  %v2422_v4 = vld [vmem:[%s3046_s1 + $0xe8] sm:$0xff]  ;;  %s3057_s21 = smov (!%p297_p4, %s2564_s21), 1  ;;  %vm1488_vm0 = vcmask 523264  }
   0xd   : > { %v2432_v1 = vld [vmem:[%s3046_s1 + $0x138] sm:$0xff]  ;;  %674 = vmatpush.bf16.msra.mxu0 %v2424_v0  ;;  %2508 = vmatpush.bf16.msra.mxu2 %v2424_v0  ;;  %v2431_v3 = vld [vmem:[%s3046_s1 + $0x130] sm:$0xff]  ;;  %v2430_v5 = vld [vmem:[%s3046_s1 + $0x128] sm:$0xff]  ;;  %s2524_s27 = smul.u32 120, %s3057_s21  ;;  %s3009_s12 = scalar_lea.vmem %s3050_s5, %s3057_s21 }
   0xe   : > { %703 = vmatpush.bf16.msra.mxu1 %v2432_v1  ;;  %2516 = vmatpush.bf16.msra.mxu3 %v2432_v1  ;;  %v2421_v6 = vld [vmem:[%s3046_s1 + $0xe0] sm:$0xff]  ;;  %v2420_v8 = vld [vmem:[%s3046_s1 + $0xd8] sm:$0xff]  ;;  %v2419_v10 = vld [vmem:[%s3046_s1 + $0xd0] sm:$0xff]  ;;  %s3015_s15 = scalar_lea.vmem %s3051_s6, %s3057_s21 }
   0xf   : > { %v2429_v7 = vld [vmem:[%s3046_s1 + $0x120] sm:$0xff]  ;;  %v2428_v9 = vld [vmem:[%s3046_s1 + $0x118] sm:$0xff]  ;;  %v2427_v11 = vld [vmem:[%s3046_s1 + $0x110] sm:$0xff]  ;;  %s2677_s10 = scalar_lea.vmem %s3045_s0, %s2524_s27  ;;  %s2367_s27 = sshll.u32 %s3057_s21, 5 }
  0x10   : > { %v2418_v12 = vld [vmem:[%s3046_s1 + $0xc8] sm:$0xff]  ;;  %v2417_v14 = vld [vmem:[%s3046_s1 + $0xc0] sm:$0xff]  ;;  %v2406_v17 = vld [vmem:[%s2677_s10 + $0x14] sm:$0xf0]  ;;  %s2928_s30 = scalar_lea.vmem %s3047_s2, %s2367_s27  ;;  %s2997_s8 = scalar_lea.vmem %s3049_s4, %s2367_s27 }
  0x11   : > { %675 = vmatpush.bf16.msra.mxu0 %v2423_v2  ;;  %2509 = vmatpush.bf16.msra.mxu2 %v2423_v2  ;;  %v2426_v13 = vld [vmem:[%s3046_s1 + $0x108] sm:$0xff]  ;;  %v2425_v15 = vld [vmem:[%s3046_s1 + $0x100] sm:$0xff]  ;;  %v1859_v18 = vld [vmem:[%s2677_s10 + $0x3c] sm:$0xf] }
  0x12   : > { %704 = vmatpush.bf16.msra.mxu1 %v2431_v3  ;;  %2517 = vmatpush.bf16.msra.mxu3 %v2431_v3  ;;  %v1835_v16 = vld [vmem:[%s2677_s10 + $0xc] sm:$0xf]  ;;  %v2412_v19 = vld [vmem:[%s2677_s10 + $0x44] sm:$0xf0]  ;;  %v2405_v20 = vld [vmem:[%s2677_s10 + $0x10] sm:$0xf] }
  0x13   : > { %v1837_v21 = vld [vmem:[%s2677_s10 + $0x18] sm:$0xf0]  ;;  %v2411_v22 = vld [vmem:[%s2677_s10 + $0x40] sm:$0xf]  ;;  %v1861_v23 = vld [vmem:[%s2677_s10 + $0x48] sm:$0xf0]  ;;  %v1836_v26 = vor.u32 %v2406_v17, %v1835_v16  ;;  %v1860_v27 = vor.u32 %v2412_v19, %v1859_v18 }
  0x14   : > { %v2440_v24 = vld [vmem:[%s3046_s1 + $0x178] sm:$0xff]  ;;  %v1840_v28 = vor.u32 %v2405_v20, %v1837_v21  ;;  %v1864_v29 = vor.u32 %v2411_v22, %v1861_v23  ;;  %v2439_v32 = vld [vmem:[%s3046_s1 + $0x170] sm:$0xff]  ;;  %v2438_v36 = vld [vmem:[%s3046_s1 + $0x168] sm:$0xff] }
  0x15   : > { %676 = vmatpush.bf16.msra.mxu0 %v2422_v4  ;;  %2510 = vmatpush.bf16.msra.mxu2 %v2422_v4  ;;  %v2388_v25 = vld [vmem:[%s3046_s1 + $0x38] sm:$0xff]  ;;  %v2387_v33 = vld [vmem:[%s3046_s1 + $0x30] sm:$0xff]  ;;  %v2386_v37 = vld [vmem:[%s3046_s1 + $0x28] sm:$0xff] }
  0x16   : > { %705 = vmatpush.bf16.msra.mxu1 %v2430_v5  ;;  %2518 = vmatpush.bf16.msra.mxu3 %v2430_v5  ;;  %v2396_v30 = vld [vmem:[%s3046_s1 + $0x78] sm:$0xff]  ;;  %v2395_v34 = vld [vmem:[%s3046_s1 + $0x70] sm:$0xff]  ;;  %v2394_v38 = vld [vmem:[%s3046_s1 + $0x68] sm:$0xff] }
  0x17   : > { %v2404_v31 = vld [vmem:[%s3046_s1 + $0xb8] sm:$0xff]  ;;  %v2403_v35 = vld [vmem:[%s3046_s1 + $0xb0] sm:$0xff]  ;;  %v2402_v39 = vld [vmem:[%s3046_s1 + $0xa8] sm:$0xff] }
  0x18   : > { %v2437_v40 = vld [vmem:[%s3046_s1 + $0x160] sm:$0xff]  ;;  %v2409_v44 = vld [vmem:[%s2677_s10 + $0x2c] sm:$0xf0]  ;;  %v1871_v45 = vld [vmem:[%s2677_s10 + $0x54] sm:$0xf] }
  0x19   : > { %677 = vmatpush.bf16.msra.mxu0 %v2421_v6  ;;  %2511 = vmatpush.bf16.msra.mxu2 %v2421_v6  ;;  %v2385_v41 = vld [vmem:[%s3046_s1 + $0x20] sm:$0xff]  ;;  %v2408_v47 = vld [vmem:[%s2677_s10 + $0x28] sm:$0xf]  ;;  %v1849_v48 = vld [vmem:[%s2677_s10 + $0x30] sm:$0xf0] }
  0x1a   : > { %706 = vmatpush.bf16.msra.mxu1 %v2429_v7  ;;  %2519 = vmatpush.bf16.msra.mxu3 %v2429_v7  ;;  %v2393_v42 = vld [vmem:[%s3046_s1 + $0x60] sm:$0xff]  ;;  %v2414_v49 = vld [vmem:[%s2677_s10 + $0x58] sm:$0xf]  ;;  %v1852_v56 = vor.u32 %v2408_v47, %v1849_v48  ;;  %v2435_v60 = vld [vmem:[%s3046_s1 + $0x150] sm:$0xff] }
  0x1b   : > { %v1847_v43 = vld [vmem:[%s2677_s10 + $0x24] sm:$0xf]  ;;  %v2415_v46 = vld [vmem:[%s2677_s10 + $0x5c] sm:$0xf0]  ;;  %v2436_v52 = vld [vmem:[%s3046_s1 + $0x158] sm:$0xff] }
  0x1c   : > { %v1873_v50 = vld [vmem:[%s2677_s10 + $0x60] sm:$0xf0]  ;;  %v2384_v53 = vld [vmem:[%s3046_s1 + $0x18] sm:$0xff]  ;;  %v1848_v54 = vor.u32 %v2409_v44, %v1847_v43  ;;  %v1872_v55 = vor.u32 %v2415_v46, %v1871_v45  ;;  %v2383_v61 = vld [vmem:[%s3046_s1 + $0x10] sm:$0xff] }
  0x1d   : > { %678 = vmatpush.bf16.msra.mxu0 %v2420_v8  ;;  %2512 = vmatpush.bf16.msra.mxu2 %v2420_v8  ;;  %v2401_v51 = vld [vmem:[%s3046_s1 + $0xa0] sm:$0xff]  ;;  %v1876_v57 = vor.u32 %v2414_v49, %v1873_v50  ;;  %v2392_v58 = vld [vmem:[%s3046_s1 + $0x58] sm:$0xff]  ;;  %v2391_v62 = vld [vmem:[%s3046_s1 + $0x50] sm:$0xff] }
  0x1e   : > { %707 = vmatpush.bf16.msra.mxu1 %v2428_v9  ;;  %2520 = vmatpush.bf16.msra.mxu3 %v2428_v9  ;;  %v2400_v59 = vld [vmem:[%s3046_s1 + $0x98] sm:$0xff]  ;;  %v2399_v63 = vld [vmem:[%s3046_s1 + $0x90] sm:$0xff]  ;;  %v2434_v0 = vld [vmem:[%s3046_s1 + $0x148] sm:$0xff] }
  0x1f   : > { %v2382_v1 = vld [vmem:[%s3046_s1 + $0x8] sm:$0xff]  ;;  %v2433_v4 = vld [vmem:[%s3046_s1 + $0x140] sm:$0xff]  ;;  %v1843_v6 = vld [vmem:[%s2677_s10 + $0x14] sm:$0xf] }
  0x20   : > { %v2390_v2 = vld [vmem:[%s3046_s1 + $0x48] sm:$0xff]  ;;  %v2381_v5 = vld [vmem:[%s3046_s1] sm:$0xff]  ;;  %v2460_v9 = vld [vmem:[%s3046_s1 + $0x1b8] sm:$0xff] }
  0x21   : > { %679 = vmatpush.bf16.msra.mxu0 %v2419_v10  ;;  %2513 = vmatpush.bf16.msra.mxu2 %v2419_v10  ;;  %v2398_v3 = vld [vmem:[%s3046_s1 + $0x88] sm:$0xff]  ;;  %v2389_v7 = vld [vmem:[%s3046_s1 + $0x40] sm:$0xff]  ;;  %v2468_v10 = vld [vmem:[%s3046_s1 + $0x1f8] sm:$0xff] }
  0x22   : > { %708 = vmatpush.bf16.msra.mxu1 %v2427_v11  ;;  %2521 = vmatpush.bf16.msra.mxu3 %v2427_v11  ;;  %v2407_v8 = vld [vmem:[%s2677_s10 + $0x1c] sm:$0xf0]  ;;  %v1987_v16 = vld [vmem:[%s2677_s10 + $0x8] sm:$0xf]  ;;  %v2371_v17 = vld [vmem:[%s2677_s10 + $0x10] sm:$0xf0] }
  0x23   : > { %v1979_v11 = vld [vmem:[%s2677_s10] sm:$0xf]  ;;  %v2476_v18 = vld [vmem:[%s3046_s1 + $0x238] sm:$0xff]  ;;  %v1844_v20 = vor.u32 %v2407_v8, %v1843_v6  ;;  %v2467_v21 = vld [vmem:[%s3046_s1 + $0x1f0] sm:$0xff] }
  0x24   : > { %v2484_v19 = vld [vmem:[%s3048_s3 + $0x18] sm:$0xff]  ;;  %v1999_v43 = vld [vmem:[%s2677_s10 + $0x20] sm:$0xf]  ;;  %v2374_v44 = vld [vmem:[%s2677_s10 + $0x28] sm:$0xf0] }
  0x25   : > { %680 = vmatpush.bf16.msra.mxu0 %v2418_v12  ;;  %2514 = vmatpush.bf16.msra.mxu2 %v2418_v12  ;;  %v2370_v12 = vld [vmem:[%s2677_s10 + $0x8] sm:$0xf0]  ;;  %v2472_v45 = vld [vmem:[%s3046_s1 + $0x218] sm:$0xff]  ;;  %v2463_v47 = vld [vmem:[%s3046_s1 + $0x1d0] sm:$0xff]  ;;  %v2000_v50 = vor.u32 %v2374_v44, %v1999_v43 }
  0x26   : > { %709 = vmatpush.bf16.msra.mxu1 %v2426_v13  ;;  %2522 = vmatpush.bf16.msra.mxu3 %v2426_v13  ;;  %v2369_v13 = vld [vmem:[%s2677_s10 + $0x4] sm:$0xf]  ;;  %v1980_v22 = vor.u32 %v2370_v12, %v1979_v11  ;;  %v1879_v8 = vld [vmem:[%s2677_s10 + $0x5c] sm:$0xf]  ;;  %v2379_v11 = vld [vmem:[%s2677_s10 + $0x50] sm:$0xf0] }
  0x27   : > { %v2378_v12 = vld [vmem:[%s2677_s10 + $0x4c] sm:$0xf]  ;;  %v2213_v43 = vld [vmem:[%s2677_s10 + $0x54] sm:$0xf0]  ;;  %v2219_v44 = vld [vmem:[%s2677_s10 + $0x50] sm:$0xf] }
  0x29   : > { %681 = vmatpush.bf16.msra.mxu0 %v2417_v14  ;;  %2515 = vmatpush.bf16.msra.mxu2 %v2417_v14  ;;  %v1981_v14 = vld [vmem:[%s2677_s10 + $0xc] sm:$0xf0] }
  0x2a   : > { %710 = vmatpush.bf16.msra.mxu1 %v2425_v15  ;;  %2523 = vmatpush.bf16.msra.mxu3 %v2425_v15  ;;  %v2397_v15 = vld [vmem:[%s3046_s1 + $0x80] sm:$0xff]  ;;  %v1984_v23 = vor.u32 %v2369_v13, %v1981_v14  ;;  %v2017_v13 = vld [vmem:[%s2677_s10 + $0x54] sm:$0xf0]  ;;  %v2023_v14 = vld [vmem:[%s2677_s10 + $0x50] sm:$0xf] }
  0x2c   : > { %682 = vmatmul.bf16.vlgmr.msra.gmra.mxu0 %v1836_v26  ;;  %692 = vmatmul.bf16.vlgmr.msra.gmra.mxu2 %v1860_v27  ;;  %v2475_v26 = vld [vmem:[%s3046_s1 + $0x230] sm:$0xff] }
  0x2d   : > { %732 = vmatpush.bf16.msrb.mxu2 %v2440_v24  ;;  %711 = vmatmul.bf16.vlgmr.msra.gmra.mxu1 %v1840_v28  ;;  %v1988_v24 = vor.u32 %v2371_v17, %v1987_v16  ;;  %v2483_v27 = vld [vmem:[%s3048_s3 + $0x10] sm:$0xff]  ;;  %v2466_v28 = vld [vmem:[%s3046_s1 + $0x1e8] sm:$0xff] }
  0x2e   : > { %969 = vmatpush.bf16.msrb.mxu3 %v2388_v25  ;;  %998 = vmatpush.bf16.msrb.mxu0 %v2396_v30  ;;  %v2459_v25 = vld [vmem:[%s3046_s1 + $0x1b0] sm:$0xff]  ;;  %v2474_v30 = vld [vmem:[%s3046_s1 + $0x228] sm:$0xff] }
  0x2f   : > { %721 = vmatmul.bf16.vlgmr.msra.gmra.mxu3 %v1864_v29  ;;  %1027 = vmatpush.bf16.msrb.mxu1 %v2404_v31  ;;  %v2458_v29 = vld [vmem:[%s3046_s1 + $0x1a8] sm:$0xff] }
  0x30   : > { %v2482_v31 = vld [vmem:[%s3048_s3 + $0x8] sm:$0xff] }
  0x31   : > { %733 = vmatpush.bf16.msrb.mxu2 %v2439_v32  ;;  %v2465_v32 = vld [vmem:[%s3046_s1 + $0x1e0] sm:$0xff] }
  0x32   : > { %970 = vmatpush.bf16.msrb.mxu3 %v2387_v33  ;;  %999 = vmatpush.bf16.msrb.mxu0 %v2395_v34  ;;  %v2457_v33 = vld [vmem:[%s3046_s1 + $0x1a0] sm:$0xff] }
  0x33   : > { %1028 = vmatpush.bf16.msrb.mxu1 %v2403_v35  ;;  %v2473_v34 = vld [vmem:[%s3046_s1 + $0x220] sm:$0xff]  ;;  %v1855_v35 = vld [vmem:[%s2677_s10 + $0x2c] sm:$0xf] }
  0x35   : > { %734 = vmatpush.bf16.msrb.mxu2 %v2438_v36  ;;  %v2464_v36 = vld [vmem:[%s3046_s1 + $0x1d8] sm:$0xff] }
  0x36   : > { %971 = vmatpush.bf16.msrb.mxu3 %v2386_v37  ;;  %1000 = vmatpush.bf16.msrb.mxu0 %v2394_v38  ;;  %v2410_v37 = vld [vmem:[%s2677_s10 + $0x34] sm:$0xf0] }
  0x37   : > { %1029 = vmatpush.bf16.msrb.mxu1 %v2402_v39  ;;  %v1991_v38 = vld [vmem:[%s2677_s10 + $0x18] sm:$0xf]  ;;  %v2373_v39 = vld [vmem:[%s2677_s10 + $0x20] sm:$0xf0]  ;;  %v1856_v46 = vor.u32 %v2410_v37, %v1855_v35 }
  0x38   : > { %v1992_v48 = vor.u32 %v2373_v39, %v1991_v38  ;;  %v2446_v35 = vld [vmem:[%s2677_s10 + $0x40] sm:$0xf0]  ;;  %v2478_v39 = vld [vmem:[%s2928_s30 + $0x8] sm:$0xff] }
  0x39   : > { %735 = vmatpush.bf16.msrb.mxu2 %v2437_v40  ;;  %v2372_v40 = vld [vmem:[%s2677_s10 + $0x1c] sm:$0xf] }
  0x3a   : > { %972 = vmatpush.bf16.msrb.mxu3 %v2385_v41  ;;  %1001 = vmatpush.bf16.msrb.mxu0 %v2393_v42  ;;  %v1993_v41 = vld [vmem:[%s2677_s10 + $0x24] sm:$0xf0]  ;;  %v2456_v42 = vld [vmem:[%s3046_s1 + $0x198] sm:$0xff] }
  0x3b   : > { %1030 = vmatpush.bf16.msrb.mxu1 %v2401_v51  ;;  %v1996_v49 = vor.u32 %v2372_v40, %v1993_v41  ;;  %v2455_v51 = vld [vmem:[%s3046_s1 + $0x190] sm:$0xff]  ;;  %v2211_v40 = vld [vmem:[%s2677_s10 + $0x48] sm:$0xf] }
  0x3c   : > { %687 = vmatmul.bf16.gmra.mxu0 %v1848_v54  ;;  %697 = vmatmul.bf16.gmra.mxu2 %v1872_v55  ;;  %v2454_v54 = vld [vmem:[%s3046_s1 + $0x188] sm:$0xff]  ;;  %v2448_v41 = vld [vmem:[%s2677_s10 + $0x50] sm:$0xf0] }
  0x3d   : > { %736 = vmatpush.bf16.msrb.mxu2 %v2436_v52  ;;  %716 = vmatmul.bf16.gmra.mxu1 %v1852_v56  ;;  %v2462_v52 = vld [vmem:[%s3046_s1 + $0x1c8] sm:$0xff]  ;;  %v2481_v56 = vld [vmem:[%s3048_s3] sm:$0xff] }
  0x3e   : > { %973 = vmatpush.bf16.msrb.mxu3 %v2384_v53  ;;  %1002 = vmatpush.bf16.msrb.mxu0 %v2392_v58  ;;  %v2471_v53 = vld [vmem:[%s3046_s1 + $0x210] sm:$0xff]  ;;  %v2470_v55 = vld [vmem:[%s3046_s1 + $0x208] sm:$0xff]  ;;  %v2453_v58 = vld [vmem:[%s3046_s1 + $0x180] sm:$0xff] }
  0x3f   : > { %726 = vmatmul.bf16.gmra.mxu3 %v1876_v57  ;;  %1031 = vmatpush.bf16.msrb.mxu1 %v2400_v59  ;;  %v2461_v57 = vld [vmem:[%s3046_s1 + $0x1c0] sm:$0xff] }
  0x40   : > { %v2469_v59 = vld [vmem:[%s3046_s1 + $0x200] sm:$0xff] }
  0x41   : > { %737 = vmatpush.bf16.msrb.mxu2 %v2435_v60  ;;  %v1867_v60 = vld [vmem:[%s2677_s10 + $0x44] sm:$0xf] }
  0x42   : > { %974 = vmatpush.bf16.msrb.mxu3 %v2383_v61  ;;  %1003 = vmatpush.bf16.msrb.mxu0 %v2391_v62  ;;  %v2413_v61 = vld [vmem:[%s2677_s10 + $0x4c] sm:$0xf0] }
  0x43   : > { %1032 = vmatpush.bf16.msrb.mxu1 %v2399_v63  ;;  %v2003_v62 = vld [vmem:[%s2677_s10 + $0x30] sm:$0xf]  ;;  %v2376_v63 = vld [vmem:[%s2677_s10 + $0x38] sm:$0xf0] }
  0x45   : > { %738 = vmatpush.bf16.msrb.mxu2 %v2434_v0  ;;  %v2375_v0 = vld [vmem:[%s2677_s10 + $0x34] sm:$0xf] }
  0x46   : > { %975 = vmatpush.bf16.msrb.mxu3 %v2382_v1  ;;  %1004 = vmatpush.bf16.msrb.mxu0 %v2390_v2  ;;  %v2005_v1 = vld [vmem:[%s2677_s10 + $0x3c] sm:$0xf0]  ;;  %v2011_v2 = vld [vmem:[%s2677_s10 + $0x38] sm:$0xf] }
  0x47   : > { %1033 = vmatpush.bf16.msrb.mxu1 %v2398_v3  ;;  %v2377_v3 = vld [vmem:[%s2677_s10 + $0x40] sm:$0xf0]  ;;  %v2008_v6 = vor.u32 %v2375_v0, %v2005_v1  ;;  %v2452_v0 = vld [vmem:[%s2677_s10 + $0x70] sm:$0xf0] }
  0x49   : > { %739 = vmatpush.bf16.msrb.mxu2 %v2433_v4  ;;  %v1868_v4 = vor.u32 %v2413_v61, %v1867_v60  ;;  %v2451_v60 = vld [vmem:[%s2677_s10 + $0x68] sm:$0xf0]  ;;  %v2450_v61 = vld [vmem:[%s2677_s10 + $0x64] sm:$0xf] }
  0x4a   : > { %976 = vmatpush.bf16.msrb.mxu3 %v2381_v5  ;;  %1005 = vmatpush.bf16.msrb.mxu0 %v2389_v7  ;;  %v2004_v5 = vor.u32 %v2376_v63, %v2003_v62  ;;  %v2012_v7 = vor.u32 %v2377_v3, %v2011_v2  ;;  %v2225_v62 = vld [vmem:[%s2677_s10 + $0x6c] sm:$0xf0]  ;;  %v2231_v63 = vld [vmem:[%s2677_s10 + $0x68] sm:$0xf] }
  0x4b   : > { %1034 = vmatpush.bf16.msrb.mxu1 %v2397_v15  ;;  %v2380_v15 = vld [vmem:[%s2677_s10 + $0x58] sm:$0xf0] }
  0x4c   : > { %740 = vmatmul.bf16.vlgmr.msrb.gmra.mxu2 %v1844_v20  ;;  %v2187_v20 = vld [vmem:[%s2677_s10 + $0x18] sm:$0xf] }
  0x4d   : > { %1333 = vmatpush.bf16.msra.mxu2 %v2460_v9  ;;  %1006 = vmatmul.bf16.vlgmr.msrb.gmra.mxu0 %v1984_v23  ;;  %v2416_v9 = vld [vmem:[%s2677_s10 + $0x64] sm:$0xf0] }
  0x4e   : > { %1362 = vmatpush.bf16.msra.mxu3 %v2468_v10  ;;  %1391 = vmatpush.bf16.msra.mxu0 %v2476_v18  ;;  %v2015_v10 = vld [vmem:[%s2677_s10 + $0x48] sm:$0xf]  ;;  %v1880_v16 = vor.u32 %v2416_v9, %v1879_v8  ;;  %v2020_v18 = vor.u32 %v2378_v12, %v2017_v13  ;;  %v2480_v9 = vld [vmem:[%s2928_s30 + $0x18] sm:$0xff] }
  0x4f   : > { %1505 = vmatpush.bf16.msra.mxu1 %v2484_v19  ;;  %977 = vmatmul.bf16.vlgmr.msrb.gmra.mxu3 %v1980_v22  ;;  %v2016_v17 = vor.u32 %v2379_v11, %v2015_v10  ;;  %v2024_v19 = vor.u32 %v2380_v15, %v2023_v14  ;;  %v2441_v22 = vld [vmem:[%s2677_s10 + $0x1c] sm:$0xf]  ;;  %v2189_v23 = vld [vmem:[%s2677_s10 + $0x24] sm:$0xf0] }
  0x50   : > { %1035 = vmatmul.bf16.vlgmr.msrb.gmra.mxu1 %v1988_v24  ;;  %v2195_v24 = vld [vmem:[%s2677_s10 + $0x20] sm:$0xf] }
  0x51   : > { %1334 = vmatpush.bf16.msra.mxu2 %v2459_v25  ;;  %v2443_v25 = vld [vmem:[%s2677_s10 + $0x28] sm:$0xf0] }
  0x52   : > { %1363 = vmatpush.bf16.msra.mxu3 %v2467_v21  ;;  %1392 = vmatpush.bf16.msra.mxu0 %v2475_v26  ;;  %v2442_v21 = vld [vmem:[%s2677_s10 + $0x20] sm:$0xf0] }
  0x53   : > { %1506 = vmatpush.bf16.msra.mxu1 %v2483_v27  ;;  %v2188_v26 = vor.u32 %v2442_v21, %v2187_v20  ;;  %v2192_v27 = vor.u32 %v2441_v22, %v2189_v23 }
  0x55   : > { %1335 = vmatpush.bf16.msra.mxu2 %v2458_v29  ;;  %v2477_v29 = vld [vmem:[%s2928_s30] sm:$0xff] }
  0x56   : > { %1364 = vmatpush.bf16.msra.mxu3 %v2466_v28  ;;  %1393 = vmatpush.bf16.msra.mxu0 %v2474_v30  ;;  %v2196_v28 = vor.u32 %v2443_v25, %v2195_v24  ;;  %v2199_v30 = vld [vmem:[%s2677_s10 + $0x30] sm:$0xf] }
  0x57   : > { %1507 = vmatpush.bf16.msra.mxu1 %v2482_v31  ;;  %v2445_v31 = vld [vmem:[%s2677_s10 + $0x38] sm:$0xf0] }
  0x59   : > { %1336 = vmatpush.bf16.msra.mxu2 %v2457_v33  ;;  %v2201_v33 = vld [vmem:[%s2677_s10 + $0x3c] sm:$0xf0] }
  0x5a   : > { %1365 = vmatpush.bf16.msra.mxu3 %v2465_v32  ;;  %1394 = vmatpush.bf16.msra.mxu0 %v2473_v34  ;;  %v2444_v32 = vld [vmem:[%s2677_s10 + $0x34] sm:$0xf]  ;;  %v2207_v34 = vld [vmem:[%s2677_s10 + $0x38] sm:$0xf] }
  0x5b   : > { %1508 = vmatpush.bf16.msra.mxu1 %v2481_v56  ;;  %v2204_v37 = vor.u32 %v2444_v32, %v2201_v33  ;;  %v2208_v38 = vor.u32 %v2446_v35, %v2207_v34 }
  0x5c   : > { %745 = vmatmul.bf16.gmra.mxu2 %v1856_v46  ;;  %v2212_v46 = vor.u32 %v2448_v41, %v2211_v40 }
  0x5d   : > { %1337 = vmatpush.bf16.msra.mxu2 %v2456_v42  ;;  %1011 = vmatmul.bf16.gmra.mxu0 %v1996_v49  ;;  %v2447_v42 = vld [vmem:[%s2677_s10 + $0x4c] sm:$0xf] }
  0x5e   : > { %1366 = vmatpush.bf16.msra.mxu3 %v2464_v36  ;;  %1395 = vmatpush.bf16.msra.mxu0 %v2472_v45  ;;  %v2200_v36 = vor.u32 %v2445_v31, %v2199_v30  ;;  %v2449_v45 = vld [vmem:[%s2677_s10 + $0x58] sm:$0xf0] }
  0x5f   : > { %982 = vmatmul.bf16.gmra.mxu3 %v1992_v48  ;;  %v2216_v48 = vor.u32 %v2447_v42, %v2213_v43  ;;  %v2220_v49 = vor.u32 %v2449_v45, %v2219_v44 }
  0x60   : > { %1040 = vmatmul.bf16.gmra.mxu1 %v2000_v50 }
  0x61   : > { %1338 = vmatpush.bf16.msra.mxu2 %v2455_v51  ;;  %v2479_v51 = vld [vmem:[%s2928_s30 + $0x10] sm:$0xff] }
  0x62   : > { %1367 = vmatpush.bf16.msra.mxu3 %v2463_v47  ;;  %1396 = vmatpush.bf16.msra.mxu0 %v2471_v53 }
  0x65   : > { %1339 = vmatpush.bf16.msra.mxu2 %v2454_v54 }
  0x66   : > { %1368 = vmatpush.bf16.msra.mxu3 %v2462_v52  ;;  %1397 = vmatpush.bf16.msra.mxu0 %v2470_v55 }
  0x69   : > { %1340 = vmatpush.bf16.msra.mxu2 %v2453_v58 }
  0x6a   : > { %1369 = vmatpush.bf16.msra.mxu3 %v2461_v57  ;;  %1398 = vmatpush.bf16.msra.mxu0 %v2469_v59  ;;  %v2223_v59 = vld [vmem:[%s2677_s10 + $0x60] sm:$0xf] }
  0x6b   : > { %v2224_v3 = vor.u32 %v2451_v60, %v2223_v59 }
  0x6c   : > { %750 = vmatmul.bf16.gmra.mxu2 %v1868_v4 }
  0x6d   : > { %1016 = vmatmul.bf16.gmra.mxu0 %v2008_v6  ;;  %v2228_v6 = vor.u32 %v2450_v61, %v2225_v62 }
  0x6f   : > { %987 = vmatmul.bf16.gmra.mxu3 %v2004_v5 }
  0x70   : > { %1045 = vmatmul.bf16.gmra.mxu1 %v2012_v7  ;;  %v2232_v7 = vor.u32 %v2452_v0, %v2231_v63 }
  0x7c   : > { %755 = vmatmul.bf16.gmra.mxu2 %v1880_v16 }
  0x7d   : > { %1021 = vmatmul.bf16.gmra.mxu0 %v2020_v18 }
  0x7f   : > { %992 = vmatmul.bf16.gmra.mxu3 %v2016_v17 }
  0x80   : > { %1050 = vmatmul.bf16.gmra.mxu1 %v2024_v19 }
  0x8c   : > { %1341 = vmatmul.bf16.vlgmr.msra.gmra.mxu2 %v2188_v26 }
  0x8d   : > { %1399 = vmatmul.bf16.vlgmr.msra.gmra.mxu0 %v2196_v28 }
  0x8f   : > { %1370 = vmatmul.bf16.vlgmr.msra.gmra.mxu3 %v2192_v27 }
  0x90   : > { %2361 = vmatmul.msk.bf16.vlgmr.msra.gmra.mxu1 %vm1488_vm0, %v2477_v29 }
  0x9c   : > { %1346 = vmatmul.bf16.gmra.mxu2 %v2200_v36 }
  0x9d   : > { %1404 = vmatmul.bf16.gmra.mxu0 %v2208_v38 }
  0x9f   : > { %1375 = vmatmul.bf16.gmra.mxu3 %v2204_v37 }
  0xa0   : > { %2362 = vmatmul.msk.bf16.gmra.mxu1 %vm1488_vm0, %v2478_v39 }
  0xa9   : > { %v683_v47 = vpop.f32.mrf.mxu0 }
  0xaa   : > { %v712_v50 = vpop.f32.mrf.mxu1 }
  0xab   : > { %v713_v52 = vadd.f32 %v712_v50, %v683_v47 }
  0xac   : > { %1351 = vmatmul.bf16.gmra.mxu2 %v2212_v46 }
  0xad   : > { %1409 = vmatmul.bf16.gmra.mxu0 %v2220_v49 }
  0xaf   : > { %1380 = vmatmul.bf16.gmra.mxu3 %v2216_v48  ;;  %v693_v53 = vpop.f32.mrf.mxu2 }
  0xb0   : > { %2363 = vmatmul.msk.bf16.gmra.mxu1 %vm1488_vm0, %v2479_v51 }
  0xb1   : > { %v685_v56 = vpop.f32.mrf.mxu0 }
  0xb2   : > { %v722_v54 = vpop.f32.mrf.mxu3  ;;  %v714_v57 = vpop.f32.mrf.mxu1 }
  0xb3   : > { %v723_v55 = vadd.f32 %v722_v54, %v693_v53  ;;  %v2948_v58 = vadd.f32 %v714_v57, %v685_v56 }
  0xb7   : > { %v695_v1 = vpop.f32.mrf.mxu2 }
  0xb9   : > { %v688_v5 = vpop.f32.mrf.mxu0 }
  0xba   : > { %v724_v2 = vpop.f32.mrf.mxu3  ;;  %v717_v8 = vpop.f32.mrf.mxu1 }
  0xbb   : > { %v2956_v4 = vadd.f32 %v724_v2, %v695_v1  ;;  %v718_v10 = vadd.f32 %v717_v8, %v688_v5 }
  0xbc   : > { %1356 = vmatmul.bf16.gmra.mxu2 %v2224_v3 }
  0xbd   : > { %1414 = vmatmul.bf16.gmra.mxu0 %v2232_v7 }
  0xbf   : > { %1385 = vmatmul.bf16.gmra.mxu3 %v2228_v6  ;;  %v698_v11 = vpop.f32.mrf.mxu2 }
  0xc0   : > { %2364 = vmatmul.msk.bf16.gmra.mxu1 %vm1488_vm0, %v2480_v9 }
  0xc1   : > { %v690_v14 = vpop.f32.mrf.mxu0 }
  0xc2   : > { %v727_v12 = vpop.f32.mrf.mxu3  ;;  %v719_v15 = vpop.f32.mrf.mxu1 }
  0xc3   : > { %v728_v13 = vadd.f32 %v727_v12, %v698_v11  ;;  %v2960_v16 = vadd.f32 %v719_v15, %v690_v14 }
  0xc7   : > { %v700_v17 = vpop.f32.mrf.mxu2 }
  0xca   : > { %v729_v18 = vpop.f32.mrf.mxu3  ;;  %v1007_v20 = vpop.f32.mrf.mxu0 }
  0xcb   : > { %v2962_v19 = vadd.f32 %v729_v18, %v700_v17 }
  0xcd   : > { %v1036_v21 = vpop.f32.mrf.mxu1 }
  0xcf   : > { %v741_v22 = vpop.f32.mrf.mxu2 }
  0xd0   : > { %v742_v23 = vadd.f32 %v741_v22, %v713_v52 }
  0xd2   : > { %v978_v24 = vpop.f32.mrf.mxu3  ;;  %v1009_v26 = vpop.f32.mrf.mxu0 }
  0xd3   : > { %v979_v25 = vadd.f32 %v978_v24, %v742_v23 }
  0xd5   : > { %v1038_v27 = vpop.f32.mrf.mxu1  ;;  %v1008_v28 = vadd.f32 %v1007_v20, %v979_v25 }
  0xd7   : > { %v1037_v29 = vadd.f32 %v1036_v21, %v1008_v28  ;;  %v743_v30 = vpop.f32.mrf.mxu2 }
  0xd8   : > { %v744_v8 = vadd.f32 %v743_v30, %v2948_v58 }
  0xda   : > { %v980_v31 = vpop.f32.mrf.mxu3  ;;  %v1012_v32 = vpop.f32.mrf.mxu0 }
  0xdd   : > { %v1041_v33 = vpop.f32.mrf.mxu1 }
  0xdf   : > { %v746_v34 = vpop.f32.mrf.mxu2 }
  0xe0   : > { %v747_v35 = vadd.f32 %v746_v34, %v718_v10 }
  0xe2   : > { %v983_v36 = vpop.f32.mrf.mxu3  ;;  %v2964_v38 = vpop.f32.mrf.mxu0 }
  0xe3   : > { %v984_v37 = vadd.f32 %v983_v36, %v747_v35 }
  0xe5   : > { %v2966_v39 = vpop.f32.mrf.mxu1  ;;  %v1013_v40 = vadd.f32 %v1012_v32, %v984_v37 }
  0xe7   : > { %v2968_v41 = vadd.f32 %v1041_v33, %v1013_v40  ;;  %v748_v42 = vpop.f32.mrf.mxu2 }
  0xe8   : > { %v749_v58 = vadd.f32 %v748_v42, %v2960_v16 }
  0xea   : > { %v985_v43 = vpop.f32.mrf.mxu3  ;;  %v1017_v44 = vpop.f32.mrf.mxu0 }
  0xeb   : > { %v986_v40 = vadd.f32 %v985_v43, %v749_v58 }
  0xed   : > { %v1046_v45 = vpop.f32.mrf.mxu1 }
  0xef   : > { %v751_v46 = vpop.f32.mrf.mxu2 }
  0xf0   : > { %v752_v47 = vadd.f32 %v751_v46, %v723_v55  ;;  %v1015_v46 = vadd.f32 %v2964_v38, %v986_v40 }
  0xf2   : > { %v988_v48 = vpop.f32.mrf.mxu3  ;;  %v2970_v50 = vpop.f32.mrf.mxu0 }
  0xf3   : > { %v989_v49 = vadd.f32 %v988_v48, %v752_v47 }
  0xf5   : > { %v2972_v51 = vpop.f32.mrf.mxu1  ;;  %v1018_v52 = vadd.f32 %v1017_v44, %v989_v49 }
  0xf7   : > { %v2974_v53 = vadd.f32 %v1046_v45, %v1018_v52  ;;  %v2976_v54 = vpop.f32.mrf.mxu2 }
  0xfa   : > { %v2978_v56 = vpop.f32.mrf.mxu3  ;;  %v1022_v57 = vpop.f32.mrf.mxu0 }
  0xfd   : > { %v1051_v59 = vpop.f32.mrf.mxu1 }
  0xff   : > { %v756_v60 = vpop.f32.mrf.mxu2 }
 0x100   : > { %v757_v61 = vadd.f32 %v756_v60, %v728_v13  ;;  %v981_v13 = vadd.f32 %v980_v31, %v744_v8  ;;  %v1044_v60 = vadd.f32 %v2966_v39, %v1015_v46 }
 0x102   : > { %v993_v62 = vpop.f32.mrf.mxu3  ;;  %v2980_v55 = vpop.f32.mrf.mxu0  ;;  %v1010_v17 = vadd.f32 %v1009_v26, %v981_v13 }
 0x103   : > { %v994_v63 = vadd.f32 %v993_v62, %v757_v61 }
 0x104   : > { %v1039_v24 = vadd.f32 %v1038_v27, %v1010_v17 }
 0x105   : > { %v2982_v0 = vpop.f32.mrf.mxu1  ;;  %v1023_v1 = vadd.f32 %v1022_v57, %v994_v63 }
 0x107   : > { %v2984_v2 = vadd.f32 %v1051_v59, %v1023_v1  ;;  %v2986_v3 = vpop.f32.mrf.mxu2 }
 0x10a   : > { %v2988_v5 = vpop.f32.mrf.mxu3  ;;  %v1400_v6 = vpop.f32.mrf.mxu0 }
 0x10d   : > { %v1510_v7 = vpop.f32.mrf.mxu1 }
 0x10f   : > { %v1342_v9 = vpop.f32.mrf.mxu2 }
 0x112   : > { %v1371_v10 = vpop.f32.mrf.mxu3  ;;  %v1402_v12 = vpop.f32.mrf.mxu0 }
 0x113   : > { %v1372_v11 = vadd.f32 %v1371_v10, %v1342_v9 }
 0x115   : > { %v1512_v14 = vpop.f32.mrf.mxu1  ;;  %v1401_v15 = vadd.f32 %v1400_v6, %v1372_v11 }
 0x117   : > { %v1344_v18 = vpop.f32.mrf.mxu2  ;;  %v1420_v20 = vadd.f32 %v1401_v15, %v1037_v29 }
 0x119   : > { %v1530_v28 = vadd.f32 %v1510_v7, %v1420_v20 }
 0x11a   : > { %v1373_v21 = vpop.f32.mrf.mxu3  ;;  %v1405_v23 = vpop.f32.mrf.mxu0 }
 0x11b   : > { %v1374_v22 = vadd.f32 %v1373_v21, %v1344_v18  ;;  %v1577_v35 = vmul.f32 %v1530_v28, %v1530_v28 }
 0x11d   : > { %v1403_v25 = vadd.f32 %v1402_v12, %v1374_v22  ;;  %v1515_v32 = vpop.f32.mrf.mxu1  ;;  %v2574_v12 = vmov 0.0  }
 0x11e   : > { %1558 = vst [vmem:[%s3009_s12] sm:$0x1] %v2574_v12 }
 0x11f   : > { %v1421_v33 = vadd.f32 %v1403_v25, %v1039_v24  ;;  %v1347_v34 = vpop.f32.mrf.mxu2  ;;  %1559 = vst [vmem:[%s3015_s15] sm:$0x1] %v2574_v12 }
 0x121   : > { %v1531_v30 = vadd.f32 %v1512_v14, %v1421_v33 }
 0x122   : > { %v1376_v26 = vpop.f32.mrf.mxu3  ;;  %v1407_v37 = vpop.f32.mrf.mxu0 }
 0x123   : > { %v2488_v29 = vpack.c.bf16 %v1531_v30, %v1530_v28  ;;  %v1561_v31 = vadd.f32 %v1531_v30, %v1530_v28  ;;  %v1578_v27 = vmul.f32 %v1531_v30, %v1531_v30  ;;  %v1377_v36 = vadd.f32 %v1376_v26, %v1347_v34 }
 0x125   : > { %2489 = vst [vmem:[%s2997_s8] sm:$0xff] %v2488_v29   ;;  %v1585_v44 = vadd.f32 %v1578_v27, %v1577_v35  ;;  %v1406_v16 = vadd.f32 %v1405_v23, %v1377_v36  ;;  %v1517_v45 = vpop.f32.mrf.mxu1 }
 0x127   : > { %v1422_v42 = vadd.f32 %v1406_v16, %v2968_v41  ;;  %v1349_v48 = vpop.f32.mrf.mxu2  ;;  %v754_v41 = vadd.f32 %v2976_v54, %v2956_v4 }
 0x129   : > { %v1532_v47 = vadd.f32 %v1515_v32, %v1422_v42  ;;  %v991_v4 = vadd.f32 %v2978_v56, %v754_v41 }
 0x12a   : > { %v1378_v49 = vpop.f32.mrf.mxu3  ;;  %v1410_v62 = vpop.f32.mrf.mxu0 }
 0x12b   : > { %v1562_v52 = vadd.f32 %v1561_v31, %v1532_v47  ;;  %v1579_v57 = vmul.f32 %v1532_v47, %v1532_v47  ;;  %v1379_v59 = vadd.f32 %v1378_v49, %v1349_v48  ;;  %v1020_v15 = vadd.f32 %v2970_v50, %v991_v4 }
 0x12d   : > { %v1586_v61 = vadd.f32 %v1585_v44, %v1579_v57  ;;  %v1408_v43 = vadd.f32 %v1407_v37, %v1379_v59  ;;  %v1520_v6 = vpop.f32.mrf.mxu1  ;;  %v1049_v56 = vadd.f32 %v2972_v51, %v1020_v15 }
 0x12f   : > { %v1423_v63 = vadd.f32 %v1408_v43, %v1044_v60  ;;  %v1352_v38 = vpop.f32.mrf.mxu2 }
 0x131   : > { %v1533_v1 = vadd.f32 %v1517_v45, %v1423_v63 }
 0x132   : > { %v1381_v7 = vpop.f32.mrf.mxu3  ;;  %v1412_v14 = vpop.f32.mrf.mxu0 }
 0x133   : > { %v2493_v8 = vpack.c.bf16 %v1533_v1, %v1532_v47  ;;  %v1563_v9 = vadd.f32 %v1562_v52, %v1533_v1  ;;  %v1580_v10 = vmul.f32 %v1533_v1, %v1533_v1  ;;  %v1382_v11 = vadd.f32 %v1381_v7, %v1352_v38  ;;  %v1560_v7 = vld [vmem:[%s3009_s12] sm:$0x1] }
 0x135   : > { %2505 = vst [vmem:[%s2997_s8 + $0x8] sm:$0xff] %v2493_v8   ;;  %v1587_v39 = vadd.f32 %v1586_v61, %v1580_v10  ;;  %v1411_v54 = vadd.f32 %v1410_v62, %v1382_v11  ;;  %v1522_v24 = vpop.f32.mrf.mxu1  ;;  %v1576_v10 = vld [vmem:[%s3015_s15] sm:$0x1] }
 0x137   : > { %v1424_v13 = vadd.f32 %v1411_v54, %v2974_v53  ;;  %v1354_v18 = vpop.f32.mrf.mxu2  ;;  %v759_v53 = vadd.f32 %v2986_v3, %v2962_v19 }
 0x139   : > { %v1534_v17 = vadd.f32 %v1520_v6, %v1424_v13  ;;  %v996_v31 = vadd.f32 %v2988_v5, %v759_v53 }
 0x13a   : > { %v1383_v20 = vpop.f32.mrf.mxu3  ;;  %v1415_v30 = vpop.f32.mrf.mxu0 }
 0x13b   : > { %v1564_v21 = vadd.f32 %v1563_v9, %v1534_v17  ;;  %v1581_v22 = vmul.f32 %v1534_v17, %v1534_v17  ;;  %v1384_v23 = vadd.f32 %v1383_v20, %v1354_v18  ;;  %v1025_v40 = vadd.f32 %v2980_v55, %v996_v31 }
 0x13d   : > { %v1588_v25 = vadd.f32 %v1587_v39, %v1581_v22  ;;  %v1413_v28 = vadd.f32 %v1412_v14, %v1384_v23  ;;  %v1525_v51 = vpop.f32.mrf.mxu1  ;;  %v1054_v47 = vadd.f32 %v2982_v0, %v1025_v40 }
 0x13f   : > { %v1425_v32 = vadd.f32 %v1413_v28, %v1049_v56  ;;  %v1357_v58 = vpop.f32.mrf.mxu2 }
 0x141   : > { %v1535_v33 = vadd.f32 %v1522_v24, %v1425_v32 }
 0x142   : > { %v1386_v50 = vpop.f32.mrf.mxu3  ;;  %v1417_v46 = vpop.f32.mrf.mxu0 }
 0x143   : > { %v2498_v34 = vpack.c.bf16 %v1535_v33, %v1534_v17  ;;  %v1565_v35 = vadd.f32 %v1564_v21, %v1535_v33  ;;  %v1582_v26 = vmul.f32 %v1535_v33, %v1535_v33  ;;  %v1387_v29 = vadd.f32 %v1386_v50, %v1357_v58 }
 0x145   : > { %2506 = vst [vmem:[%s2997_s8 + $0x10] sm:$0xff] %v2498_v34   ;;  %v1589_v27 = vadd.f32 %v1588_v25, %v1582_v26  ;;  %v1416_v36 = vadd.f32 %v1415_v30, %v1387_v29  ;;  %v1527_v52 = vpop.f32.mrf.mxu1 }
 0x147   : > { %v1426_v37 = vadd.f32 %v1416_v36, %v2984_v2  ;;  %v1359_v19 = vpop.f32.mrf.mxu2 }
 0x149   : > { %v1536_v44 = vadd.f32 %v1525_v51, %v1426_v37 }
 0x14a   : > { %v1388_v3 = vpop.f32.mrf.mxu3 }
 0x14b   : > { %v1566_v16 = vadd.f32 %v1565_v35, %v1536_v44  ;;  %v1583_v42 = vmul.f32 %v1536_v44, %v1536_v44  ;;  %v1389_v45 = vadd.f32 %v1388_v3, %v1359_v19 }
 0x14d   : > { %v1590_v48 = vadd.f32 %v1589_v27, %v1583_v42  ;;  %v1418_v5 = vadd.f32 %v1417_v46, %v1389_v45 }
 0x14f   : > { %v1427_v49 = vadd.f32 %v1418_v5, %v1054_v47 }
 0x151   : > { %v1537_v57 = vadd.f32 %v1527_v52, %v1427_v49 }
 0x153   : > { %v2503_v59 = vpack.c.bf16 %v1537_v57, %v1536_v44  ;;  %v1567_v2 = vadd.f32 %v1566_v16, %v1537_v57  ;;  %v1584_v55 = vmul.f32 %v1537_v57, %v1537_v57 }
 0x155   : > { %2507 = vst [vmem:[%s2997_s8 + $0x18] sm:$0xff] %v2503_v59   ;;  %v1568_v60 = vrot.slane %v1567_v2, 4  ;;  %v1591_v61 = vadd.f32 %v1590_v48, %v1584_v55 }
 0x157   : > { %v1569_v43 = vadd.f32 %v1568_v60, %v1567_v2  ;;  %v1592_v62 = vrot.slane %v1591_v61, 4 }
 0x159   : > { %v1570_v63 = vrot.slane %v1569_v43, 2  ;;  %v1593_v41 = vadd.f32 %v1592_v62, %v1591_v61 }
 0x15b   : > { %v1571_v0 = vadd.f32 %v1570_v63, %v1569_v43  ;;  %v1594_v1 = vrot.slane %v1593_v41, 2 }
 0x15d   : > { %v1572_v38 = vrot.slane %v1571_v0, 1  ;;  %v1595_v6 = vadd.f32 %v1594_v1, %v1593_v41 }
 0x15f   : > { %v1573_v8 = vadd.f32 %v1572_v38, %v1571_v0  ;;  %v1596_v9 = vrot.slane %v1595_v6, 1 }
 0x161   : > { %v1574_v11 = vadd.f32 %v1573_v8, %v1560_v7  ;;  %v1597_v4 = vadd.f32 %v1596_v9, %v1595_v6 }
 0x163   : > { %1575 = vst [vmem:[%s3009_s12] sm:$0x1] %v1574_v11  ;;  %v1598_v39 = vadd.f32 %v1597_v4, %v1576_v10 }
 0x165   : > { %1599 = vst [vmem:[%s3015_s15] sm:$0x1] %v1598_v39 }
 0x166 PF: > { %s17_s23 = sadd.s32 1, %s2572_s23   ;;  %s3052_s21 = smov %s2568_s22 }
 0x167   : > { %p14_p5 = scmp.ge.s32.totalorder %s17_s23, 4   ;;  %s3053_s22 = smov %s3055_s24 }
 0x169   :  { %16 = sbr.rel (!%p14_p5) target bundleno = 2 (0x2), region = 102 }

</bundles_post_ra>
